<compile_context>
chip_gen: v5e
topology: v5e:2x2
jax: 0.10.0
libtpu: 0.0.40
codegen_flags: <defaults>
</compile_context>

<pallas_src>
import functools

import jax
import jax.numpy as jnp
from jax.experimental import pallas as pl
from jax.experimental.pallas import tpu as pltpu

# ----------------------------- small config -----------------------------
BATCH = 16                              # folded into matmul M-dim
B_BLK = 8                               # images per grid step -> M = B_BLK*SEQ = 128
CHANNELS = 3
IMAGE = 16
PATCH = 4
SEQ = (IMAGE // PATCH) ** 2             # 16 patches per image
HIDDEN = 128
HEADS = 4
HEAD_DIM = HIDDEN // HEADS              # 32
MLP = 256
LAYERS = 2
EPS = 1e-6                              # Siglip layer_norm_eps
PATCH_DIM = CHANNELS * PATCH * PATCH    # 48
PATCH_DIM_PAD = 128                     # zero-pad K to one full lane width


# --------------------------- shared math helpers ---------------------------
def _layernorm(x, g, b):
    mu = jnp.mean(x, axis=-1, keepdims=True)
    var = jnp.mean((x - mu) ** 2, axis=-1, keepdims=True)
    return (x - mu) * jax.lax.rsqrt(var + EPS) * g + b


def _gelu_tanh(x):
    # gelu_pytorch_tanh (Siglip hidden_act), f32 math
    c = 0.7978845608028654  # sqrt(2/pi)
    return 0.5 * x * (1.0 + jnp.tanh(c * (x + 0.044715 * x * x * x)))


# ------------------------------ fused kernel ------------------------------
def _siglip_kernel(p_ref, pw_ref, posb_ref,
                   ln1g_ref, ln1b_ref, wqkv_ref, bqkv_ref, wo_ref, bo_ref,
                   ln2g_ref, ln2b_ref, w1_ref, b1_ref, w2_ref, b2_ref,
                   postg_ref, postb_ref, o_ref, x_ref,
                   *, num_heads, b_blk, seq):
    bf = jnp.bfloat16
    f32 = jnp.float32

    l = pl.program_id(1)
    last = pl.num_programs(1) - 1

    M = b_blk * seq
    D = x_ref.shape[-1]
    dh = D // num_heads
    scale = dh ** -0.5

    # ---- patch embedding only on the first layer step of each batch tile ----
    @pl.when(l == 0)
    def _():
        patches = p_ref[...].reshape(M, p_ref.shape[-1]).astype(bf)   # (M, Ppad)
        emb = jnp.dot(patches, pw_ref[...], preferred_element_type=f32)
        x_ref[...] = emb + posb_ref[...]                               # pos + bias precomputed

    x = x_ref[...]                                                     # (M, D) f32

    # --- self-attention block (pre-LN, residual) ---
    h = _layernorm(x, ln1g_ref[0], ln1b_ref[0]).astype(bf)
    qkv = jnp.dot(h, wqkv_ref[0], preferred_element_type=f32) + bqkv_ref[0]  # (M, 3D)
    q3 = ((qkv[:, :D] * scale).astype(bf)).reshape(b_blk, seq, D)      # scale folded into q
    k3 = (qkv[:, D:2 * D].astype(bf)).reshape(b_blk, seq, D)
    v3 = (qkv[:, 2 * D:].astype(bf)).reshape(b_blk, seq, D)

    wo_l = wo_ref[0]                                                   # (D, D) bf16
    attn = jnp.zeros((M, D), f32)
    for hd in range(num_heads):                                        # per-head, no mask
        sl = slice(hd * dh, (hd + 1) * dh)
        s = jnp.einsum('bqd,bkd->bqk', q3[..., sl], k3[..., sl],
                       preferred_element_type=f32)                     # (B_blk, S, S)
        s = s - jnp.max(s, axis=-1, keepdims=True)
        p = jnp.exp(s)
        p = p * pl.reciprocal(jnp.sum(p, axis=-1, keepdims=True), approx=True)
        ctx = jnp.einsum('bqk,bkd->bqd', p.astype(bf), v3[..., sl],
                         preferred_element_type=f32)                   # (B_blk, S, dh)
        # accumulate straight into the output projection (no concat repack)
        attn = attn + jnp.dot(ctx.reshape(M, dh).astype(bf), wo_l[sl, :],
                              preferred_element_type=f32)

    x = x + attn + bo_ref[0]

    # --- MLP block (pre-LN, residual) ---
    h = _layernorm(x, ln2g_ref[0], ln2b_ref[0]).astype(bf)
    h = jnp.dot(h, w1_ref[0], preferred_element_type=f32) + b1_ref[0]
    h = _gelu_tanh(h).astype(bf)
    h = jnp.dot(h, w2_ref[0], preferred_element_type=f32) + b2_ref[0]
    x = x + h
    x_ref[...] = x

    # --- post LayerNorm + mean over sequence (last layer step only) ---
    @pl.when(l == last)
    def _():
        y = _layernorm(x, postg_ref[...], postb_ref[...])
        o_ref[...] = jnp.mean(y.reshape(b_blk, seq, D), axis=1)        # (B_blk, D)


# ------------------------------- wrapper -------------------------------
def _extract_patches(x):
    """(B, C, H, W) -> (B, S, Ppad) with per-patch pixels in (c, ph, pw) order
    (the Conv2d(kernel=p, stride=p) dot order), zero-padded to 128 lanes."""
    B, C, H, W = x.shape
    p = PATCH
    gh, gw = H // p, W // p
    patches = x.reshape(B, C, gh, p, gw, p)
    patches = patches.transpose(0, 2, 4, 1, 3, 5).reshape(B, gh * gw, C * p * p)
    pad = PATCH_DIM_PAD - C * p * p
    if pad:
        patches = jnp.pad(patches, ((0, 0), (0, 0), (0, pad)))
    return patches


def siglip_forward(x, params):
    """x: (B, C, H, W) float32 -> (B, HIDDEN) float32 pooled features."""
    patches = _extract_patches(x)                    # (B, S, Ppad)
    B, S, Pp = patches.shape
    assert B % B_BLK == 0, "batch must be a multiple of B_BLK"
    BT = B // B_BLK
    D = HIDDEN
    M = B_BLK * S

    # host-side constant: positional embedding tiled per image + patch bias
    posb = jnp.tile(params["pos"], (B_BLK, 1)) + params["patch_b"]     # (M, D) f32

    kern = functools.partial(_siglip_kernel, num_heads=HEADS, b_blk=B_BLK, seq=S)

    def const_spec(a):
        n = a.ndim
        return pl.BlockSpec(a.shape, lambda b, l, n=n: (0,) * n)

    def layer_spec(a):                               # stream one layer's block per step
        n = a.ndim
        return pl.BlockSpec((1,) + a.shape[1:], lambda b, l, n=n: (l,) + (0,) * (n - 1))

    args = [
        patches, params["patch_w"], posb,
        params["ln1_g"], params["ln1_b"], params["wqkv"], params["bqkv"],
        params["wo"], params["bo"], params["ln2_g"], params["ln2_b"],
        params["w1"], params["b1"], params["w2"], params["b2"],
        params["post_g"], params["post_b"],
    ]
    in_specs = [pl.BlockSpec((B_BLK, S, Pp), lambda b, l: (b, 0, 0)),
                const_spec(params["patch_w"]),
                const_spec(posb)]
    in_specs += [layer_spec(a) for a in args[3:15]]
    in_specs += [const_spec(params["post_g"]), const_spec(params["post_b"])]

    out = pl.pallas_call(
        kern,
        out_shape=jax.ShapeDtypeStruct((B, D), jnp.float32),
        grid=(BT, LAYERS),
        in_specs=in_specs,
        out_specs=pl.BlockSpec((B_BLK, D), lambda b, l: (b, 0)),
        scratch_shapes=[pltpu.VMEM((M, D), jnp.float32)],              # carried activations
        compiler_params=pltpu.CompilerParams(
            dimension_semantics=("parallel", "arbitrary")),
    )(*args)
    return out


# ------------------------- reference (plain JAX) -------------------------
# Mirrors the kernel's numerics (bf16 MXU inputs, f32 accumulation & elementwise).
def reference_forward(x, params):
    bf = jnp.bfloat16
    f32 = jnp.float32

    def mm(a, b):
        return jnp.dot(a.astype(bf), b.astype(bf), preferred_element_type=f32)

    B = x.shape[0]
    D, H, dh = HIDDEN, HEADS, HEAD_DIM
    patches = _extract_patches(x)
    h = mm(patches, params["patch_w"]) + params["patch_b"] + params["pos"]
    for l in range(LAYERS):
        r = _layernorm(h, params["ln1_g"][l], params["ln1_b"][l])
        qkv = mm(r, params["wqkv"][l]) + params["bqkv"][l]             # (B, S, 3D)
        q = (qkv[..., :D] * (dh ** -0.5)).astype(bf)
        k = qkv[..., D:2 * D].astype(bf)
        v = qkv[..., 2 * D:].astype(bf)
        q = q.reshape(B, SEQ, H, dh).transpose(0, 2, 1, 3)
        k = k.reshape(B, SEQ, H, dh).transpose(0, 2, 1, 3)
        v = v.reshape(B, SEQ, H, dh).transpose(0, 2, 1, 3)
        s = jnp.einsum("bhqd,bhkd->bhqk", q, k, preferred_element_type=f32)
        a = jax.nn.softmax(s, axis=-1)
        ctx = jnp.einsum("bhqk,bhkd->bhqd", a.astype(bf), v, preferred_element_type=f32)
        ctx = ctx.transpose(0, 2, 1, 3).reshape(B, SEQ, D)
        h = h + mm(ctx, params["wo"][l]) + params["bo"][l]
        r = _layernorm(h, params["ln2_g"][l], params["ln2_b"][l])
        r = _gelu_tanh(mm(r, params["w1"][l]) + params["b1"][l])
        h = h + mm(r, params["w2"][l]) + params["b2"][l]
    h = _layernorm(h, params["post_g"], params["post_b"])
    return h.mean(axis=1)


# ------------------------------ param init ------------------------------
def init_params(key):
    keys = iter(jax.random.split(key, 64))

    def nrm(shape, scale=0.02):
        return (scale * jax.random.normal(next(keys), shape)).astype(jnp.float32)

    D, M, S, L = HIDDEN, MLP, SEQ, LAYERS
    pw = nrm((PATCH_DIM, D), 0.05)
    pw = jnp.pad(pw, ((0, PATCH_DIM_PAD - PATCH_DIM), (0, 0)))         # zero pad rows
    params = {
        "patch_w": pw.astype(jnp.bfloat16),                            # (Ppad, D) bf16
        "patch_b": nrm((1, D)),
        "pos": nrm((S, D)),
        "post_g": jnp.ones((1, D), jnp.float32),
        "post_b": jnp.zeros((1, D), jnp.float32),
        # stacked per-layer params (L, ...), streamed one layer per grid step
        "ln1_g": jnp.ones((L, 1, D), jnp.float32),
        "ln1_b": jnp.zeros((L, 1, D), jnp.float32),
        "wqkv": nrm((L, D, 3 * D)).astype(jnp.bfloat16),               # fused q|k|v
        "bqkv": nrm((L, 1, 3 * D)),
        "wo": nrm((L, D, D)).astype(jnp.bfloat16),
        "bo": nrm((L, 1, D)),
        "ln2_g": jnp.ones((L, 1, D), jnp.float32),
        "ln2_b": jnp.zeros((L, 1, D), jnp.float32),
        "w1": nrm((L, D, M)).astype(jnp.bfloat16),
        "b1": nrm((L, 1, M)),
        "w2": nrm((L, M, D)).astype(jnp.bfloat16),
        "b2": nrm((L, 1, D)),
    }
    return params


# TODO(synk): the HF AutoProcessor-based `transform()` (PIL resize / normalize) is
# host-side preprocessing, not part of forward(); it is not implemented here.

if __name__ == "__main__":
    key = jax.random.PRNGKey(0)
    kx, kp = jax.random.split(key)
    x = jax.random.normal(kx, (BATCH, CHANNELS, IMAGE, IMAGE), dtype=jnp.float32)
    params = init_params(kp)

    out = jax.block_until_ready(siglip_forward(x, params))
    assert out.shape == (BATCH, HIDDEN) and out.dtype == jnp.float32

    ref = reference_forward(x, params)
    max_err = float(jnp.max(jnp.abs(out - ref)))
    # bf16 matmuls + approx softmax reciprocal -> slightly looser tolerance than f32
    assert max_err < 1e-2, f"mismatch vs reference, max abs err = {max_err}"

    print("KERNEL_OK")
</pallas_src>

<mosaic_0001>
module attributes {stable_mosaic.version = 11 : i64} {
  func.func @_siglip_kernel(%arg0: i32, %arg1: i32, %arg2: memref<8x16x128xf32, #tpu.memory_space<vmem>>, %arg3: memref<128x128xbf16, #tpu.memory_space<vmem>>, %arg4: memref<128x128xf32, #tpu.memory_space<vmem>>, %arg5: memref<1x1x128xf32, #tpu.memory_space<vmem>>, %arg6: memref<1x1x128xf32, #tpu.memory_space<vmem>>, %arg7: memref<1x128x384xbf16, #tpu.memory_space<vmem>>, %arg8: memref<1x1x384xf32, #tpu.memory_space<vmem>>, %arg9: memref<1x128x128xbf16, #tpu.memory_space<vmem>>, %arg10: memref<1x1x128xf32, #tpu.memory_space<vmem>>, %arg11: memref<1x1x128xf32, #tpu.memory_space<vmem>>, %arg12: memref<1x1x128xf32, #tpu.memory_space<vmem>>, %arg13: memref<1x128x256xbf16, #tpu.memory_space<vmem>>, %arg14: memref<1x1x256xf32, #tpu.memory_space<vmem>>, %arg15: memref<1x256x128xbf16, #tpu.memory_space<vmem>>, %arg16: memref<1x1x128xf32, #tpu.memory_space<vmem>>, %arg17: memref<1x128xf32, #tpu.memory_space<vmem>>, %arg18: memref<1x128xf32, #tpu.memory_space<vmem>>, %arg19: memref<8x128xf32, #tpu.memory_space<vmem>>, %arg20: memref<128x128xf32, #tpu.memory_space<vmem>>) attributes {dimension_semantics = [#tpu.dimension_semantics<parallel>, #tpu.dimension_semantics<arbitrary>], iteration_bounds = array<i64: 2, 2>, scalar_prefetch = 0 : i64, scratch_operands = 1 : i64, tpu.core_type = #tpu.core_type<tc>, window_params = [{transform_indices = @transform_0, window_bounds = array<i64: 8, 16, 128>}, {pipeline_mode = #tpu.pipeline_mode<synchronous>, transform_indices = @transform_1, window_bounds = array<i64: 128, 128>}, {pipeline_mode = #tpu.pipeline_mode<synchronous>, transform_indices = @transform_2, window_bounds = array<i64: 128, 128>}, {transform_indices = @transform_3, window_bounds = array<i64: 1, 1, 128>}, {transform_indices = @transform_4, window_bounds = array<i64: 1, 1, 128>}, {transform_indices = @transform_5, window_bounds = array<i64: 1, 128, 384>}, {transform_indices = @transform_6, window_bounds = array<i64: 1, 1, 384>}, {transform_indices = @transform_7, window_bounds = array<i64: 1, 128, 128>}, {transform_indices = @transform_8, window_bounds = array<i64: 1, 1, 128>}, {transform_indices = @transform_9, window_bounds = array<i64: 1, 1, 128>}, {transform_indices = @transform_10, window_bounds = array<i64: 1, 1, 128>}, {transform_indices = @transform_11, window_bounds = array<i64: 1, 128, 256>}, {transform_indices = @transform_12, window_bounds = array<i64: 1, 1, 256>}, {transform_indices = @transform_13, window_bounds = array<i64: 1, 256, 128>}, {transform_indices = @transform_14, window_bounds = array<i64: 1, 1, 128>}, {pipeline_mode = #tpu.pipeline_mode<synchronous>, transform_indices = @transform_15, window_bounds = array<i64: 1, 128>}, {pipeline_mode = #tpu.pipeline_mode<synchronous>, transform_indices = @transform_16, window_bounds = array<i64: 1, 128>}, {transform_indices = @transform_17, window_bounds = array<i64: 8, 128>}]} {
    %c0_i32 = arith.constant 0 : i32
    %0 = arith.cmpi eq, %arg1, %c0_i32 : i32
    %1 = arith.extui %0 : i1 to i32
    %c0_i32_0 = arith.constant 0 : i32
    %2 = arith.cmpi ne, %1, %c0_i32_0 : i32
    scf.if %2 {
      %c0_79 = arith.constant 0 : index
      %c0_80 = arith.constant 0 : index
      %c0_81 = arith.constant 0 : index
      %201 = vector.load %arg2[%c0_79, %c0_80, %c0_81] : memref<8x16x128xf32, #tpu.memory_space<vmem>>, vector<8x16x128xf32>
      %202 = vector.shape_cast %201 : vector<8x16x128xf32> to vector<128x128xf32>
      %203 = arith.truncf %202 : vector<128x128xf32> to vector<128x128xbf16>
      %c0_82 = arith.constant 0 : index
      %c0_83 = arith.constant 0 : index
      %204 = vector.load %arg3[%c0_82, %c0_83] : memref<128x128xbf16, #tpu.memory_space<vmem>>, vector<128x128xbf16>
      %cst_84 = arith.constant dense<0.000000e+00> : vector<128x128xf32>
      %205 = tpu.matmul %203, %204, %cst_84 {dimension_numbers = #tpu.dot_dimension_numbers<[1], [0], [0], [1], [0, 0, 1, 1], [], []>} : vector<128x128xbf16>, vector<128x128xbf16>, vector<128x128xf32> -> vector<128x128xf32>
      %c0_85 = arith.constant 0 : index
      %c0_86 = arith.constant 0 : index
      %206 = vector.load %arg4[%c0_85, %c0_86] : memref<128x128xf32, #tpu.memory_space<vmem>>, vector<128x128xf32>
      %207 = arith.addf %205, %206 : vector<128x128xf32>
      %c0_87 = arith.constant 0 : index
      %c0_88 = arith.constant 0 : index
      %208 = vector.load %arg20[%c0_87, %c0_88] : memref<128x128xf32, #tpu.memory_space<vmem>>, vector<128x128xf32>
      tpu.vector_store %arg20[%c0_87, %c0_88], %207 {strides = array<i32>} : memref<128x128xf32, #tpu.memory_space<vmem>>, vector<128x128xf32>,
    } else {
    }
    %c0 = arith.constant 0 : index
    %c0_1 = arith.constant 0 : index
    %3 = vector.load %arg20[%c0, %c0_1] : memref<128x128xf32, #tpu.memory_space<vmem>>, vector<128x128xf32>
    %c0_2 = arith.constant 0 : index
    %c0_3 = arith.constant 0 : index
    %c0_4 = arith.constant 0 : index
    %4 = vector.load %arg5[%c0_2, %c0_3, %c0_4] : memref<1x1x128xf32, #tpu.memory_space<vmem>>, vector<1x1x128xf32>
    %5 = vector.shape_cast %4 : vector<1x1x128xf32> to vector<1x128xf32>
    %c0_5 = arith.constant 0 : index
    %c0_6 = arith.constant 0 : index
    %c0_7 = arith.constant 0 : index
    %6 = vector.load %arg6[%c0_5, %c0_6, %c0_7] : memref<1x1x128xf32, #tpu.memory_space<vmem>>, vector<1x1x128xf32>
    %7 = vector.shape_cast %6 : vector<1x1x128xf32> to vector<1x128xf32>
    %cst = arith.constant dense<0.000000e+00> : vector<128xf32>
    %8 = vector.multi_reduction <add>, %3, %cst [1] : vector<128x128xf32> to vector<128xf32>
    %9 = vector.shape_cast %8 : vector<128xf32> to vector<128x1xf32>
    %cst_8 = arith.constant 1.280000e+02 : f32
    %10 = vector.broadcast %cst_8 : f32 to vector<128x1xf32>
    %11 = arith.divf %9, %10 : vector<128x1xf32>
    %12 = vector.broadcast %11 : vector<128x1xf32> to vector<128x128xf32>
    %13 = arith.subf %3, %12 : vector<128x128xf32>
    %14 = arith.mulf %13, %13 : vector<128x128xf32>
    %cst_9 = arith.constant dense<0.000000e+00> : vector<128xf32>
    %15 = vector.multi_reduction <add>, %14, %cst_9 [1] : vector<128x128xf32> to vector<128xf32>
    %16 = vector.shape_cast %15 : vector<128xf32> to vector<128x1xf32>
    %cst_10 = arith.constant 1.280000e+02 : f32
    %17 = vector.broadcast %cst_10 : f32 to vector<128x1xf32>
    %18 = arith.divf %16, %17 : vector<128x1xf32>
    %19 = vector.broadcast %11 : vector<128x1xf32> to vector<128x128xf32>
    %20 = arith.subf %3, %19 : vector<128x128xf32>
    %cst_11 = arith.constant 9.99999997E-7 : f32
    %21 = vector.broadcast %cst_11 : f32 to vector<128x1xf32>
    %22 = arith.addf %18, %21 : vector<128x1xf32>
    %23 = math.rsqrt %22 : vector<128x1xf32>
    %24 = vector.broadcast %23 : vector<128x1xf32> to vector<128x128xf32>
    %25 = arith.mulf %20, %24 : vector<128x128xf32>
    %26 = vector.broadcast %5 : vector<1x128xf32> to vector<128x128xf32>
    %27 = arith.mulf %25, %26 : vector<128x128xf32>
    %28 = vector.broadcast %7 : vector<1x128xf32> to vector<128x128xf32>
    %29 = arith.addf %27, %28 : vector<128x128xf32>
    %30 = arith.truncf %29 : vector<128x128xf32> to vector<128x128xbf16>
    %c0_12 = arith.constant 0 : index
    %c0_13 = arith.constant 0 : index
    %c0_14 = arith.constant 0 : index
    %31 = vector.load %arg7[%c0_12, %c0_13, %c0_14] : memref<1x128x384xbf16, #tpu.memory_space<vmem>>, vector<1x128x384xbf16>
    %32 = vector.shape_cast %31 : vector<1x128x384xbf16> to vector<128x384xbf16>
    %cst_15 = arith.constant dense<0.000000e+00> : vector<128x384xf32>
    %33 = tpu.matmul %30, %32, %cst_15 {dimension_numbers = #tpu.dot_dimension_numbers<[1], [0], [0], [1], [0, 0, 1, 1], [], []>} : vector<128x128xbf16>, vector<128x384xbf16>, vector<128x384xf32> -> vector<128x384xf32>
    %c0_16 = arith.constant 0 : index
    %c0_17 = arith.constant 0 : index
    %c0_18 = arith.constant 0 : index
    %34 = vector.load %arg8[%c0_16, %c0_17, %c0_18] : memref<1x1x384xf32, #tpu.memory_space<vmem>>, vector<1x1x384xf32>
    %35 = vector.shape_cast %34 : vector<1x1x384xf32> to vector<1x384xf32>
    %36 = vector.broadcast %35 : vector<1x384xf32> to vector<128x384xf32>
    %37 = arith.addf %33, %36 : vector<128x384xf32>
    %38 = vector.extract_strided_slice %37 {offsets = [0, 0], sizes = [128, 128], strides = [1, 1]} : vector<128x384xf32> to vector<128x128xf32>
    %cst_19 = arith.constant 0.176776692 : f32
    %39 = vector.broadcast %cst_19 : f32 to vector<128x128xf32>
    %40 = arith.mulf %38, %39 : vector<128x128xf32>
    %41 = arith.truncf %40 : vector<128x128xf32> to vector<128x128xbf16>
    %42 = vector.shape_cast %41 : vector<128x128xbf16> to vector<8x16x128xbf16>
    %43 = vector.extract_strided_slice %37 {offsets = [0, 128], sizes = [128, 128], strides = [1, 1]} : vector<128x384xf32> to vector<128x128xf32>
    %44 = arith.truncf %43 : vector<128x128xf32> to vector<128x128xbf16>
    %45 = vector.shape_cast %44 : vector<128x128xbf16> to vector<8x16x128xbf16>
    %46 = vector.extract_strided_slice %37 {offsets = [0, 256], sizes = [128, 128], strides = [1, 1]} : vector<128x384xf32> to vector<128x128xf32>
    %47 = arith.truncf %46 : vector<128x128xf32> to vector<128x128xbf16>
    %48 = vector.shape_cast %47 : vector<128x128xbf16> to vector<8x16x128xbf16>
    %c0_20 = arith.constant 0 : index
    %c0_21 = arith.constant 0 : index
    %c0_22 = arith.constant 0 : index
    %49 = vector.load %arg9[%c0_20, %c0_21, %c0_22] : memref<1x128x128xbf16, #tpu.memory_space<vmem>>, vector<1x128x128xbf16>
    %50 = vector.shape_cast %49 : vector<1x128x128xbf16> to vector<128x128xbf16>
    %cst_23 = arith.constant 0.000000e+00 : f32
    %51 = vector.broadcast %cst_23 : f32 to vector<128x128xf32>
    %52 = vector.extract_strided_slice %42 {offsets = [0, 0, 0], sizes = [8, 16, 32], strides = [1, 1, 1]} : vector<8x16x128xbf16> to vector<8x16x32xbf16>
    %53 = vector.extract_strided_slice %45 {offsets = [0, 0, 0], sizes = [8, 16, 32], strides = [1, 1, 1]} : vector<8x16x128xbf16> to vector<8x16x32xbf16>
    "tpu.trace_start"() <{level = 10 : i32, message = "bqd,bkd->bqk"}> : () -> ()
    %cst_24 = arith.constant dense<0.000000e+00> : vector<8x16x16xf32>
    %54 = tpu.matmul %52, %53, %cst_24 {dimension_numbers = #tpu.dot_dimension_numbers<[2], [2], [1], [1], [0, 0, 0, 1, 1, 1], [0], [0]>} : vector<8x16x32xbf16>, vector<8x16x32xbf16>, vector<8x16x16xf32> -> vector<8x16x16xf32>
    "tpu.trace_stop"() : () -> ()
    %cst_25 = arith.constant dense<0xFF800000> : vector<8x16xf32>
    %55 = vector.multi_reduction <maximumf>, %54, %cst_25 [2] : vector<8x16x16xf32> to vector<8x16xf32>
    %56 = vector.shape_cast %55 : vector<8x16xf32> to vector<8x16x1xf32>
    %57 = vector.broadcast %56 : vector<8x16x1xf32> to vector<8x16x16xf32>
    %58 = arith.subf %54, %57 : vector<8x16x16xf32>
    %59 = math.exp %58 : vector<8x16x16xf32>
    %cst_26 = arith.constant dense<0.000000e+00> : vector<8x16xf32>
    %60 = vector.multi_reduction <add>, %59, %cst_26 [2] : vector<8x16x16xf32> to vector<8x16xf32>
    %61 = vector.shape_cast %60 : vector<8x16xf32> to vector<8x16x1xf32>
    %62 = tpu.reciprocal %61 {approx = true} : vector<8x16x1xf32> -> vector<8x16x1xf32>
    %63 = vector.broadcast %62 : vector<8x16x1xf32> to vector<8x16x16xf32>
    %64 = arith.mulf %59, %63 : vector<8x16x16xf32>
    %65 = arith.truncf %64 : vector<8x16x16xf32> to vector<8x16x16xbf16>
    %66 = vector.extract_strided_slice %48 {offsets = [0, 0, 0], sizes = [8, 16, 32], strides = [1, 1, 1]} : vector<8x16x128xbf16> to vector<8x16x32xbf16>
    "tpu.trace_start"() <{level = 10 : i32, message = "bqk,bkd->bqd"}> : () -> ()
    %cst_27 = arith.constant dense<0.000000e+00> : vector<8x16x32xf32>
    %67 = tpu.matmul %65, %66, %cst_27 {dimension_numbers = #tpu.dot_dimension_numbers<[2], [1], [1], [2], [0, 0, 0, 1, 1, 2], [0], [0]>} : vector<8x16x16xbf16>, vector<8x16x32xbf16>, vector<8x16x32xf32> -> vector<8x16x32xf32>
    "tpu.trace_stop"() : () -> ()
    %68 = vector.shape_cast %67 : vector<8x16x32xf32> to vector<128x32xf32>
    %69 = arith.truncf %68 : vector<128x32xf32> to vector<128x32xbf16>
    %70 = vector.extract_strided_slice %50 {offsets = [0, 0], sizes = [32, 128], strides = [1, 1]} : vector<128x128xbf16> to vector<32x128xbf16>
    %cst_28 = arith.constant dense<0.000000e+00> : vector<128x128xf32>
    %71 = tpu.matmul %69, %70, %cst_28 {dimension_numbers = #tpu.dot_dimension_numbers<[1], [0], [0], [1], [0, 0, 1, 1], [], []>} : vector<128x32xbf16>, vector<32x128xbf16>, vector<128x128xf32> -> vector<128x128xf32>
    %72 = arith.addf %51, %71 : vector<128x128xf32>
    %73 = vector.extract_strided_slice %42 {offsets = [0, 0, 32], sizes = [8, 16, 32], strides = [1, 1, 1]} : vector<8x16x128xbf16> to vector<8x16x32xbf16>
    %74 = vector.extract_strided_slice %45 {offsets = [0, 0, 32], sizes = [8, 16, 32], strides = [1, 1, 1]} : vector<8x16x128xbf16> to vector<8x16x32xbf16>
    "tpu.trace_start"() <{level = 10 : i32, message = "bqd,bkd->bqk"}> : () -> ()
    %cst_29 = arith.constant dense<0.000000e+00> : vector<8x16x16xf32>
    %75 = tpu.matmul %73, %74, %cst_29 {dimension_numbers = #tpu.dot_dimension_numbers<[2], [2], [1], [1], [0, 0, 0, 1, 1, 1], [0], [0]>} : vector<8x16x32xbf16>, vector<8x16x32xbf16>, vector<8x16x16xf32> -> vector<8x16x16xf32>
    "tpu.trace_stop"() : () -> ()
    %cst_30 = arith.constant dense<0xFF800000> : vector<8x16xf32>
    %76 = vector.multi_reduction <maximumf>, %75, %cst_30 [2] : vector<8x16x16xf32> to vector<8x16xf32>
    %77 = vector.shape_cast %76 : vector<8x16xf32> to vector<8x16x1xf32>
    %78 = vector.broadcast %77 : vector<8x16x1xf32> to vector<8x16x16xf32>
    %79 = arith.subf %75, %78 : vector<8x16x16xf32>
    %80 = math.exp %79 : vector<8x16x16xf32>
    %cst_31 = arith.constant dense<0.000000e+00> : vector<8x16xf32>
    %81 = vector.multi_reduction <add>, %80, %cst_31 [2] : vector<8x16x16xf32> to vector<8x16xf32>
    %82 = vector.shape_cast %81 : vector<8x16xf32> to vector<8x16x1xf32>
    %83 = tpu.reciprocal %82 {approx = true} : vector<8x16x1xf32> -> vector<8x16x1xf32>
    %84 = vector.broadcast %83 : vector<8x16x1xf32> to vector<8x16x16xf32>
    %85 = arith.mulf %80, %84 : vector<8x16x16xf32>
    %86 = arith.truncf %85 : vector<8x16x16xf32> to vector<8x16x16xbf16>
    %87 = vector.extract_strided_slice %48 {offsets = [0, 0, 32], sizes = [8, 16, 32], strides = [1, 1, 1]} : vector<8x16x128xbf16> to vector<8x16x32xbf16>
    "tpu.trace_start"() <{level = 10 : i32, message = "bqk,bkd->bqd"}> : () -> ()
    %cst_32 = arith.constant dense<0.000000e+00> : vector<8x16x32xf32>
    %88 = tpu.matmul %86, %87, %cst_32 {dimension_numbers = #tpu.dot_dimension_numbers<[2], [1], [1], [2], [0, 0, 0, 1, 1, 2], [0], [0]>} : vector<8x16x16xbf16>, vector<8x16x32xbf16>, vector<8x16x32xf32> -> vector<8x16x32xf32>
    "tpu.trace_stop"() : () -> ()
    %89 = vector.shape_cast %88 : vector<8x16x32xf32> to vector<128x32xf32>
    %90 = arith.truncf %89 : vector<128x32xf32> to vector<128x32xbf16>
    %91 = vector.extract_strided_slice %50 {offsets = [32, 0], sizes = [32, 128], strides = [1, 1]} : vector<128x128xbf16> to vector<32x128xbf16>
    %cst_33 = arith.constant dense<0.000000e+00> : vector<128x128xf32>
    %92 = tpu.matmul %90, %91, %cst_33 {dimension_numbers = #tpu.dot_dimension_numbers<[1], [0], [0], [1], [0, 0, 1, 1], [], []>} : vector<128x32xbf16>, vector<32x128xbf16>, vector<128x128xf32> -> vector<128x128xf32>
    %93 = arith.addf %72, %92 : vector<128x128xf32>
    %94 = vector.extract_strided_slice %42 {offsets = [0, 0, 64], sizes = [8, 16, 32], strides = [1, 1, 1]} : vector<8x16x128xbf16> to vector<8x16x32xbf16>
    %95 = vector.extract_strided_slice %45 {offsets = [0, 0, 64], sizes = [8, 16, 32], strides = [1, 1, 1]} : vector<8x16x128xbf16> to vector<8x16x32xbf16>
    "tpu.trace_start"() <{level = 10 : i32, message = "bqd,bkd->bqk"}> : () -> ()
    %cst_34 = arith.constant dense<0.000000e+00> : vector<8x16x16xf32>
    %96 = tpu.matmul %94, %95, %cst_34 {dimension_numbers = #tpu.dot_dimension_numbers<[2], [2], [1], [1], [0, 0, 0, 1, 1, 1], [0], [0]>} : vector<8x16x32xbf16>, vector<8x16x32xbf16>, vector<8x16x16xf32> -> vector<8x16x16xf32>
    "tpu.trace_stop"() : () -> ()
    %cst_35 = arith.constant dense<0xFF800000> : vector<8x16xf32>
    %97 = vector.multi_reduction <maximumf>, %96, %cst_35 [2] : vector<8x16x16xf32> to vector<8x16xf32>
    %98 = vector.shape_cast %97 : vector<8x16xf32> to vector<8x16x1xf32>
    %99 = vector.broadcast %98 : vector<8x16x1xf32> to vector<8x16x16xf32>
    %100 = arith.subf %96, %99 : vector<8x16x16xf32>
    %101 = math.exp %100 : vector<8x16x16xf32>
    %cst_36 = arith.constant dense<0.000000e+00> : vector<8x16xf32>
    %102 = vector.multi_reduction <add>, %101, %cst_36 [2] : vector<8x16x16xf32> to vector<8x16xf32>
    %103 = vector.shape_cast %102 : vector<8x16xf32> to vector<8x16x1xf32>
    %104 = tpu.reciprocal %103 {approx = true} : vector<8x16x1xf32> -> vector<8x16x1xf32>
    %105 = vector.broadcast %104 : vector<8x16x1xf32> to vector<8x16x16xf32>
    %106 = arith.mulf %101, %105 : vector<8x16x16xf32>
    %107 = arith.truncf %106 : vector<8x16x16xf32> to vector<8x16x16xbf16>
    %108 = vector.extract_strided_slice %48 {offsets = [0, 0, 64], sizes = [8, 16, 32], strides = [1, 1, 1]} : vector<8x16x128xbf16> to vector<8x16x32xbf16>
    "tpu.trace_start"() <{level = 10 : i32, message = "bqk,bkd->bqd"}> : () -> ()
    %cst_37 = arith.constant dense<0.000000e+00> : vector<8x16x32xf32>
    %109 = tpu.matmul %107, %108, %cst_37 {dimension_numbers = #tpu.dot_dimension_numbers<[2], [1], [1], [2], [0, 0, 0, 1, 1, 2], [0], [0]>} : vector<8x16x16xbf16>, vector<8x16x32xbf16>, vector<8x16x32xf32> -> vector<8x16x32xf32>
    "tpu.trace_stop"() : () -> ()
    %110 = vector.shape_cast %109 : vector<8x16x32xf32> to vector<128x32xf32>
    %111 = arith.truncf %110 : vector<128x32xf32> to vector<128x32xbf16>
    %112 = vector.extract_strided_slice %50 {offsets = [64, 0], sizes = [32, 128], strides = [1, 1]} : vector<128x128xbf16> to vector<32x128xbf16>
    %cst_38 = arith.constant dense<0.000000e+00> : vector<128x128xf32>
    %113 = tpu.matmul %111, %112, %cst_38 {dimension_numbers = #tpu.dot_dimension_numbers<[1], [0], [0], [1], [0, 0, 1, 1], [], []>} : vector<128x32xbf16>, vector<32x128xbf16>, vector<128x128xf32> -> vector<128x128xf32>
    %114 = arith.addf %93, %113 : vector<128x128xf32>
    %115 = vector.extract_strided_slice %42 {offsets = [0, 0, 96], sizes = [8, 16, 32], strides = [1, 1, 1]} : vector<8x16x128xbf16> to vector<8x16x32xbf16>
    %116 = vector.extract_strided_slice %45 {offsets = [0, 0, 96], sizes = [8, 16, 32], strides = [1, 1, 1]} : vector<8x16x128xbf16> to vector<8x16x32xbf16>
    "tpu.trace_start"() <{level = 10 : i32, message = "bqd,bkd->bqk"}> : () -> ()
    %cst_39 = arith.constant dense<0.000000e+00> : vector<8x16x16xf32>
    %117 = tpu.matmul %115, %116, %cst_39 {dimension_numbers = #tpu.dot_dimension_numbers<[2], [2], [1], [1], [0, 0, 0, 1, 1, 1], [0], [0]>} : vector<8x16x32xbf16>, vector<8x16x32xbf16>, vector<8x16x16xf32> -> vector<8x16x16xf32>
    "tpu.trace_stop"() : () -> ()
    %cst_40 = arith.constant dense<0xFF800000> : vector<8x16xf32>
    %118 = vector.multi_reduction <maximumf>, %117, %cst_40 [2] : vector<8x16x16xf32> to vector<8x16xf32>
    %119 = vector.shape_cast %118 : vector<8x16xf32> to vector<8x16x1xf32>
    %120 = vector.broadcast %119 : vector<8x16x1xf32> to vector<8x16x16xf32>
    %121 = arith.subf %117, %120 : vector<8x16x16xf32>
    %122 = math.exp %121 : vector<8x16x16xf32>
    %cst_41 = arith.constant dense<0.000000e+00> : vector<8x16xf32>
    %123 = vector.multi_reduction <add>, %122, %cst_41 [2] : vector<8x16x16xf32> to vector<8x16xf32>
    %124 = vector.shape_cast %123 : vector<8x16xf32> to vector<8x16x1xf32>
    %125 = tpu.reciprocal %124 {approx = true} : vector<8x16x1xf32> -> vector<8x16x1xf32>
    %126 = vector.broadcast %125 : vector<8x16x1xf32> to vector<8x16x16xf32>
    %127 = arith.mulf %122, %126 : vector<8x16x16xf32>
    %128 = arith.truncf %127 : vector<8x16x16xf32> to vector<8x16x16xbf16>
    %129 = vector.extract_strided_slice %48 {offsets = [0, 0, 96], sizes = [8, 16, 32], strides = [1, 1, 1]} : vector<8x16x128xbf16> to vector<8x16x32xbf16>
    "tpu.trace_start"() <{level = 10 : i32, message = "bqk,bkd->bqd"}> : () -> ()
    %cst_42 = arith.constant dense<0.000000e+00> : vector<8x16x32xf32>
    %130 = tpu.matmul %128, %129, %cst_42 {dimension_numbers = #tpu.dot_dimension_numbers<[2], [1], [1], [2], [0, 0, 0, 1, 1, 2], [0], [0]>} : vector<8x16x16xbf16>, vector<8x16x32xbf16>, vector<8x16x32xf32> -> vector<8x16x32xf32>
    "tpu.trace_stop"() : () -> ()
    %131 = vector.shape_cast %130 : vector<8x16x32xf32> to vector<128x32xf32>
    %132 = arith.truncf %131 : vector<128x32xf32> to vector<128x32xbf16>
    %133 = vector.extract_strided_slice %50 {offsets = [96, 0], sizes = [32, 128], strides = [1, 1]} : vector<128x128xbf16> to vector<32x128xbf16>
    %cst_43 = arith.constant dense<0.000000e+00> : vector<128x128xf32>
    %134 = tpu.matmul %132, %133, %cst_43 {dimension_numbers = #tpu.dot_dimension_numbers<[1], [0], [0], [1], [0, 0, 1, 1], [], []>} : vector<128x32xbf16>, vector<32x128xbf16>, vector<128x128xf32> -> vector<128x128xf32>
    %135 = arith.addf %114, %134 : vector<128x128xf32>
    %136 = arith.addf %3, %135 : vector<128x128xf32>
    %c0_44 = arith.constant 0 : index
    %c0_45 = arith.constant 0 : index
    %c0_46 = arith.constant 0 : index
    %137 = vector.load %arg10[%c0_44, %c0_45, %c0_46] : memref<1x1x128xf32, #tpu.memory_space<vmem>>, vector<1x1x128xf32>
    %138 = vector.shape_cast %137 : vector<1x1x128xf32> to vector<1x128xf32>
    %139 = vector.broadcast %138 : vector<1x128xf32> to vector<128x128xf32>
    %140 = arith.addf %136, %139 : vector<128x128xf32>
    %c0_47 = arith.constant 0 : index
    %c0_48 = arith.constant 0 : index
    %c0_49 = arith.constant 0 : index
    %141 = vector.load %arg11[%c0_47, %c0_48, %c0_49] : memref<1x1x128xf32, #tpu.memory_space<vmem>>, vector<1x1x128xf32>
    %142 = vector.shape_cast %141 : vector<1x1x128xf32> to vector<1x128xf32>
    %c0_50 = arith.constant 0 : index
    %c0_51 = arith.constant 0 : index
    %c0_52 = arith.constant 0 : index
    %143 = vector.load %arg12[%c0_50, %c0_51, %c0_52] : memref<1x1x128xf32, #tpu.memory_space<vmem>>, vector<1x1x128xf32>
    %144 = vector.shape_cast %143 : vector<1x1x128xf32> to vector<1x128xf32>
    %cst_53 = arith.constant dense<0.000000e+00> : vector<128xf32>
    %145 = vector.multi_reduction <add>, %140, %cst_53 [1] : vector<128x128xf32> to vector<128xf32>
    %146 = vector.shape_cast %145 : vector<128xf32> to vector<128x1xf32>
    %cst_54 = arith.constant 1.280000e+02 : f32
    %147 = vector.broadcast %cst_54 : f32 to vector<128x1xf32>
    %148 = arith.divf %146, %147 : vector<128x1xf32>
    %149 = vector.broadcast %148 : vector<128x1xf32> to vector<128x128xf32>
    %150 = arith.subf %140, %149 : vector<128x128xf32>
    %151 = arith.mulf %150, %150 : vector<128x128xf32>
    %cst_55 = arith.constant dense<0.000000e+00> : vector<128xf32>
    %152 = vector.multi_reduction <add>, %151, %cst_55 [1] : vector<128x128xf32> to vector<128xf32>
    %153 = vector.shape_cast %152 : vector<128xf32> to vector<128x1xf32>
    %cst_56 = arith.constant 1.280000e+02 : f32
    %154 = vector.broadcast %cst_56 : f32 to vector<128x1xf32>
    %155 = arith.divf %153, %154 : vector<128x1xf32>
    %156 = vector.broadcast %148 : vector<128x1xf32> to vector<128x128xf32>
    %157 = arith.subf %140, %156 : vector<128x128xf32>
    %cst_57 = arith.constant 9.99999997E-7 : f32
    %158 = vector.broadcast %cst_57 : f32 to vector<128x1xf32>
    %159 = arith.addf %155, %158 : vector<128x1xf32>
    %160 = math.rsqrt %159 : vector<128x1xf32>
    %161 = vector.broadcast %160 : vector<128x1xf32> to vector<128x128xf32>
    %162 = arith.mulf %157, %161 : vector<128x128xf32>
    %163 = vector.broadcast %142 : vector<1x128xf32> to vector<128x128xf32>
    %164 = arith.mulf %162, %163 : vector<128x128xf32>
    %165 = vector.broadcast %144 : vector<1x128xf32> to vector<128x128xf32>
    %166 = arith.addf %164, %165 : vector<128x128xf32>
    %167 = arith.truncf %166 : vector<128x128xf32> to vector<128x128xbf16>
    %c0_58 = arith.constant 0 : index
    %c0_59 = arith.constant 0 : index
    %c0_60 = arith.constant 0 : index
    %168 = vector.load %arg13[%c0_58, %c0_59, %c0_60] : memref<1x128x256xbf16, #tpu.memory_space<vmem>>, vector<1x128x256xbf16>
    %169 = vector.shape_cast %168 : vector<1x128x256xbf16> to vector<128x256xbf16>
    %cst_61 = arith.constant dense<0.000000e+00> : vector<128x256xf32>
    %170 = tpu.matmul %167, %169, %cst_61 {dimension_numbers = #tpu.dot_dimension_numbers<[1], [0], [0], [1], [0, 0, 1, 1], [], []>} : vector<128x128xbf16>, vector<128x256xbf16>, vector<128x256xf32> -> vector<128x256xf32>
    %c0_62 = arith.constant 0 : index
    %c0_63 = arith.constant 0 : index
    %c0_64 = arith.constant 0 : index
    %171 = vector.load %arg14[%c0_62, %c0_63, %c0_64] : memref<1x1x256xf32, #tpu.memory_space<vmem>>, vector<1x1x256xf32>
    %172 = vector.shape_cast %171 : vector<1x1x256xf32> to vector<1x256xf32>
    %173 = vector.broadcast %172 : vector<1x256xf32> to vector<128x256xf32>
    %174 = arith.addf %170, %173 : vector<128x256xf32>
    %cst_65 = arith.constant 5.000000e-01 : f32
    %175 = vector.broadcast %cst_65 : f32 to vector<128x256xf32>
    %176 = arith.mulf %175, %174 : vector<128x256xf32>
    %cst_66 = arith.constant 4.471500e-02 : f32
    %177 = vector.broadcast %cst_66 : f32 to vector<128x256xf32>
    %178 = arith.mulf %177, %174 : vector<128x256xf32>
    %179 = arith.mulf %178, %174 : vector<128x256xf32>
    %180 = arith.mulf %179, %174 : vector<128x256xf32>
    %181 = arith.addf %174, %180 : vector<128x256xf32>
    %cst_67 = arith.constant 0.797884583 : f32
    %182 = vector.broadcast %cst_67 : f32 to vector<128x256xf32>
    %183 = arith.mulf %182, %181 : vector<128x256xf32>
    %184 = math.tanh %183 : vector<128x256xf32>
    %cst_68 = arith.constant 1.000000e+00 : f32
    %185 = vector.broadcast %cst_68 : f32 to vector<128x256xf32>
    %186 = arith.addf %185, %184 : vector<128x256xf32>
    %187 = arith.mulf %176, %186 : vector<128x256xf32>
    %188 = arith.truncf %187 : vector<128x256xf32> to vector<128x256xbf16>
    %c0_69 = arith.constant 0 : index
    %c0_70 = arith.constant 0 : index
    %c0_71 = arith.constant 0 : index
    %189 = vector.load %arg15[%c0_69, %c0_70, %c0_71] : memref<1x256x128xbf16, #tpu.memory_space<vmem>>, vector<1x256x128xbf16>
    %190 = vector.shape_cast %189 : vector<1x256x128xbf16> to vector<256x128xbf16>
    %cst_72 = arith.constant dense<0.000000e+00> : vector<128x128xf32>
    %191 = tpu.matmul %188, %190, %cst_72 {dimension_numbers = #tpu.dot_dimension_numbers<[1], [0], [0], [1], [0, 0, 1, 1], [], []>} : vector<128x256xbf16>, vector<256x128xbf16>, vector<128x128xf32> -> vector<128x128xf32>
    %c0_73 = arith.constant 0 : index
    %c0_74 = arith.constant 0 : index
    %c0_75 = arith.constant 0 : index
    %192 = vector.load %arg16[%c0_73, %c0_74, %c0_75] : memref<1x1x128xf32, #tpu.memory_space<vmem>>, vector<1x1x128xf32>
    %193 = vector.shape_cast %192 : vector<1x1x128xf32> to vector<1x128xf32>
    %194 = vector.broadcast %193 : vector<1x128xf32> to vector<128x128xf32>
    %195 = arith.addf %191, %194 : vector<128x128xf32>
    %196 = arith.addf %140, %195 : vector<128x128xf32>
    %c0_76 = arith.constant 0 : index
    %c0_77 = arith.constant 0 : index
    %197 = vector.load %arg20[%c0_76, %c0_77] : memref<128x128xf32, #tpu.memory_space<vmem>>, vector<128x128xf32>
    tpu.vector_store %arg20[%c0_76, %c0_77], %196 {strides = array<i32>} : memref<128x128xf32, #tpu.memory_space<vmem>>, vector<128x128xf32>,
    %c1_i32 = arith.constant 1 : i32
    %198 = arith.cmpi eq, %arg1, %c1_i32 : i32
    %199 = arith.extui %198 : i1 to i32
    %c0_i32_78 = arith.constant 0 : i32
    %200 = arith.cmpi ne, %199, %c0_i32_78 : i32
    scf.if %200 {
      %c0_79 = arith.constant 0 : index
      %c0_80 = arith.constant 0 : index
      %201 = vector.load %arg17[%c0_79, %c0_80] : memref<1x128xf32, #tpu.memory_space<vmem>>, vector<1x128xf32>
      %c0_81 = arith.constant 0 : index
      %c0_82 = arith.constant 0 : index
      %202 = vector.load %arg18[%c0_81, %c0_82] : memref<1x128xf32, #tpu.memory_space<vmem>>, vector<1x128xf32>
      %cst_83 = arith.constant dense<0.000000e+00> : vector<128xf32>
      %203 = vector.multi_reduction <add>, %196, %cst_83 [1] : vector<128x128xf32> to vector<128xf32>
      %204 = vector.shape_cast %203 : vector<128xf32> to vector<128x1xf32>
      %cst_84 = arith.constant 1.280000e+02 : f32
      %205 = vector.broadcast %cst_84 : f32 to vector<128x1xf32>
      %206 = arith.divf %204, %205 : vector<128x1xf32>
      %207 = vector.broadcast %206 : vector<128x1xf32> to vector<128x128xf32>
      %208 = arith.subf %196, %207 : vector<128x128xf32>
      %209 = arith.mulf %208, %208 : vector<128x128xf32>
      %cst_85 = arith.constant dense<0.000000e+00> : vector<128xf32>
      %210 = vector.multi_reduction <add>, %209, %cst_85 [1] : vector<128x128xf32> to vector<128xf32>
      %211 = vector.shape_cast %210 : vector<128xf32> to vector<128x1xf32>
      %cst_86 = arith.constant 1.280000e+02 : f32
      %212 = vector.broadcast %cst_86 : f32 to vector<128x1xf32>
      %213 = arith.divf %211, %212 : vector<128x1xf32>
      %214 = vector.broadcast %206 : vector<128x1xf32> to vector<128x128xf32>
      %215 = arith.subf %196, %214 : vector<128x128xf32>
      %cst_87 = arith.constant 9.99999997E-7 : f32
      %216 = vector.broadcast %cst_87 : f32 to vector<128x1xf32>
      %217 = arith.addf %213, %216 : vector<128x1xf32>
      %218 = math.rsqrt %217 : vector<128x1xf32>
      %219 = vector.broadcast %218 : vector<128x1xf32> to vector<128x128xf32>
      %220 = arith.mulf %215, %219 : vector<128x128xf32>
      %221 = vector.broadcast %201 : vector<1x128xf32> to vector<128x128xf32>
      %222 = arith.mulf %220, %221 : vector<128x128xf32>
      %223 = vector.broadcast %202 : vector<1x128xf32> to vector<128x128xf32>
      %224 = arith.addf %222, %223 : vector<128x128xf32>
      %225 = vector.shape_cast %224 : vector<128x128xf32> to vector<8x16x128xf32>
      %cst_88 = arith.constant dense<0.000000e+00> : vector<8x128xf32>
      %226 = vector.multi_reduction <add>, %225, %cst_88 [1] : vector<8x16x128xf32> to vector<8x128xf32>
      %cst_89 = arith.constant 1.600000e+01 : f32
      %227 = vector.broadcast %cst_89 : f32 to vector<8x128xf32>
      %228 = arith.divf %226, %227 : vector<8x128xf32>
      %c0_90 = arith.constant 0 : index
      %c0_91 = arith.constant 0 : index
      %229 = vector.load %arg19[%c0_90, %c0_91] : memref<8x128xf32, #tpu.memory_space<vmem>>, vector<8x128xf32>
      tpu.vector_store %arg19[%c0_90, %c0_91], %228 {strides = array<i32>} : memref<8x128xf32, #tpu.memory_space<vmem>>, vector<8x128xf32>,
    } else {
    }
    return
  }
  func.func @transform_0(%arg0: i32, %arg1: i32) -> (i32, i32, i32) {
    %c0_i32 = arith.constant 0 : i32
    %c0_i32_0 = arith.constant 0 : i32
    %c0_i32_1 = arith.constant 0 : i32
    return %arg0, %c0_i32, %c0_i32_0 : i32, i32, i32
  }
  func.func @transform_1(%arg0: i32, %arg1: i32) -> (i32, i32) {
    %c0_i32 = arith.constant 0 : i32
    %c0_i32_0 = arith.constant 0 : i32
    %c0_i32_1 = arith.constant 0 : i32
    return %c0_i32, %c0_i32_0 : i32, i32
  }
  func.func @transform_2(%arg0: i32, %arg1: i32) -> (i32, i32) {
    %c0_i32 = arith.constant 0 : i32
    %c0_i32_0 = arith.constant 0 : i32
    %c0_i32_1 = arith.constant 0 : i32
    return %c0_i32, %c0_i32_0 : i32, i32
  }
  func.func @transform_3(%arg0: i32, %arg1: i32) -> (i32, i32, i32) {
    %c0_i32 = arith.constant 0 : i32
    %c0_i32_0 = arith.constant 0 : i32
    %c0_i32_1 = arith.constant 0 : i32
    return %arg1, %c0_i32, %c0_i32_0 : i32, i32, i32
  }
  func.func @transform_4(%arg0: i32, %arg1: i32) -> (i32, i32, i32) {
    %c0_i32 = arith.constant 0 : i32
    %c0_i32_0 = arith.constant 0 : i32
    %c0_i32_1 = arith.constant 0 : i32
    return %arg1, %c0_i32, %c0_i32_0 : i32, i32, i32
  }
  func.func @transform_5(%arg0: i32, %arg1: i32) -> (i32, i32, i32) {
    %c0_i32 = arith.constant 0 : i32
    %c0_i32_0 = arith.constant 0 : i32
    %c0_i32_1 = arith.constant 0 : i32
    return %arg1, %c0_i32, %c0_i32_0 : i32, i32, i32
  }
  func.func @transform_6(%arg0: i32, %arg1: i32) -> (i32, i32, i32) {
    %c0_i32 = arith.constant 0 : i32
    %c0_i32_0 = arith.constant 0 : i32
    %c0_i32_1 = arith.constant 0 : i32
    return %arg1, %c0_i32, %c0_i32_0 : i32, i32, i32
  }
  func.func @transform_7(%arg0: i32, %arg1: i32) -> (i32, i32, i32) {
    %c0_i32 = arith.constant 0 : i32
    %c0_i32_0 = arith.constant 0 : i32
    %c0_i32_1 = arith.constant 0 : i32
    return %arg1, %c0_i32, %c0_i32_0 : i32, i32, i32
  }
  func.func @transform_8(%arg0: i32, %arg1: i32) -> (i32, i32, i32) {
    %c0_i32 = arith.constant 0 : i32
    %c0_i32_0 = arith.constant 0 : i32
    %c0_i32_1 = arith.constant 0 : i32
    return %arg1, %c0_i32, %c0_i32_0 : i32, i32, i32
  }
  func.func @transform_9(%arg0: i32, %arg1: i32) -> (i32, i32, i32) {
    %c0_i32 = arith.constant 0 : i32
    %c0_i32_0 = arith.constant 0 : i32
    %c0_i32_1 = arith.constant 0 : i32
    return %arg1, %c0_i32, %c0_i32_0 : i32, i32, i32
  }
  func.func @transform_10(%arg0: i32, %arg1: i32) -> (i32, i32, i32) {
    %c0_i32 = arith.constant 0 : i32
    %c0_i32_0 = arith.constant 0 : i32
    %c0_i32_1 = arith.constant 0 : i32
    return %arg1, %c0_i32, %c0_i32_0 : i32, i32, i32
  }
  func.func @transform_11(%arg0: i32, %arg1: i32) -> (i32, i32, i32) {
    %c0_i32 = arith.constant 0 : i32
    %c0_i32_0 = arith.constant 0 : i32
    %c0_i32_1 = arith.constant 0 : i32
    return %arg1, %c0_i32, %c0_i32_0 : i32, i32, i32
  }
  func.func @transform_12(%arg0: i32, %arg1: i32) -> (i32, i32, i32) {
    %c0_i32 = arith.constant 0 : i32
    %c0_i32_0 = arith.constant 0 : i32
    %c0_i32_1 = arith.constant 0 : i32
    return %arg1, %c0_i32, %c0_i32_0 : i32, i32, i32
  }
  func.func @transform_13(%arg0: i32, %arg1: i32) -> (i32, i32, i32) {
    %c0_i32 = arith.constant 0 : i32
    %c0_i32_0 = arith.constant 0 : i32
    %c0_i32_1 = arith.constant 0 : i32
    return %arg1, %c0_i32, %c0_i32_0 : i32, i32, i32
  }
  func.func @transform_14(%arg0: i32, %arg1: i32) -> (i32, i32, i32) {
    %c0_i32 = arith.constant 0 : i32
    %c0_i32_0 = arith.constant 0 : i32
    %c0_i32_1 = arith.constant 0 : i32
    return %arg1, %c0_i32, %c0_i32_0 : i32, i32, i32
  }
  func.func @transform_15(%arg0: i32, %arg1: i32) -> (i32, i32) {
    %c0_i32 = arith.constant 0 : i32
    %c0_i32_0 = arith.constant 0 : i32
    %c0_i32_1 = arith.constant 0 : i32
    return %c0_i32, %c0_i32_0 : i32, i32
  }
  func.func @transform_16(%arg0: i32, %arg1: i32) -> (i32, i32) {
    %c0_i32 = arith.constant 0 : i32
    %c0_i32_0 = arith.constant 0 : i32
    %c0_i32_1 = arith.constant 0 : i32
    return %c0_i32, %c0_i32_0 : i32, i32
  }
  func.func @transform_17(%arg0: i32, %arg1: i32) -> (i32, i32) {
    %c0_i32 = arith.constant 0 : i32
    %c0_i32_0 = arith.constant 0 : i32
    return %arg0, %c0_i32 : i32, i32
  }
}

</mosaic_0001>

<bundles_post_ra>
// kernel: tpu_custom_call.1
= control target key start
LH: loop header
LB: loop body
LE: loop exit
PB: predicated region body
PF: predicated region fallthrough
CT: control target
= control target key end

     0   :  { %s11559_s0 = inlined_call_operand.hbm [shape: f32[16,16,128], index: 0, kind: input, shape index: {}]   ;;  %s11560_s1 = inlined_call_operand.hbm [shape: bf16[128,128], index: 1, kind: input, shape index: {}]   ;;  %s11561_s2 = inlined_call_operand.hbm [shape: f32[128,128], index: 2, kind: input, shape index: {}]   ;;  %s11562_s3 = inlined_call_operand.vmem [shape: f32[2,1,128], index: 3, kind: input, shape index: {}]   ;;  %s11563_s4 = inlined_call_operand.hbm [shape: f32[2,1,128], index: 4, kind: input, shape index: {}]   ;;  %s11564_s5 = inlined_call_operand.hbm [shape: bf16[2,128,384], index: 5, kind: input, shape index: {}]   ;;  %s11565_s6 = inlined_call_operand.hbm [shape: f32[2,1,384], index: 6, kind: input, shape index: {}]   ;;  %s11566_s7 = inlined_call_operand.hbm [shape: bf16[2,128,128], index: 7, kind: input, shape index: {}]   ;;  %s11567_s8 = inlined_call_operand.hbm [shape: f32[2,1,128], index: 8, kind: input, shape index: {}]   ;;  %s11568_s9 = inlined_call_operand.vmem [shape: f32[2,1,128], index: 9, kind: input, shape index: {}]   ;;  %s11569_s10 = inlined_call_operand.hbm [shape: f32[2,1,128], index: 10, kind: input, shape index: {}]   ;;  %s11570_s11 = inlined_call_operand.hbm [shape: bf16[2,128,256], index: 11, kind: input, shape index: {}]   ;;  %s11571_s12 = inlined_call_operand.vmem [shape: f32[2,1,256], index: 12, kind: input, shape index: {}]   ;;  %s11572_s13 = inlined_call_operand.hbm [shape: bf16[2,256,128], index: 13, kind: input, shape index: {}]   ;;  %s11573_s14 = inlined_call_operand.vmem [shape: f32[2,1,128], index: 14, kind: input, shape index: {}]   ;;  %s11574_s15 = inlined_call_operand.vmem [shape: f32[1,128], index: 15, kind: input, shape index: {}]   ;;  %s11575_s16 = inlined_call_operand.vmem [shape: f32[1,128], index: 16, kind: input, shape index: {}]   ;;  %s11576_s17 = inlined_call_operand.hbm [shape: f32[16,128], index: 17, kind: output, shape index: {}]  }
   0x1   :  { %11620 = sst [smem:[#allocation60_spill]] %s11559_s0 }
   0x2   :  { %11621 = sst [smem:[#allocation61_spill]] %s11560_s1 }
   0x3   :  { %11622 = sst [smem:[#allocation62_spill]] %s11561_s2 }
   0x4   :  { %11623 = sst [smem:[#allocation63_spill]] %s11562_s3 }
   0x5   :  { %11624 = sst [smem:[#allocation64_spill]] %s11563_s4 }
   0x6   :  { %11625 = sst [smem:[#allocation65_spill]] %s11564_s5 }
   0x7   :  { %11626 = sst [smem:[#allocation66_spill]] %s11565_s6 }
   0x8   :  { %11627 = sst [smem:[#allocation67_spill]] %s11566_s7 }
   0x9   :  { %11628 = sst [smem:[#allocation68_spill]] %s11567_s8 }
   0xa   :  { %11629 = sst [smem:[#allocation69_spill]] %s11568_s9 }
   0xb   :  { %11630 = sst [smem:[#allocation70_spill]] %s11569_s10 }
   0xc   :  { %11631 = sst [smem:[#allocation71_spill]] %s11570_s11 }
   0xd   :  { %11632 = sst [smem:[#allocation72_spill]] %s11571_s12 }
   0xe   :  { %11633 = sst [smem:[#allocation73_spill]] %s11572_s13 }
   0xf   :  { %11634 = sst [smem:[#allocation74_spill]] %s11573_s14 }
  0x10   :  { %11635 = sst [smem:[#allocation75_spill]] %s11574_s15 }
  0x11   :  { %11636 = sst [smem:[#allocation76_spill]] %s11575_s16 }
  0x12   :  { %11637 = sst [smem:[#allocation77_spill]] %s11576_s17 }
  0x13   :  { %22 = vsyncpa [#allocation4], 0 }
  0x14   :  { %24 = vsyncpa [#allocation4 + $0x1], 0 }
  0x15   :  { %25 = vsyncpa [#allocation7], 0 }
  0x16   :  { %26 = vsyncpa [#allocation10], 0 }
  0x17   :  { %28 = vsyncpa [#allocation10 + $0x1], 0 }
  0x18   :  { %29 = vsyncpa [#allocation13], 0 }
  0x19   :  { %31 = vsyncpa [#allocation13 + $0x1], 0 }
  0x1a   :  { %32 = vsyncpa [#allocation16], 0 }
  0x1b   :  { %34 = vsyncpa [#allocation16 + $0x1], 0 }
  0x1c   :  { %35 = vsyncpa [#allocation19], 0 }
  0x1d   :  { %37 = vsyncpa [#allocation19 + $0x1], 0 }
  0x1e   :  { %38 = vsyncpa [#allocation5], 0 }
  0x1f   :  { %40 = vsyncpa [#allocation5 + $0x1], 0  ;;  %s8430_s24 = smov 0   ;;  %s8432_s25 = smov 0  }
  0x20   :  { %s8434_s26 = smov 0   ;;  %s8436_s27 = smov 0  }
  0x21   :  { %s8438_s28 = smov 0   ;;  %s8440_s29 = smov 0  }
  0x22   :  { %s8442_s0 = smov 0   ;;  %s8444_s30 = smov 0  }
  0x23   :  { %s8446_s18 = smov 0   ;;  %s8448_s19 = smov 0  }
  0x24   :  { %s8450_s1 = smov 0  }
  0x25 LB: > { %11638 = sst [smem:[#allocation29_spill]] %s8289_s25  ;;  %s8484_s20 = sadd.s32 4294967295, %s8325_s1   ;;  %s8325_s1 = sphi %s8450_s1, %s46_s1   ;;  %s8321_s19 = sphi %s8448_s19, %s11797_s19   ;;  %s8317_s18 = sphi %s8446_s18, %s11796_s18   ;;  %s8313_s30 = sphi %s8444_s30, %s11795_s30   ;;  %s8309_s0 = sphi %s8442_s0, %s11794_s0   ;;  %s8305_s29 = sphi %s8440_s29, %s11793_s29   ;;  %s8301_s28 = sphi %s8438_s28, %s11792_s28   ;;  %s8297_s27 = sphi %s8436_s27, %s11791_s27   ;;  %s8293_s26 = sphi %s8434_s26, %s11790_s26   ;;  %s8289_s25 = sphi %s8432_s25, %s11789_s25   ;;  %s8285_s24 = sphi %s8430_s24, %s11788_s24  }
  0x26   : > { %11639 = sst [smem:[#allocation30_spill]] %s8293_s26  ;;  %p172_p0 = scmp.ne.s32.totalorder %s8289_s25, %s8285_s24 }
  0x27   : > { %11640 = sst [smem:[#allocation31_spill]] %s8297_s27  ;;  %p11590_p1 = scmp.eq.s32.totalorder %s8484_s20, 0 }
  0x28   : > { %11641 = sst [smem:[#allocation32_spill]] %s8301_s28  ;;  %p498_p2 = scmp.eq.s32.totalorder %s8484_s20, 3 }
  0x29   : > { %11642 = sst [smem:[#allocation33_spill]] %s8305_s29  ;;  %p6695_p3 = scmp.ge.s32.totalorder %s8325_s1, 1 }
  0x2a   : > { %11643 = sst [smem:[#allocation34_spill]] %s8309_s0  ;;  %p511_p4 = scmp.lt.s32.totalorder %s8325_s1, 5 }
  0x2b   : > { %11644 = sst [smem:[#allocation35_spill]] %s8313_s30  ;;  %p8493_p5 = por %p172_p0, %p11590_p1 }
  0x2c   : > { %11645 = sst [smem:[#allocation36_spill]] %s8317_s18  ;;  %p8497_p6 = pnand %p6695_p3, %p511_p4 }
  0x2d   : > { %11646 = sst [smem:[#allocation37_spill]] %s8321_s19  ;;  %s8327_s16 = smov [#allocation6]  }
  0x2e   : > { %s11647_s21 = scalar_select %p8493_p5, 1, 0 }
  0x2f   : > { %s11649_s22 = scalar_select %p8497_p6, 1, 0 }
  0x30   : > { %11648 = sst [smem:[#allocation38_spill]] %s11647_s21  ;;  %p7263_p7 = pneg %p8497_p6 }
  0x31   : > { %11650 = sst [smem:[#allocation39_spill]] %s11649_s22  ;;  %s524_s15 = sshll.u32 %s8327_s16, 4  ;;  %s525_s15 = int_to_ptr.vmem [resolvable:$true] %s524_s15 }
  0x32   : > { %s11651_s17 = sld [smem:[#allocation61_spill]]  ;;  %p8508_p8 = pnand %p7263_p7, %p11590_p1 }
  0x33   : > { %s11579_s14 = smov 64   ;;  %s11581_s23 = smov 4  }
  0x34   : > { %p73_p9 = scmp.eq.s32.totalorder %s8325_s1, 0  ;;  %p166_p10 = scmp.ne.s32.totalorder %s8293_s26, %s8289_s25 }
  0x35   : > { %p7304_p11 = scmp.lt.s32.totalorder %s8325_s1, 4  ;;  %s8523_s16 = sand.u32 1, %s8325_s1  }
  0x36   : > { %s8526_s24 = sand.u32 1, %s8293_s26   ;;  %p168_p12 = por %p166_p10, %p73_p9 }
  0x37   : > { %s11653_s4 = sld [smem:[#allocation64_spill]]  ;;  %s7232_s21 = smul.u32 3, %s8317_s18 }
  0x38   : > { %s522_s30 = sshll.u32 %s11651_s17, 4  ;;  %p8537_p13 = pnand %p7304_p11, %p168_p12  ;;  %s523_s30 = int_to_ptr.hbm [resolvable:$true] %s522_s30 }
  0x39   : > { %7266 = dma.hbm_to_vmem [thread:$0]  (!%p8508_p8), %s523_s30, 1024, %s525_s15, [#allocation7], %s11579_s14, %s11579_s14, %s11581_s23  }
  0x3a   : > { %s590_s30 = scalar_lea.vmem [#allocation9], %s8526_s24  ;;  %s7231_s17 = smul.u32 3, %s8526_s24 }
  0x3b   : > { %s597_s14 = sshll.u32 %s590_s30, 4  ;;  %s11588_s3 = scalar_lea.sflag [#allocation10], %s8523_s16  ;;  %s598_s14 = int_to_ptr.vmem [resolvable:$true] %s597_s14 }
  0x3c   : > { %s11655_s6 = sld [smem:[#allocation66_spill]]  ;;  %s630_s25 = scalar_lea.vmem [#allocation12], %s7231_s17 }
  0x3d   : > { %s593_s0 = scalar_lea.hbm %s11653_s4, %s8317_s18  ;;  %s638_s22 = sshll.u32 %s630_s25, 4  ;;  %s639_s22 = int_to_ptr.vmem [resolvable:$true] %s638_s22 }
  0x3e   : > { %s595_s15 = sshll.u32 %s593_s0, 4  ;;  %s11587_s10 = scalar_lea.sflag [#allocation13], %s8523_s16  ;;  %s596_s15 = int_to_ptr.hbm [resolvable:$true] %s595_s15 }
  0x3f   : > { %7276 = dma.hbm_to_vmem [thread:$0]  (!%p8537_p13), %s596_s15, 16, %s598_s14, %s11588_s3  }
  0x40   : > { %s11656_s8 = sld [smem:[#allocation68_spill]]  ;;  %s670_s9 = scalar_lea.vmem [#allocation15], %s8526_s24 }
  0x41   : > { %s677_s0 = sshll.u32 %s670_s9, 4  ;;  %s6707_s25 = sshll.u32 %s8526_s24, 7  ;;  %s678_s0 = int_to_ptr.vmem [resolvable:$true] %s677_s0 }
  0x42   : > { %s634_s30 = scalar_lea.hbm %s11655_s6, %s7232_s21  ;;  %s11589_s21 = scalar_lea.sflag [#allocation16], %s8523_s16 }
  0x43   : > { %s636_s4 = sshll.u32 %s634_s30, 4  ;;  %s7115_s17 = sshll.u32 %s8317_s18, 7  ;;  %s637_s4 = int_to_ptr.hbm [resolvable:$true] %s636_s4 }
  0x44   : > { %7282 = dma.hbm_to_vmem [thread:$0]  (!%p8537_p13), %s637_s4, 48, %s639_s22, %s11587_s10  }
  0x45   : > { %s11657_s11 = sld [smem:[#allocation71_spill]]  ;;  %s711_s5 = scalar_lea.vmem [#allocation18], %s6707_s25 }
  0x46   : > { %s673_s14 = scalar_lea.hbm %s11656_s8, %s8317_s18  ;;  %s719_s7 = sshll.u32 %s711_s5, 4  ;;  %s720_s7 = int_to_ptr.vmem [resolvable:$true] %s719_s7 }
  0x47   : > { %s675_s15 = sshll.u32 %s673_s14, 4  ;;  %s11591_s14 = scalar_lea.sflag [#allocation19], %s8523_s16  ;;  %s676_s15 = int_to_ptr.hbm [resolvable:$true] %s675_s15 }
  0x48   : > { %7288 = dma.hbm_to_vmem [thread:$0]  (!%p8537_p13), %s676_s15, 16, %s678_s0, %s11589_s21  }
  0x49   : > { %s11592_s9 = smov 128   ;;  %s11593_s3 = smov 8  }
  0x4a   : > { %s11658_s13 = sld [smem:[#allocation73_spill]]  ;;  %s740_s4 = scalar_lea.vmem [#allocation20], %s6707_s25 }
  0x4b   : > { %s716_s22 = scalar_lea.hbm %s11657_s11, %s7115_s17  ;;  %s11659_s2 = sld [smem:[#allocation62_spill]] }
  0x4c   : > { %s717_s10 = sshll.u32 %s716_s22, 4  ;;  %s748_s22 = sshll.u32 %s740_s4, 4  ;;  %s718_s10 = int_to_ptr.hbm [resolvable:$true] %s717_s10  ;;  %s8582_s22 = int_to_ptr.vmem [resolvable:$true] %s748_s22 }
  0x4d   : > { %7294 = dma.hbm_to_vmem [thread:$0]  (!%p8537_p13), %s718_s10, 2048, %s720_s7, %s11591_s14, %s11592_s9, %s11592_s9, %s11593_s3  }
  0x4e   : > { %s6694_s7 = sadd.s32 4294967294, %s8325_s1   ;;  %s55_s6 = sadd.s32 1, %s8317_s18 }
  0x4f   : > { %p56_p0 = scmp.ge.s32.totalorder %s55_s6, 2  ;;  %s58_s21 = sadd.s32 1, %s8321_s19 }
  0x50   : > { %s745_s30 = scalar_lea.hbm %s11658_s13, %s7115_s17  ;;  %s8332_s17 = smov [#allocation8]  }
  0x51   : > { %s746_s5 = sshll.u32 %s745_s30, 4  ;;  %s536_s10 = sshll.u32 %s11659_s2, 4  ;;  %s8584_s5 = int_to_ptr.hbm [resolvable:$true] %s746_s5  ;;  %s537_s10 = int_to_ptr.hbm [resolvable:$true] %s536_s10 }
  0x52   : > { %s538_s25 = sshll.u32 %s8332_s17, 4  ;;  %s65_s15 = sadd.s32 1, %s8305_s29  ;;  %s539_s25 = int_to_ptr.vmem [resolvable:$true] %s538_s25 }
  0x53   : > { %7269 = dma.hbm_to_vmem [thread:$0]  (!%p8508_p8), %s537_s10, 2048, %s539_s25, [#allocation7], %s11592_s9, %s11592_s9, %s11593_s3  }
  0x54   : > { %p72_p3 = scmp.ne.s32.totalorder %s8305_s29, %s8301_s28  ;;  %s11799_s6 = smov (%p56_p0, %s55_s6), 0 }
  0x55   : > { %11660 = sst [smem:[#allocation40_spill]] %s11799_s6  ;;  %s11801_s21 = smov (!%p56_p0, %s58_s21), %s8321_s19 }
  0x56   : > { %p8605_p4 = por %p73_p9, %p72_p3  ;;  %p78_p7 = scmp.ne.s32.totalorder %s8301_s28, %s8297_s27 }
  0x57   : > { %p60_p8 = scmp.ge.s32.totalorder %s11801_s21, 2  ;;  %s156_s0 = ssub.s32 %s8317_s18, %s11799_s6 }
  0x58   : > { %p8618_p10 = por %p11590_p1, %p78_p7  ;;  %p157_p12 = scmp.eq.s32.totalorder %s156_s0, 0 }
  0x59   : > { %s11803_s21 = smov (%p60_p8, %s11801_s21), 0  ;;  %s11664_s4 = sadd.s32 1, %s8293_s26 }
  0x5a   : > { %11663 = sst [smem:[#allocation41_spill]] %s11803_s21  ;;  %s62_s17 = ssub.s32 %s8321_s19, %s11803_s21 }
  0x5b   : > { %s8627_s10 = scalar_select %p157_p12, %s8293_s26, %s11664_s4  }
  0x5c   : > { %p8633_p9 = por %p498_p2, %p72_p3  ;;  %p63_p0 = scmp.eq.s32.totalorder %s62_s17, 0 }
  0x5d   : > { %11665 = sst [smem:[#allocation42_spill]] %s8627_s10  ;;  %p504_p1 = scmp.eq.s32.totalorder %s6694_s7, 3 }
  0x5e   : > { %s558_s14 = sand.u32 1, %s8305_s29   ;;  %s7113_s0 = sshll.u32 %s8321_s19, 7 }
  0x5f   : > { %s8640_s9 = scalar_select %p63_p0, %s8305_s29, %s65_s15  }
  0x60   : > { %p8645_p8 = por %p504_p1, %p78_p7  ;;  %s6699_s3 = sshll.u32 %s558_s14, 7 }
  0x61   : > { %11667 = sst [smem:[#allocation43_spill]] %s8640_s9  ;;  %s562_s6 = scalar_lea.vmem [#allocation3], %s6699_s3 }
  0x62   : > { %s11668_s4 = scalar_select %p8645_p8, 1, 0 }
  0x63   : > { %s11670_s11 = sld [smem:[#allocation60_spill]]  ;;  %s571_s17 = sshll.u32 %s562_s6, 4  ;;  %s572_s17 = int_to_ptr.vmem [resolvable:$true] %s571_s17 }
  0x64   : > { %11669 = sst [smem:[#allocation44_spill]] %s11668_s4  ;;  %p7271_p1 = pnand %p7304_p11, %p8605_p4 }
  0x65   : > { %s7229_s7 = smul.u32 192, %s8526_s24  ;;  %s559_s19 = scalar_lea.sflag [#allocation4], %s558_s14 }
  0x66   : > { %s7230_s15 = smul.u32 192, %s8317_s18  ;;  %s11671_s9 = smov 8  }
  0x67   : > { %s11672_s29 = smov 128   ;;  %s608_s6 = scalar_lea.vmem [#allocation11], %s7229_s7 }
  0x68   : > { %s616_s12 = sshll.u32 %s608_s6, 4  ;;  %s8333_s10 = smov 192   ;;  %s617_s12 = int_to_ptr.vmem [resolvable:$true] %s616_s12 }
  0x69   : > { %s568_s13 = scalar_lea.hbm %s11670_s11, %s7113_s0  ;;  %s11673_s11 = sld [smem:[#allocation65_spill]] }
  0x6a   : > { %s569_s21 = sshll.u32 %s568_s13, 4  ;;  %s6704_s0 = sshll.u32 %s8526_s24, 6  ;;  %s570_s21 = int_to_ptr.hbm [resolvable:$true] %s569_s21 }
  0x6b   : > { %7273 = dma.hbm_to_vmem [thread:$0]  (!%p7271_p1), %s570_s21, 2048, %s572_s17, %s559_s19, %s11672_s29, %s11672_s29, %s11671_s9  }
  0x6c   : > { %s8334_s14 = smov 12   ;;  %s11674_s26 = scalar_lea.sflag [#allocation10], %s8523_s16 }
  0x6d   : > { %s7114_s29 = sshll.u32 %s8317_s18, 6  ;;  %s11675_s21 = sld [smem:[#allocation67_spill]] }
  0x6e   : > { %s649_s7 = scalar_lea.vmem [#allocation14], %s6704_s0  ;;  %s11676_s8 = smov 4  }
  0x6f   : > { %s613_s13 = scalar_lea.hbm %s11673_s11, %s7230_s15  ;;  %s657_s15 = sshll.u32 %s649_s7, 4  ;;  %s658_s15 = int_to_ptr.vmem [resolvable:$true] %s657_s15 }
  0x70   : > { %s614_s3 = sshll.u32 %s613_s13, 4  ;;  %s11677_s11 = smov 64   ;;  %s615_s3 = int_to_ptr.hbm [resolvable:$true] %s614_s3 }
  0x71   : > { %7279 = dma.hbm_to_vmem [thread:$0]  (!%p8537_p13), %s615_s3, 3072, %s617_s12, %s11674_s26, %s8333_s10, %s8333_s10, %s8334_s14  }
  0x72   : > { %s11678_s13 = scalar_lea.sflag [#allocation13], %s8523_s16  ;;  %s11679_s3 = sld [smem:[#allocation70_spill]] }
  0x73   : > { %s654_s17 = scalar_lea.hbm %s11675_s21, %s7114_s29  ;;  %s693_s12 = scalar_lea.vmem [#allocation17], %s8526_s24 }
  0x74   : > { %s655_s2 = sshll.u32 %s654_s17, 4  ;;  %s700_s14 = sshll.u32 %s693_s12, 4  ;;  %s656_s2 = int_to_ptr.hbm [resolvable:$true] %s655_s2  ;;  %s701_s14 = int_to_ptr.vmem [resolvable:$true] %s700_s14 }
  0x75   : > { %7285 = dma.hbm_to_vmem [thread:$0]  (!%p8537_p13), %s656_s2, 1024, %s658_s15, %s11678_s13, %s11677_s11, %s11677_s11, %s11676_s8  }
  0x76   : > { %s11680_s0 = scalar_lea.sflag [#allocation16], %s8523_s16  ;;  %s11681_s29 = scalar_lea.sflag [#allocation19], %s8523_s16 }
  0x77   : > { %7297 = dma.hbm_to_vmem [thread:$0]  (!%p8537_p13), %s8584_s5, 2048, %s8582_s22, %s11681_s29, %s11677_s11, %s11677_s11, %s11676_s8  }
  0x78   : > { %s696_s6 = scalar_lea.hbm %s11679_s3, %s8317_s18  ;;  %766 = sbr.rel (%p8497_p6) target bundleno = 4561 (0x11d1), region = 88 }
  0x79   : > { %s698_s4 = sshll.u32 %s696_s6, 4  ;;  %s699_s4 = int_to_ptr.hbm [resolvable:$true] %s698_s4 }
  0x7a   : > { %7291 = dma.hbm_to_vmem [thread:$0]  (!%p8537_p13), %s699_s4, 16, %s701_s14, %s11680_s0  }
  0x7d   : > { %s8701_s9 = sand.u32 1, %s8301_s28  }
  0x7e   : > { %s6714_s24 = sshll.u32 %s8701_s9, 7  ;;  %s769_s21 = scalar_lea.sflag [#allocation4], %s8701_s9 }
  0x7f   : > { %s8705_s17 = scalar_lea.vmem [#allocation3], %s6714_s24 }
  0x80   : > { %8256 = dma.done.wait (%p8618_p10), %s769_s21, 2048  }
  0x81   : > { %8258 = vsyncadd (%p8618_p10), %s769_s21, 4294965248  ;;  %p11683_p2 = scmp.eq.s32.totalorder %s8484_s20, 0 }
  0x83   : > { %8260 = dma.done.wait (%p11683_p2), [#allocation7], 3072   ;;  %p11684_p6 = pmov %p11683_p2 }
  0x84   : > { %s11685_s23 = sld [smem:[#allocation29_spill]]  ;;  %s788_s22 = sand.u32 1, %s8484_s20  }
  0x85   : > { %8262 = vsyncadd (%p11684_p6), [#allocation7], 4294964224  ;;  %s789_s4 = scalar_lea.sflag [#allocation10], %s788_s22 }
  0x8a   : > { %s8717_s5 = sand.u32 1, %s11685_s23  }
  0x8b   : > { %8264 = dma.done.wait (%p8493_p5), %s789_s4, 3088  }
  0x8c   : > { %8266 = vsyncadd (%p8493_p5), %s789_s4, 4294964208  ;;  %s7233_s30 = smul.u32 192, %s8717_s5  ;;  %s808_s8 = scalar_lea.sflag [#allocation13], %s788_s22 }
  0x8d   : > { %s7234_s15 = smul.u32 3, %s8717_s5 }
  0x8e   : > { %s8726_s2 = scalar_lea.vmem [#allocation11], %s7233_s30 }
  0x8f   : > { %s8728_s11 = scalar_lea.vmem [#allocation12], %s7234_s15 }
  0x90   : > { %8268 = dma.done.wait (%p8493_p5), %s808_s8, 1072  }
  0x91   : > { %8270 = vsyncadd (%p8493_p5), %s808_s8, 4294966224  ;;  %s6717_s20 = sshll.u32 %s8717_s5, 6  ;;  %s828_s26 = scalar_lea.sflag [#allocation16], %s788_s22 }
  0x92   : > { %s8735_s13 = scalar_lea.vmem [#allocation14], %s6717_s20 }
  0x93   : > { %8272 = dma.done.wait (%p8493_p5), %s828_s26, 32  }
  0x94   : > { %8274 = vsyncadd (%p8493_p5), %s828_s26, 4294967264  ;;  %s6718_s3 = sshll.u32 %s8717_s5, 7  ;;  %s846_s12 = scalar_lea.sflag [#allocation19], %s788_s22 }
  0x95   : > { %s8744_s14 = scalar_lea.vmem [#allocation18], %s6718_s3 }
  0x96   : > { %8276 = dma.done.wait (%p8493_p5), %s846_s12, 4096  }
  0x97   : > { %8278 = vsyncadd (%p8493_p5), %s846_s12, 4294963200  ;;  %s11687_s0 = sld [smem:[#allocation34_spill]]  ;;  %s6720_s29 = sshll.u32 %s8701_s9, 3 }
  0x98   : > { %s11688_s23 = sld [smem:[#allocation63_spill]]  ;;  %s8773_s27 = scalar_lea.vmem [#allocation20], %s6718_s3 }
  0x99   : > { %s11689_s15 = sld [smem:[#allocation69_spill]]  ;;  %s8775_s24 = scalar_lea.vmem [#allocation21], %s6720_s29 }
  0x9a   : > { %s11690_s12 = sld [smem:[#allocation74_spill]] }
  0x9b   : > { %s11691_s18 = sld [smem:[#allocation72_spill]] }
  0x9d   : > { %p962_p11 = scmp.lt.s32.totalorder %s11687_s0, 1  ;;  %p6722_p5 = scmp.ne.s32.totalorder %s11687_s0, 0 }
  0x9f   : > { %s8753_s19 = scalar_select %p962_p11, %s11687_s0, 1 }
  0xa0   : > { %979 = sbr.rel (%p6722_p5) target bundleno = 358 (0x166), region = 136 }
  0xa1   : > { %s964_s22 = scalar_lea.vmem %s11688_s23, %s8753_s19  ;;  %s967_s16 = scalar_lea.vmem %s11689_s15, %s8753_s19 }
  0xa2   : > { %s6721_s8 = sshll.u32 %s8753_s19, 1  ;;  %s974_s6 = scalar_lea.vmem %s11690_s12, %s8753_s19 }
  0xa3   : > { %s8771_s28 = scalar_lea.vmem %s11691_s18, %s6721_s8 }
  0xa5   : > { %v7124_v0 = vld [vmem:[#allocation6 + $0x38] sm:$0xff]  ;;  %v7123_v1 = vld [vmem:[#allocation6 + $0x30] sm:$0xff]  ;;  %v7122_v2 = vld [vmem:[#allocation6 + $0x28] sm:$0xff] }
  0xa6   : > { %1084 = vmatpush.bf16.msra.mxu0 %v7124_v0  ;;  %7189 = vmatpush.bf16.msra.mxu1 %v7124_v0  ;;  %v7121_v3 = vld [vmem:[#allocation6 + $0x20] sm:$0xff]  ;;  %v7120_v4 = vld [vmem:[#allocation6 + $0x18] sm:$0xff]  ;;  %v7119_v5 = vld [vmem:[#allocation6 + $0x10] sm:$0xff] }
  0xa7   : > { %7190 = vmatpush.bf16.msra.mxu2 %v7124_v0  ;;  %7191 = vmatpush.bf16.msra.mxu3 %v7124_v0  ;;  %v7118_v6 = vld [vmem:[#allocation6 + $0x8] sm:$0xff]  ;;  %v7117_v7 = vld [vmem:[#allocation6] sm:$0xff]  ;;  %v982_v20 = vld [vmem:[%s8705_s17 + $0x10] sm:$0xff] }
  0xa8   : > { %v980_v8 = vld [vmem:[%s8705_s17] sm:$0xff]  ;;  %v981_v9 = vld [vmem:[%s8705_s17 + $0x8] sm:$0xff]  ;;  %v983_v21 = vld [vmem:[%s8705_s17 + $0x18] sm:$0xff] }
  0xa9   : > { %v984_v10 = vld [vmem:[%s8705_s17 + $0x20] sm:$0xff]  ;;  %v985_v11 = vld [vmem:[%s8705_s17 + $0x28] sm:$0xff]  ;;  %v996_v16 = vpack.c.bf16 %v981_v9, %v980_v8  ;;  %v986_v22 = vld [vmem:[%s8705_s17 + $0x30] sm:$0xff]  ;;  %v997_v28 = vpack.c.bf16 %v983_v21, %v982_v20 }
  0xaa   : > { %1085 = vmatpush.bf16.msra.mxu0 %v7123_v1  ;;  %7192 = vmatpush.bf16.msra.mxu1 %v7123_v1  ;;  %v988_v12 = vld [vmem:[%s8705_s17 + $0x40] sm:$0xff]  ;;  %v989_v13 = vld [vmem:[%s8705_s17 + $0x48] sm:$0xff]  ;;  %v998_v17 = vpack.c.bf16 %v985_v11, %v984_v10  ;;  %v987_v23 = vld [vmem:[%s8705_s17 + $0x38] sm:$0xff] }
  0xab   : > { %7193 = vmatpush.bf16.msra.mxu2 %v7123_v1  ;;  %7194 = vmatpush.bf16.msra.mxu3 %v7123_v1  ;;  %v992_v14 = vld [vmem:[%s8705_s17 + $0x60] sm:$0xff]  ;;  %v993_v15 = vld [vmem:[%s8705_s17 + $0x68] sm:$0xff]  ;;  %v1000_v18 = vpack.c.bf16 %v989_v13, %v988_v12  ;;  %v990_v24 = vld [vmem:[%s8705_s17 + $0x50] sm:$0xff]  ;;  %v999_v29 = vpack.c.bf16 %v987_v23, %v986_v22 }
  0xac   : > { %v1002_v19 = vpack.c.bf16 %v993_v15, %v992_v14  ;;  %v991_v25 = vld [vmem:[%s8705_s17 + $0x58] sm:$0xff]  ;;  %v994_v26 = vld [vmem:[%s8705_s17 + $0x70] sm:$0xff]  ;;  %v1020_v32 = vld [vmem:[#allocation8] sm:$0xff] }
  0xad   : > { %v995_v27 = vld [vmem:[%s8705_s17 + $0x78] sm:$0xff]  ;;  %v1001_v30 = vpack.c.bf16 %v991_v25, %v990_v24  ;;  %v1024_v33 = vld [vmem:[#allocation8 + $0x20] sm:$0xff]  ;;  %v1021_v40 = vld [vmem:[#allocation8 + $0x8] sm:$0xff] }
  0xae   : > { %1086 = vmatpush.bf16.msra.mxu0 %v7122_v2  ;;  %7195 = vmatpush.bf16.msra.mxu1 %v7122_v2  ;;  %v1003_v31 = vpack.c.bf16 %v995_v27, %v994_v26  ;;  %v1028_v38 = vld [vmem:[#allocation8 + $0x40] sm:$0xff]  ;;  %v1025_v41 = vld [vmem:[#allocation8 + $0x28] sm:$0xff]  ;;  %v1022_v52 = vld [vmem:[#allocation8 + $0x10] sm:$0xff] }
  0xaf   : > { %7196 = vmatpush.bf16.msra.mxu2 %v7122_v2  ;;  %7197 = vmatpush.bf16.msra.mxu3 %v7122_v2  ;;  %v1032_v39 = vld [vmem:[#allocation8 + $0x60] sm:$0xff]  ;;  %v1029_v50 = vld [vmem:[#allocation8 + $0x48] sm:$0xff]  ;;  %v1026_v53 = vld [vmem:[#allocation8 + $0x30] sm:$0xff] }
  0xb0   : > { %v1033_v51 = vld [vmem:[#allocation8 + $0x68] sm:$0xff]  ;;  %v1030_v62 = vld [vmem:[#allocation8 + $0x50] sm:$0xff]  ;;  %v1023_v0 = vld [vmem:[#allocation8 + $0x18] sm:$0xff] }
  0xb1   : > { %v1034_v63 = vld [vmem:[#allocation8 + $0x70] sm:$0xff]  ;;  %v1027_v1 = vld [vmem:[#allocation8 + $0x38] sm:$0xff] }
  0xb2   : > { %1087 = vmatpush.bf16.msra.mxu0 %v7121_v3  ;;  %7198 = vmatpush.bf16.msra.mxu1 %v7121_v3  ;;  %v1031_v10 = vld [vmem:[#allocation8 + $0x58] sm:$0xff] }
  0xb3   : > { %7199 = vmatpush.bf16.msra.mxu2 %v7121_v3  ;;  %7200 = vmatpush.bf16.msra.mxu3 %v7121_v3  ;;  %v1035_v11 = vld [vmem:[#allocation8 + $0x78] sm:$0xff] }
  0xb6   : > { %1088 = vmatpush.bf16.msra.mxu0 %v7120_v4  ;;  %7201 = vmatpush.bf16.msra.mxu1 %v7120_v4 }
  0xb7   : > { %7202 = vmatpush.bf16.msra.mxu2 %v7120_v4  ;;  %7203 = vmatpush.bf16.msra.mxu3 %v7120_v4 }
  0xba   : > { %1089 = vmatpush.bf16.msra.mxu0 %v7119_v5  ;;  %7204 = vmatpush.bf16.msra.mxu1 %v7119_v5 }
  0xbb   : > { %7205 = vmatpush.bf16.msra.mxu2 %v7119_v5  ;;  %7206 = vmatpush.bf16.msra.mxu3 %v7119_v5 }
  0xbe   : > { %1090 = vmatpush.bf16.msra.mxu0 %v7118_v6  ;;  %7207 = vmatpush.bf16.msra.mxu1 %v7118_v6 }
  0xbf   : > { %7208 = vmatpush.bf16.msra.mxu2 %v7118_v6  ;;  %7209 = vmatpush.bf16.msra.mxu3 %v7118_v6 }
  0xc2   : > { %1091 = vmatpush.bf16.msra.mxu0 %v7117_v7  ;;  %7210 = vmatpush.bf16.msra.mxu1 %v7117_v7 }
  0xc3   : > { %7211 = vmatpush.bf16.msra.mxu2 %v7117_v7  ;;  %7212 = vmatpush.bf16.msra.mxu3 %v7117_v7 }
  0xc5   : > { %1092 = vmatmul.bf16.vlgmr.msra.gmra.mxu0 %v996_v16  ;;  %1102 = vmatmul.bf16.vlgmr.msra.gmra.mxu1 %v998_v17 }
  0xc6   : > { %1112 = vmatmul.bf16.vlgmr.msra.gmra.mxu2 %v1000_v18  ;;  %1122 = vmatmul.bf16.vlgmr.msra.gmra.mxu3 %v1002_v19 }
  0xd5   : > { %1097 = vmatmul.bf16.gmra.mxu0 %v997_v28  ;;  %1107 = vmatmul.bf16.gmra.mxu1 %v999_v29 }
  0xd6   : > { %1117 = vmatmul.bf16.gmra.mxu2 %v1001_v30  ;;  %1127 = vmatmul.bf16.gmra.mxu3 %v1003_v31 }
 0x142   : > { %v1093_v34 = vpop.f32.mrf.mxu0  ;;  %v1103_v35 = vpop.f32.mrf.mxu1 }
 0x143   : > { %v1094_v36 = vadd.f32 %v1093_v34, %v1020_v32  ;;  %v1104_v37 = vadd.f32 %v1103_v35, %v1024_v33 }
 0x145   : > { %1133 = vst [vmem:[#allocation2 + $0x30] sm:$0xff] %v1094_v36 }
 0x146   : > { %1137 = vst [vmem:[#allocation2 + $0x50] sm:$0xff] %v1104_v37 }
 0x149   : > { %v1113_v42 = vpop.f32.mrf.mxu2  ;;  %v1123_v43 = vpop.f32.mrf.mxu3 }
 0x14a   : > { %v1114_v44 = vadd.f32 %v1113_v42, %v1028_v38  ;;  %v1124_v45 = vadd.f32 %v1123_v43, %v1032_v39  ;;  %v1095_v46 = vpop.f32.mrf.mxu0  ;;  %v1105_v47 = vpop.f32.mrf.mxu1 }
 0x14b   : > { %v1096_v48 = vadd.f32 %v1095_v46, %v1021_v40  ;;  %v1106_v49 = vadd.f32 %v1105_v47, %v1025_v41 }
 0x14c   : > { %1141 = vst [vmem:[#allocation2 + $0x40] sm:$0xff] %v1114_v44 }
 0x14d   : > { %1145 = vst [vmem:[#allocation2 + $0x60] sm:$0xff] %v1124_v45 }
 0x14e   : > { %1134 = vst [vmem:[#allocation2] sm:$0xff] %v1096_v48 }
 0x14f   : > { %1138 = vst [vmem:[#allocation2 + $0x68] sm:$0xff] %v1106_v49 }
 0x151   : > { %v1115_v54 = vpop.f32.mrf.mxu2  ;;  %v1125_v55 = vpop.f32.mrf.mxu3 }
 0x152   : > { %v1116_v56 = vadd.f32 %v1115_v54, %v1029_v50  ;;  %v1126_v57 = vadd.f32 %v1125_v55, %v1033_v51  ;;  %v1098_v58 = vpop.f32.mrf.mxu0  ;;  %v1108_v59 = vpop.f32.mrf.mxu1 }
 0x153   : > { %v1099_v60 = vadd.f32 %v1098_v58, %v1022_v52  ;;  %v1109_v61 = vadd.f32 %v1108_v59, %v1026_v53 }
 0x154   : > { %1142 = vst [vmem:[#allocation2 + $0x20] sm:$0xff] %v1116_v56 }
 0x155   : > { %1146 = vst [vmem:[#allocation2 + $0x70] sm:$0xff] %v1126_v57 }
 0x156   : > { %1135 = vst [vmem:[#allocation2 + $0x58] sm:$0xff] %v1099_v60 }
 0x157   : > { %1139 = vst [vmem:[#allocation2 + $0x8] sm:$0xff] %v1109_v61 }
 0x159   : > { %v1118_v2 = vpop.f32.mrf.mxu2  ;;  %v1128_v3 = vpop.f32.mrf.mxu3 }
 0x15a   : > { %v1119_v4 = vadd.f32 %v1118_v2, %v1030_v62  ;;  %v1129_v5 = vadd.f32 %v1128_v3, %v1034_v63  ;;  %v1100_v6 = vpop.f32.mrf.mxu0  ;;  %v1110_v7 = vpop.f32.mrf.mxu1 }
 0x15b   : > { %v1101_v8 = vadd.f32 %v1100_v6, %v1023_v0  ;;  %v1111_v9 = vadd.f32 %v1110_v7, %v1027_v1 }
 0x15c   : > { %1143 = vst [vmem:[#allocation2 + $0x10] sm:$0xff] %v1119_v4 }
 0x15d   : > { %1147 = vst [vmem:[#allocation2 + $0x78] sm:$0xff] %v1129_v5 }
 0x15e   : > { %1136 = vst [vmem:[#allocation2 + $0x18] sm:$0xff] %v1101_v8 }
 0x15f   : > { %1140 = vst [vmem:[#allocation2 + $0x48] sm:$0xff] %v1111_v9 }
 0x161   : > { %v1120_v12 = vpop.f32.mrf.mxu2  ;;  %v1130_v13 = vpop.f32.mrf.mxu3 }
 0x162   : > { %v1121_v14 = vadd.f32 %v1120_v12, %v1031_v10  ;;  %v1131_v15 = vadd.f32 %v1130_v13, %v1035_v11 }
 0x164   : > { %1144 = vst [vmem:[#allocation2 + $0x38] sm:$0xff] %v1121_v14 }
 0x165   : > { %1148 = vst [vmem:[#allocation2 + $0x28] sm:$0xff] %v1131_v15 }
 0x166 PF: > { %v1159_v16 = vld [vmem:[#allocation2 + $0x10] sm:$0xff]  ;;  %v1157_v17 = vld [vmem:[#allocation2 + $0x40] sm:$0xff]  ;;  %v8335_v23 = vmov 128.0   ;;  %v8821_v51 = vld [vmem:[#allocation2 + $0x58] sm:$0xff]  ;;  %s11696_s10 = scalar_lea.vmem [#allocation9], %s8717_s5  ;;  %s8338_s3 = smov 32  }
 0x167   : > { %1187 = vadd.xlane.f32.xlu1 %v1159_v16  ;;  %1183 = vadd.xlane.f32.xlu0 %v1157_v17  ;;  %v1161_v18 = vld [vmem:[#allocation2 + $0x60] sm:$0xff]  ;;  %v1162_v21 = vld [vmem:[#allocation2 + $0x70] sm:$0xff]  ;;  %7415 = vrcp.f32 %v8335_v23  ;;  %v8833_v58 = vld [vmem:[#allocation2 + $0x18] sm:$0xff]  ;;  %s11760_s21 = scalar_lea.vmem [#allocation17], %s8717_s5 }
 0x168   : > { %1191 = vadd.xlane.f32.xlu2 %v1161_v18  ;;  %v1158_v20 = vld [vmem:[#allocation2 + $0x20] sm:$0xff]  ;;  %v1149_v22 = vld [vmem:[#allocation2 + $0x30] sm:$0xff]  ;;  %v8835_v59 = vld [vmem:[#allocation2 + $0x68] sm:$0xff] }
 0x169   : > { %v8807_v42 = vld [vmem:[#allocation2] sm:$0xff]  ;;  %v8843_v62 = vld [vmem:[#allocation2 + $0x50] sm:$0xff]  ;;  %v8845_v63 = vld [vmem:[#allocation2 + $0x8] sm:$0xff] }
 0x16a   : > { %v8849_v0 = vld [vmem:[#allocation2 + $0x48] sm:$0xff]  ;;  %v7147_v2 = vld [vmem:[%s8726_s2 + $0xb0] sm:$0xf0]  ;;  %v6829_v4 = vld [vmem:[%s8726_s2 + $0x90] sm:$0xf] }
 0x16b   : > { %v1160_v19 = vld [vmem:[#allocation2 + $0x38] sm:$0xff]  ;;  %v6841_v1 = vld [vmem:[%s8726_s2 + $0xa8] sm:$0xf]  ;;  %v7141_v8 = vld [vmem:[%s8726_s2 + $0x80] sm:$0xf0] }
 0x16c   : > { %v6842_v3 = vor.u32 %v7147_v2, %v6841_v1  ;;  %v7144_v5 = vld [vmem:[%s8726_s2 + $0x98] sm:$0xf0]  ;;  %v6817_v7 = vld [vmem:[%s8726_s2 + $0x78] sm:$0xf]  ;;  %v6805_v10 = vld [vmem:[%s8726_s2 + $0x60] sm:$0xf] }
 0x16d   : > { %v7416_v24 = vpop.eup %7415  ;;  %v6830_v6 = vor.u32 %v7144_v5, %v6829_v4  ;;  %v6818_v9 = vor.u32 %v7141_v8, %v6817_v7  ;;  %v7138_v11 = vld [vmem:[%s8726_s2 + $0x68] sm:$0xf0]  ;;  %v6793_v13 = vld [vmem:[%s8726_s2 + $0x48] sm:$0xf]  ;;  %v7135_v14 = vld [vmem:[%s8726_s2 + $0x50] sm:$0xf0] }
 0x16e   : > { %v1200_v25 = vmul.f32 128.0, %v7416_v24  ;;  %vm1204_vm0 = vweird.f32 %v7416_v24  ;;  %7213 = vmatpush.bf16.msra.mxu1 %v6842_v3  ;;  %1708 = vmatpush.bf16.msra.mxu0 %v6842_v3  ;;  %v6806_v12 = vor.u32 %v7138_v11, %v6805_v10  ;;  %v6794_v15 = vor.u32 %v7135_v14, %v6793_v13  ;;  %v8981_v8 = vld [vmem:[#allocation2 + $0x78] sm:$0xff] }
 0x16f   : > { %1189 = vadd.xlane.f32.xlu1 %v1160_v19  ;;  %1185 = vadd.xlane.f32.xlu0 %v1158_v20 }
 0x170   : > { %1193 = vadd.xlane.f32.xlu2 %v1162_v21  ;;  %v1201_v26 = vsub.f32 1.0, %v1200_v25  ;;  %7214 = vmatpush.bf16.msra.mxu3 %v6842_v3  ;;  %v6757_v25 = vld [vmem:[%s8726_s2] sm:$0xf] }
 0x172   : > { %v1202_v27 = vmul.f32 %v7416_v24, %v1201_v26  ;;  %7215 = vmatpush.bf16.msra.mxu1 %v6830_v6  ;;  %1709 = vmatpush.bf16.msra.mxu0 %v6830_v6  ;;  %v7126_v26 = vld [vmem:[%s8726_s2 + $0x8] sm:$0xf0] }
 0x174   : > { %v1203_v28 = vadd.f32 %v7416_v24, %v1202_v27  ;;  %7216 = vmatpush.bf16.msra.mxu3 %v6830_v6  ;;  %v6758_v27 = vor.u32 %v7126_v26, %v6757_v25 }
 0x176   : > { %v8794_v29 = vsel %vm1204_vm0, %v7416_v24, %v1203_v28  ;;  %7217 = vmatpush.bf16.msra.mxu1 %v6818_v9  ;;  %1710 = vmatpush.bf16.msra.mxu0 %v6818_v9 }
 0x177   : > { %11692 = vst [vmem:[#allocation45_spill] sm:$0xff] %v8794_v29 }
 0x178   : > { %1167 = vadd.xlane.f32.xlu2 %v1149_v22  ;;  %7218 = vmatpush.bf16.msra.mxu3 %v6818_v9 }
 0x17a   : > { %7219 = vmatpush.bf16.msra.mxu1 %v6806_v12  ;;  %1711 = vmatpush.bf16.msra.mxu0 %v6806_v12 }
 0x17c   : > { %7220 = vmatpush.bf16.msra.mxu3 %v6806_v12 }
 0x17e   : > { %7221 = vmatpush.bf16.msra.mxu1 %v6794_v15  ;;  %1712 = vmatpush.bf16.msra.mxu0 %v6794_v15 }
 0x180   : > { %7222 = vmatpush.bf16.msra.mxu3 %v6794_v15 }
 0x1da   : > { %v1188_v30 = vpop.xlane.xlu1 %1187  ;;  %v1184_v31 = vpop.xlane.xlu0 %1183 }
 0x1db   : > { %v1214_v32 = vmul.f32 %v8794_v29, %v1184_v31  ;;  %v1192_v34 = vpop.xlane.xlu2 %1191  ;;  %v1216_v44 = vmul.f32 %v8794_v29, %v1188_v30 }
 0x1dc   : > { %v1218_v43 = vmul.f32 %v8794_v29, %v1192_v34 }
 0x1dd   : > { %v8797_v33 = vsub.f32 %v1157_v17, %v1214_v32  ;;  %v8818_v49 = vsub.f32 %v1159_v16, %v1216_v44  ;;  %v6781_v16 = vld [vmem:[%s8726_s2 + $0x30] sm:$0xf]  ;;  %v7132_v17 = vld [vmem:[%s8726_s2 + $0x38] sm:$0xf0] }
 0x1de   : > { %v8816_v48 = vsub.f32 %v1161_v18, %v1218_v43  ;;  %v6782_v18 = vor.u32 %v7132_v17, %v6781_v16 }
 0x1df   : > { %v1246_v35 = vmul.f32 %v8797_v33, %v8797_v33  ;;  %v1248_v53 = vmul.f32 %v8818_v49, %v8818_v49 }
 0x1e0   : > { %v1250_v52 = vmul.f32 %v8816_v48, %v8816_v48  ;;  %7223 = vmatpush.bf16.msra.mxu1 %v6782_v18  ;;  %1713 = vmatpush.bf16.msra.mxu0 %v6782_v18 }
 0x1e1   : > { %1270 = vadd.xlane.f32.xlu0 %v1246_v35  ;;  %7224 = vmatpush.bf16.msra.mxu3 %v6782_v18 }
 0x1e2   : > { %v1190_v36 = vpop.xlane.xlu1 %1189  ;;  %v1186_v37 = vpop.xlane.xlu0 %1185 }
 0x1e3   : > { %v1217_v38 = vmul.f32 %v8794_v29, %v1190_v36  ;;  %v1215_v39 = vmul.f32 %v8794_v29, %v1186_v37  ;;  %v1194_v47 = vpop.xlane.xlu2 %1193 }
 0x1e4   : > { %v1219_v50 = vmul.f32 %v8794_v29, %v1194_v47 }
 0x1e5   : > { %v8803_v40 = vsub.f32 %v1158_v20, %v1215_v39  ;;  %v8805_v41 = vsub.f32 %v1160_v19, %v1217_v38  ;;  %v6769_v19 = vld [vmem:[%s8726_s2 + $0x18] sm:$0xf]  ;;  %v7129_v20 = vld [vmem:[%s8726_s2 + $0x20] sm:$0xf0] }
 0x1e6   : > { %v8828_v54 = vsub.f32 %v1162_v21, %v1219_v50 }
 0x1e7   : > { %v1247_v45 = vmul.f32 %v8803_v40, %v8803_v40  ;;  %v1249_v46 = vmul.f32 %v8805_v41, %v8805_v41 }
 0x1e8   : > { %v1251_v56 = vmul.f32 %v8828_v54, %v8828_v54 }
 0x1e9   : > { %1272 = vadd.xlane.f32.xlu1 %v1247_v45  ;;  %1169 = vadd.xlane.f32.xlu0 %v8807_v42 }
 0x1ea   : > { %1276 = vadd.xlane.f32.xlu2 %v1249_v46 }
 0x1eb   : > { %v1168_v55 = vpop.xlane.xlu2 %1167 }
 0x1ec   : > { %v1206_v57 = vmul.f32 %v8794_v29, %v1168_v55 }
 0x1ee   : > { %v8838_v60 = vsub.f32 %v1149_v22, %v1206_v57  ;;  %v6770_v22 = vor.u32 %v7129_v20, %v6769_v19 }
 0x1f0   : > { %v1238_v61 = vmul.f32 %v8838_v60, %v8838_v60  ;;  %7225 = vmatpush.bf16.msra.mxu1 %v6770_v22  ;;  %1714 = vmatpush.bf16.msra.mxu0 %v6770_v22 }
 0x1f1   : > { %1274 = vadd.xlane.f32.xlu1 %v1248_v53  ;;  %1171 = vadd.xlane.f32.xlu0 %v8821_v51 }
 0x1f2   : > { %1278 = vadd.xlane.f32.xlu2 %v1250_v52  ;;  %7226 = vmatpush.bf16.msra.mxu3 %v6770_v22 }
 0x1f4   : > { %7227 = vmatpush.bf16.msra.mxu1 %v6758_v27  ;;  %1715 = vmatpush.bf16.msra.mxu0 %v6758_v27 }
 0x1f6   : > { %7228 = vmatpush.bf16.msra.mxu3 %v6758_v27 }
 0x1f9   : > { %1173 = vadd.xlane.f32.xlu1 %v8833_v58  ;;  %1280 = vadd.xlane.f32.xlu0 %v1251_v56 }
 0x1fa   : > { %1177 = vadd.xlane.f32.xlu2 %v8835_v59 }
 0x201   : > { %1175 = vadd.xlane.f32.xlu1 %v8843_v62  ;;  %1254 = vadd.xlane.f32.xlu0 %v1238_v61 }
 0x202   : > { %1179 = vadd.xlane.f32.xlu2 %v8845_v63 }
 0x209   : > { %1181 = vadd.xlane.f32.xlu0 %v8849_v0 }
 0x254   : > { %v1271_v21 = vpop.xlane.xlu0 %1270 }
 0x255   : > { %v1294_v23 = vmul.f32 %v1271_v21, %v8794_v29 }
 0x257   : > { %v1310_v24 = vadd.f32 1e-06, %v1294_v23 }
 0x259   : > { %7417 = vrsqrt.f32 %v1310_v24  ;;  %vm1404_vm2 = vweird.f32 %v1310_v24 }
 0x25c   : > { %v1273_v28 = vpop.xlane.xlu1 %1272  ;;  %v1170_v30 = vpop.xlane.xlu0 %1169 }
 0x25d   : > { %v1295_v31 = vmul.f32 %v1273_v28, %v8794_v29  ;;  %v1207_v32 = vmul.f32 %v8794_v29, %v1170_v30  ;;  %v1277_v34 = vpop.xlane.xlu2 %1276 }
 0x25e   : > { %v1297_v35 = vmul.f32 %v1277_v34, %v8794_v29 }
 0x25f   : > { %v7418_v36 = vpop.eup %7417  ;;  %v1311_v37 = vadd.f32 1e-06, %v1295_v31  ;;  %v8873_v38 = vsub.f32 %v8807_v42, %v1207_v32 }
 0x260   : > { %v1399_v39 = vmul.f32 %v7418_v36, %v1310_v24  ;;  %v8875_v43 = vadd.f32 1e-06, %v1297_v35  ;;  %vm1405_vm1 = vweird.f32 %v7418_v36  ;;  %v8921_v24 = vld [vmem:[%s964_s22] ss:$0 sm:$0xff] }
 0x261   : > { %7419 = vrsqrt.f32 %v1311_v37  ;;  %v1239_v44 = vmul.f32 %v8873_v38, %v8873_v38  ;;  %vm8895_vm3 = vmor %vm1404_vm2, %vm1405_vm1  ;;  %vm1414_vm5 = vweird.f32 %v1311_v37 }
 0x262   : > { %v1400_v45 = vmul.f32 %v7418_v36, %v1399_v39  ;;  %7421 = vrsqrt.f32 %v8875_v43  ;;  %vm1434_vm10 = vweird.f32 %v8875_v43 }
 0x263   : > { %1256 = vadd.xlane.f32.xlu1 %v1239_v44 }
 0x264   : > { %v1401_v46 = vmul.f32 0.5, %v1400_v45  ;;  %v1275_v47 = vpop.xlane.xlu1 %1274  ;;  %v1172_v50 = vpop.xlane.xlu0 %1171 }
 0x265   : > { %v1296_v52 = vmul.f32 %v1275_v47, %v8794_v29  ;;  %v1208_v53 = vmul.f32 %v8794_v29, %v1172_v50  ;;  %v1279_v42 = vpop.xlane.xlu2 %1278 }
 0x266   : > { %v1402_v55 = vsub.f32 1.5, %v1401_v46  ;;  %v1298_v56 = vmul.f32 %v1279_v42, %v8794_v29 }
 0x267   : > { %v7420_v57 = vpop.eup %7419  ;;  %v8883_v61 = vadd.f32 1e-06, %v1296_v52  ;;  %v8886_v1 = vsub.f32 %v8821_v51, %v1208_v53 }
 0x268   : > { %v8888_v2 = vpop.eup %7421  ;;  %v1403_v3 = vmul.f32 %v7418_v36, %v1402_v55  ;;  %v1409_v4 = vmul.f32 %v7420_v57, %v1311_v37  ;;  %v8893_v7 = vadd.f32 1e-06, %v1298_v56  ;;  %vm1415_vm4 = vweird.f32 %v7420_v57 }
 0x269   : > { %v1429_v5 = vmul.f32 %v8888_v2, %v8875_v43  ;;  %7423 = vrsqrt.f32 %v8883_v61  ;;  %v1240_v9 = vmul.f32 %v8886_v1, %v8886_v1  ;;  %vm1416_vm6 = vmor %vm1414_vm5, %vm1415_vm4  ;;  %vm1435_vm7 = vweird.f32 %v8888_v2 }
 0x26a   : > { %v1410_v6 = vmul.f32 %v7420_v57, %v1409_v4  ;;  %v1407_v10 = vsel %vm8895_vm3, %v7418_v36, %v1403_v3  ;;  %7425 = vrsqrt.f32 %v8893_v7  ;;  %vm1424_vm8 = vweird.f32 %v8883_v61  ;;  %vm8972_vm12 = vmor %vm1434_vm10, %vm1435_vm7  ;;  %v7142_v4 = vld [vmem:[%s8726_s2 + $0x88] sm:$0xf0] }
 0x26b   : > { %v1430_v51 = vmul.f32 %v8888_v2, %v1429_v5  ;;  %1258 = vadd.xlane.f32.xlu1 %v1240_v9  ;;  %v1486_v23 = vmul.f32 %v1407_v10, %v8797_v33  ;;  %v7146_v9 = vld [vmem:[%s8726_s2 + $0xac] sm:$0xf]  ;;  %v6843_v10 = vld [vmem:[%s8726_s2 + $0xb4] sm:$0xf0]  ;;  %vm1444_vm1 = vweird.f32 %v8893_v7 }
 0x26c   : > { %v1411_v11 = vmul.f32 0.5, %v1410_v6  ;;  %v1174_v12 = vpop.xlane.xlu1 %1173  ;;  %v1281_v13 = vpop.xlane.xlu0 %1280 }
 0x26d   : > { %v1209_v14 = vmul.f32 %v8794_v29, %v1174_v12  ;;  %v1299_v15 = vmul.f32 %v1281_v13, %v8794_v29  ;;  %v1178_v16 = vpop.xlane.xlu2 %1177  ;;  %v1431_v20 = vmul.f32 0.5, %v1430_v51  ;;  %v1505_v34 = vmul.f32 %v8921_v24, %v1486_v23 }
 0x26e   : > { %v1412_v17 = vsub.f32 1.5, %v1411_v11  ;;  %v1211_v18 = vmul.f32 %v8794_v29, %v1178_v16  ;;  %v6849_v11 = vld [vmem:[%s8726_s2 + $0xb0] sm:$0xf]  ;;  %v7148_v16 = vld [vmem:[%s8726_s2 + $0xb8] sm:$0xf0] }
 0x26f   : > { %v8908_v19 = vpop.eup %7423  ;;  %v8910_v21 = vadd.f32 1e-06, %v1299_v15  ;;  %v8913_v22 = vsub.f32 %v8833_v58, %v1209_v14  ;;  %v1432_v30 = vsub.f32 1.5, %v1431_v20  ;;  %v6846_v15 = vor.u32 %v7146_v9, %v6843_v10  ;;  %v7139_v10 = vld [vmem:[%s8726_s2 + $0x70] sm:$0xf0] }
 0x270   : > { %v1413_v25 = vmul.f32 %v7420_v57, %v1412_v17  ;;  %v1419_v26 = vmul.f32 %v8908_v19, %v8883_v61  ;;  %v8926_v27 = vsub.f32 %v8835_v59, %v1211_v18  ;;  %v8938_v59 = vld [vmem:[%s11696_s10] ss:$0 sm:$0xff]  ;;  %v8940_v35 = vpop.eup %7425  ;;  %vm1425_vm9 = vweird.f32 %v8908_v19 }
 0x271   : > { %7427 = vrsqrt.f32 %v8910_v21  ;;  %v1241_v28 = vmul.f32 %v8913_v22, %v8913_v22  ;;  %v1433_v52 = vmul.f32 %v8888_v2, %v1432_v30  ;;  %v1524_v53 = vadd.f32 %v8938_v59, %v1505_v34  ;;  %vm8964_vm11 = vmor %vm1424_vm8, %vm1425_vm9  ;;  %1757 = vmatpush.bf16.msrb.mxu1 %v6846_v15 }
 0x272   : > { %v1417_v58 = vsel %vm1416_vm6, %v7420_v57, %v1413_v25  ;;  %v1420_v33 = vmul.f32 %v8908_v19, %v1419_v26  ;;  %v1243_v31 = vmul.f32 %v8926_v27, %v8926_v27  ;;  %v1439_v57 = vmul.f32 %v8940_v35, %v8893_v7 }
 0x273   : > { %v1487_v32 = vmul.f32 %v1417_v58, %v8803_v40  ;;  %1260 = vadd.xlane.f32.xlu2 %v1241_v28  ;;  %v1437_v12 = vsel %vm8972_vm12, %v8888_v2, %v1433_v52  ;;  %v9003_v58 = vld [vmem:[#allocation2 + $0x28] sm:$0xff]  ;;  %vm1454_vm13 = vweird.f32 %v8910_v21  ;;  %vm1445_vm0 = vweird.f32 %v8940_v35 }
 0x274   : > { %v1421_v36 = vmul.f32 0.5, %v1420_v33  ;;  %v1176_v37 = vpop.xlane.xlu1 %1175  ;;  %v8942_v39 = vpop.xlane.xlu0 %1254  ;;  %1264 = vadd.xlane.f32.xlu1 %v1243_v31  ;;  %v1440_v13 = vmul.f32 %v8940_v35, %v1439_v57  ;;  %v1489_v2 = vmul.f32 %v1437_v12, %v8805_v41  ;;  %vm1446_vm2 = vmor %vm1444_vm1, %vm1445_vm0  ;;  %v7145_v52 = vld [vmem:[%s8726_s2 + $0xa0] sm:$0xf0]  ;;  %v6825_v57 = vld [vmem:[%s8726_s2 + $0x80] sm:$0xf] }
 0x275   : > { %v1210_v44 = vmul.f32 %v8794_v29, %v1176_v37  ;;  %v1180_v45 = vpop.xlane.xlu2 %1179  ;;  %v1506_v40 = vmul.f32 %v8921_v24, %v1487_v32  ;;  %v1286_v5 = vmul.f32 %v8942_v39, %v8794_v29  ;;  %v6801_v39 = vld [vmem:[%s8726_s2 + $0x50] sm:$0xf] }
 0x276   : > { %v1422_v46 = vsub.f32 1.5, %v1421_v36  ;;  %v1212_v47 = vmul.f32 %v8794_v29, %v1180_v45  ;;  %v1441_v25 = vmul.f32 0.5, %v1440_v13  ;;  %v7134_v13 = vld [vmem:[%s8726_s2 + $0x4c] sm:$0xf] }
 0x277   : > { %v7428_v50 = vpop.eup %7427  ;;  %v1525_v42 = vadd.f32 %v8938_v59, %v1506_v40  ;;  %v8954_v55 = vsub.f32 %v8843_v62, %v1210_v44 }
 0x278   : > { %v1423_v56 = vmul.f32 %v8908_v19, %v1422_v46  ;;  %v1449_v61 = vmul.f32 %v7428_v50, %v8910_v21  ;;  %v8961_v3 = vsub.f32 %v8845_v63, %v1212_v47  ;;  %v1442_v30 = vsub.f32 1.5, %v1441_v25  ;;  %v7133_v25 = vld [vmem:[%s8726_s2 + $0x40] sm:$0xf0] }
 0x279   : > { %v8968_v62 = vpack.c.bf16 %v1525_v42, %v1524_v53  ;;  %v1242_v43 = vmul.f32 %v8954_v55, %v8954_v55  ;;  %vm1455_vm14 = vweird.f32 %v7428_v50  ;;  %v7140_v42 = vld [vmem:[%s8726_s2 + $0x7c] sm:$0xf] }
 0x27a   : > { %v1427_v63 = vsel %vm8964_vm11, %v8908_v19, %v1423_v56  ;;  %v1450_v6 = vmul.f32 %v7428_v50, %v1449_v61  ;;  %v1244_v51 = vmul.f32 %v8961_v3, %v8961_v3  ;;  %v6850_v19 = vor.u32 %v7148_v16, %v6849_v11  ;;  %vm1456_vm15 = vmor %vm1454_vm13, %vm1455_vm14  ;;  %v6819_v56 = vld [vmem:[%s8726_s2 + $0x84] sm:$0xf0]  ;;  %v7136_v16 = vld [vmem:[%s8726_s2 + $0x58] sm:$0xf0] }
 0x27b   : > { %1736 = vmatmul.bf16.vlgmr.msra.gmra.mxu1 %v8968_v62  ;;  %1262 = vadd.xlane.f32.xlu0 %v1242_v43  ;;  %v1488_v18 = vmul.f32 %v1427_v63, %v8818_v49  ;;  %v1508_v49 = vmul.f32 %v8921_v24, %v1489_v2  ;;  %v1443_v32 = vmul.f32 %v8940_v35, %v1442_v30  ;;  %v6807_v43 = vld [vmem:[%s8726_s2 + $0x6c] sm:$0xf0]  ;;  %v1302_v11 = vadd.f32 1e-06, %v1286_v5  ;;  %v6777_v30 = vld [vmem:[%s8726_s2 + $0x20] sm:$0xf] }
 0x27c   : > { %1266 = vadd.xlane.f32.xlu2 %v1244_v51  ;;  %v1182_v14 = vpop.xlane.xlu0 %1181  ;;  %1195 = vadd.xlane.f32.xlu1 %v8981_v8  ;;  %v1451_v20 = vmul.f32 0.5, %v1450_v6  ;;  %v6822_v61 = vor.u32 %v7140_v42, %v6819_v56  ;;  %v6826_v63 = vor.u32 %v7142_v4, %v6825_v57  ;;  %v7137_v6 = vld [vmem:[%s8726_s2 + $0x64] sm:$0xf]  ;;  %v6813_v51 = vld [vmem:[%s8726_s2 + $0x68] sm:$0xf] }
 0x27d   : > { %v1213_v17 = vmul.f32 %v8794_v29, %v1182_v14  ;;  %1806 = vmatpush.bf16.msra.mxu2 %v6850_v19  ;;  %v1507_v33 = vmul.f32 %v8921_v24, %v1488_v18  ;;  %v1527_v31 = vadd.f32 %v8938_v59, %v1508_v49  ;;  %v1447_v36 = vsel %vm1446_vm2, %v8940_v35, %v1443_v32  ;;  %v7143_v35 = vld [vmem:[%s8726_s2 + $0x94] sm:$0xf]  ;;  %v6795_v14 = vld [vmem:[%s8726_s2 + $0x54] sm:$0xf0]  ;;  %v6783_v19 = vld [vmem:[%s8726_s2 + $0x3c] sm:$0xf0] }
 0x27e   : > { %v1452_v28 = vsub.f32 1.5, %v1451_v20  ;;  %v1490_v44 = vmul.f32 %v1447_v36, %v8816_v48  ;;  %v6810_v9 = vor.u32 %v7137_v6, %v6807_v43  ;;  %v6814_v12 = vor.u32 %v7139_v10, %v6813_v51  ;;  %v7131_v18 = vld [vmem:[%s8726_s2 + $0x34] sm:$0xf]  ;;  %v6789_v20 = vld [vmem:[%s8726_s2 + $0x38] sm:$0xf] }
 0x27f   : > { %v8998_v23 = vsub.f32 %v8849_v0, %v1213_v17  ;;  %v1526_v41 = vadd.f32 %v8938_v59, %v1507_v33  ;;  %v6798_v15 = vor.u32 %v7134_v13, %v6795_v14  ;;  %7429 = vrsqrt.f32 %v1302_v11  ;;  %v6771_v49 = vld [vmem:[%s8726_s2 + $0x24] sm:$0xf0]  ;;  %v6759_v36 = vld [vmem:[%s8726_s2 + $0xc] sm:$0xf0] }
 0x280   : > { %v1453_v0 = vmul.f32 %v7428_v50, %v1452_v28  ;;  %v1509_v40 = vmul.f32 %v8921_v24, %v1490_v44  ;;  %v6802_v17 = vor.u32 %v7136_v16, %v6801_v39  ;;  %v6786_v2 = vor.u32 %v7131_v18, %v6783_v19  ;;  %v7128_v28 = vld [vmem:[%s8726_s2 + $0x1c] sm:$0xf] }
 0x281   : > { %v1245_v26 = vmul.f32 %v8998_v23, %v8998_v23  ;;  %v9013_v34 = vpack.c.bf16 %v1527_v31, %v1526_v41  ;;  %v6774_v41 = vor.u32 %v7128_v28, %v6771_v49  ;;  %vm1324_vm3 = vweird.f32 %v1302_v11 }
 0x282   : > { %v1457_v21 = vsel %vm1456_vm15, %v7428_v50, %v1453_v0  ;;  %v1528_v46 = vadd.f32 %v8938_v59, %v1509_v40  ;;  %v6837_v50 = vld [vmem:[%s8726_s2 + $0x98] sm:$0xf]  ;;  %v7130_v0 = vld [vmem:[%s8726_s2 + $0x28] sm:$0xf0] }
 0x283   : > { %1268 = vadd.xlane.f32.xlu0 %v1245_v26  ;;  %v1491_v37 = vmul.f32 %v1457_v21, %v8828_v54  ;;  %v6831_v54 = vld [vmem:[%s8726_s2 + $0x9c] sm:$0xf0]  ;;  %v6838_v53 = vor.u32 %v7145_v52, %v6837_v50  ;;  %v6790_v26 = vor.u32 %v7133_v25, %v6789_v20  ;;  %v6778_v31 = vor.u32 %v7130_v0, %v6777_v30  ;;  %v7125_v21 = vld [vmem:[%s8726_s2 + $0x4] sm:$0xf] }
 0x284   : > { %1197 = vadd.xlane.f32.xlu2 %v9003_v58  ;;  %v6834_v48 = vor.u32 %v7143_v35, %v6831_v54  ;;  %v6762_v44 = vor.u32 %v7125_v21, %v6759_v36 }
 0x285   : > { %v1510_v45 = vmul.f32 %v8921_v24, %v1491_v37  ;;  %1807 = vmatpush.bf16.msra.mxu2 %v6838_v53  ;;  %v7430_v33 = vpop.eup %7429  ;;  %v6765_v37 = vld [vmem:[%s8726_s2 + $0x8] sm:$0xf] }
 0x286   : > { %1758 = vmatpush.bf16.msrb.mxu1 %v6834_v48  ;;  %v1319_v32 = vmul.f32 %v7430_v33, %v1302_v11  ;;  %vm1325_vm4 = vweird.f32 %v7430_v33 }
 0x287   : > { %v1529_v7 = vadd.f32 %v8938_v59, %v1510_v45  ;;  %v7127_v45 = vld [vmem:[%s8726_s2 + $0x10] sm:$0xf0]  ;;  %vm1326_vm5 = vmor %vm1324_vm3, %vm1325_vm4  ;;  %s8336_s2 = smov 96  }
 0x288   : > { %v6766_v40 = vor.u32 %v7127_v45, %v6765_v37 }
 0x289   : > { %v9024_v47 = vpack.c.bf16 %v1529_v7, %v1528_v46  ;;  %1808 = vmatpush.bf16.msra.mxu2 %v6826_v63  ;;  %v1320_v7 = vmul.f32 %v7430_v33, %v1319_v32 }
 0x28a   : > { %1759 = vmatpush.bf16.msrb.mxu1 %v6822_v61 }
 0x28b   : > { %1741 = vmatmul.bf16.gmra.mxu1 %v9013_v34  ;;  %v1321_v50 = vmul.f32 0.5, %v1320_v7 }
 0x28d   : > { %1809 = vmatpush.bf16.msra.mxu2 %v6814_v12  ;;  %v1322_v48 = vsub.f32 1.5, %v1321_v50 }
 0x28e   : > { %1760 = vmatpush.bf16.msrb.mxu1 %v6810_v9 }
 0x28f   : > { %v1323_v56 = vmul.f32 %v7430_v33, %v1322_v48 }
 0x291   : > { %1810 = vmatpush.bf16.msra.mxu2 %v6802_v17  ;;  %v1327_v5 = vsel %vm1326_vm5, %v7430_v33, %v1323_v56 }
 0x292   : > { %1761 = vmatpush.bf16.msrb.mxu1 %v6798_v15  ;;  %v1478_v11 = vmul.f32 %v1327_v5, %v8838_v60 }
 0x294   : > { %v1497_v18 = vmul.f32 %v8921_v24, %v1478_v11 }
 0x295   : > { %1811 = vmatpush.bf16.msra.mxu2 %v6790_v26 }
 0x296   : > { %1762 = vmatpush.bf16.msrb.mxu1 %v6786_v2  ;;  %v1516_v49 = vadd.f32 %v8938_v59, %v1497_v18 }
 0x299   : > { %1812 = vmatpush.bf16.msra.mxu2 %v6778_v31 }
 0x29a   : > { %1763 = vmatpush.bf16.msrb.mxu1 %v6774_v41 }
 0x29b   : > { %1746 = vmatmul.bf16.gmra.mxu1 %v9024_v47 }
 0x29d   : > { %1813 = vmatpush.bf16.msra.mxu2 %v6766_v40 }
 0x29e   : > { %1764 = vmatpush.bf16.msrb.mxu1 %v6762_v44 }
 0x2d6   : > { %v1257_v46 = vpop.xlane.xlu1 %1256 }
 0x2d7   : > { %v1287_v35 = vmul.f32 %v1257_v46, %v8794_v29 }
 0x2d9   : > { %v1303_v54 = vadd.f32 1e-06, %v1287_v35 }
 0x2db   : > { %7431 = vrsqrt.f32 %v1303_v54  ;;  %vm1334_vm6 = vweird.f32 %v1303_v54 }
 0x2de   : > { %v1259_v52 = vpop.xlane.xlu1 %1258 }
 0x2df   : > { %v1288_v42 = vmul.f32 %v1259_v52, %v8794_v29 }
 0x2e1   : > { %v7432_v53 = vpop.eup %7431  ;;  %v1304_v61 = vadd.f32 1e-06, %v1288_v42 }
 0x2e2   : > { %v1329_v57 = vmul.f32 %v7432_v53, %v1303_v54  ;;  %vm1335_vm7 = vweird.f32 %v7432_v53 }
 0x2e3   : > { %7433 = vrsqrt.f32 %v1304_v61  ;;  %vm1336_vm8 = vmor %vm1334_vm6, %vm1335_vm7  ;;  %vm1344_vm9 = vweird.f32 %v1304_v61 }
 0x2e4   : > { %v1330_v4 = vmul.f32 %v7432_v53, %v1329_v57 }
 0x2e6   : > { %v1331_v63 = vmul.f32 0.5, %v1330_v4  ;;  %v1261_v6 = vpop.xlane.xlu2 %1260 }
 0x2e7   : > { %v1265_v51 = vpop.xlane.xlu1 %1264  ;;  %v1289_v9 = vmul.f32 %v1261_v6, %v8794_v29 }
 0x2e8   : > { %v1332_v43 = vsub.f32 1.5, %v1331_v63  ;;  %v1291_v10 = vmul.f32 %v1265_v51, %v8794_v29 }
 0x2e9   : > { %v1305_v13 = vadd.f32 1e-06, %v1289_v9  ;;  %v7434_v14 = vpop.eup %7433 }
 0x2ea   : > { %v1333_v12 = vmul.f32 %v7432_v53, %v1332_v43  ;;  %v9062_v39 = vadd.f32 1e-06, %v1291_v10  ;;  %v1339_v16 = vmul.f32 %v7434_v14, %v1304_v61  ;;  %vm1345_vm10 = vweird.f32 %v7434_v14 }
 0x2eb   : > { %7435 = vrsqrt.f32 %v1305_v13  ;;  %vm9080_vm11 = vmor %vm1344_vm9, %vm1345_vm10  ;;  %vm1354_vm13 = vweird.f32 %v1305_v13 }
 0x2ec   : > { %v1337_v15 = vsel %vm1336_vm8, %v7432_v53, %v1333_v12  ;;  %7437 = vrsqrt.f32 %v9062_v39  ;;  %v1340_v19 = vmul.f32 %v7434_v14, %v1339_v16  ;;  %vm1374_vm3 = vweird.f32 %v9062_v39 }
 0x2ed   : > { %v1479_v17 = vmul.f32 %v1337_v15, %v8873_v38 }
 0x2ee   : > { %v1263_v20 = vpop.xlane.xlu0 %1262  ;;  %v1341_v25 = vmul.f32 0.5, %v1340_v19 }
 0x2ef   : > { %v1267_v2 = vpop.xlane.xlu2 %1266  ;;  %v1498_v60 = vmul.f32 %v8921_v24, %v1479_v17  ;;  %v1290_v26 = vmul.f32 %v1263_v20, %v8794_v29  ;;  %v1196_v33 = vpop.xlane.xlu1 %1195 }
 0x2f0   : > { %v1220_v28 = vmul.f32 %v8794_v29, %v1196_v33  ;;  %v1342_v0 = vsub.f32 1.5, %v1341_v25  ;;  %v1292_v31 = vmul.f32 %v1267_v2, %v8794_v29 }
 0x2f1   : > { %v1517_v30 = vadd.f32 %v8938_v59, %v1498_v60  ;;  %v7436_v41 = vpop.eup %7435  ;;  %v1306_v38 = vadd.f32 1e-06, %v1290_v26 }
 0x2f2   : > { %v9073_v32 = vpop.eup %7437  ;;  %v1349_v21 = vmul.f32 %v7436_v41, %v1305_v13  ;;  %v9076_v37 = vsub.f32 %v8981_v8, %v1220_v28  ;;  %v1343_v44 = vmul.f32 %v7434_v14, %v1342_v0  ;;  %v9084_v46 = vadd.f32 1e-06, %v1292_v31 }
 0x2f3   : > { %v1532_v36 = vpack.c.bf16 %v1517_v30, %v1516_v49  ;;  %v1369_v45 = vmul.f32 %v9073_v32, %v9062_v39  ;;  %7439 = vrsqrt.f32 %v1306_v38  ;;  %vm1355_vm12 = vweird.f32 %v7436_v41 }
 0x2f4   : > { %v1350_v40 = vmul.f32 %v7436_v41, %v1349_v21  ;;  %v1252_v35 = vmul.f32 %v9076_v37, %v9076_v37  ;;  %v1347_v8 = vsel %vm9080_vm11, %v7434_v14, %v1343_v44  ;;  %7441 = vrsqrt.f32 %v9084_v46  ;;  %vm1356_vm14 = vmor %vm1354_vm13, %vm1355_vm12 }
 0x2f5   : > { %1716 = vmatmul.bf16.vlgmr.msra.gmra.mxu0 %v1532_v36  ;;  %1765 = vmatmul.bf16.vlgmr.msrb.gmra.mxu1 %v1532_v36  ;;  %v1370_v54 = vmul.f32 %v9073_v32, %v1369_v45  ;;  %v1480_v5 = vmul.f32 %v1347_v8, %v8886_v1  ;;  %vm1364_vm15 = vweird.f32 %v1306_v38  ;;  %vm1375_vm1 = vweird.f32 %v9073_v32 }
 0x2f6   : > { %1814 = vmatmul.bf16.vlgmr.msra.gmra.mxu2 %v1532_v36  ;;  %v1351_v50 = vmul.f32 0.5, %v1350_v40  ;;  %v1269_v48 = vpop.xlane.xlu0 %1268  ;;  %1282 = vadd.xlane.f32.xlu0 %v1252_v35  ;;  %vm1376_vm4 = vmor %vm1374_vm3, %vm1375_vm1  ;;  %vm1384_vm9 = vweird.f32 %v9084_v46  ;;  %vm1945_vm13 = vcmask 261120  }
 0x2f7   : > { %v1198_v52 = vpop.xlane.xlu2 %1197  ;;  %v1293_v53 = vmul.f32 %v1269_v48, %v8794_v29  ;;  %v1371_v63 = vmul.f32 0.5, %v1370_v54  ;;  %v1499_v12 = vmul.f32 %v8921_v24, %v1480_v5 }
 0x2f8   : > { %v1221_v42 = vmul.f32 %v8794_v29, %v1198_v52  ;;  %v1352_v56 = vsub.f32 1.5, %v1351_v50 }
 0x2f9   : > { %v7440_v57 = vpop.eup %7439  ;;  %v1309_v61 = vadd.f32 1e-06, %v1293_v53  ;;  %v1372_v14 = vsub.f32 1.5, %v1371_v63 }
 0x2fa   : > { %v9095_v4 = vsub.f32 %v9003_v58, %v1221_v42  ;;  %v1353_v6 = vmul.f32 %v7436_v41, %v1352_v56  ;;  %v1359_v43 = vmul.f32 %v7440_v57, %v1306_v38  ;;  %vm1365_vm0 = vweird.f32 %v7440_v57  ;;  %v7442_v1 = vpop.eup %7441 }
 0x2fb   : > { %7443 = vrsqrt.f32 %v1309_v61  ;;  %vm9104_vm2 = vmor %vm1364_vm15, %vm1365_vm0  ;;  %v1373_v19 = vmul.f32 %v9073_v32, %v1372_v14  ;;  %v1379_v2 = vmul.f32 %v7442_v1, %v9084_v46  ;;  %vm1394_vm5 = vweird.f32 %v1309_v61  ;;  %v9131_v46 = vpop.f32.mrf.mxu1 }
 0x2fc   : > { %v1357_v51 = vsel %vm1356_vm14, %v7436_v41, %v1353_v6  ;;  %v1360_v9 = vmul.f32 %v7440_v57, %v1359_v43  ;;  %v1253_v10 = vmul.f32 %v9095_v4, %v9095_v4  ;;  %vm1385_vm8 = vweird.f32 %v7442_v1 }
 0x2fd   : > { %v1481_v11 = vmul.f32 %v1357_v51, %v8913_v22  ;;  %v1518_v22 = vadd.f32 %v8938_v59, %v1499_v12  ;;  %v1377_v28 = vsel %vm1376_vm4, %v9073_v32, %v1373_v19  ;;  %v1380_v49 = vmul.f32 %v7442_v1, %v1379_v2  ;;  %vm1386_vm10 = vmor %vm1384_vm9, %vm1385_vm8 }
 0x2fe   : > { %v1361_v58 = vmul.f32 0.5, %v1360_v9  ;;  %1284 = vadd.xlane.f32.xlu1 %v1253_v10  ;;  %v1483_v0 = vmul.f32 %v1377_v28, %v8926_v27 }
 0x2ff   : > { %v1500_v13 = vmul.f32 %v8921_v24, %v1481_v11  ;;  %v1381_v38 = vmul.f32 0.5, %v1380_v49 }
 0x300   : > { %v1362_v15 = vsub.f32 1.5, %v1361_v58  ;;  %v1502_v21 = vmul.f32 %v8921_v24, %v1483_v0 }
 0x301   : > { %v7444_v16 = vpop.eup %7443  ;;  %v1519_v18 = vadd.f32 %v8938_v59, %v1500_v13  ;;  %v1382_v36 = vsub.f32 1.5, %v1381_v38 }
 0x302   : > { %v1363_v20 = vmul.f32 %v7440_v57, %v1362_v15  ;;  %v1389_v60 = vmul.f32 %v7444_v16, %v1309_v61  ;;  %vm1395_vm6 = vweird.f32 %v7444_v16  ;;  %v1521_v32 = vadd.f32 %v8938_v59, %v1502_v21 }
 0x303   : > { %v1533_v25 = vpack.c.bf16 %v1519_v18, %v1518_v22  ;;  %vm1396_vm7 = vmor %vm1394_vm5, %vm1395_vm6  ;;  %v1383_v40 = vmul.f32 %v7442_v1, %v1382_v36 }
 0x304   : > { %v1367_v26 = vsel %vm9104_vm2, %v7440_v57, %v1363_v20  ;;  %v1390_v33 = vmul.f32 %v7444_v16, %v1389_v60  ;;  %vm2176_vm2 = vcmask 130048  }
 0x305   : > { %1721 = vmatmul.bf16.gmra.mxu0 %v1533_v25  ;;  %1770 = vmatmul.bf16.gmra.mxu1 %v1533_v25  ;;  %v1482_v30 = vmul.f32 %v1367_v26, %v8954_v55  ;;  %v1387_v7 = vsel %vm1386_vm10, %v7442_v1, %v1383_v40 }
 0x306   : > { %1819 = vmatmul.bf16.gmra.mxu2 %v1533_v25  ;;  %v1391_v41 = vmul.f32 0.5, %v1390_v33  ;;  %v1484_v8 = vmul.f32 %v1387_v7, %v8961_v3  ;;  %v9133_v3 = vpop.f32.mrf.mxu1 }
 0x307   : > { %v1501_v31 = vmul.f32 %v8921_v24, %v1482_v30 }
 0x308   : > { %v1392_v39 = vsub.f32 1.5, %v1391_v41  ;;  %v1503_v50 = vmul.f32 %v8921_v24, %v1484_v8 }
 0x309   : > { %v1520_v44 = vadd.f32 %v8938_v59, %v1501_v31 }
 0x30a   : > { %v1393_v45 = vmul.f32 %v7444_v16, %v1392_v39  ;;  %v1522_v52 = vadd.f32 %v8938_v59, %v1503_v50 }
 0x30b   : > { %v1534_v55 = vpack.c.bf16 %v1521_v32, %v1520_v44 }
 0x30c   : > { %v1397_v27 = vsel %vm1396_vm7, %v7444_v16, %v1393_v45 }
 0x30d   : > { %v1485_v35 = vmul.f32 %v1397_v27, %v8998_v23 }
 0x30e   : > { %v9137_v23 = vpop.f32.mrf.mxu1 }
 0x30f   : > { %v1504_v54 = vmul.f32 %v8921_v24, %v1485_v35 }
 0x311   : > { %v1523_v48 = vadd.f32 %v8938_v59, %v1504_v54 }
 0x313   : > { %v1535_v53 = vpack.c.bf16 %v1523_v48, %v1522_v52 }
 0x315   : > { %1726 = vmatmul.bf16.gmra.mxu0 %v1534_v55  ;;  %1775 = vmatmul.bf16.gmra.mxu1 %v1534_v55 }
 0x316   : > { %1824 = vmatmul.bf16.gmra.mxu2 %v1534_v55  ;;  %v9139_v42 = vpop.f32.mrf.mxu1 }
 0x31e   : > { %v9143_v56 = vpop.f32.mrf.mxu1 }
 0x325   : > { %1731 = vmatmul.bf16.gmra.mxu0 %v1535_v53  ;;  %1780 = vmatmul.bf16.gmra.mxu1 %v1535_v53 }
 0x326   : > { %1829 = vmatmul.bf16.gmra.mxu2 %v1535_v53 }
 0x335   : > { %1785 = vmatmul.bf16.gmra.mxu1 %v8968_v62 }
 0x336   : > { %1834 = vmatmul.bf16.gmra.mxu2 %v8968_v62  ;;  %v9145_v62 = vpop.f32.mrf.mxu1 }
 0x345   : > { %1790 = vmatmul.bf16.gmra.mxu1 %v9013_v34 }
 0x346   : > { %1839 = vmatmul.bf16.gmra.mxu2 %v9013_v34  ;;  %v9149_v34 = vld [vmem:[%s8728_s11] sm:$0x7]  ;;  %s8337_s11 = smov 64  }
 0x347   : > { %v9153_v9 = vperm.slane %v9149_v34, 1 }
 0x355   : > { %1795 = vmatmul.bf16.gmra.mxu1 %v9024_v47 }
 0x356   : > { %1844 = vmatmul.bf16.gmra.mxu2 %v9024_v47 }
 0x369   : > { %v1283_v57 = vpop.xlane.xlu0 %1282 }
 0x36a   : > { %v1300_v61 = vmul.f32 %v1283_v57, %v8794_v29 }
 0x36c   : > { %v1316_v5 = vadd.f32 1e-06, %v1300_v61 }
 0x36e   : > { %7445 = vrsqrt.f32 %v1316_v5  ;;  %vm1464_vm11 = vweird.f32 %v1316_v5 }
 0x371   : > { %v1285_v43 = vpop.xlane.xlu1 %1284 }
 0x372   : > { %v1717_v63 = vpop.f32.mrf.mxu0  ;;  %v1766_v6 = vpop.f32.mrf.mxu1  ;;  %v1301_v51 = vmul.f32 %v1285_v43, %v8794_v29 }
 0x373   : > { %v1767_v12 = vadd.f32 %v1766_v6, %v9153_v9 }
 0x374   : > { %v7446_v47 = vpop.eup %7445  ;;  %v1317_v10 = vadd.f32 1e-06, %v1301_v51 }
 0x375   : > { %v1459_v11 = vmul.f32 %v7446_v47, %v1316_v5  ;;  %v1887_v17 = vpack.c.bf16 %v1767_v12, %v1767_v12  ;;  %vm1465_vm12 = vweird.f32 %v7446_v47 }
 0x376   : > { %7447 = vrsqrt.f32 %v1317_v10  ;;  %vm1466_vm14 = vmor %vm1464_vm11, %vm1465_vm12  ;;  %vm1474_vm0 = vweird.f32 %v1317_v10 }
 0x377   : > { %v1460_v14 = vmul.f32 %v7446_v47, %v1459_v11  ;;  %v1942_v60 = vunpack.c.l.b16 %v1887_v17 }
 0x379   : > { %v9156_v58 = vpop.f32.mrf.mxu2  ;;  %v1461_v15 = vmul.f32 0.5, %v1460_v14 }
 0x37a   : > { %v1719_v1 = vpop.f32.mrf.mxu0  ;;  %v1768_v13 = vpop.f32.mrf.mxu1 }
 0x37b   : > { %v1769_v16 = vadd.f32 %v1768_v13, %v9153_v9  ;;  %v1462_v22 = vsub.f32 1.5, %v1461_v15 }
 0x37c   : > { %v7448_v19 = vpop.eup %7447 }
 0x37d   : > { %v1888_v18 = vpack.c.bf16 %v1769_v16, %v1769_v16  ;;  %v1463_v20 = vmul.f32 %v7446_v47, %v1462_v22  ;;  %v1469_v2 = vmul.f32 %v7448_v19, %v1317_v10  ;;  %vm1475_vm15 = vweird.f32 %v7448_v19 }
 0x37e   : > { %vm1476_vm1 = vmor %vm1474_vm0, %vm1475_vm15 }
 0x37f   : > { %v1943_v25 = vunpack.c.l.b16 %v1888_v18  ;;  %v1470_v26 = vmul.f32 %v7448_v19, %v1469_v2  ;;  %v1467_v49 = vsel %vm1466_vm14, %v7446_v47, %v1463_v20 }
 0x380   : > { %v1492_v39 = vmul.f32 %v1467_v49, %v9076_v37  ;;  %v9176_v37 = vperm.slane %v9149_v34, 0 }
 0x381   : > { %v9159_v33 = vpop.f32.mrf.mxu2  ;;  %v9161_v28 = vpack.c.b16 %v1943_v25, %v1942_v60  ;;  %v1471_v30 = vmul.f32 0.5, %v1470_v26  ;;  %v9197_v60 = vperm.slane %v9149_v34, 2 }
 0x382   : > { %v9163_v41 = vpop.f32.mrf.mxu0  ;;  %v1771_v0 = vpop.f32.mrf.mxu1  ;;  %v1511_v40 = vmul.f32 %v8921_v24, %v1492_v39  ;;  %v1720_v52 = vadd.f32 %v1719_v1, %v9176_v37  ;;  %v1718_v61 = vadd.f32 %v1717_v63, %v9176_v37  ;;  %v1750_v13 = vadd.f32 %v9145_v62, %v9176_v37 }
 0x383   : > { %v1950_v38 = vsel %vm1945_vm13, %v9161_v28, 0  ;;  %v1472_v31 = vsub.f32 1.5, %v1471_v30  ;;  %v1772_v36 = vadd.f32 %v1771_v0, %v9153_v9  ;;  %v1748_v20 = vadd.f32 %v9143_v56, %v9176_v37 }
 0x384   : > { %1959 = vmatpush.bf16.xpose.msrb.mxu3 %v1950_v38  ;;  %v1530_v50 = vadd.f32 %v8938_v59, %v1511_v40  ;;  %v1856_v6 = vmul.f32 0.17677669, %v1720_v52  ;;  %v1855_v47 = vmul.f32 0.17677669, %v1718_v61  ;;  %v1868_v30 = vmul.f32 0.17677669, %v1750_v13 }
 0x385   : > { %v1473_v21 = vmul.f32 %v7448_v19, %v1472_v31  ;;  %v1889_v7 = vpack.c.bf16 %v1772_v36, %v1772_v36  ;;  %v1867_v36 = vmul.f32 0.17677669, %v1748_v20  ;;  %v1723_v56 = vadd.f32 %v9163_v41, %v9176_v37 }
 0x386   : > { %v1872_v11 = vpack.c.bf16 %v1856_v6, %v1856_v6  ;;  %v1871_v12 = vpack.c.bf16 %v1855_v47, %v1855_v47 }
 0x387   : > { %v1477_v44 = vsel %vm1476_vm1, %v7448_v19, %v1473_v21  ;;  %v1857_v52 = vmul.f32 0.17677669, %v1723_v56 }
 0x388   : > { %v1493_v32 = vmul.f32 %v1477_v44, %v9095_v4  ;;  %v1973_v4 = vunpack.c.l.b16 %v1889_v7  ;;  %v1938_v15 = vunpack.c.l.b16 %v1872_v11  ;;  %v1937_v2 = vunpack.c.l.b16 %v1871_v12 }
 0x389   : > { %v9169_v45 = vpop.f32.mrf.mxu2 }
 0x38a   : > { %v1724_v55 = vpop.f32.mrf.mxu0  ;;  %v1773_v27 = vpop.f32.mrf.mxu1  ;;  %v1512_v8 = vmul.f32 %v8921_v24, %v1493_v32  ;;  %v9199_v62 = vpack.c.b16 %v1938_v15, %v1937_v2 }
 0x38b   : > { %v1774_v35 = vadd.f32 %v1773_v27, %v9153_v9  ;;  %v1725_v38 = vadd.f32 %v1724_v55, %v9176_v37  ;;  %v1884_v55 = vpack.c.bf16 %v1868_v30, %v1868_v30 }
 0x38c   : > { %v1531_v48 = vadd.f32 %v8938_v59, %v1512_v8 }
 0x38d   : > { %v1890_v54 = vpack.c.bf16 %v1774_v35, %v1774_v35  ;;  %v1858_v8 = vmul.f32 0.17677669, %v1725_v38 }
 0x38e   : > { %v1539_v57 = vpack.c.bf16 %v1531_v48, %v1530_v50  ;;  %v1883_v48 = vpack.c.bf16 %v1867_v36, %v1867_v36 }
 0x38f   : > { %v1974_v53 = vunpack.c.l.b16 %v1890_v54  ;;  %v1874_v61 = vpack.c.bf16 %v1858_v8, %v1858_v8 }
 0x390   : > { %1751 = vmatmul.bf16.vlgmr.msra.gmra.mxu3 %v1539_v57  ;;  %1800 = vmatmul.bf16.gmra.mxu1 %v1539_v57 }
 0x391   : > { %v9182_v5 = vpack.c.b16 %v1974_v53, %v1973_v4  ;;  %v9184_v24 = vpop.f32.mrf.mxu2  ;;  %1849 = vmatmul.bf16.gmra.mxu2 %v1539_v57  ;;  %v2119_v57 = vunpack.c.l.b16 %v1884_v55 }
 0x392   : > { %v1727_v43 = vpop.f32.mrf.mxu0  ;;  %v1776_v51 = vpop.f32.mrf.mxu1 }
 0x393   : > { %v1980_v59 = vsel %vm1945_vm13, %v9182_v5, 0  ;;  %v1728_v10 = vadd.f32 %v1727_v43, %v9176_v37  ;;  %v1777_v63 = vadd.f32 %v1776_v51, %v9153_v9  ;;  %v2118_v51 = vunpack.c.l.b16 %v1883_v48 }
 0x394   : > { %1989 = vmatpush.bf16.xpose.msra.mxu3 %v1980_v59  ;;  %v1873_v59 = vpack.c.bf16 %v1857_v52, %v1857_v52 }
 0x395   : > { %v1859_v14 = vmul.f32 0.17677669, %v1728_v10  ;;  %v1891_v22 = vpack.c.bf16 %v1777_v63, %v1777_v63  ;;  %v9222_v11 = vpack.c.b16 %v2119_v57, %v2118_v51  ;;  %v1969_v63 = vunpack.c.l.b16 %v1874_v61 }
 0x397   : > { %v1875_v25 = vpack.c.bf16 %v1859_v14, %v1859_v14  ;;  %v2003_v31 = vunpack.c.l.b16 %v1891_v22  ;;  %11707 = vst [vmem:[#allocation48_spill] sm:$0xff] %v9222_v11 }
 0x399   : > { %v1825_v1 = vpop.f32.mrf.mxu2  ;;  %v1998_v44 = vunpack.c.l.b16 %v1875_v25 }
 0x39a   : > { %v1729_v16 = vpop.f32.mrf.mxu0  ;;  %v1778_v17 = vpop.f32.mrf.mxu1  ;;  %v1826_v0 = vadd.f32 %v1825_v1, %v9197_v60  ;;  %v1968_v1 = vunpack.c.l.b16 %v1873_v59 }
 0x39b   : > { %v1730_v18 = vadd.f32 %v1729_v16, %v9176_v37  ;;  %v1779_v19 = vadd.f32 %v1778_v17, %v9153_v9 }
 0x39c   : > { %v1907_v27 = vpack.c.bf16 %v1826_v0, %v1826_v0  ;;  %v9228_v16 = vpack.c.b16 %v1969_v63, %v1968_v1 }
 0x39d   : > { %v1860_v26 = vmul.f32 0.17677669, %v1730_v18  ;;  %v1892_v49 = vpack.c.bf16 %v1779_v19, %v1779_v19 }
 0x39e   : > { %v2432_v4 = vunpack.c.l.b16 %v1907_v27 }
 0x39f   : > { %v1876_v39 = vpack.c.bf16 %v1860_v26, %v1860_v26  ;;  %v2004_v21 = vunpack.c.l.b16 %v1892_v49 }
 0x3a0   : > { %6851 = vmatmul.msk.bf16.vlgmr.msrb.gmra.mxu3 %vm1945_vm13, %v9199_v62 }
 0x3a1   : > { %v1999_v34 = vunpack.c.l.b16 %v1876_v39  ;;  %v9205_v32 = vpack.c.b16 %v2004_v21, %v2003_v31  ;;  %v1827_v40 = vpop.f32.mrf.mxu2 }
 0x3a2   : > { %v1828_v7 = vadd.f32 %v1827_v40, %v9197_v60  ;;  %v1781_v35 = vpop.f32.mrf.mxu1  ;;  %v1732_v20 = vpop.f32.mrf.mxu0 }
 0x3a3   : > { %11705 = vst [vmem:[#allocation46_spill] sm:$0xff] %v9205_v32  ;;  %v9210_v54 = vpack.c.b16 %v1999_v34, %v1998_v44  ;;  %2651 = vrot.lane.b32.xlu2 %v9205_v32, %s8336_s2  ;;  %v2010_v41 = vsel %vm1945_vm13, %v9205_v32, 0  ;;  %v1782_v6 = vadd.f32 %v1781_v35, %v9153_v9  ;;  %v1733_v8 = vadd.f32 %v1732_v20, %v9176_v37 }
 0x3a4   : > { %v1908_v50 = vpack.c.bf16 %v1828_v7, %v1828_v7  ;;  %2019 = vmatpush.bf16.xpose.msrb.mxu3 %v2010_v41  ;;  %v1740_v20 = vadd.f32 %v9133_v3, %v9176_v37 }
 0x3a5   : > { %11706 = vst [vmem:[#allocation47_spill] sm:$0xff] %v9210_v54  ;;  %2649 = vrot.lane.b32.xlu0 %v9210_v54, %s8336_s2  ;;  %v1893_v12 = vpack.c.bf16 %v1782_v6, %v1782_v6  ;;  %v1861_v6 = vmul.f32 0.17677669, %v1733_v8 }
 0x3a6   : > { %v2433_v53 = vunpack.c.l.b16 %v1908_v50 }
 0x3a7   : > { %v2033_v17 = vunpack.c.l.b16 %v1893_v12  ;;  %v1877_v12 = vpack.c.bf16 %v1861_v6, %v1861_v6 }
 0x3a8   : > { %v9219_v43 = vpack.c.b16 %v2433_v53, %v2432_v4 }
 0x3a9   : > { %v1830_v47 = vpop.f32.mrf.mxu2 }
 0x3aa   : > { %2446 = vmatpush.bf16.msrb.mxu2 %v9219_v43  ;;  %v1783_v10 = vpop.f32.mrf.mxu1  ;;  %v1831_v15 = vadd.f32 %v1830_v47, %v9197_v60  ;;  %v1734_v34 = vpop.f32.mrf.mxu0 }
 0x3ab   : > { %v1784_v14 = vadd.f32 %v1783_v10, %v9153_v9  ;;  %v1735_v7 = vadd.f32 %v1734_v34, %v9176_v37 }
 0x3ac   : > { %v1909_v2 = vpack.c.bf16 %v1831_v15, %v1831_v15 }
 0x3ad   : > { %v1894_v13 = vpack.c.bf16 %v1784_v14, %v1784_v14  ;;  %2745 = vrot.lane.b32.xlu0 %v9222_v11, %s8336_s2  ;;  %v1862_v53 = vmul.f32 0.17677669, %v1735_v7 }
 0x3ae   : > { %v2460_v0 = vunpack.c.l.b16 %v1909_v2 }
 0x3af   : > { %v2034_v22 = vunpack.c.l.b16 %v1894_v13  ;;  %v1878_v47 = vpack.c.bf16 %v1862_v53, %v1862_v53  ;;  %v1743_v53 = vadd.f32 %v9137_v23, %v9176_v37 }
 0x3b0   : > { %6852 = vmatmul.msk.bf16.vlgmr.msra.gmra.mxu3 %vm1945_vm13, %v9228_v16 }
 0x3b1   : > { %v9230_v18 = vpack.c.b16 %v2034_v22, %v2033_v17  ;;  %v1832_v19 = vpop.f32.mrf.mxu2  ;;  %v2029_v13 = vunpack.c.l.b16 %v1878_v47  ;;  %v2028_v22 = vunpack.c.l.b16 %v1877_v12 }
 0x3b2   : > { %v1833_v25 = vadd.f32 %v1832_v19, %v9197_v60  ;;  %v1786_v26 = vpop.f32.mrf.mxu1 }
 0x3b3   : > { %11708 = vst [vmem:[#allocation49_spill] sm:$0xff] %v9230_v18  ;;  %v2040_v49 = vsel %vm1945_vm13, %v9230_v18, 0  ;;  %v1787_v31 = vadd.f32 %v1786_v26, %v9153_v9  ;;  %v9261_v2 = vpack.c.b16 %v2029_v13, %v2028_v22 }
 0x3b4   : > { %v1910_v30 = vpack.c.bf16 %v1833_v25, %v1833_v25  ;;  %2049 = vmatpush.bf16.xpose.msra.mxu3 %v2040_v49  ;;  %v1738_v49 = vadd.f32 %v9131_v46, %v9176_v37 }
 0x3b5   : > { %v1895_v56 = vpack.c.bf16 %v1787_v31, %v1787_v31  ;;  %11710 = vst [vmem:[#allocation51_spill] sm:$0xff] %v9261_v2  ;;  %v1864_v31 = vmul.f32 0.17677669, %v1740_v20 }
 0x3b6   : > { %v2461_v38 = vunpack.c.l.b16 %v1910_v30  ;;  %v1863_v3 = vmul.f32 0.17677669, %v1738_v49  ;;  %v1818_v49 = vadd.f32 %v9159_v33, %v9197_v60 }
 0x3b7   : > { %v2063_v35 = vunpack.c.l.b16 %v1895_v56 }
 0x3b8   : > { %v9238_v39 = vpack.c.b16 %v2461_v38, %v2460_v0 }
 0x3b9   : > { %v1835_v21 = vpop.f32.mrf.mxu2 }
 0x3ba   : > { %2474 = vmatpush.bf16.msra.mxu1 %v9238_v39  ;;  %v1788_v36 = vpop.f32.mrf.mxu1  ;;  %v1836_v27 = vadd.f32 %v1835_v21, %v9197_v60 }
 0x3bb   : > { %v1789_v44 = vadd.f32 %v1788_v36, %v9153_v9  ;;  %v1880_v36 = vpack.c.bf16 %v1864_v31, %v1864_v31 }
 0x3bc   : > { %v1911_v48 = vpack.c.bf16 %v1836_v27, %v1836_v27 }
 0x3bd   : > { %v1896_v40 = vpack.c.bf16 %v1789_v44, %v1789_v44  ;;  %v1879_v44 = vpack.c.bf16 %v1863_v3, %v1863_v3 }
 0x3be   : > { %v2488_v51 = vunpack.c.l.b16 %v1911_v48  ;;  %v1745_v48 = vadd.f32 %v9139_v42, %v9176_v37 }
 0x3bf   : > { %v2064_v55 = vunpack.c.l.b16 %v1896_v40  ;;  %v2059_v40 = vunpack.c.l.b16 %v1880_v36 }
 0x3c0   : > { %6853 = vmatmul.msk.bf16.vlgmr.msrb.gmra.mxu3 %vm1945_vm13, %v9210_v54 }
 0x3c1   : > { %v9245_v41 = vpack.c.b16 %v2064_v55, %v2063_v35  ;;  %v1837_v50 = vpop.f32.mrf.mxu2  ;;  %v2058_v35 = vunpack.c.l.b16 %v1879_v44 }
 0x3c2   : > { %v1838_v52 = vadd.f32 %v1837_v50, %v9197_v60  ;;  %v1791_v4 = vpop.f32.mrf.mxu1 }
 0x3c3   : > { %v2070_v57 = vsel %vm1945_vm13, %v9245_v41, 0  ;;  %v1792_v10 = vadd.f32 %v1791_v4, %v9153_v9  ;;  %v9276_v50 = vpack.c.b16 %v2059_v40, %v2058_v35 }
 0x3c4   : > { %v1912_v61 = vpack.c.bf16 %v1838_v52, %v1838_v52  ;;  %2079 = vmatpush.bf16.xpose.msrb.mxu3 %v2070_v57 }
 0x3c5   : > { %v1897_v15 = vpack.c.bf16 %v1792_v10, %v1792_v10  ;;  %v1865_v10 = vmul.f32 0.17677669, %v1743_v53 }
 0x3c6   : > { %v2489_v59 = vunpack.c.l.b16 %v1912_v61 }
 0x3c7   : > { %v2093_v25 = vunpack.c.l.b16 %v1897_v15  ;;  %v1881_v15 = vpack.c.bf16 %v1865_v10, %v1865_v10 }
 0x3c8   : > { %v9253_v63 = vpack.c.b16 %v2489_v59, %v2488_v51  ;;  %v1866_v59 = vmul.f32 0.17677669, %v1745_v48 }
 0x3c9   : > { %v9255_v14 = vpop.f32.mrf.mxu2  ;;  %v2088_v22 = vunpack.c.l.b16 %v1881_v15 }
 0x3ca   : > { %11709 = vst [vmem:[#allocation50_spill] sm:$0xff] %v9253_v63  ;;  %2502 = vmatpush.bf16.msra.mxu2 %v9253_v63  ;;  %v1793_v1 = vpop.f32.mrf.mxu1 }
 0x3cb   : > { %v1794_v17 = vadd.f32 %v1793_v1, %v9153_v9  ;;  %v1882_v1 = vpack.c.bf16 %v1866_v59, %v1866_v59 }
 0x3cd   : > { %v1898_v19 = vpack.c.bf16 %v1794_v17, %v1794_v17  ;;  %v2089_v17 = vunpack.c.l.b16 %v1882_v1 }
 0x3cf   : > { %v2094_v26 = vunpack.c.l.b16 %v1898_v19  ;;  %v9294_v19 = vpack.c.b16 %v2089_v17, %v2088_v22 }
 0x3d0   : > { %6854 = vmatmul.msk.bf16.vlgmr.msra.gmra.mxu3 %vm1945_vm13, %v9261_v2 }
 0x3d1   : > { %v9265_v30 = vpack.c.b16 %v2094_v26, %v2093_v25  ;;  %v9269_v0 = vpop.f32.mrf.mxu2  ;;  %11713 = vst [vmem:[#allocation54_spill] sm:$0xff] %v9294_v19 }
 0x3d2   : > { %v1796_v38 = vpop.f32.mrf.mxu1 }
 0x3d3   : > { %11711 = vst [vmem:[#allocation52_spill] sm:$0xff] %v9265_v30  ;;  %v2100_v21 = vsel %vm1945_vm13, %v9265_v30, 0  ;;  %v1797_v56 = vadd.f32 %v1796_v38, %v9153_v9 }
 0x3d4   : > { %2109 = vmatpush.bf16.xpose.msra.mxu3 %v2100_v21  ;;  %v1816_v21 = vadd.f32 %v9156_v58, %v9197_v60  ;;  %v1821_v58 = vadd.f32 %v9169_v45, %v9197_v60 }
 0x3d5   : > { %v1899_v27 = vpack.c.bf16 %v1797_v56, %v1797_v56  ;;  %v1904_v56 = vpack.c.bf16 %v1818_v49, %v1818_v49 }
 0x3d6   : > { %v1903_v40 = vpack.c.bf16 %v1816_v21, %v1816_v21 }
 0x3d7   : > { %v2123_v52 = vunpack.c.l.b16 %v1899_v27  ;;  %v2377_v35 = vunpack.c.l.b16 %v1904_v56 }
 0x3d9   : > { %v1845_v34 = vpop.f32.mrf.mxu2 }
 0x3da   : > { %v1798_v46 = vpop.f32.mrf.mxu1  ;;  %v1846_v8 = vadd.f32 %v1845_v34, %v9197_v60 }
 0x3db   : > { %v1799_v7 = vadd.f32 %v1798_v46, %v9153_v9 }
 0x3dc   : > { %v1915_v6 = vpack.c.bf16 %v1846_v8, %v1846_v8 }
 0x3dd   : > { %v1900_v55 = vpack.c.bf16 %v1799_v7, %v1799_v7  ;;  %v1823_v7 = vadd.f32 %v9184_v24, %v9197_v60 }
 0x3de   : > { %v2544_v23 = vunpack.c.l.b16 %v1915_v6 }
 0x3df   : > { %v2124_v4 = vunpack.c.l.b16 %v1900_v55  ;;  %v1906_v6 = vpack.c.bf16 %v1823_v7, %v1823_v7 }
 0x3e0   : > { %6855 = vmatmul.msk.bf16.vlgmr.msrb.gmra.mxu3 %vm1945_vm13, %v9276_v50 }
 0x3e1   : > { %v9282_v57 = vpack.c.b16 %v2124_v4, %v2123_v52  ;;  %v1847_v61 = vpop.f32.mrf.mxu2  ;;  %v2376_v4 = vunpack.c.l.b16 %v1903_v40  ;;  %v2405_v1 = vunpack.c.l.b16 %v1906_v6 }
 0x3e2   : > { %v1848_v51 = vadd.f32 %v1847_v61, %v9197_v60 }
 0x3e3   : > { %11712 = vst [vmem:[#allocation53_spill] sm:$0xff] %v9282_v57  ;;  %2747 = vrot.lane.b32.xlu1 %v9282_v57, %s8336_s2  ;;  %v2130_v42 = vsel %vm1945_vm13, %v9282_v57, 0  ;;  %v9317_v59 = vpack.c.b16 %v2377_v35, %v2376_v4 }
 0x3e4   : > { %v1916_v47 = vpack.c.bf16 %v1848_v51, %v1848_v51  ;;  %2139 = vmatpush.bf16.xpose.msrb.mxu3 %v2130_v42 }
 0x3e6   : > { %v2545_v12 = vunpack.c.l.b16 %v1916_v47 }
 0x3e8   : > { %v9291_v13 = vpack.c.b16 %v2545_v12, %v2544_v23  ;;  %v1905_v23 = vpack.c.bf16 %v1821_v58, %v1821_v58 }
 0x3ea   : > { %2558 = vmatpush.bf16.msrb.mxu0 %v9291_v13 }
 0x3f0   : > { %6856 = vmatmul.msk.bf16.vlgmr.msra.gmra.mxu3 %vm1945_vm13, %v9294_v19 }
 0x3fd   : > { %v2652_v20 = vpop.permute.xlu2 %2651 }
 0x3fe   : > { %v2657_v25 = vsel %vm1945_vm13, %v2652_v20, 0  ;;  %v2404_v20 = vunpack.c.l.b16 %v1905_v23 }
 0x3ff   : > { %2666 = vmatpush.bf16.xpose.msra.mxu0 %v2657_v25 }
 0x400   : > { %6857 = vmatmul.msk.bf16.vlgmr.msrb.gmra.mxu3 %vm1945_vm13, %v9222_v11 }
 0x40d   : > { %v1801_v26 = vpop.f32.mrf.mxu1 }
 0x40e   : > { %v1802_v38 = vadd.f32 %v1801_v26, %v9153_v9 }
 0x410   : > { %v1901_v44 = vpack.c.bf16 %v1802_v38, %v1802_v38  ;;  %v9328_v38 = vpack.c.b16 %v2405_v1, %v2404_v20 }
 0x412   : > { %v2153_v55 = vunpack.c.l.b16 %v1901_v44 }
 0x413   : > { %v1752_v31 = vpop.f32.mrf.mxu3 }
 0x414   : > { %v1850_v3 = vpop.f32.mrf.mxu2  ;;  %v1753_v34 = vadd.f32 %v1752_v31, %v9176_v37 }
 0x415   : > { %v1803_v36 = vpop.f32.mrf.mxu1  ;;  %v1851_v33 = vadd.f32 %v1850_v3, %v9197_v60 }
 0x416   : > { %v1804_v46 = vadd.f32 %v1803_v36, %v9153_v9  ;;  %v1869_v8 = vmul.f32 0.17677669, %v1753_v34 }
 0x417   : > { %v1917_v51 = vpack.c.bf16 %v1851_v33, %v1851_v33 }
 0x418   : > { %v1902_v27 = vpack.c.bf16 %v1804_v46, %v1804_v46  ;;  %v1885_v42 = vpack.c.bf16 %v1869_v8, %v1869_v8 }
 0x41a   : > { %v2154_v48 = vunpack.c.l.b16 %v1902_v27  ;;  %v2148_v17 = vunpack.c.l.b16 %v1885_v42 }
 0x41b   : > { %v1754_v52 = vpop.f32.mrf.mxu3 }
 0x41c   : > { %v9313_v53 = vpack.c.b16 %v2154_v48, %v2153_v55  ;;  %v1755_v9 = vadd.f32 %v1754_v52, %v9176_v37  ;;  %v1852_v61 = vpop.f32.mrf.mxu2  ;;  %v2572_v37 = vunpack.c.l.b16 %v1917_v51 }
 0x41d   : > { %v1853_v24 = vadd.f32 %v1852_v61, %v9197_v60 }
 0x41e   : > { %11714 = vst [vmem:[#allocation55_spill] sm:$0xff] %v9313_v53  ;;  %v1870_v47 = vmul.f32 0.17677669, %v1755_v9  ;;  %v2160_v10 = vsel %vm1945_vm13, %v9313_v53, 0 }
 0x41f   : > { %v1918_v45 = vpack.c.bf16 %v1853_v24, %v1853_v24  ;;  %2169 = vmatpush.bf16.xpose.msra.mxu3 %v2160_v10 }
 0x420   : > { %v1886_v12 = vpack.c.bf16 %v1870_v47, %v1870_v47 }
 0x421   : > { %v2573_v15 = vunpack.c.l.b16 %v1918_v45 }
 0x422   : > { %v2149_v22 = vunpack.c.l.b16 %v1886_v12 }
 0x423   : > { %v9322_v25 = vpack.c.b16 %v2573_v15, %v2572_v37  ;;  %v9324_v26 = vpop.f32.mrf.mxu3 }
 0x424   : > { %v9326_v49 = vpack.c.b16 %v2149_v22, %v2148_v17 }
 0x425   : > { %11715 = vst [vmem:[#allocation56_spill] sm:$0xff] %v9322_v25  ;;  %2586 = vmatpush.bf16.msrb.mxu1 %v9322_v25 }
 0x426   : > { %11716 = vst [vmem:[#allocation57_spill] sm:$0xff] %v9326_v49  ;;  %6858 = vmatmul.msk.bf16.vlgmr.msra.gmra.mxu3 %vm1945_vm13, %v9326_v49 }
 0x427   : > { %2390 = vmatpush.bf16.msrb.mxu3 %v9317_v59 }
 0x42b   : > { %2418 = vmatpush.bf16.msra.mxu3 %v9328_v38  ;;  %v9334_v31 = vpop.f32.mrf.mxu3 }
 0x433   : > { %v9336_v21 = vpop.f32.mrf.mxu3 }
 0x434   : > { %v2183_v15 = vsel %vm2176_vm2, %v9336_v21, -inf }
 0x43b   : > { %v9338_v3 = vpop.f32.mrf.mxu3 }
 0x443   : > { %v9340_v36 = vpop.f32.mrf.mxu3 }
 0x44b   : > { %v9342_v56 = vpop.f32.mrf.mxu3 }
 0x453   : > { %v2051_v44 = vpop.f32.mrf.mxu3 }
 0x454   : > { %v2195_v34 = vsel %vm2176_vm2, %v2051_v44, -inf }
 0x455   : > { %2196 = vmax.xlane.f32.xlu1 %v2195_v34  ;;  %v9371_v6 = vpop.permute.xlu1 %2747 }
 0x45b   : > { %v2053_v46 = vpop.f32.mrf.mxu3 }
 0x45c   : > { %v2198_v40 = vsel %vm2176_vm2, %v2053_v46, -inf }
 0x45d   : > { %2199 = vmax.xlane.f32.xlu2 %v2198_v40  ;;  %v2180_v40 = vsel %vm2176_vm2, %v9334_v31, -inf }
 0x463   : > { %v9346_v27 = vpop.f32.mrf.mxu3 }
 0x46b   : > { %v9348_v7 = vpop.f32.mrf.mxu3 }
 0x473   : > { %v9350_v33 = vpop.f32.mrf.mxu3 }
 0x47b   : > { %v9352_v35 = vpop.f32.mrf.mxu3 }
 0x47c   : > { %v2210_v17 = vsel %vm2176_vm2, %v9352_v35, -inf }
 0x483   : > { %v2141_v55 = vpop.f32.mrf.mxu3 }
 0x484   : > { %v2213_v8 = vsel %vm2176_vm2, %v2141_v55, -inf }
 0x485   : > { %2214 = vmax.xlane.f32.xlu2 %v2213_v8  ;;  %v2207_v8 = vsel %vm2176_vm2, %v9350_v33, -inf }
 0x48b   : > { %v9355_v48 = vpop.f32.mrf.mxu3 }
 0x48c   : > { %v2216_v58 = vsel %vm2176_vm2, %v9355_v48, -inf }
 0x48d   : > { %2217 = vmax.xlane.f32.xlu0 %v2216_v58 }
 0x49d   : > { %2675 = vrot.lane.b32.xlu2 %v9230_v18, %s8336_s2 }
 0x4a9   : > { %v9361_v52 = vpop.f32.mrf.mxu3 }
 0x4aa   : > { %v2219_v4 = vsel %vm2176_vm2, %v9361_v52, -inf }
 0x4ab   : > { %2220 = vmax.xlane.f32.xlu0 %v2219_v4 }
 0x4b1   : > { %v9365_v9 = vpop.f32.mrf.mxu3 }
 0x4b2   : > { %v2222_v61 = vsel %vm2176_vm2, %v9365_v9, -inf }
 0x4b3   : > { %2223 = vmax.xlane.f32.xlu1 %v2222_v61 }
 0x4bf   : > { %2769 = vrot.lane.b32.xlu0 %v9326_v49, %s8336_s2 }
 0x4c8   : > { %v2197_v51 = vpop.xlane.xlu1 %2196 }
 0x4c9   : > { %v2231_v24 = vsub.f32 %v2051_v44, %v2197_v51  ;;  %v2177_v51 = vsel %vm2176_vm2, %v9324_v26, -inf }
 0x4cb   : > { %v2253_v42 = vmul.f32 1.442695, %v2231_v24 }
 0x4cd   : > { %7449 = vpow2.f32 %v2253_v42 }
 0x4d0   : > { %v2200_v47 = vpop.xlane.xlu2 %2199 }
 0x4d1   : > { %v2232_v10 = vsub.f32 %v2053_v46, %v2200_v47 }
 0x4d3   : > { %v7450_v23 = vpop.eup %7449  ;;  %v2255_v45 = vmul.f32 1.442695, %v2232_v10  ;;  %v2186_v10 = vsel %vm2176_vm2, %v9338_v3, -inf }
 0x4d4   : > { %v2291_v12 = vsel %vm2176_vm2, %v7450_v23, 0.0 }
 0x4d5   : > { %7451 = vpow2.f32 %v2255_v45  ;;  %2292 = vadd.xlane.f32.xlu1 %v2291_v12 }
 0x4db   : > { %v7452_v1 = vpop.eup %7451 }
 0x4dc   : > { %v2294_v37 = vsel %vm2176_vm2, %v7452_v1, 0.0 }
 0x4dd   : > { %2295 = vadd.xlane.f32.xlu2 %v2294_v37 }
 0x4e9   : > { %2184 = vmax.xlane.f32.xlu0 %v2183_v15 }
 0x4ee   : > { %2771 = vrot.lane.b32.xlu1 %v9313_v53, %s8336_s2 }
 0x4f1   : > { %2211 = vmax.xlane.f32.xlu0 %v2210_v17 }
 0x4f8   : > { %v2215_v22 = vpop.xlane.xlu2 %2214 }
 0x4f9   : > { %v2237_v20 = vsub.f32 %v2141_v55, %v2215_v22  ;;  %v9391_v55 = vpop.permute.xlu0 %2649 }
 0x4fb   : > { %v2265_v44 = vmul.f32 1.442695, %v2237_v20 }
 0x4fd   : > { %7453 = vpow2.f32 %v2265_v44 }
 0x500   : > { %v2676_v24 = vpop.permute.xlu2 %2675 }
 0x501   : > { %v9393_v58 = vpop.permute.xlu0 %2745  ;;  %v2681_v63 = vsel %vm1945_vm13, %v2676_v24, 0 }
 0x503   : > { %v9381_v34 = vpop.eup %7453 }
 0x504   : > { %v2309_v46 = vsel %vm2176_vm2, %v9381_v34, 0.0 }
 0x505   : > { %2310 = vadd.xlane.f32.xlu2 %v2309_v46 }
 0x509   : > { %v2218_v61 = vpop.xlane.xlu0 %2217 }
 0x518   : > { %2181 = vmax.xlane.f32.xlu1 %v2180_v40 }
 0x51d   : > { %2673 = vrot.lane.b32.xlu2 %v9261_v2, %s8336_s2 }
 0x51e   : > { %v2221_v47 = vpop.xlane.xlu0 %2220 }
 0x520   : > { %2208 = vmax.xlane.f32.xlu1 %v2207_v8 }
 0x526   : > { %v9395_v4 = vpop.xlane.xlu1 %2223 }
 0x531   : > { %v9401_v37 = vpop.permute.xlu0 %2769 }
 0x546   : > { %2178 = vmax.xlane.f32.xlu2 %v2177_v51 }
 0x548   : > { %v2293_v42 = vpop.xlane.xlu1 %2292 }
 0x549   : > { %7455 = vrcp.f32 %v2293_v42 }
 0x54e   : > { %2187 = vmax.xlane.f32.xlu2 %v2186_v10 }
 0x54f   : > { %v7456_v12 = vpop.eup %7455 }
 0x550   : > { %v2296_v45 = vpop.xlane.xlu2 %2295  ;;  %v2343_v15 = vmul.f32 %v7456_v12, %v7450_v23 }
 0x551   : > { %7457 = vrcp.f32 %v2296_v45 }
 0x552   : > { %v2359_v22 = vpack.c.bf16 %v2343_v15, %v2343_v15 }
 0x554   : > { %v2455_v46 = vunpack.c.l.b16 %v2359_v22 }
 0x557   : > { %v7458_v17 = vpop.eup %7457 }
 0x558   : > { %v2344_v20 = vmul.f32 %v7458_v17, %v7452_v1  ;;  %v2238_v1 = vsub.f32 %v9355_v48, %v2218_v61 }
 0x55a   : > { %v2360_v44 = vpack.c.bf16 %v2344_v20, %v2344_v20 }
 0x55c   : > { %v2456_v40 = vunpack.c.l.b16 %v2360_v44  ;;  %v2185_v8 = vpop.xlane.xlu0 %2184 }
 0x55d   : > { %v2227_v51 = vsub.f32 %v9336_v21, %v2185_v8  ;;  %v2267_v21 = vmul.f32 1.442695, %v2238_v1 }
 0x55e   : > { %v2457_v42 = vpack.c.b16 %v2456_v40, %v2455_v46 }
 0x55f   : > { %v2245_v29 = vmul.f32 1.442695, %v2227_v51 }
 0x560   : > { %6862 = vmatmul.msk.bf16.vlgmr.msra.gmra.mxu1 %vm2176_vm2, %v2457_v42  ;;  %v9425_v20 = vpop.permute.xlu1 %2771 }
 0x561   : > { %7459 = vpow2.f32 %v2245_v29  ;;  %2690 = vmatpush.bf16.xpose.msra.mxu1 %v2681_v63  ;;  %v2239_v29 = vsub.f32 %v9361_v52, %v2221_v47 }
 0x564   : > { %v2212_v10 = vpop.xlane.xlu0 %2211 }
 0x565   : > { %v2236_v23 = vsub.f32 %v9352_v35, %v2212_v10  ;;  %v2269_v35 = vmul.f32 1.442695, %v2239_v29 }
 0x567   : > { %v9407_v45 = vpop.eup %7459  ;;  %v2263_v12 = vmul.f32 1.442695, %v2236_v23 }
 0x568   : > { %v2279_v15 = vsel %vm2176_vm2, %v9407_v45, 0.0 }
 0x569   : > { %7461 = vpow2.f32 %v2263_v12  ;;  %2280 = vadd.xlane.f32.xlu0 %v2279_v15 }
 0x56a   : > { %7463 = vpow2.f32 %v2267_v21  ;;  %v2189_v21 = vsel %vm2176_vm2, %v9340_v36, -inf }
 0x56b   : > { %7465 = vpow2.f32 %v2269_v35 }
 0x56f   : > { %v9412_v17 = vpop.eup %7461 }
 0x570   : > { %v2306_v63 = vsel %vm2176_vm2, %v9412_v17, 0.0  ;;  %v9417_v24 = vpop.eup %7463 }
 0x571   : > { %2307 = vadd.xlane.f32.xlu0 %v2306_v63  ;;  %v2312_v48 = vsel %vm2176_vm2, %v9417_v24, 0.0  ;;  %v9421_v61 = vpop.eup %7465 }
 0x572   : > { %v2315_v22 = vsel %vm2176_vm2, %v9421_v61, 0.0 }
 0x578   : > { %v2311_v23 = vpop.xlane.xlu2 %2310 }
 0x579   : > { %2313 = vadd.xlane.f32.xlu0 %v2312_v48 }
 0x580   : > { %v9439_v1 = vpop.permute.xlu2 %2673 }
 0x581   : > { %2316 = vadd.xlane.f32.xlu0 %v2315_v22 }
 0x58b   : > { %v2182_v52 = vpop.xlane.xlu1 %2181 }
 0x58c   : > { %v2226_v47 = vsub.f32 %v9334_v31, %v2182_v52 }
 0x58e   : > { %v2243_v44 = vmul.f32 1.442695, %v2226_v47  ;;  %v2240_v47 = vsub.f32 %v9365_v9, %v9395_v4 }
 0x590   : > { %7467 = vpow2.f32 %v2243_v44 }
 0x593   : > { %v2209_v46 = vpop.xlane.xlu1 %2208 }
 0x594   : > { %v2235_v40 = vsub.f32 %v9350_v33, %v2209_v46 }
 0x595   : > { %2723 = vrot.lane.b32.xlu0 %v9265_v30, %s8336_s2 }
 0x596   : > { %v9431_v8 = vpop.eup %7467  ;;  %v2261_v51 = vmul.f32 1.442695, %v2235_v40 }
 0x597   : > { %v2276_v42 = vsel %vm2176_vm2, %v9431_v8, 0.0 }
 0x598   : > { %7469 = vpow2.f32 %v2261_v51  ;;  %2277 = vadd.xlane.f32.xlu1 %v2276_v42 }
 0x59e   : > { %v9435_v10 = vpop.eup %7469 }
 0x59f   : > { %v2303_v31 = vsel %vm2176_vm2, %v9435_v10, 0.0 }
 0x5a0   : > { %2304 = vadd.xlane.f32.xlu1 %v2303_v31 }
 0x5b9   : > { %2625 = vrot.lane.b32.xlu1 %v9228_v16, %s8336_s2  ;;  %v2179_v33 = vpop.xlane.xlu2 %2178 }
 0x5ba   : > { %v2225_v12 = vsub.f32 %v9324_v26, %v2179_v33 }
 0x5bc   : > { %v2241_v15 = vmul.f32 1.442695, %v2225_v12 }
 0x5be   : > { %7471 = vpow2.f32 %v2241_v15 }
 0x5bf   : > { %2190 = vmax.xlane.f32.xlu0 %v2189_v21 }
 0x5c1   : > { %v2188_v29 = vpop.xlane.xlu2 %2187 }
 0x5c2   : > { %v2228_v63 = vsub.f32 %v9338_v3, %v2188_v29  ;;  %v2271_v3 = vmul.f32 1.442695, %v2240_v47 }
 0x5c4   : > { %v9447_v35 = vpop.eup %7471  ;;  %v2247_v48 = vmul.f32 1.442695, %v2228_v63 }
 0x5c5   : > { %v2273_v22 = vsel %vm2176_vm2, %v9447_v35, 0.0 }
 0x5c6   : > { %7473 = vpow2.f32 %v2247_v48  ;;  %2274 = vadd.xlane.f32.xlu2 %v2273_v22 }
 0x5c7   : > { %7475 = vpow2.f32 %v2271_v3 }
 0x5c8   : > { %7477 = vrcp.f32 %v2311_v23 }
 0x5cc   : > { %v9451_v52 = vpop.eup %7473 }
 0x5cd   : > { %v2282_v26 = vsel %vm2176_vm2, %v9451_v52, 0.0  ;;  %v9461_v46 = vpop.eup %7475 }
 0x5ce   : > { %2283 = vadd.xlane.f32.xlu2 %v2282_v26  ;;  %v2318_v40 = vsel %vm2176_vm2, %v9461_v46, 0.0  ;;  %v7478_v51 = vpop.eup %7477  ;;  %v1843_v26 = vadd.f32 %v9269_v0, %v9197_v60 }
 0x5cf   : > { %v2349_v42 = vmul.f32 %v7478_v51, %v9381_v34  ;;  %v2753_v34 = vsel %vm1945_vm13, %v9371_v6, 0  ;;  %v2192_v6 = vsel %vm2176_vm2, %v9342_v56, -inf }
 0x5d0   : > { %v1914_v3 = vpack.c.bf16 %v1843_v26, %v1843_v26 }
 0x5d1   : > { %v2365_v33 = vpack.c.bf16 %v2349_v42, %v2349_v42 }
 0x5d3   : > { %3065 = vrot.lane.b32.xlu0 %v9238_v39, %s8336_s2  ;;  %v2539_v23 = vunpack.c.l.b16 %v2365_v33  ;;  %v2517_v33 = vunpack.c.l.b16 %v1914_v3 }
 0x5db   : > { %3165 = vrot.lane.b32.xlu0 %v9322_v25, %s8336_s2 }
 0x5dc   : > { %v2281_v44 = vpop.xlane.xlu0 %2280 }
 0x5e3   : > { %3411 = vrot.lane.b32.xlu0 %v9210_v54, %s8337_s11  ;;  %2319 = vadd.xlane.f32.xlu1 %v2318_v40 }
 0x5e4   : > { %v9467_v9 = vpop.xlane.xlu0 %2307 }
 0x5e6   : > { %2627 = vrot.lane.b32.xlu2 %v9182_v5, %s8336_s2 }
 0x5eb   : > { %3387 = vrot.lane.b32.xlu0 %v9228_v16, %s8337_s11 }
 0x5ec   : > { %v2314_v4 = vpop.xlane.xlu0 %2313 }
 0x5ed   : > { %7479 = vrcp.f32 %v2314_v4 }
 0x5ee   : > { %2721 = vrot.lane.b32.xlu2 %v9294_v19, %s8336_s2 }
 0x5f3   : > { %v7480_v31 = vpop.eup %7479  ;;  %3461 = vrot.lane.b32.xlu0 %v9245_v41, %s8337_s11 }
 0x5f4   : > { %v2350_v12 = vmul.f32 %v7480_v31, %v9417_v24  ;;  %v2204_v24 = vsel %vm2176_vm2, %v9348_v7, -inf }
 0x5f6   : > { %v2366_v15 = vpack.c.bf16 %v2350_v12, %v2350_v12  ;;  %3140 = vrot.lane.b32.xlu2 %v9291_v13, %s8336_s2 }
 0x5f8   : > { %v2540_v21 = vunpack.c.l.b16 %v2366_v15 }
 0x5fa   : > { %v2541_v29 = vpack.c.b16 %v2540_v21, %v2539_v23 }
 0x5fb   : > { %3437 = vrot.lane.b32.xlu0 %v9230_v18, %s8337_s11 }
 0x5fc   : > { %3040 = vrot.lane.b32.xlu1 %v9219_v43, %s8336_s2  ;;  %6865 = vmatmul.msk.bf16.vlgmr.msrb.gmra.mxu0 %vm2176_vm2, %v2541_v29  ;;  %v2317_v29 = vpop.xlane.xlu0 %2316 }
 0x5fd   : > { %2762 = vmatpush.bf16.xpose.msrb.mxu0 %v2753_v34 }
 0x5fe   : > { %3363 = vrot.lane.b32.xlu2 %v9199_v62, %s8337_s11 }
 0x603   : > { %3459 = vrot.lane.b32.xlu0 %v9276_v50, %s8337_s11 }
 0x60b   : > { %3435 = vrot.lane.b32.xlu0 %v9261_v2, %s8337_s11  ;;  %v2278_v63 = vpop.xlane.xlu1 %2277 }
 0x60c   : > { %6869 = vmatmul.msk.bf16.vlgmr.msra.gmra.mxu0 %vm1945_vm13, %v9391_v55  ;;  %7481 = vrcp.f32 %v2278_v63 }
 0x612   : > { %v7482_v22 = vpop.eup %7481 }
 0x613   : > { %v2338_v55 = vmul.f32 %v7482_v22, %v9431_v8  ;;  %v2305_v15 = vpop.xlane.xlu1 %2304 }
 0x615   : > { %v2354_v40 = vpack.c.bf16 %v2338_v55, %v2338_v55 }
 0x617   : > { %v2372_v0 = vunpack.c.l.b16 %v2354_v40 }
 0x61c   : > { %6873 = vmatmul.msk.bf16.vlgmr.msrb.gmra.mxu0 %vm1945_vm13, %v9393_v58  ;;  %v1841_v58 = vadd.f32 %v9255_v14, %v9197_v60 }
 0x61e   : > { %v1913_v42 = vpack.c.bf16 %v1841_v58, %v1841_v58 }
 0x620   : > { %v2516_v8 = vunpack.c.l.b16 %v1913_v42 }
 0x622   : > { %v9512_v14 = vpack.c.b16 %v2517_v33, %v2516_v8 }
 0x626   : > { %2193 = vmax.xlane.f32.xlu1 %v2192_v6 }
 0x627   : > { %2205 = vmax.xlane.f32.xlu2 %v2204_v24 }
 0x62b   : > { %v2626_v34 = vpop.permute.xlu1 %2625 }
 0x639   : > { %v2275_v48 = vpop.xlane.xlu2 %2274 }
 0x63a   : > { %7483 = vrcp.f32 %v2275_v48 }
 0x63f   : > { %3365 = vrot.lane.b32.xlu1 %v9161_v28, %s8337_s11 }
 0x640   : > { %v7484_v47 = vpop.eup %7483 }
 0x641   : > { %v2337_v4 = vmul.f32 %v7484_v47, %v9447_v35  ;;  %v2284_v51 = vpop.xlane.xlu2 %2283 }
 0x642   : > { %7485 = vrcp.f32 %v2284_v51 }
 0x643   : > { %v2353_v31 = vpack.c.bf16 %v2337_v4, %v2337_v4  ;;  %7487 = vrcp.f32 %v2281_v44 }
 0x644   : > { %7489 = vrcp.f32 %v2317_v29 }
 0x645   : > { %v2371_v12 = vunpack.c.l.b16 %v2353_v31  ;;  %7491 = vrcp.f32 %v2305_v15 }
 0x646   : > { %7493 = vrcp.f32 %v9467_v9 }
 0x647   : > { %v2373_v23 = vpack.c.b16 %v2372_v0, %v2371_v12  ;;  %3413 = vrot.lane.b32.xlu1 %v9205_v32, %s8337_s11 }
 0x648   : > { %v7486_v60 = vpop.eup %7485 }
 0x649   : > { %6859 = vmatmul.msk.bf16.vlgmr.msrb.gmra.mxu3 %vm2176_vm2, %v2373_v23  ;;  %v7488_v35 = vpop.eup %7487  ;;  %v2340_v21 = vmul.f32 %v7486_v60, %v9451_v52  ;;  %v2628_v22 = vpop.permute.xlu2 %2627 }
 0x64a   : > { %2530 = vmatpush.bf16.msrb.mxu3 %v9512_v14  ;;  %v2339_v44 = vmul.f32 %v7488_v35, %v9407_v45  ;;  %v7490_v55 = vpop.eup %7489  ;;  %v2633_v45 = vsel %vm1945_vm13, %v2628_v22, 0  ;;  %v2724_v23 = vpop.permute.xlu0 %2723 }
 0x64b   : > { %v2356_v6 = vpack.c.bf16 %v2340_v21, %v2340_v21  ;;  %v7492_v52 = vpop.eup %7491  ;;  %v2351_v3 = vmul.f32 %v7490_v55, %v9421_v61  ;;  %v2777_v61 = vsel %vm1945_vm13, %v9425_v20, 0  ;;  %v2201_v20 = vsel %vm2176_vm2, %v9346_v27, -inf }
 0x64c   : > { %v2355_v24 = vpack.c.bf16 %v2339_v44, %v2339_v44  ;;  %v7494_v47 = vpop.eup %7493  ;;  %v2347_v40 = vmul.f32 %v7492_v52, %v9435_v10 }
 0x64d   : > { %v2400_v63 = vunpack.c.l.b16 %v2356_v6  ;;  %v2348_v9 = vmul.f32 %v7494_v47, %v9412_v17  ;;  %v2367_v51 = vpack.c.bf16 %v2351_v3, %v2351_v3  ;;  %v2729_v17 = vsel %vm1945_vm13, %v2724_v23, 0 }
 0x64e   : > { %v2399_v48 = vunpack.c.l.b16 %v2355_v24  ;;  %v2363_v31 = vpack.c.bf16 %v2347_v40, %v2347_v40 }
 0x64f   : > { %3389 = vrot.lane.b32.xlu1 %v9182_v5, %s8337_s11  ;;  %v2364_v0 = vpack.c.bf16 %v2348_v9, %v2348_v9  ;;  %v2567_v12 = vunpack.c.l.b16 %v2367_v51 }
 0x650   : > { %v2401_v58 = vpack.c.b16 %v2400_v63, %v2399_v48  ;;  %v2511_v15 = vunpack.c.l.b16 %v2363_v31  ;;  %v9572_v31 = vpop.f32.mrf.mxu1 }
 0x651   : > { %v2512_v35 = vunpack.c.l.b16 %v2364_v0  ;;  %v2722_v21 = vpop.permute.xlu2 %2721 }
 0x653   : > { %v2513_v10 = vpack.c.b16 %v2512_v35, %v2511_v15 }
 0x656   : > { %v2320_v26 = vpop.xlane.xlu1 %2319 }
 0x657   : > { %7495 = vrcp.f32 %v2320_v26 }
 0x659   : > { %6860 = vmatmul.msk.bf16.vlgmr.msra.gmra.mxu3 %vm2176_vm2, %v2401_v58  ;;  %v3141_v6 = vpop.permute.xlu2 %3140 }
 0x65a   : > { %2642 = vmatpush.bf16.xpose.msra.mxu3 %v2633_v45 }
 0x65d   : > { %v7496_v4 = vpop.eup %7495 }
 0x65e   : > { %v2352_v42 = vmul.f32 %v7496_v4, %v9461_v46  ;;  %v2191_v46 = vpop.xlane.xlu0 %2190 }
 0x65f   : > { %v2229_v29 = vsub.f32 %v9340_v36, %v2191_v46 }
 0x660   : > { %v2368_v33 = vpack.c.bf16 %v2352_v42, %v2352_v42 }
 0x661   : > { %v2249_v24 = vmul.f32 1.442695, %v2229_v29 }
 0x662   : > { %v2568_v8 = vunpack.c.l.b16 %v2368_v33 }
 0x663   : > { %7497 = vpow2.f32 %v2249_v24 }
 0x664   : > { %v2569_v60 = vpack.c.b16 %v2568_v8, %v2567_v12  ;;  %v9580_v8 = vpop.f32.mrf.mxu1 }
 0x666   : > { %6866 = vmatmul.msk.bf16.vlgmr.msrb.gmra.mxu1 %vm2176_vm2, %v2569_v60  ;;  %v3066_v63 = vpop.permute.xlu0 %3065 }
 0x667   : > { %2786 = vmatpush.bf16.xpose.msrb.mxu1 %v2777_v61 }
 0x669   : > { %6864 = vmatmul.msk.bf16.vlgmr.msrb.gmra.mxu3 %vm2176_vm2, %v2513_v10  ;;  %v9540_v22 = vpop.eup %7497 }
 0x66a   : > { %2738 = vmatpush.bf16.xpose.msrb.mxu3 %v2729_v17  ;;  %v2285_v36 = vsel %vm2176_vm2, %v9540_v22, 0.0 }
 0x66e   : > { %v3041_v44 = vpop.permute.xlu1 %3040  ;;  %v3166_v55 = vpop.permute.xlu0 %3165 }
 0x66f   : > { %3053 = vmatpush.bf16.msra.mxu0 %v3041_v44 }
 0x673   : > { %3153 = vmatpush.bf16.msrb.mxu0 %v3141_v6 }
 0x676   : > { %6870 = vmatmul.msk.bf16.vlgmr.msra.gmra.mxu1 %vm1945_vm13, %v9439_v1  ;;  %v9574_v33 = vpop.permute.xlu0 %3411 }
 0x677   : > { %3078 = vmatpush.bf16.msra.mxu1 %v3066_v63 }
 0x679   : > { %2202 = vmax.xlane.f32.xlu1 %v2201_v20  ;;  %v9537_v48 = vpop.f32.mrf.mxu0  ;;  %6868 = vmatmul.msk.bf16.vlgmr.msra.gmra.mxu3 %vm1945_vm13, %v2626_v34 }
 0x67e   : > { %v9582_v15 = vpop.permute.xlu0 %3387 }
 0x681   : > { %2286 = vadd.xlane.f32.xlu1 %v2285_v36  ;;  %v9544_v26 = vpop.f32.mrf.mxu0 }
 0x686   : > { %6874 = vmatmul.msk.bf16.vlgmr.msrb.gmra.mxu1 %vm1945_vm13, %v9401_v37 }
 0x687   : > { %3178 = vmatpush.bf16.msrb.mxu1 %v3166_v55 }
 0x689   : > { %v9548_v1 = vpop.f32.mrf.mxu0  ;;  %6872 = vmatmul.msk.bf16.vlgmr.msrb.gmra.mxu3 %vm1945_vm13, %v2722_v21  ;;  %v9590_v21 = vpop.permute.xlu0 %3461 }
 0x68a   : > { %v2805_v34 = vsel %vm2176_vm2, %v9548_v1, -inf }
 0x68b   : > { %2806 = vmax.xlane.f32.xlu0 %v2805_v34 }
 0x691   : > { %v2670_v58 = vpop.f32.mrf.mxu0  ;;  %v9598_v46 = vpop.permute.xlu0 %3437 }
 0x692   : > { %v2808_v52 = vsel %vm2176_vm2, %v2670_v58, -inf }
 0x693   : > { %2809 = vmax.xlane.f32.xlu1 %v2808_v52 }
 0x699   : > { %v2194_v45 = vpop.xlane.xlu1 %2193  ;;  %v9554_v47 = vpop.f32.mrf.mxu0 }
 0x69a   : > { %v2230_v3 = vsub.f32 %v9342_v56, %v2194_v45  ;;  %v2829_v42 = vsel %vm2176_vm2, %v9554_v47, -inf  ;;  %v9610_v20 = vpop.permute.xlu0 %3459 }
 0x69c   : > { %v2251_v40 = vmul.f32 1.442695, %v2230_v3 }
 0x69e   : > { %7499 = vpow2.f32 %v2251_v40 }
 0x6a1   : > { %v2766_v37 = vpop.f32.mrf.mxu0 }
 0x6a2   : > { %v2832_v4 = vsel %vm2176_vm2, %v2766_v37, -inf  ;;  %v9620_v3 = vpop.permute.xlu0 %3435 }
 0x6a3   : > { %2833 = vmax.xlane.f32.xlu0 %v2832_v4 }
 0x6a4   : > { %v9558_v9 = vpop.eup %7499 }
 0x6a5   : > { %v2288_v51 = vsel %vm2176_vm2, %v9558_v9, 0.0 }
 0x6a6   : > { %2289 = vadd.xlane.f32.xlu2 %v2288_v51  ;;  %v9622_v51 = vpop.permute.xlu2 %3363 }
 0x6ac   : > { %3509 = vrot.lane.b32.xlu1 %v9282_v57, %s8337_s11 }
 0x6ae   : > { %2830 = vmax.xlane.f32.xlu2 %v2829_v42 }
 0x6b1   : > { %v9578_v12 = vpop.permute.xlu1 %3365 }
 0x6b7   : > { %3507 = vrot.lane.b32.xlu0 %v9222_v11, %s8337_s11 }
 0x6b9   : > { %v9586_v60 = vpop.permute.xlu1 %3413 }
 0x6bf   : > { %3483 = vrot.lane.b32.xlu0 %v9294_v19, %s8337_s11 }
 0x6c1   : > { %v9596_v17 = vpop.permute.xlu1 %3389 }
 0x6cc   : > { %v9570_v56 = vpop.f32.mrf.mxu3 }
 0x6d4   : > { %v9576_v0 = vpop.f32.mrf.mxu3 }
 0x6dc   : > { %v9584_v23 = vpop.f32.mrf.mxu3 }
 0x6e3   : > { %v9588_v35 = vpop.f32.mrf.mxu1 }
 0x6e4   : > { %v9592_v61 = vpop.f32.mrf.mxu3 }
 0x6eb   : > { %v9594_v10 = vpop.f32.mrf.mxu1 }
 0x6ec   : > { %11717 = vst [vmem:[#allocation58_spill] sm:$0xff] %v9594_v10  ;;  %v9602_v29 = vpop.xlane.xlu1 %2202  ;;  %v9606_v24 = vpop.f32.mrf.mxu3 }
 0x6f3   : > { %v9600_v44 = vpop.f32.mrf.mxu1 }
 0x6f4   : > { %v2811_v6 = vsel %vm2176_vm2, %v9600_v44, -inf  ;;  %v2287_v55 = vpop.xlane.xlu1 %2286  ;;  %v9614_v34 = vpop.f32.mrf.mxu3 }
 0x6f5   : > { %2812 = vmax.xlane.f32.xlu1 %v2811_v6 }
 0x6fb   : > { %v9608_v63 = vpop.f32.mrf.mxu1 }
 0x6fc   : > { %v2814_v36 = vsel %vm2176_vm2, %v9608_v63, -inf  ;;  %v9624_v42 = vpop.f32.mrf.mxu3 }
 0x6fd   : > { %2815 = vmax.xlane.f32.xlu2 %v2814_v36  ;;  %v2799_v11 = vsel %vm2176_vm2, %v9624_v42, -inf }
 0x703   : > { %v9616_v52 = vpop.f32.mrf.mxu1 }
 0x704   : > { %v2835_v45 = vsel %vm2176_vm2, %v9616_v52, -inf }
 0x705   : > { %2836 = vmax.xlane.f32.xlu0 %v2835_v45  ;;  %v2807_v45 = vpop.xlane.xlu0 %2806 }
 0x706   : > { %v2810_v40 = vpop.xlane.xlu1 %2809 }
 0x707   : > { %v2846_v4 = vsub.f32 %v2670_v58, %v2810_v40  ;;  %v9634_v58 = vpop.xlane.xlu2 %2205 }
 0x709   : > { %v2867_v6 = vmul.f32 1.442695, %v2846_v4 }
 0x70b   : > { %7501 = vpow2.f32 %v2867_v6  ;;  %v9626_v36 = vpop.f32.mrf.mxu1 }
 0x70c   : > { %v2838_v57 = vsel %vm2176_vm2, %v9626_v36, -inf  ;;  %7503 = vrcp.f32 %v2287_v55 }
 0x70d   : > { %2839 = vmax.xlane.f32.xlu1 %v2838_v57  ;;  %2800 = vmax.xlane.f32.xlu0 %v2799_v11 }
 0x711   : > { %v9632_v19 = vpop.eup %7501 }
 0x712   : > { %v2904_v40 = vsel %vm2176_vm2, %v9632_v19, 0.0  ;;  %v7504_v18 = vpop.eup %7503 }
 0x713   : > { %v2341_v11 = vmul.f32 %v7504_v18, %v9540_v22  ;;  %v2845_v18 = vsub.f32 %v9548_v1, %v2807_v45 }
 0x715   : > { %3485 = vrot.lane.b32.xlu2 %v9265_v30, %s8337_s11  ;;  %2905 = vadd.xlane.f32.xlu0 %v2904_v40  ;;  %v2357_v55 = vpack.c.bf16 %v2341_v11, %v2341_v11 }
 0x716   : > { %v2834_v4 = vpop.xlane.xlu0 %2833 }
 0x717   : > { %v2854_v6 = vsub.f32 %v2766_v37, %v2834_v4  ;;  %v2427_v40 = vunpack.c.l.b16 %v2357_v55 }
 0x719   : > { %v2883_v2 = vmul.f32 1.442695, %v2854_v6  ;;  %v2290_v25 = vpop.xlane.xlu2 %2289 }
 0x71a   : > { %7505 = vrcp.f32 %v2290_v25 }
 0x71b   : > { %7507 = vpow2.f32 %v2883_v2  ;;  %v2865_v2 = vmul.f32 1.442695, %v2845_v18 }
 0x71d   : > { %7509 = vpow2.f32 %v2865_v2 }
 0x720   : > { %v7506_v57 = vpop.eup %7505 }
 0x721   : > { %v9641_v54 = vpop.eup %7507  ;;  %v2342_v32 = vmul.f32 %v7506_v57, %v9558_v9  ;;  %v2831_v22 = vpop.xlane.xlu2 %2830 }
 0x722   : > { %v2928_v10 = vsel %vm2176_vm2, %v9641_v54, 0.0  ;;  %v2853_v9 = vsub.f32 %v9554_v47, %v2831_v22 }
 0x723   : > { %v2358_v30 = vpack.c.bf16 %v2342_v32, %v2342_v32  ;;  %2929 = vadd.xlane.f32.xlu0 %v2928_v10  ;;  %v9650_v4 = vpop.eup %7509  ;;  %v9657_v10 = vpop.f32.mrf.mxu3 }
 0x724   : > { %v2901_v32 = vsel %vm2176_vm2, %v9650_v4, 0.0  ;;  %v2881_v6 = vmul.f32 1.442695, %v2853_v9  ;;  %v2802_v1 = vsel %vm2176_vm2, %v9657_v10, -inf }
 0x725   : > { %v2428_v37 = vunpack.c.l.b16 %v2358_v30  ;;  %v2233_v30 = vsub.f32 %v9346_v27, %v9602_v29 }
 0x726   : > { %3533 = vrot.lane.b32.xlu1 %v9313_v53, %s8337_s11  ;;  %7511 = vpow2.f32 %v2881_v6 }
 0x727   : > { %v2429_v25 = vpack.c.b16 %v2428_v37, %v2427_v40  ;;  %v2257_v11 = vmul.f32 1.442695, %v2233_v30  ;;  %v9675_v37 = vpop.permute.xlu1 %3509 }
 0x729   : > { %6861 = vmatmul.msk.bf16.vlgmr.msrb.gmra.mxu2 %vm2176_vm2, %v2429_v25  ;;  %7513 = vpow2.f32 %v2257_v11  ;;  %v9677_v25 = vpop.permute.xlu0 %3507  ;;  %v2234_v11 = vsub.f32 %v9348_v7, %v9634_v58 }
 0x72b   : > { %v9663_v47 = vpop.f32.mrf.mxu3 }
 0x72c   : > { %v9661_v45 = vpop.eup %7511 }
 0x72d   : > { %v2925_v27 = vsel %vm2176_vm2, %v9661_v45, 0.0 }
 0x72f   : > { %v9665_v57 = vpop.eup %7513 }
 0x730   : > { %v2297_v29 = vsel %vm2176_vm2, %v9665_v57, 0.0 }
 0x731   : > { %v9680_v9 = vpop.permute.xlu0 %3483 }
 0x733   : > { %v9671_v55 = vpop.f32.mrf.mxu3 }
 0x734   : > { %v2826_v40 = vsel %vm2176_vm2, %v9671_v55, -inf }
 0x73e   : > { %2902 = vadd.xlane.f32.xlu2 %v2901_v32 }
 0x746   : > { %2803 = vmax.xlane.f32.xlu2 %v2802_v1 }
 0x74e   : > { %2926 = vadd.xlane.f32.xlu2 %v2925_v27 }
 0x750   : > { %2298 = vadd.xlane.f32.xlu1 %v2297_v29  ;;  %v2259_v29 = vmul.f32 1.442695, %v2234_v11 }
 0x758   : > { %2827 = vmax.xlane.f32.xlu1 %v2826_v40 }
 0x768   : > { %v2813_v18 = vpop.xlane.xlu1 %2812 }
 0x769   : > { %v2847_v2 = vsub.f32 %v9600_v44, %v2813_v18 }
 0x76b   : > { %v2869_v22 = vmul.f32 1.442695, %v2847_v2 }
 0x76d   : > { %7515 = vpow2.f32 %v2869_v22 }
 0x770   : > { %v2816_v32 = vpop.xlane.xlu2 %2815 }
 0x771   : > { %v2848_v30 = vsub.f32 %v9608_v63, %v2816_v32 }
 0x773   : > { %v9683_v6 = vpop.eup %7515  ;;  %v2871_v1 = vmul.f32 1.442695, %v2848_v30 }
 0x774   : > { %v2907_v27 = vsel %vm2176_vm2, %v9683_v6, 0.0 }
 0x775   : > { %7517 = vpow2.f32 %v2871_v1  ;;  %2908 = vadd.xlane.f32.xlu2 %v2907_v27 }
 0x776   : > { %7519 = vpow2.f32 %v2259_v29 }
 0x778   : > { %v2837_v44 = vpop.xlane.xlu0 %2836 }
 0x779   : > { %v2855_v40 = vsub.f32 %v9616_v52, %v2837_v44 }
 0x77b   : > { %v9690_v18 = vpop.eup %7517  ;;  %v2885_v2 = vmul.f32 1.442695, %v2855_v40  ;;  %v2823_v40 = vsel %vm2176_vm2, %v9663_v47, -inf }
 0x77c   : > { %v2910_v63 = vsel %vm2176_vm2, %v9690_v18, 0.0  ;;  %v9694_v58 = vpop.eup %7519 }
 0x77d   : > { %7521 = vpow2.f32 %v2885_v2  ;;  %2911 = vadd.xlane.f32.xlu0 %v2910_v63  ;;  %v2300_v11 = vsel %vm2176_vm2, %v9694_v58, 0.0 }
 0x780   : > { %v2840_v7 = vpop.xlane.xlu1 %2839  ;;  %v2801_v1 = vpop.xlane.xlu0 %2800 }
 0x781   : > { %v2856_v22 = vsub.f32 %v9626_v36, %v2840_v7  ;;  %v2843_v29 = vsub.f32 %v9624_v42, %v2801_v1  ;;  %v9716_v42 = vpop.permute.xlu2 %3485 }
 0x783   : > { %v9697_v32 = vpop.eup %7521  ;;  %v2887_v30 = vmul.f32 1.442695, %v2856_v22  ;;  %v2861_v44 = vmul.f32 1.442695, %v2843_v29 }
 0x784   : > { %v2931_v52 = vsel %vm2176_vm2, %v9697_v32, 0.0 }
 0x785   : > { %7523 = vpow2.f32 %v2887_v30  ;;  %2932 = vadd.xlane.f32.xlu2 %v2931_v52  ;;  %2301 = vadd.xlane.f32.xlu0 %v2300_v11 }
 0x786   : > { %7525 = vpow2.f32 %v2861_v44 }
 0x788   : > { %v2906_v7 = vpop.xlane.xlu0 %2905 }
 0x789   : > { %7527 = vrcp.f32 %v2906_v7 }
 0x78b   : > { %v9703_v27 = vpop.eup %7523 }
 0x78c   : > { %v2934_v36 = vsel %vm2176_vm2, %v9703_v27, 0.0  ;;  %v9710_v2 = vpop.eup %7525 }
 0x78d   : > { %2935 = vadd.xlane.f32.xlu0 %v2934_v36  ;;  %v2895_v63 = vsel %vm2176_vm2, %v9710_v2, 0.0 }
 0x78f   : > { %v7528_v30 = vpop.eup %7527 }
 0x790   : > { %v2958_v52 = vmul.f32 %v7528_v30, %v9632_v19  ;;  %v3371_v30 = vsel %vm1945_vm13, %v9578_v12, 0 }
 0x792   : > { %v2974_v1 = vpack.c.bf16 %v2958_v52, %v2958_v52 }
 0x794   : > { %v3038_v53 = vunpack.c.l.b16 %v2974_v1 }
 0x795   : > { %2824 = vmax.xlane.f32.xlu0 %v2823_v40 }
 0x796   : > { %v2930_v29 = vpop.xlane.xlu0 %2929 }
 0x79d   : > { %3531 = vrot.lane.b32.xlu2 %v9326_v49, %s8337_s11  ;;  %2896 = vadd.xlane.f32.xlu0 %v2895_v63  ;;  %v9725_v63 = vpop.permute.xlu1 %3533 }
 0x7b1   : > { %3015 = vrot.lane.b32.xlu0 %v9328_v38, %s8336_s2  ;;  %v2903_v22 = vpop.xlane.xlu2 %2902 }
 0x7b2   : > { %7529 = vrcp.f32 %v2903_v22 }
 0x7b3   : > { %7531 = vrcp.f32 %v2930_v29 }
 0x7b8   : > { %v7530_v11 = vpop.eup %7529 }
 0x7b9   : > { %v2957_v36 = vmul.f32 %v7530_v11, %v9650_v4  ;;  %3115 = vrot.lane.b32.xlu0 %v9512_v14, %s8336_s2  ;;  %v2804_v44 = vpop.xlane.xlu2 %2803  ;;  %v7532_v52 = vpop.eup %7531 }
 0x7ba   : > { %v2844_v40 = vsub.f32 %v9657_v10, %v2804_v44  ;;  %v2966_v1 = vmul.f32 %v7532_v52, %v9641_v54  ;;  %v3419_v54 = vsel %vm1945_vm13, %v9586_v60, 0 }
 0x7bb   : > { %v2973_v7 = vpack.c.bf16 %v2957_v36, %v2957_v36 }
 0x7bc   : > { %v2863_v49 = vmul.f32 1.442695, %v2844_v40  ;;  %v2982_v12 = vpack.c.bf16 %v2966_v1, %v2966_v1 }
 0x7bd   : > { %v3037_v22 = vunpack.c.l.b16 %v2973_v7 }
 0x7be   : > { %7533 = vpow2.f32 %v2863_v49  ;;  %v3138_v7 = vunpack.c.l.b16 %v2982_v12 }
 0x7bf   : > { %v3039_v19 = vpack.c.b16 %v3038_v53, %v3037_v22 }
 0x7c1   : > { %2601 = vrot.lane.b32.xlu0 %v9199_v62, %s8336_s2  ;;  %6877 = vmatmul.msk.bf16.vlgmr.msra.gmra.mxu0 %vm2176_vm2, %v3039_v19  ;;  %v2927_v4 = vpop.xlane.xlu2 %2926 }
 0x7c2   : > { %3380 = vmatpush.bf16.xpose.msra.mxu0 %v3371_v30  ;;  %7535 = vrcp.f32 %v2927_v4 }
 0x7c3   : > { %v2299_v10 = vpop.xlane.xlu1 %2298 }
 0x7c4   : > { %v9732_v11 = vpop.eup %7533 }
 0x7c5   : > { %v2898_v53 = vsel %vm2176_vm2, %v9732_v11, 0.0 }
 0x7c6   : > { %2899 = vadd.xlane.f32.xlu1 %v2898_v53  ;;  %v3515_v53 = vsel %vm1945_vm13, %v9675_v37, 0 }
 0x7c8   : > { %v7536_v49 = vpop.eup %7535 }
 0x7c9   : > { %v2965_v29 = vmul.f32 %v7536_v49, %v9661_v45  ;;  %2699 = vrot.lane.b32.xlu0 %v9245_v41, %s8336_s2 }
 0x7cb   : > { %v2981_v36 = vpack.c.bf16 %v2965_v29, %v2965_v29  ;;  %v2828_v44 = vpop.xlane.xlu1 %2827 }
 0x7cc   : > { %v2852_v40 = vsub.f32 %v9671_v55, %v2828_v44  ;;  %v3467_v55 = vsel %vm1945_vm13, %v9590_v21, 0 }
 0x7cd   : > { %v3137_v22 = vunpack.c.l.b16 %v2981_v36 }
 0x7ce   : > { %v2879_v19 = vmul.f32 1.442695, %v2852_v40 }
 0x7cf   : > { %v3139_v30 = vpack.c.b16 %v3138_v7, %v3137_v22 }
 0x7d0   : > { %7537 = vpow2.f32 %v2879_v19 }
 0x7d1   : > { %3802 = vrot.lane.b32.xlu0 %v9219_v43, %s8337_s11  ;;  %6881 = vmatmul.msk.bf16.vlgmr.msrb.gmra.mxu0 %vm2176_vm2, %v3139_v30 }
 0x7d2   : > { %3428 = vmatpush.bf16.xpose.msrb.mxu0 %v3419_v54 }
 0x7d6   : > { %v9746_v45 = vpop.eup %7537 }
 0x7d7   : > { %v2922_v4 = vsel %vm2176_vm2, %v9746_v45, 0.0 }
 0x7d8   : > { %2923 = vadd.xlane.f32.xlu1 %v2922_v4 }
 0x7d9   : > { %4058 = vrot.lane.b32.xlu0 %v9161_v28, %s8338_s3 }
 0x7e1   : > { %6915 = vmatmul.msk.bf16.vlgmr.msra.gmra.mxu0 %vm1945_vm13, %v9622_v51 }
 0x7e2   : > { %3476 = vmatpush.bf16.xpose.msra.mxu0 %v3467_v55 }
 0x7e8   : > { %v2909_v60 = vpop.xlane.xlu2 %2908 }
 0x7e9   : > { %7539 = vrcp.f32 %v2909_v60 }
 0x7ef   : > { %v7540_v1 = vpop.eup %7539 }
 0x7f0   : > { %v2912_v52 = vpop.xlane.xlu0 %2911  ;;  %v2959_v21 = vmul.f32 %v7540_v1, %v9683_v6  ;;  %v3395_v6 = vsel %vm1945_vm13, %v9596_v17, 0 }
 0x7f1   : > { %7541 = vrcp.f32 %v2912_v52  ;;  %2603 = vrot.lane.b32.xlu1 %v9161_v28, %s8336_s2  ;;  %6917 = vmatmul.msk.bf16.vlgmr.msrb.gmra.mxu0 %vm1945_vm13, %v9574_v33 }
 0x7f2   : > { %3524 = vmatpush.bf16.xpose.msrb.mxu0 %v3515_v53  ;;  %7543 = vrcp.f32 %v2299_v10  ;;  %v2975_v49 = vpack.c.bf16 %v2959_v21, %v2959_v21 }
 0x7f4   : > { %v3062_v33 = vunpack.c.l.b16 %v2975_v49 }
 0x7f7   : > { %v7542_v51 = vpop.eup %7541 }
 0x7f8   : > { %v2960_v12 = vmul.f32 %v7542_v51, %v9690_v18  ;;  %v2302_v29 = vpop.xlane.xlu0 %2301  ;;  %v2933_v36 = vpop.xlane.xlu2 %2932 }
 0x7f9   : > { %v7544_v44 = vpop.eup %7543  ;;  %7545 = vrcp.f32 %v2302_v29  ;;  %3752 = vrot.lane.b32.xlu1 %v9317_v59, %s8337_s11 }
 0x7fa   : > { %v2976_v37 = vpack.c.bf16 %v2960_v12, %v2960_v12  ;;  %7547 = vrcp.f32 %v2933_v36  ;;  %v2345_v28 = vmul.f32 %v7544_v44, %v9665_v57  ;;  %v3491_v36 = vsel %vm1945_vm13, %v9716_v42, 0 }
 0x7fc   : > { %v3063_v40 = vunpack.c.l.b16 %v2976_v37  ;;  %v2361_v22 = vpack.c.bf16 %v2345_v28, %v2345_v28  ;;  %v11718_v37 = vld [vmem:[#allocation50_spill] sm:$0xff] }
 0x7fe   : > { %v3064_v10 = vpack.c.b16 %v3063_v40, %v3062_v33  ;;  %v2483_v54 = vunpack.c.l.b16 %v2361_v22 }
 0x7ff   : > { %v7546_v7 = vpop.eup %7545 }
 0x800   : > { %v2346_v18 = vmul.f32 %v7546_v7, %v9694_v58  ;;  %v2936_v19 = vpop.xlane.xlu0 %2935  ;;  %6878 = vmatmul.msk.bf16.vlgmr.msra.gmra.mxu1 %vm2176_vm2, %v3064_v10  ;;  %v7548_v30 = vpop.eup %7547 }
 0x801   : > { %7549 = vrcp.f32 %v2936_v19  ;;  %3404 = vmatpush.bf16.xpose.msra.mxu1 %v3395_v6  ;;  %3827 = vrot.lane.b32.xlu1 %v9238_v39, %s8337_s11  ;;  %v2967_v17 = vmul.f32 %v7548_v30, %v9697_v32  ;;  %v3443_v32 = vsel %vm1945_vm13, %v9598_v46, 0 }
 0x802   : > { %v2362_v57 = vpack.c.bf16 %v2346_v18, %v2346_v18  ;;  %6919 = vmatmul.msk.bf16.vlgmr.msra.gmra.mxu0 %vm1945_vm13, %v9610_v20 }
 0x803   : > { %v2983_v58 = vpack.c.bf16 %v2967_v17, %v2967_v17 }
 0x804   : > { %v2484_v4 = vunpack.c.l.b16 %v2362_v57 }
 0x805   : > { %v3162_v20 = vunpack.c.l.b16 %v2983_v58 }
 0x806   : > { %v2485_v55 = vpack.c.b16 %v2484_v4, %v2483_v54 }
 0x807   : > { %v7550_v60 = vpop.eup %7549 }
 0x808   : > { %v2968_v52 = vmul.f32 %v7550_v60, %v9703_v27  ;;  %6863 = vmatmul.msk.bf16.vlgmr.msra.gmra.mxu2 %vm2176_vm2, %v2485_v55  ;;  %v2825_v1 = vpop.xlane.xlu0 %2824 }
 0x809   : > { %v2851_v53 = vsub.f32 %v9663_v47, %v2825_v1  ;;  %3902 = vrot.lane.b32.xlu1 %v9291_v13, %s8337_s11  ;;  %v7149_v1 = vld [vmem:[%s8735_s13] sm:$0xff] }
 0x80a   : > { %v2984_v21 = vpack.c.bf16 %v2968_v52, %v2968_v52  ;;  %v7150_v52 = vld [vmem:[%s8735_s13 + $0x8] sm:$0xff] }
 0x80b   : > { %v2877_v51 = vmul.f32 1.442695, %v2851_v53 }
 0x80c   : > { %v3163_v49 = vunpack.c.l.b16 %v2984_v21 }
 0x80d   : > { %7551 = vpow2.f32 %v2877_v51 }
 0x80e   : > { %v3164_v12 = vpack.c.b16 %v3163_v49, %v3162_v20 }
 0x810   : > { %6882 = vmatmul.msk.bf16.vlgmr.msrb.gmra.mxu1 %vm2176_vm2, %v3164_v12  ;;  %v2897_v29 = vpop.xlane.xlu0 %2896 }
 0x811   : > { %3452 = vmatpush.bf16.xpose.msrb.mxu1 %v3443_v32  ;;  %4056 = vrot.lane.b32.xlu1 %v9199_v62, %s8338_s3  ;;  %7553 = vrcp.f32 %v2897_v29 }
 0x812   : > { %6921 = vmatmul.msk.bf16.vlgmr.msrb.gmra.mxu0 %vm1945_vm13, %v9677_v25  ;;  %v3539_v25 = vsel %vm1945_vm13, %v9725_v63, 0 }
 0x813   : > { %v9788_v47 = vpop.eup %7551 }
 0x814   : > { %v2919_v27 = vsel %vm2176_vm2, %v9788_v47, 0.0 }
 0x815   : > { %2920 = vadd.xlane.f32.xlu2 %v2919_v27 }
 0x817   : > { %v7554_v42 = vpop.eup %7553 }
 0x818   : > { %v2955_v44 = vmul.f32 %v7554_v42, %v9710_v2 }
 0x820   : > { %6916 = vmatmul.msk.bf16.vlgmr.msra.gmra.mxu1 %vm1945_vm13, %v9582_v15 }
 0x821   : > { %3500 = vmatpush.bf16.xpose.msra.mxu1 %v3491_v36 }
 0x823   : > { %v3016_v46 = vpop.permute.xlu0 %3015 }
 0x824   : > { %3028 = vmatpush.bf16.msra.mxu3 %v3016_v46 }
 0x82b   : > { %v3116_v62 = vpop.permute.xlu0 %3115 }
 0x82c   : > { %3128 = vmatpush.bf16.msrb.mxu3 %v3116_v62 }
 0x82d   : > { %2697 = vrot.lane.b32.xlu2 %v9276_v50, %s8336_s2 }
 0x830   : > { %6918 = vmatmul.msk.bf16.vlgmr.msrb.gmra.mxu1 %vm1945_vm13, %v9620_v3  ;;  %v2971_v3 = vpack.c.bf16 %v2955_v44, %v2955_v44 }
 0x831   : > { %3548 = vmatpush.bf16.xpose.msrb.mxu1 %v3539_v25 }
 0x832   : > { %v3012_v10 = vunpack.c.l.b16 %v2971_v3 }
 0x833   : > { %v2602_v18 = vpop.permute.xlu0 %2601 }
 0x835   : > { %3777 = vrot.lane.b32.xlu2 %v9328_v38, %s8337_s11 }
 0x839   : > { %v2900_v15 = vpop.xlane.xlu1 %2899 }
 0x83a   : > { %7555 = vrcp.f32 %v2900_v15 }
 0x83d   : > { %3852 = vrot.lane.b32.xlu2 %v11718_v37, %s8337_s11 }
 0x83e   : > { %v9807_v28 = vpop.f32.mrf.mxu0 }
 0x840   : > { %v7556_v33 = vpop.eup %7555  ;;  %6920 = vmatmul.msk.bf16.vlgmr.msra.gmra.mxu1 %vm1945_vm13, %v9680_v9  ;;  %v3532_v9 = vpop.permute.xlu2 %3531 }
 0x841   : > { %v2956_v63 = vmul.f32 %v7556_v33, %v9732_v11 }
 0x843   : > { %v2972_v40 = vpack.c.bf16 %v2956_v63, %v2956_v63 }
 0x845   : > { %v3013_v7 = vunpack.c.l.b16 %v2972_v40  ;;  %3877 = vrot.lane.b32.xlu2 %v9512_v14, %s8337_s11 }
 0x846   : > { %v9814_v6 = vpop.f32.mrf.mxu0 }
 0x847   : > { %v3014_v2 = vpack.c.b16 %v3013_v7, %v3012_v10 }
 0x849   : > { %6876 = vmatmul.msk.bf16.vlgmr.msra.gmra.mxu3 %vm2176_vm2, %v3014_v2 }
 0x84a   : > { %3320 = vmatpush.bf16.msra.mxu3 %v7150_v52 }
 0x84b   : > { %v2924_v19 = vpop.xlane.xlu1 %2923 }
 0x84c   : > { %7557 = vrcp.f32 %v2924_v19 }
 0x84d   : > { %4082 = vrot.lane.b32.xlu2 %v9182_v5, %s8338_s3  ;;  %v2700_v5 = vpop.permute.xlu0 %2699 }
 0x84e   : > { %v9819_v22 = vpop.f32.mrf.mxu0  ;;  %v2705_v17 = vsel %vm1945_vm13, %v2700_v5, 0  ;;  %3321 = vmatpush.bf16.msra.mxu3 %v7149_v1 }
 0x850   : > { %6922 = vmatmul.msk.bf16.vlgmr.msrb.gmra.mxu1 %vm1945_vm13, %v3532_v9  ;;  %v2593_v9 = vpack.c.bf16 %v9576_v0, %v9570_v56  ;;  %v2594_v0 = vpack.c.bf16 %v9592_v61, %v9584_v23 }
 0x852   : > { %v7558_v12 = vpop.eup %7557 }
 0x853   : > { %v2964_v32 = vmul.f32 %v7558_v12, %v9746_v45 }
 0x855   : > { %4080 = vrot.lane.b32.xlu2 %v9228_v16, %s8338_s3  ;;  %v3803_v58 = vpop.permute.xlu0 %3802  ;;  %v2980_v36 = vpack.c.bf16 %v2964_v32, %v2964_v32 }
 0x856   : > { %v9824_v11 = vpop.f32.mrf.mxu0 }
 0x857   : > { %v3113_v15 = vunpack.c.l.b16 %v2980_v36 }
 0x85d   : > { %v4059_v44 = vpop.permute.xlu0 %4058 }
 0x85e   : > { %v9826_v30 = vpop.f32.mrf.mxu0  ;;  %v4064_v63 = vsel %vm1945_vm13, %v4059_v44, 0 }
 0x85f   : > { %v3555_v57 = vsel %vm2176_vm2, %v9826_v30, -inf }
 0x860   : > { %3556 = vmax.xlane.f32.xlu0 %v3555_v57 }
 0x863   : > { %v2604_v54 = vpop.permute.xlu1 %2603 }
 0x864   : > { %v2609_v4 = vsel %vm1945_vm13, %v2604_v54, 0 }
 0x865   : > { %2618 = vmatpush.bf16.xpose.msrb.mxu2 %v2609_v4 }
 0x866   : > { %v9832_v16 = vpop.f32.mrf.mxu0 }
 0x867   : > { %v3558_v55 = vsel %vm2176_vm2, %v9832_v16, -inf }
 0x868   : > { %3559 = vmax.xlane.f32.xlu1 %v3558_v55 }
 0x86b   : > { %v3753_v60 = vpop.permute.xlu1 %3752 }
 0x86c   : > { %6867 = vmatmul.msk.bf16.vlgmr.msrb.gmra.mxu2 %vm1945_vm13, %v2602_v18  ;;  %3765 = vmatpush.bf16.msra.mxu0 %v3753_v60 }
 0x86d   : > { %2714 = vmatpush.bf16.xpose.msra.mxu2 %v2705_v17 }
 0x86e   : > { %v9839_v53 = vpop.f32.mrf.mxu0 }
 0x86f   : > { %v3567_v51 = vsel %vm2176_vm2, %v9839_v53, -inf }
 0x870   : > { %3815 = vmatpush.bf16.msrb.mxu0 %v3803_v58  ;;  %v2448_v58 = vpop.f32.mrf.mxu2 }
 0x873   : > { %v3828_v40 = vpop.permute.xlu1 %3827 }
 0x878   : > { %v2450_v61 = vpop.f32.mrf.mxu2 }
 0x87b   : > { %v9901_v32 = vpop.permute.xlu1 %3902 }
 0x87d   : > { %v9841_v21 = vpop.f32.mrf.mxu1 }
 0x87e   : > { %3568 = vmax.xlane.f32.xlu2 %v3567_v51 }
 0x885   : > { %v9845_v20 = vpop.f32.mrf.mxu1 }
 0x888   : > { %v2921_v49 = vpop.xlane.xlu2 %2920 }
 0x889   : > { %7559 = vrcp.f32 %v2921_v49  ;;  %v2595_v49 = vpack.c.bf16 %v2450_v61, %v2448_v58 }
 0x88d   : > { %v9848_v27 = vpop.f32.mrf.mxu1 }
 0x88f   : > { %v7560_v29 = vpop.eup %7559 }
 0x890   : > { %v2963_v46 = vmul.f32 %v7560_v29, %v9788_v47  ;;  %v2698_v62 = vpop.permute.xlu2 %2697  ;;  %v9856_v47 = vpop.f32.mrf.mxu0 }
 0x891   : > { %6871 = vmatmul.msk.bf16.vlgmr.msra.gmra.mxu2 %vm1945_vm13, %v2698_v62  ;;  %v3570_v18 = vsel %vm2176_vm2, %v9856_v47, -inf }
 0x892   : > { %v2979_v25 = vpack.c.bf16 %v2963_v46, %v2963_v46 }
 0x894   : > { %v3112_v42 = vunpack.c.l.b16 %v2979_v25 }
 0x895   : > { %v9852_v33 = vpop.f32.mrf.mxu1 }
 0x896   : > { %v3114_v3 = vpack.c.b16 %v3113_v15, %v3112_v42  ;;  %v9913_v15 = vpop.permute.xlu1 %4056 }
 0x898   : > { %6880 = vmatmul.msk.bf16.vlgmr.msrb.gmra.mxu3 %vm2176_vm2, %v3114_v3  ;;  %v3778_v45 = vpop.permute.xlu2 %3777  ;;  %v9868_v19 = vpop.f32.mrf.mxu0 }
 0x899   : > { %4073 = vmatpush.bf16.xpose.msrb.mxu3 %v4064_v63  ;;  %3790 = vmatpush.bf16.msra.mxu1 %v3778_v45  ;;  %v3579_v17 = vsel %vm2176_vm2, %v9868_v19, -inf  ;;  %v2596_v45 = vpack.c.bf16 %v9580_v8, %v9572_v31 }
 0x89d   : > { %3840 = vmatpush.bf16.msrb.mxu1 %v3828_v40  ;;  %v9858_v10 = vpop.f32.mrf.mxu1 }
 0x89e   : > { %v3561_v7 = vsel %vm2176_vm2, %v9858_v10, -inf }
 0x89f   : > { %3562 = vmax.xlane.f32.xlu2 %v3561_v7 }
 0x8a0   : > { %v9877_v4 = vpop.f32.mrf.mxu0  ;;  %v9905_v36 = vpop.permute.xlu2 %3852 }
 0x8a1   : > { %v3582_v55 = vsel %vm2176_vm2, %v9877_v4, -inf }
 0x8a5   : > { %v9862_v2 = vpop.f32.mrf.mxu1 }
 0x8a6   : > { %v3564_v5 = vsel %vm2176_vm2, %v9862_v2, -inf }
 0x8a7   : > { %3571 = vmax.xlane.f32.xlu2 %v3570_v18 }
 0x8a8   : > { %6907 = vmatmul.msk.bf16.vlgmr.msra.gmra.mxu3 %vm1945_vm13, %v2593_v9  ;;  %v9890_v52 = vpop.f32.mrf.mxu0  ;;  %v9916_v3 = vpop.permute.xlu2 %3877 }
 0x8a9   : > { %v3591_v23 = vsel %vm2176_vm2, %v9890_v52, -inf }
 0x8ad   : > { %v9871_v57 = vpop.f32.mrf.mxu1 }
 0x8ae   : > { %v3573_v54 = vsel %vm2176_vm2, %v9871_v57, -inf }
 0x8af   : > { %3565 = vmax.xlane.f32.xlu2 %v3564_v5  ;;  %3574 = vmax.xlane.f32.xlu1 %v3573_v54 }
 0x8b0   : > { %v9903_v29 = vpop.f32.mrf.mxu0  ;;  %v9930_v31 = vpop.permute.xlu2 %4082 }
 0x8b1   : > { %v3594_v62 = vsel %vm2176_vm2, %v9903_v29, -inf }
 0x8b5   : > { %v9879_v56 = vpop.f32.mrf.mxu1 }
 0x8b6   : > { %v3576_v60 = vsel %vm2176_vm2, %v9879_v56, -inf }
 0x8b7   : > { %3580 = vmax.xlane.f32.xlu2 %v3579_v17  ;;  %3583 = vmax.xlane.f32.xlu1 %v3582_v55 }
 0x8b8   : > { %3577 = vmax.xlane.f32.xlu0 %v3576_v60  ;;  %6908 = vmatmul.msk.bf16.gmra.mxu3 %vm1945_vm13, %v2594_v0 }
 0x8bd   : > { %v9892_v1 = vpop.f32.mrf.mxu1 }
 0x8be   : > { %v3585_v12 = vsel %vm2176_vm2, %v9892_v1, -inf }
 0x8bf   : > { %3592 = vmax.xlane.f32.xlu1 %v3591_v23 }
 0x8c5   : > { %v9896_v51 = vpop.f32.mrf.mxu1 }
 0x8c6   : > { %v3588_v7 = vsel %vm2176_vm2, %v9896_v51, -inf }
 0x8c7   : > { %3586 = vmax.xlane.f32.xlu1 %v3585_v12  ;;  %v2598_v12 = vpack.c.bf16 %v9614_v34, %v9606_v24  ;;  %v11719_v24 = vld [vmem:[#allocation58_spill] sm:$0xff] }
 0x8c8   : > { %6909 = vmatmul.msk.bf16.gmra.mxu3 %vm1945_vm13, %v2595_v49  ;;  %v2600_v34 = vpack.c.bf16 %v11719_v24, %v9588_v35 }
 0x8cd   : > { %v9907_v46 = vpop.f32.mrf.mxu1 }
 0x8ce   : > { %v3597_v25 = vsel %vm2176_vm2, %v9907_v46, -inf }
 0x8cf   : > { %3595 = vmax.xlane.f32.xlu1 %v3594_v62  ;;  %3598 = vmax.xlane.f32.xlu2 %v3597_v25 }
 0x8d3   : > { %v3557_v42 = vpop.xlane.xlu0 %3556 }
 0x8d4   : > { %v3603_v44 = vsub.f32 %v9826_v30, %v3557_v42  ;;  %v2504_v30 = vpop.f32.mrf.mxu2  ;;  %v2599_v42 = vpack.c.bf16 %v9544_v26, %v9537_v48 }
 0x8d5   : > { %v9918_v63 = vpop.f32.mrf.mxu1 }
 0x8d6   : > { %v3619_v40 = vmul.f32 1.442695, %v3603_v44  ;;  %v3600_v9 = vsel %vm2176_vm2, %v9918_v63, -inf }
 0x8d7   : > { %3589 = vmax.xlane.f32.xlu1 %v3588_v7  ;;  %3601 = vmax.xlane.f32.xlu0 %v3600_v9 }
 0x8d8   : > { %7561 = vpow2.f32 %v3619_v40  ;;  %6910 = vmatmul.msk.bf16.gmra.mxu3 %vm1945_vm13, %v2596_v45 }
 0x8db   : > { %v3560_v18 = vpop.xlane.xlu1 %3559 }
 0x8dc   : > { %v3604_v5 = vsub.f32 %v9832_v16, %v3560_v18  ;;  %v2506_v17 = vpop.f32.mrf.mxu2  ;;  %v9939_v16 = vpop.permute.xlu2 %4080 }
 0x8dd   : > { %v2597_v60 = vpack.c.bf16 %v2506_v17, %v2504_v30 }
 0x8de   : > { %v9928_v54 = vpop.eup %7561  ;;  %v3621_v0 = vmul.f32 1.442695, %v3604_v5 }
 0x8df   : > { %v3651_v8 = vsel %vm2176_vm2, %v9928_v54, 0.0 }
 0x8e0   : > { %7563 = vpow2.f32 %v3621_v0  ;;  %3652 = vadd.xlane.f32.xlu2 %v3651_v8 }
 0x8e6   : > { %v9934_v55 = vpop.eup %7563 }
 0x8e7   : > { %v3654_v58 = vsel %vm2176_vm2, %v9934_v55, 0.0 }
 0x8e8   : > { %3655 = vadd.xlane.f32.xlu1 %v3654_v58  ;;  %6911 = vmatmul.msk.bf16.gmra.mxu3 %vm1945_vm13, %v2597_v60 }
 0x8f1   : > { %v3569_v23 = vpop.xlane.xlu2 %3568 }
 0x8f2   : > { %v3607_v61 = vsub.f32 %v9839_v53, %v3569_v23 }
 0x8f4   : > { %v3627_v49 = vmul.f32 1.442695, %v3607_v61 }
 0x8f6   : > { %7565 = vpow2.f32 %v3627_v49 }
 0x8f8   : > { %6912 = vmatmul.msk.bf16.gmra.mxu3 %vm1945_vm13, %v2598_v12 }
 0x8fc   : > { %v9945_v62 = vpop.eup %7565 }
 0x8fd   : > { %v3663_v25 = vsel %vm2176_vm2, %v9945_v62, 0.0 }
 0x8fe   : > { %3664 = vadd.xlane.f32.xlu0 %v3663_v25 }
 0x908   : > { %6913 = vmatmul.msk.bf16.gmra.mxu3 %vm1945_vm13, %v2599_v42 }
 0x912   : > { %v3563_v44 = vpop.xlane.xlu2 %3562 }
 0x913   : > { %v3605_v53 = vsub.f32 %v9858_v10, %v3563_v44 }
 0x915   : > { %v3623_v45 = vmul.f32 1.442695, %v3605_v53 }
 0x917   : > { %7567 = vpow2.f32 %v3623_v45 }
 0x918   : > { %6914 = vmatmul.msk.bf16.gmra.mxu3 %vm1945_vm13, %v2600_v34 }
 0x91a   : > { %v3572_v40 = vpop.xlane.xlu2 %3571 }
 0x91b   : > { %v3608_v7 = vsub.f32 %v9856_v47, %v3572_v40 }
 0x91d   : > { %v9957_v9 = vpop.eup %7567  ;;  %v3629_v30 = vmul.f32 1.442695, %v3608_v7 }
 0x91e   : > { %v3657_v48 = vsel %vm2176_vm2, %v9957_v9, 0.0 }
 0x91f   : > { %7569 = vpow2.f32 %v3629_v30  ;;  %3658 = vadd.xlane.f32.xlu2 %v3657_v48 }
 0x922   : > { %v3575_v26 = vpop.xlane.xlu1 %3574  ;;  %v3566_v10 = vpop.xlane.xlu2 %3565 }
 0x923   : > { %v3609_v18 = vsub.f32 %v9871_v57, %v3575_v26  ;;  %v3606_v35 = vsub.f32 %v9862_v2, %v3566_v10 }
 0x925   : > { %v9963_v5 = vpop.eup %7569  ;;  %v3631_v0 = vmul.f32 1.442695, %v3609_v18  ;;  %v3625_v8 = vmul.f32 1.442695, %v3606_v35 }
 0x926   : > { %v3666_v47 = vsel %vm2176_vm2, %v9963_v5, 0.0 }
 0x927   : > { %7571 = vpow2.f32 %v3631_v0  ;;  %3667 = vadd.xlane.f32.xlu0 %v3666_v47  ;;  %v9999_v0 = vpop.f32.mrf.mxu2 }
 0x928   : > { %7573 = vpow2.f32 %v3625_v8  ;;  %6947 = vmatmul.msk.bf16.vlgmr.msrb.gmra.mxu3 %vm1945_vm13, %v9913_v15 }
 0x92a   : > { %v3584_v17 = vpop.xlane.xlu1 %3583  ;;  %v3581_v60 = vpop.xlane.xlu2 %3580 }
 0x92b   : > { %v3578_v58 = vpop.xlane.xlu0 %3577  ;;  %v3611_v57 = vsub.f32 %v9868_v19, %v3581_v60  ;;  %v3612_v12 = vsub.f32 %v9877_v4, %v3584_v17  ;;  %v2793_v17 = vsel %vm2176_vm2, %v9999_v0, -inf }
 0x92c   : > { %v3610_v2 = vsub.f32 %v9879_v56, %v3578_v58 }
 0x92d   : > { %v9971_v23 = vpop.eup %7571  ;;  %v3635_v61 = vmul.f32 1.442695, %v3611_v57  ;;  %v3637_v19 = vmul.f32 1.442695, %v3612_v12 }
 0x92e   : > { %v9973_v49 = vpop.eup %7573  ;;  %v3633_v25 = vmul.f32 1.442695, %v3610_v2  ;;  %v3669_v42 = vsel %vm2176_vm2, %v9971_v23, 0.0 }
 0x92f   : > { %3670 = vadd.xlane.f32.xlu0 %v3669_v42  ;;  %v3660_v15 = vsel %vm2176_vm2, %v9973_v49, 0.0 }
 0x930   : > { %7575 = vpow2.f32 %v3633_v25  ;;  %3661 = vadd.xlane.f32.xlu1 %v3660_v15  ;;  %v11720_v25 = vld [vmem:[#allocation46_spill] sm:$0xff] }
 0x931   : > { %7577 = vpow2.f32 %v3635_v61  ;;  %v10011_v61 = vpop.f32.mrf.mxu3 }
 0x932   : > { %v3593_v56 = vpop.xlane.xlu1 %3592  ;;  %7579 = vpow2.f32 %v3637_v19 }
 0x933   : > { %v3615_v44 = vsub.f32 %v9890_v52, %v3593_v56  ;;  %v11721_v56 = vld [vmem:[#allocation47_spill] sm:$0xff] }
 0x935   : > { %v3643_v53 = vmul.f32 1.442695, %v3615_v44 }
 0x936   : > { %v9981_v45 = vpop.eup %7575 }
 0x937   : > { %v9983_v4 = vpop.eup %7577  ;;  %7581 = vpow2.f32 %v3643_v53  ;;  %v3672_v24 = vsel %vm2176_vm2, %v9981_v45, 0.0 }
 0x938   : > { %3673 = vadd.xlane.f32.xlu1 %v3672_v24  ;;  %v3675_v34 = vsel %vm2176_vm2, %v9983_v4, 0.0  ;;  %v9990_v30 = vpop.eup %7579 }
 0x939   : > { %3676 = vadd.xlane.f32.xlu2 %v3675_v34  ;;  %v3678_v10 = vsel %vm2176_vm2, %v9990_v30, 0.0  ;;  %v10016_v19 = vpop.f32.mrf.mxu3  ;;  %v11722_v34 = vld [vmem:[#allocation49_spill] sm:$0xff] }
 0x93a   : > { %v3587_v40 = vpop.xlane.xlu1 %3586 }
 0x93b   : > { %v3613_v7 = vsub.f32 %v9892_v1, %v3587_v40 }
 0x93d   : > { %v9992_v52 = vpop.eup %7581  ;;  %v3639_v48 = vmul.f32 1.442695, %v3613_v7 }
 0x93e   : > { %v3687_v26 = vsel %vm2176_vm2, %v9992_v52, 0.0 }
 0x93f   : > { %7583 = vpow2.f32 %v3639_v48 }
 0x940   : > { %3688 = vadd.xlane.f32.xlu1 %v3687_v26  ;;  %v11723_v26 = vld [vmem:[#allocation56_spill] sm:$0xff] }
 0x941   : > { %3679 = vadd.xlane.f32.xlu2 %v3678_v10  ;;  %v10025_v10 = vpop.f32.mrf.mxu3 }
 0x942   : > { %v3596_v18 = vpop.xlane.xlu1 %3595  ;;  %v3599_v60 = vpop.xlane.xlu2 %3598 }
 0x943   : > { %v3616_v35 = vsub.f32 %v9903_v29, %v3596_v18  ;;  %v11724_v18 = vld [vmem:[#allocation51_spill] sm:$0xff] }
 0x945   : > { %v10001_v1 = vpop.eup %7583  ;;  %v3645_v8 = vmul.f32 1.442695, %v3616_v35 }
 0x946   : > { %v3681_v47 = vsel %vm2176_vm2, %v10001_v1, 0.0 }
 0x947   : > { %7585 = vpow2.f32 %v3645_v8  ;;  %3682 = vadd.xlane.f32.xlu0 %v3681_v47 }
 0x948   : > { %2794 = vmax.xlane.f32.xlu1 %v2793_v17 }
 0x94a   : > { %v3590_v57 = vpop.xlane.xlu1 %3589  ;;  %v3602_v8 = vpop.xlane.xlu0 %3601 }
 0x94b   : > { %v3618_v47 = vsub.f32 %v9918_v63, %v3602_v8 }
 0x94d   : > { %v10007_v58 = vpop.eup %7585  ;;  %v3649_v17 = vmul.f32 1.442695, %v3618_v47 }
 0x94e   : > { %v3690_v29 = vsel %vm2176_vm2, %v10007_v58, 0.0 }
 0x94f   : > { %3691 = vadd.xlane.f32.xlu2 %v3690_v29 }
 0x953   : > { %v3653_v2 = vpop.xlane.xlu2 %3652 }
 0x954   : > { %7587 = vrcp.f32 %v3653_v2  ;;  %v10043_v2 = vpop.f32.mrf.mxu2 }
 0x95a   : > { %v7588_v42 = vpop.eup %7587 }
 0x95b   : > { %v3656_v12 = vpop.xlane.xlu1 %3655  ;;  %4106 = vrot.lane.b32.xlu0 %v11720_v25, %s8338_s3  ;;  %v3715_v15 = vmul.f32 %v7588_v42, %v9928_v54  ;;  %v2796_v25 = vsel %vm2176_vm2, %v10043_v2, -inf  ;;  %v3617_v42 = vsub.f32 %v9907_v46, %v3599_v60 }
 0x95c   : > { %7589 = vrcp.f32 %v3656_v12 }
 0x95d   : > { %v3731_v53 = vpack.c.bf16 %v3715_v15, %v3715_v15  ;;  %7591 = vpow2.f32 %v3649_v17 }
 0x95f   : > { %v3749_v7 = vunpack.c.l.b16 %v3731_v53 }
 0x961   : > { %4104 = vrot.lane.b32.xlu1 %v11721_v56, %s8338_s3 }
 0x962   : > { %v7590_v44 = vpop.eup %7589 }
 0x963   : > { %v3716_v24 = vmul.f32 %v7590_v44, %v9934_v55  ;;  %4130 = vrot.lane.b32.xlu0 %v11722_v34, %s8338_s3  ;;  %v10033_v55 = vpop.f32.mrf.mxu3  ;;  %v10045_v12 = vpop.eup %7591 }
 0x964   : > { %v3696_v15 = vsel %vm2176_vm2, %v10045_v12, 0.0 }
 0x965   : > { %v3732_v40 = vpack.c.bf16 %v3716_v24, %v3716_v24 }
 0x967   : > { %v3750_v48 = vunpack.c.l.b16 %v3732_v40  ;;  %3927 = vrot.lane.b32.xlu2 %v11723_v26, %s8337_s11 }
 0x969   : > { %v3751_v54 = vpack.c.b16 %v3750_v48, %v3749_v7  ;;  %4154 = vrot.lane.b32.xlu1 %v9245_v41, %s8338_s3  ;;  %v3614_v41 = vsub.f32 %v9896_v51, %v3590_v57  ;;  %v3647_v51 = vmul.f32 1.442695, %v3617_v42  ;;  %v11727_v42 = vld [vmem:[#allocation54_spill] sm:$0xff] }
 0x96b   : > { %4128 = vrot.lane.b32.xlu0 %v11724_v18, %s8338_s3  ;;  %6923 = vmatmul.msk.bf16.vlgmr.msra.gmra.mxu0 %vm2176_vm2, %v3751_v54  ;;  %v10037_v35 = vpop.f32.mrf.mxu3 }
 0x96c   : > { %3865 = vmatpush.bf16.msra.mxu0 %v9905_v36  ;;  %v3641_v36 = vmul.f32 1.442695, %v3614_v41 }
 0x96e   : > { %7593 = vpow2.f32 %v3641_v36 }
 0x971   : > { %v3665_v63 = vpop.xlane.xlu0 %3664 }
 0x972   : > { %7595 = vrcp.f32 %v3665_v63 }
 0x973   : > { %4152 = vrot.lane.b32.xlu0 %v9276_v50, %s8338_s3  ;;  %v10040_v29 = vpop.f32.mrf.mxu3  ;;  %7597 = vpow2.f32 %v3647_v51 }
 0x974   : > { %v10054_v57 = vpop.eup %7593 }
 0x975   : > { %v3684_v46 = vsel %vm2176_vm2, %v10054_v57, 0.0 }
 0x978   : > { %v7596_v44 = vpop.eup %7595 }
 0x979   : > { %v3719_v60 = vmul.f32 %v7596_v44, %v9945_v62  ;;  %v10061_v34 = vpop.eup %7597 }
 0x97a   : > { %v3693_v47 = vsel %vm2176_vm2, %v10061_v34, 0.0 }
 0x97b   : > { %v10049_v50 = vpop.f32.mrf.mxu3  ;;  %v3735_v7 = vpack.c.bf16 %v3719_v60, %v3719_v60 }
 0x97d   : > { %v3799_v41 = vunpack.c.l.b16 %v3735_v7  ;;  %v11730_v7 = vld [vmem:[#allocation48_spill] sm:$0xff] }
 0x983   : > { %v10056_v53 = vpop.f32.mrf.mxu3 }
 0x984   : > { %11725 = vst [vmem:[#allocation50_spill] sm:$0xff] %v10056_v53 }
 0x98b   : > { %v10066_v17 = vpop.f32.mrf.mxu3 }
 0x98c   : > { %11726 = vst [vmem:[#allocation58_spill] sm:$0xff] %v10066_v17 }
 0x990   : > { %2797 = vmax.xlane.f32.xlu2 %v2796_v25 }
 0x992   : > { %v3659_v24 = vpop.xlane.xlu2 %3658 }
 0x993   : > { %3697 = vadd.xlane.f32.xlu1 %v3696_v15 }
 0x99a   : > { %v3668_v56 = vpop.xlane.xlu0 %3667 }
 0x99b   : > { %7599 = vrcp.f32 %v3668_v56 }
 0x99c   : > { %7601 = vrcp.f32 %v3659_v24  ;;  %v11728_v24 = vld [vmem:[#allocation52_spill] sm:$0xff] }
 0x99d   : > { %3685 = vadd.xlane.f32.xlu0 %v3684_v46  ;;  %v10076_v46 = vpop.f32.mrf.mxu3 }
 0x99e   : > { %11729 = vst [vmem:[#allocation46_spill] sm:$0xff] %v10076_v46 }
 0x9a1   : > { %v7600_v40 = vpop.eup %7599 }
 0x9a2   : > { %v3720_v48 = vmul.f32 %v7600_v40, %v9963_v5  ;;  %v7602_v18 = vpop.eup %7601  ;;  %v3671_v15 = vpop.xlane.xlu0 %3670 }
 0x9a3   : > { %v3662_v54 = vpop.xlane.xlu1 %3661  ;;  %v3717_v62 = vmul.f32 %v7602_v18, %v9957_v9 }
 0x9a4   : > { %v3736_v8 = vpack.c.bf16 %v3720_v48, %v3720_v48  ;;  %7603 = vrcp.f32 %v3662_v54 }
 0x9a5   : > { %3694 = vadd.xlane.f32.xlu0 %v3693_v47  ;;  %v3733_v5 = vpack.c.bf16 %v3717_v62, %v3717_v62  ;;  %v10085_v62 = vpop.f32.mrf.mxu3 }
 0x9a6   : > { %v3800_v36 = vunpack.c.l.b16 %v3736_v8  ;;  %11731 = vst [vmem:[#allocation47_spill] sm:$0xff] %v10085_v62 }
 0x9a7   : > { %v3774_v60 = vunpack.c.l.b16 %v3733_v5 }
 0x9a8   : > { %v3801_v25 = vpack.c.b16 %v3800_v36, %v3799_v41  ;;  %4176 = vrot.lane.b32.xlu2 %v11727_v42, %s8338_s3  ;;  %v11732_v42 = vld [vmem:[#allocation53_spill] sm:$0xff] }
 0x9aa   : > { %v7604_v63 = vpop.eup %7603  ;;  %6925 = vmatmul.msk.bf16.vlgmr.msrb.gmra.mxu0 %vm2176_vm2, %v3801_v25 }
 0x9ab   : > { %v3718_v51 = vmul.f32 %v7604_v63, %v9973_v49  ;;  %v3674_v56 = vpop.xlane.xlu1 %3673  ;;  %3915 = vmatpush.bf16.msrb.mxu0 %v9901_v32 }
 0x9ac   : > { %7605 = vrcp.f32 %v3674_v56  ;;  %v3677_v44 = vpop.xlane.xlu2 %3676  ;;  %4178 = vrot.lane.b32.xlu1 %v11728_v24, %s8338_s3 }
 0x9ad   : > { %v3734_v9 = vpack.c.bf16 %v3718_v51, %v3718_v51  ;;  %7607 = vrcp.f32 %v3671_v15 }
 0x9ae   : > { %7609 = vrcp.f32 %v3677_v44 }
 0x9af   : > { %v3775_v40 = vunpack.c.l.b16 %v3734_v9 }
 0x9b0   : > { %4200 = vrot.lane.b32.xlu2 %v11730_v7, %s8338_s3  ;;  %v10090_v7 = vpop.f32.mrf.mxu3 }
 0x9b1   : > { %v3776_v48 = vpack.c.b16 %v3775_v40, %v3774_v60  ;;  %11733 = vst [vmem:[#allocation49_spill] sm:$0xff] %v10090_v7 }
 0x9b2   : > { %v7606_v49 = vpop.eup %7605 }
 0x9b3   : > { %6924 = vmatmul.msk.bf16.vlgmr.msra.gmra.mxu1 %vm2176_vm2, %v3776_v48  ;;  %v7608_v32 = vpop.eup %7607  ;;  %v3722_v8 = vmul.f32 %v7606_v49, %v9981_v45  ;;  %v3689_v41 = vpop.xlane.xlu1 %3688  ;;  %v4088_v48 = vsel %vm1945_vm13, %v9930_v31, 0 }
 0x9b4   : > { %3890 = vmatpush.bf16.msra.mxu1 %v9916_v3  ;;  %v3680_v54 = vpop.xlane.xlu2 %3679  ;;  %v7610_v18 = vpop.eup %7609  ;;  %v3721_v47 = vmul.f32 %v7608_v32, %v9971_v23 }
 0x9b5   : > { %7611 = vrcp.f32 %v3680_v54  ;;  %v3723_v36 = vmul.f32 %v7610_v18, %v9983_v4  ;;  %v3738_v25 = vpack.c.bf16 %v3722_v8, %v3722_v8 }
 0x9b6   : > { %v3737_v5 = vpack.c.bf16 %v3721_v47, %v3721_v47  ;;  %7613 = vrcp.f32 %v3689_v41 }
 0x9b7   : > { %v3739_v15 = vpack.c.bf16 %v3723_v36, %v3723_v36  ;;  %v3825_v51 = vunpack.c.l.b16 %v3738_v25 }
 0x9b8   : > { %v3824_v56 = vunpack.c.l.b16 %v3737_v5  ;;  %v10099_v25 = vpop.f32.mrf.mxu3 }
 0x9b9   : > { %4202 = vrot.lane.b32.xlu0 %v11732_v42, %s8338_s3  ;;  %v3849_v44 = vunpack.c.l.b16 %v3739_v15  ;;  %11734 = vst [vmem:[#allocation56_spill] sm:$0xff] %v10099_v25 }
 0x9ba   : > { %v3826_v24 = vpack.c.b16 %v3825_v51, %v3824_v56  ;;  %v3683_v49 = vpop.xlane.xlu0 %3682 }
 0x9bb   : > { %v7612_v63 = vpop.eup %7611  ;;  %v2795_v9 = vpop.xlane.xlu1 %2794 }
 0x9bc   : > { %v3724_v3 = vmul.f32 %v7612_v63, %v9990_v30  ;;  %v7614_v40 = vpop.eup %7613  ;;  %v2841_v30 = vsub.f32 %v9999_v0, %v2795_v9  ;;  %v10101_v63 = vpop.f32.mrf.mxu2 }
 0x9bd   : > { %v3727_v32 = vmul.f32 %v7614_v40, %v9992_v52  ;;  %v2817_v56 = vsel %vm2176_vm2, %v10101_v63, -inf }
 0x9be   : > { %v3740_v45 = vpack.c.bf16 %v3724_v3, %v3724_v3  ;;  %v2857_v54 = vmul.f32 1.442695, %v2841_v30 }
 0x9bf   : > { %v3743_v8 = vpack.c.bf16 %v3727_v32, %v3727_v32  ;;  %v11739_v32 = vld [vmem:[#allocation55_spill] sm:$0xff] }
 0x9c0   : > { %v3850_v23 = vunpack.c.l.b16 %v3740_v45  ;;  %v10111_v45 = vpop.f32.mrf.mxu3 }
 0x9c1   : > { %v3899_v42 = vunpack.c.l.b16 %v3743_v8  ;;  %11735 = vst [vmem:[#allocation51_spill] sm:$0xff] %v10111_v45 }
 0x9c2   : > { %v3851_v4 = vpack.c.b16 %v3850_v23, %v3849_v44  ;;  %v3692_v60 = vpop.xlane.xlu2 %3691 }
 0x9c3   : > { %6926 = vmatmul.msk.bf16.vlgmr.msrb.gmra.mxu1 %vm2176_vm2, %v3826_v24  ;;  %7615 = vrcp.f32 %v3692_v60 }
 0x9c4   : > { %6927 = vmatmul.msk.bf16.vlgmr.msra.gmra.mxu0 %vm2176_vm2, %v3851_v4  ;;  %7617 = vpow2.f32 %v2857_v54  ;;  %v10115_v44 = vpop.f32.mrf.mxu2 }
 0x9c5   : > { %4097 = vmatpush.bf16.xpose.msra.mxu0 %v4088_v48  ;;  %v2820_v4 = vsel %vm2176_vm2, %v10115_v44, -inf }
 0x9c8   : > { %v10121_v60 = vpop.f32.mrf.mxu3 }
 0x9c9   : > { %v7616_v18 = vpop.eup %7615  ;;  %11736 = vst [vmem:[#allocation54_spill] sm:$0xff] %v10121_v60 }
 0x9ca   : > { %v3728_v47 = vmul.f32 %v7616_v18, %v10007_v58  ;;  %v3928_v41 = vpop.permute.xlu2 %3927  ;;  %v10103_v15 = vpop.eup %7617 }
 0x9cb   : > { %3940 = vmatpush.bf16.msrb.mxu1 %v3928_v41  ;;  %v2889_v58 = vsel %vm2176_vm2, %v10103_v15, 0.0 }
 0x9cc   : > { %v3744_v36 = vpack.c.bf16 %v3728_v47, %v3728_v47 }
 0x9cd   : > { %v4107_v31 = vpop.permute.xlu0 %4106 }
 0x9ce   : > { %v3900_v0 = vunpack.c.l.b16 %v3744_v36 }
 0x9d0   : > { %v3901_v5 = vpack.c.b16 %v3900_v0, %v3899_v42  ;;  %v10125_v40 = vpop.f32.mrf.mxu3 }
 0x9d1   : > { %11737 = vst [vmem:[#allocation52_spill] sm:$0xff] %v10125_v40 }
 0x9d3   : > { %v10105_v52 = vpop.permute.xlu1 %4104 }
 0x9d4   : > { %6929 = vmatmul.msk.bf16.vlgmr.msrb.gmra.mxu0 %vm2176_vm2, %v3901_v5 }
 0x9d5   : > { %v4131_v3 = vpop.permute.xlu0 %4130 }
 0x9d6   : > { %v4136_v51 = vsel %vm1945_vm13, %v4131_v3, 0  ;;  %2890 = vadd.xlane.f32.xlu1 %v2889_v58 }
 0x9d7   : > { %4145 = vmatpush.bf16.xpose.msra.mxu3 %v4136_v51 }
 0x9d8   : > { %v10128_v30 = vpop.f32.mrf.mxu3 }
 0x9d9   : > { %2818 = vmax.xlane.f32.xlu2 %v2817_v56  ;;  %11738 = vst [vmem:[#allocation48_spill] sm:$0xff] %v10128_v30 }
 0x9db   : > { %v4155_v23 = vpop.permute.xlu1 %4154 }
 0x9dc   : > { %v4160_v24 = vsel %vm1945_vm13, %v4155_v23, 0 }
 0x9dd   : > { %4169 = vmatpush.bf16.xpose.msrb.mxu0 %v4160_v24  ;;  %v4129_v9 = vpop.permute.xlu0 %4128 }
 0x9de   : > { %2821 = vmax.xlane.f32.xlu1 %v2820_v4  ;;  %6950 = vmatmul.msk.bf16.vlgmr.msra.gmra.mxu3 %vm1945_vm13, %v4129_v9 }
 0x9e0   : > { %v10132_v54 = vpop.f32.mrf.mxu3 }
 0x9e1   : > { %11740 = vst [vmem:[#allocation53_spill] sm:$0xff] %v10132_v54 }
 0x9e4   : > { %6948 = vmatmul.msk.bf16.vlgmr.msra.gmra.mxu0 %vm1945_vm13, %v9939_v16 }
 0x9e5   : > { %v4153_v48 = vpop.permute.xlu0 %4152 }
 0x9e8   : > { %v10135_v41 = vpop.f32.mrf.mxu3 }
 0x9e9   : > { %11741 = vst [vmem:[#allocation55_spill] sm:$0xff] %v10135_v41 }
 0x9f0   : > { %v10141_v5 = vpop.f32.mrf.mxu3 }
 0x9f1   : > { %11742 = vst [vmem:[#allocation59_spill] sm:$0xff] %v10141_v5 }
 0x9f4   : > { %6951 = vmatmul.msk.bf16.vlgmr.msrb.gmra.mxu0 %vm1945_vm13, %v4153_v48 }
 0x9f7   : > { %4226 = vrot.lane.b32.xlu1 %v11739_v32, %s8338_s3 }
 0x9f8   : > { %v10145_v4 = vpop.f32.mrf.mxu3 }
 0xa03   : > { %v2798_v18 = vpop.xlane.xlu2 %2797 }
 0xa04   : > { %v2842_v8 = vsub.f32 %v10043_v2, %v2798_v18  ;;  %v4112_v18 = vsel %vm1945_vm13, %v4107_v31, 0 }
 0xa06   : > { %v2859_v47 = vmul.f32 1.442695, %v2842_v8  ;;  %v3698_v51 = vpop.xlane.xlu1 %3697 }
 0xa08   : > { %7619 = vpow2.f32 %v2859_v47 }
 0xa09   : > { %7621 = vrcp.f32 %v3683_v49 }
 0xa0e   : > { %v10137_v16 = vpop.eup %7619 }
 0xa0f   : > { %v2892_v36 = vsel %vm2176_vm2, %v10137_v16, 0.0  ;;  %v7622_v0 = vpop.eup %7621 }
 0xa10   : > { %v3686_v42 = vpop.xlane.xlu0 %3685  ;;  %2893 = vadd.xlane.f32.xlu0 %v2892_v36  ;;  %v3725_v3 = vmul.f32 %v7622_v0, %v10001_v1  ;;  %v4248_v1 = vsel %vm2176_vm2, %v10145_v4, -inf  ;;  %v4177_v0 = vpop.permute.xlu2 %4176 }
 0xa11   : > { %7623 = vrcp.f32 %v3686_v42 }
 0xa12   : > { %v3741_v2 = vpack.c.bf16 %v3725_v3, %v3725_v3 }
 0xa14   : > { %v3874_v24 = vunpack.c.l.b16 %v3741_v2 }
 0xa17   : > { %v7624_v58 = vpop.eup %7623 }
 0xa18   : > { %v3726_v56 = vmul.f32 %v7624_v58, %v10054_v57  ;;  %v3695_v23 = vpop.xlane.xlu0 %3694 }
 0xa19   : > { %7625 = vrcp.f32 %v3695_v23 }
 0xa1a   : > { %v3742_v49 = vpack.c.bf16 %v3726_v56, %v3726_v56  ;;  %7627 = vrcp.f32 %v3698_v51  ;;  %v11743_v51 = vld [vmem:[#allocation57_spill] sm:$0xff] }
 0xa1c   : > { %v3875_v9 = vunpack.c.l.b16 %v3742_v49 }
 0xa1e   : > { %v3876_v48 = vpack.c.b16 %v3875_v9, %v3874_v24  ;;  %v4179_v56 = vpop.permute.xlu1 %4178 }
 0xa1f   : > { %v7626_v32 = vpop.eup %7625 }
 0xa20   : > { %6928 = vmatmul.msk.bf16.vlgmr.msra.gmra.mxu1 %vm2176_vm2, %v3876_v48  ;;  %v7628_v8 = vpop.eup %7627  ;;  %v3729_v57 = vmul.f32 %v7626_v32, %v10061_v34  ;;  %v4184_v34 = vsel %vm1945_vm13, %v4179_v56, 0 }
 0xa21   : > { %4249 = vmax.xlane.f32.xlu1 %v4248_v1  ;;  %4121 = vmatpush.bf16.xpose.msra.mxu1 %v4112_v18  ;;  %v3730_v47 = vmul.f32 %v7628_v8, %v10045_v12  ;;  %v4201_v12 = vpop.permute.xlu2 %4200 }
 0xa22   : > { %v3745_v36 = vpack.c.bf16 %v3729_v57, %v3729_v57 }
 0xa23   : > { %v3746_v42 = vpack.c.bf16 %v3730_v47, %v3730_v47  ;;  %v10170_v47 = vpop.f32.mrf.mxu3 }
 0xa24   : > { %2990 = vrot.lane.b32.xlu0 %v9317_v59, %s8336_s2  ;;  %v3924_v3 = vunpack.c.l.b16 %v3745_v36 }
 0xa25   : > { %v3925_v58 = vunpack.c.l.b16 %v3746_v42 }
 0xa27   : > { %v3926_v23 = vpack.c.b16 %v3925_v58, %v3924_v3  ;;  %v10185_v58 = vpop.f32.mrf.mxu0 }
 0xa2b   : > { %v4203_v31 = vpop.permute.xlu0 %4202 }
 0xa2c   : > { %v4208_v2 = vsel %vm1945_vm13, %v4203_v31, 0  ;;  %4224 = vrot.lane.b32.xlu0 %v11743_v51, %s8338_s3 }
 0xa2d   : > { %4217 = vmatpush.bf16.xpose.msrb.mxu3 %v4208_v2 }
 0xa2f   : > { %v10189_v2 = vpop.f32.mrf.mxu0 }
 0xa30   : > { %6930 = vmatmul.msk.bf16.vlgmr.msrb.gmra.mxu1 %vm2176_vm2, %v3926_v23  ;;  %v10191_v51 = vpop.f32.mrf.mxu1 }
 0xa31   : > { %4193 = vmatpush.bf16.xpose.msrb.mxu1 %v4184_v34 }
 0xa34   : > { %6953 = vmatmul.msk.bf16.vlgmr.msrb.gmra.mxu3 %vm1945_vm13, %v4201_v12 }
 0xa37   : > { %v10195_v56 = vpop.f32.mrf.mxu0 }
 0xa38   : > { %v10197_v23 = vpop.f32.mrf.mxu1 }
 0xa3f   : > { %v10199_v12 = vpop.f32.mrf.mxu0 }
 0xa40   : > { %6949 = vmatmul.msk.bf16.vlgmr.msra.gmra.mxu1 %vm1945_vm13, %v10105_v52 }
 0xa49   : > { %v2891_v49 = vpop.xlane.xlu1 %2890 }
 0xa4c   : > { %v2819_v24 = vpop.xlane.xlu2 %2818 }
 0xa4d   : > { %v2849_v9 = vsub.f32 %v10101_v63, %v2819_v24 }
 0xa4f   : > { %v2873_v48 = vmul.f32 1.442695, %v2849_v9 }
 0xa50   : > { %6952 = vmatmul.msk.bf16.vlgmr.msrb.gmra.mxu1 %vm1945_vm13, %v4177_v0 }
 0xa51   : > { %7629 = vpow2.f32 %v2873_v48  ;;  %v2822_v32 = vpop.xlane.xlu1 %2821 }
 0xa52   : > { %v2850_v18 = vsub.f32 %v10115_v44, %v2822_v32  ;;  %v10202_v32 = vpop.f32.mrf.mxu1 }
 0xa54   : > { %v2875_v1 = vmul.f32 1.442695, %v2850_v18 }
 0xa56   : > { %7631 = vpow2.f32 %v2875_v1 }
 0xa57   : > { %v10166_v8 = vpop.eup %7629 }
 0xa58   : > { %v2913_v57 = vsel %vm2176_vm2, %v10166_v8, 0.0 }
 0xa59   : > { %2914 = vadd.xlane.f32.xlu2 %v2913_v57  ;;  %v10205_v57 = vpop.f32.mrf.mxu0 }
 0xa5c   : > { %v10172_v52 = vpop.eup %7631 }
 0xa5d   : > { %v2916_v63 = vsel %vm2176_vm2, %v10172_v52, 0.0 }
 0xa5e   : > { %2917 = vadd.xlane.f32.xlu0 %v2916_v63 }
 0xa61   : > { %v10176_v36 = vpop.f32.mrf.mxu3 }
 0xa62   : > { %v4266_v44 = vsel %vm2176_vm2, %v10176_v36, -inf }
 0xa66   : > { %4267 = vmax.xlane.f32.xlu0 %v4266_v44 }
 0xa69   : > { %v4227_v42 = vpop.permute.xlu1 %4226  ;;  %v10181_v3 = vpop.f32.mrf.mxu3 }
 0xa6a   : > { %v4232_v0 = vsel %vm1945_vm13, %v4227_v42, 0  ;;  %v4269_v31 = vsel %vm2176_vm2, %v10181_v3, -inf }
 0xa6b   : > { %4241 = vmatpush.bf16.xpose.msra.mxu0 %v4232_v0  ;;  %4270 = vmax.xlane.f32.xlu1 %v4269_v31  ;;  %v10207_v0 = vpop.f32.mrf.mxu1  ;;  %v4251_v31 = vsel %vm2176_vm2, %v10170_v47, -inf }
 0xa71   : > { %3090 = vrot.lane.b32.xlu2 %v11718_v37, %s8336_s2 }
 0xa7a   : > { %4470 = vrot.lane.b32.xlu0 %v9328_v38, %s8338_s3 }
 0xa83   : > { %v2894_v34 = vpop.xlane.xlu0 %2893 }
 0xa84   : > { %7633 = vrcp.f32 %v2894_v34 }
 0xa85   : > { %7635 = vrcp.f32 %v2891_v49 }
 0xa8a   : > { %v7634_v24 = vpop.eup %7633 }
 0xa8b   : > { %v7636_v9 = vpop.eup %7635  ;;  %v2954_v48 = vmul.f32 %v7634_v24, %v10137_v16  ;;  %v10212_v16 = vpop.f32.mrf.mxu0 }
 0xa8c   : > { %v2953_v18 = vmul.f32 %v7636_v9, %v10103_v15 }
 0xa8d   : > { %v2970_v1 = vpack.c.bf16 %v2954_v48, %v2954_v48 }
 0xa8e   : > { %v2969_v38 = vpack.c.bf16 %v2953_v18, %v2953_v18 }
 0xa8f   : > { %v2988_v63 = vunpack.c.l.b16 %v2970_v1 }
 0xa90   : > { %v2987_v44 = vunpack.c.l.b16 %v2969_v38 }
 0xa92   : > { %v2989_v49 = vpack.c.b16 %v2988_v63, %v2987_v44 }
 0xa93   : > { %v10217_v24 = vpop.f32.mrf.mxu0 }
 0xa94   : > { %v4250_v41 = vpop.xlane.xlu1 %4249 }
 0xa95   : > { %v4296_v30 = vsub.f32 %v10145_v4, %v4250_v41 }
 0xa96   : > { %v2991_v42 = vpop.permute.xlu0 %2990 }
 0xa97   : > { %3003 = vmatpush.bf16.msrb.mxu2 %v2991_v42  ;;  %v4312_v25 = vmul.f32 1.442695, %v4296_v30 }
 0xa9a   : > { %6875 = vmatmul.msk.bf16.vlgmr.msrb.gmra.mxu2 %vm2176_vm2, %v2989_v49  ;;  %4252 = vmax.xlane.f32.xlu2 %v4251_v31 }
 0xa9b   : > { %v10221_v48 = vpop.f32.mrf.mxu0 }
 0xa9d   : > { %v10214_v34 = vpop.f32.mrf.mxu1 }
 0xa9e   : > { %v4225_v15 = vpop.permute.xlu0 %4224 }
 0xa9f   : > { %6954 = vmatmul.msk.bf16.vlgmr.msra.gmra.mxu0 %vm1945_vm13, %v4225_v15 }
 0xaa3   : > { %v10229_v38 = vpop.f32.mrf.mxu0 }
 0xaa5   : > { %v10219_v9 = vpop.f32.mrf.mxu1 }
 0xaab   : > { %v10237_v49 = vpop.f32.mrf.mxu0 }
 0xaad   : > { %v10225_v18 = vpop.f32.mrf.mxu1 }
 0xab2   : > { %4445 = vrot.lane.b32.xlu2 %v9317_v59, %s8338_s3  ;;  %v4257_v59 = vsel %vm2176_vm2, %v10237_v49, -inf }
 0xab3   : > { %v10243_v5 = vpop.f32.mrf.mxu0 }
 0xab4   : > { %v4272_v54 = vsel %vm2176_vm2, %v10243_v5, -inf }
 0xab5   : > { %v10231_v63 = vpop.f32.mrf.mxu1 }
 0xab7   : > { %v10227_v1 = vpop.f32.mrf.mxu3 }
 0xab8   : > { %v4284_v41 = vsel %vm2176_vm2, %v10227_v1, -inf }
 0xabd   : > { %v10239_v31 = vpop.f32.mrf.mxu1 }
 0xabf   : > { %v10233_v44 = vpop.f32.mrf.mxu3 }
 0xac0   : > { %v4287_v42 = vsel %vm2176_vm2, %v10233_v44, -inf }
 0xac1   : > { %4288 = vmax.xlane.f32.xlu1 %v4287_v42 }
 0xac5   : > { %v10248_v40 = vpop.f32.mrf.mxu1 }
 0xac9   : > { %4258 = vmax.xlane.f32.xlu1 %v4257_v59 }
 0xacc   : > { %v2915_v15 = vpop.xlane.xlu2 %2914 }
 0xacd   : > { %7637 = vrcp.f32 %v2915_v15  ;;  %v4263_v15 = vsel %vm2176_vm2, %v10248_v40, -inf }
 0xad1   : > { %v2918_v42 = vpop.xlane.xlu0 %2917  ;;  %4273 = vmax.xlane.f32.xlu1 %v4272_v54  ;;  %v10256_v54 = vpop.f32.mrf.mxu1 }
 0xad2   : > { %7639 = vrcp.f32 %v2918_v42 }
 0xad3   : > { %v7638_v60 = vpop.eup %7637  ;;  %7641 = vpow2.f32 %v4312_v25  ;;  %v4278_v25 = vsel %vm2176_vm2, %v10256_v54, -inf }
 0xad4   : > { %v3091_v45 = vpop.permute.xlu2 %3090  ;;  %v2961_v59 = vmul.f32 %v7638_v60, %v10166_v8 }
 0xad5   : > { %3103 = vmatpush.bf16.msra.mxu2 %v3091_v45 }
 0xad6   : > { %v2977_v62 = vpack.c.bf16 %v2961_v59, %v2961_v59 }
 0xad8   : > { %v7640_v7 = vpop.eup %7639  ;;  %v3087_v30 = vunpack.c.l.b16 %v2977_v62  ;;  %v10269_v62 = vpop.f32.mrf.mxu0 }
 0xad9   : > { %v2962_v46 = vmul.f32 %v7640_v7, %v10172_v52  ;;  %4264 = vmax.xlane.f32.xlu1 %v4263_v15  ;;  %v10258_v60 = vpop.eup %7641  ;;  %v10265_v8 = vpop.xlane.xlu0 %4267  ;;  %v4275_v59 = vsel %vm2176_vm2, %v10269_v62, -inf }
 0xada   : > { %v4344_v7 = vsel %vm2176_vm2, %v10258_v60, 0.0 }
 0xadb   : > { %v2978_v4 = vpack.c.bf16 %v2962_v46, %v2962_v46  ;;  %4285 = vmax.xlane.f32.xlu2 %v4284_v41  ;;  %v10267_v46 = vpop.f32.mrf.mxu1  ;;  %v7152_v41 = vld [vmem:[%s8735_s13 + $0x18] sm:$0xff] }
 0xadc   : > { %v4281_v52 = vsel %vm2176_vm2, %v10267_v46, -inf  ;;  %3235 = vmatpush.bf16.msrb.mxu2 %v7152_v41 }
 0xadd   : > { %v3088_v42 = vunpack.c.l.b16 %v2978_v4  ;;  %v7151_v4 = vld [vmem:[%s8735_s13 + $0x10] sm:$0xff] }
 0xadf   : > { %v3089_v45 = vpack.c.b16 %v3088_v42, %v3087_v30 }
 0xae0   : > { %3236 = vmatpush.bf16.msrb.mxu2 %v7151_v4 }
 0xae1   : > { %6879 = vmatmul.msk.bf16.vlgmr.msra.gmra.mxu2 %vm2176_vm2, %v3089_v45  ;;  %4279 = vmax.xlane.f32.xlu1 %v4278_v25 }
 0xae3   : > { %4345 = vadd.xlane.f32.xlu2 %v4344_v7 }
 0xae9   : > { %4282 = vmax.xlane.f32.xlu1 %v4281_v52 }
 0xaeb   : > { %4276 = vmax.xlane.f32.xlu2 %v4275_v59 }
 0xaec   : > { %v4471_v15 = vpop.permute.xlu0 %4470 }
 0xaed   : > { %4483 = vmatpush.bf16.msra.mxu3 %v4471_v15 }
 0xb0d   : > { %v4253_v30 = vpop.xlane.xlu2 %4252 }
 0xb0e   : > { %v4297_v42 = vsub.f32 %v10170_v47, %v4253_v30  ;;  %v4254_v47 = vsel %vm2176_vm2, %v10229_v38, -inf }
 0xb10   : > { %v4314_v45 = vmul.f32 1.442695, %v4297_v42  ;;  %v4260_v42 = vsel %vm2176_vm2, %v10239_v31, -inf }
 0xb12   : > { %7643 = vpow2.f32 %v4314_v45  ;;  %v10291_v45 = vpop.xlane.xlu1 %4270 }
 0xb15   : > { %v4446_v25 = vpop.permute.xlu2 %4445 }
 0xb16   : > { %4458 = vmatpush.bf16.msra.mxu1 %v4446_v25 }
 0xb18   : > { %v10278_v7 = vpop.eup %7643 }
 0xb19   : > { %v4347_v52 = vsel %vm2176_vm2, %v10278_v7, 0.0 }
 0xb1a   : > { %4348 = vadd.xlane.f32.xlu0 %v4347_v52  ;;  %v3186_v52 = vpack.c.bf16 %v10016_v19, %v10011_v61 }
 0xb1c   : > { %v10282_v59 = vpop.f32.mrf.mxu0 }
 0xb1d   : > { %v3005_v15 = vpop.f32.mrf.mxu2  ;;  %v4290_v41 = vsel %vm2176_vm2, %v10282_v59, -inf }
 0xb1e   : > { %4291 = vmax.xlane.f32.xlu2 %v4290_v41 }
 0xb22   : > { %4255 = vmax.xlane.f32.xlu0 %v4254_v47 }
 0xb25   : > { %v3007_v4 = vpop.f32.mrf.mxu2 }
 0xb26   : > { %v3185_v30 = vpack.c.bf16 %v3007_v4, %v3005_v15 }
 0xb28   : > { %6891 = vmatmul.msk.bf16.vlgmr.msrb.gmra.mxu2 %vm1945_vm13, %v3185_v30  ;;  %v3187_v30 = vpack.c.bf16 %v9814_v6, %v9807_v28  ;;  %v3188_v28 = vpack.c.bf16 %v9845_v20, %v9841_v21  ;;  %v3190_v21 = vpack.c.bf16 %v10033_v55, %v10025_v10 }
 0xb2a   : > { %4261 = vmax.xlane.f32.xlu0 %v4260_v42 }
 0xb34   : > { %v10293_v25 = vpop.xlane.xlu1 %4288 }
 0xb38   : > { %6892 = vmatmul.msk.bf16.gmra.mxu2 %vm1945_vm13, %v3186_v52 }
 0xb3c   : > { %v4259_v41 = vpop.xlane.xlu1 %4258 }
 0xb3d   : > { %v4299_v47 = vsub.f32 %v10237_v49, %v4259_v41 }
 0xb3f   : > { %v4318_v17 = vmul.f32 1.442695, %v4299_v47  ;;  %v7154_v47 = vld [vmem:[%s8735_s13 + $0x28] sm:$0xff] }
 0xb40   : > { %3997 = vmatpush.bf16.msra.mxu2 %v7154_v47 }
 0xb41   : > { %7645 = vpow2.f32 %v4318_v17 }
 0xb44   : > { %v4274_v15 = vpop.xlane.xlu1 %4273 }
 0xb45   : > { %v4304_v4 = vsub.f32 %v10243_v5, %v4274_v15 }
 0xb47   : > { %v10302_v42 = vpop.eup %7645  ;;  %v4328_v53 = vmul.f32 1.442695, %v4304_v4 }
 0xb48   : > { %6893 = vmatmul.msk.bf16.gmra.mxu2 %vm1945_vm13, %v3187_v30  ;;  %v4353_v61 = vsel %vm2176_vm2, %v10302_v42, 0.0 }
 0xb49   : > { %7647 = vpow2.f32 %v4328_v53  ;;  %4354 = vadd.xlane.f32.xlu1 %v4353_v61  ;;  %v3191_v61 = vpack.c.bf16 %v9824_v11, %v9819_v22 }
 0xb4c   : > { %v10316_v5 = vpop.xlane.xlu1 %4264 }
 0xb4e   : > { %v4286_v41 = vpop.xlane.xlu2 %4285 }
 0xb4f   : > { %v10307_v19 = vpop.eup %7647 }
 0xb50   : > { %v4368_v17 = vsel %vm2176_vm2, %v10307_v19, 0.0 }
 0xb51   : > { %4369 = vadd.xlane.f32.xlu2 %v4368_v17 }
 0xb54   : > { %v10321_v52 = vpop.xlane.xlu1 %4279 }
 0xb56   : > { %v4346_v15 = vpop.xlane.xlu2 %4345 }
 0xb57   : > { %7649 = vrcp.f32 %v4346_v15 }
 0xb58   : > { %6894 = vmatmul.msk.bf16.gmra.mxu2 %vm1945_vm13, %v3188_v28 }
 0xb5c   : > { %v4283_v20 = vpop.xlane.xlu1 %4282 }
 0xb5d   : > { %v7650_v30 = vpop.eup %7649 }
 0xb5e   : > { %v4408_v10 = vmul.f32 %v7650_v30, %v10258_v60 }
 0xb62   : > { %4495 = vrot.lane.b32.xlu1 %v9219_v43, %s8338_s3  ;;  %v4307_v43 = vsub.f32 %v10267_v46, %v4283_v20 }
 0xb64   : > { %v3105_v6 = vpop.f32.mrf.mxu2  ;;  %v4334_v4 = vmul.f32 1.442695, %v4307_v43 }
 0xb66   : > { %7651 = vpow2.f32 %v4334_v4  ;;  %v3192_v4 = vpack.c.bf16 %v9852_v33, %v9848_v27 }
 0xb69   : > { %4520 = vrot.lane.b32.xlu2 %v9238_v39, %s8338_s3  ;;  %v7153_v39 = vld [vmem:[%s8735_s13 + $0x20] sm:$0xff] }
 0xb6a   : > { %3998 = vmatpush.bf16.msra.mxu2 %v7153_v39 }
 0xb6c   : > { %v3107_v53 = vpop.f32.mrf.mxu2  ;;  %v10331_v28 = vpop.eup %7651 }
 0xb6d   : > { %v3189_v49 = vpack.c.bf16 %v3107_v53, %v3105_v6  ;;  %v4377_v55 = vsel %vm2176_vm2, %v10331_v28, 0.0  ;;  %v4424_v6 = vpack.c.bf16 %v4408_v10, %v4408_v10 }
 0xb6f   : > { %6895 = vmatmul.msk.bf16.gmra.mxu2 %vm1945_vm13, %v3189_v49  ;;  %v4442_v43 = vunpack.c.l.b16 %v4424_v6 }
 0xb7f   : > { %6896 = vmatmul.msk.bf16.gmra.mxu2 %vm1945_vm13, %v3190_v21  ;;  %v4303_v21 = vsub.f32 %v10181_v3, %v10291_v45  ;;  %v4302_v45 = vsub.f32 %v10176_v36, %v10265_v8  ;;  %v3947_v36 = vpack.c.bf16 %v10189_v2, %v10185_v58 }
 0xb81   : > { %v4326_v15 = vmul.f32 1.442695, %v4303_v21  ;;  %v4324_v27 = vmul.f32 1.442695, %v4302_v45  ;;  %v3951_v45 = vpack.c.bf16 %v10212_v16, %v10205_v57  ;;  %v3952_v57 = vpack.c.bf16 %v10219_v9, %v10214_v34 }
 0xb8d   : > { %v4349_v17 = vpop.xlane.xlu0 %4348 }
 0xb8e   : > { %7653 = vrcp.f32 %v4349_v17 }
 0xb8f   : > { %6897 = vmatmul.msk.bf16.gmra.mxu2 %vm1945_vm13, %v3191_v61 }
 0xb92   : > { %4378 = vadd.xlane.f32.xlu2 %v4377_v55  ;;  %v10365_v55 = vpop.f32.mrf.mxu0 }
 0xb94   : > { %v7654_v46 = vpop.eup %7653 }
 0xb95   : > { %v4409_v53 = vmul.f32 %v7654_v46, %v10278_v7  ;;  %v4256_v49 = vpop.xlane.xlu0 %4255  ;;  %v4277_v46 = vpop.xlane.xlu2 %4276 }
 0xb96   : > { %v4298_v22 = vsub.f32 %v10229_v38, %v4256_v49 }
 0xb97   : > { %v4425_v11 = vpack.c.bf16 %v4409_v53, %v4409_v53 }
 0xb98   : > { %v4316_v20 = vmul.f32 1.442695, %v4298_v22 }
 0xb99   : > { %v4443_v47 = vunpack.c.l.b16 %v4425_v11 }
 0xb9a   : > { %7655 = vpow2.f32 %v4316_v20 }
 0xb9b   : > { %v4444_v60 = vpack.c.b16 %v4443_v47, %v4442_v43  ;;  %7657 = vpow2.f32 %v4326_v15  ;;  %v3949_v47 = vpack.c.bf16 %v10199_v12, %v10195_v56  ;;  %v4305_v56 = vsub.f32 %v10269_v62, %v4277_v46 }
 0xb9d   : > { %v4262_v39 = vpop.xlane.xlu0 %4261  ;;  %6955 = vmatmul.msk.bf16.vlgmr.msra.gmra.mxu1 %vm2176_vm2, %v4444_v60  ;;  %v4292_v2 = vpop.xlane.xlu2 %4291  ;;  %v4330_v12 = vmul.f32 1.442695, %v4305_v56 }
 0xb9e   : > { %v4300_v7 = vsub.f32 %v10239_v31, %v4262_v39  ;;  %v4308_v31 = vsub.f32 %v10227_v1, %v4286_v41  ;;  %v4306_v1 = vsub.f32 %v10256_v54, %v10321_v52  ;;  %v4310_v49 = vsub.f32 %v10282_v59, %v4292_v2 }
 0xb9f   : > { %6898 = vmatmul.msk.bf16.gmra.mxu2 %vm1945_vm13, %v3192_v4  ;;  %v3948_v54 = vpack.c.bf16 %v10197_v23, %v10191_v51  ;;  %v4301_v4 = vsub.f32 %v10248_v40, %v10316_v5 }
 0xba0   : > { %v10346_v38 = vpop.eup %7655  ;;  %v4320_v3 = vmul.f32 1.442695, %v4300_v7  ;;  %v4336_v8 = vmul.f32 1.442695, %v4308_v31  ;;  %v4332_v58 = vmul.f32 1.442695, %v4306_v1 }
 0xba1   : > { %v4350_v30 = vsel %vm2176_vm2, %v10346_v38, 0.0  ;;  %v10352_v33 = vpop.eup %7657  ;;  %v4340_v52 = vmul.f32 1.442695, %v4310_v49  ;;  %v4322_v39 = vmul.f32 1.442695, %v4301_v4 }
 0xba2   : > { %7659 = vpow2.f32 %v4320_v3  ;;  %4351 = vadd.xlane.f32.xlu0 %v4350_v30  ;;  %v4365_v17 = vsel %vm2176_vm2, %v10352_v33, 0.0 }
 0xba3   : > { %7661 = vpow2.f32 %v4324_v27  ;;  %v3953_v27 = vpack.c.bf16 %v10221_v48, %v10217_v24 }
 0xba4   : > { %7663 = vpow2.f32 %v4336_v8 }
 0xba5   : > { %7665 = vpow2.f32 %v4332_v58 }
 0xba6   : > { %7667 = vpow2.f32 %v4340_v52 }
 0xba7   : > { %7669 = vpow2.f32 %v4322_v39 }
 0xba8   : > { %v10354_v61 = vpop.eup %7659  ;;  %7671 = vpow2.f32 %v4330_v12 }
 0xba9   : > { %v4356_v10 = vsel %vm2176_vm2, %v10354_v61, 0.0  ;;  %v10367_v6 = vpop.eup %7661 }
 0xbaa   : > { %4620 = vrot.lane.b32.xlu2 %v11723_v26, %s8338_s3  ;;  %4366 = vadd.xlane.f32.xlu0 %v4365_v17  ;;  %v4293_v26 = vsel %vm2176_vm2, %v10365_v55, -inf  ;;  %v4362_v41 = vsel %vm2176_vm2, %v10367_v6, 0.0  ;;  %v10376_v53 = vpop.eup %7663 }
 0xbab   : > { %4357 = vadd.xlane.f32.xlu1 %v4356_v10  ;;  %v4380_v22 = vsel %vm2176_vm2, %v10376_v53, 0.0  ;;  %v10383_v11 = vpop.eup %7665  ;;  %v10399_v15 = vpop.f32.mrf.mxu2 }
 0xbac   : > { %v4374_v21 = vsel %vm2176_vm2, %v10383_v11, 0.0  ;;  %v10392_v59 = vpop.eup %7667 }
 0xbad   : > { %v4386_v51 = vsel %vm2176_vm2, %v10392_v59, 0.0  ;;  %v10409_v3 = vpop.eup %7669 }
 0xbae   : > { %v4359_v40 = vsel %vm2176_vm2, %v10409_v3, 0.0 }
 0xbaf   : > { %6939 = vmatmul.msk.bf16.vlgmr.msra.gmra.mxu2 %vm1945_vm13, %v3947_v36  ;;  %v3954_v36 = vpack.c.bf16 %v10231_v63, %v10225_v18 }
 0xbb2   : > { %4294 = vmax.xlane.f32.xlu0 %v4293_v26 }
 0xbb3   : > { %4363 = vadd.xlane.f32.xlu1 %v4362_v41  ;;  %v10406_v7 = vpop.f32.mrf.mxu2 }
 0xbbb   : > { %4381 = vadd.xlane.f32.xlu1 %v4380_v22  ;;  %v10413_v30 = vpop.f32.mrf.mxu2 }
 0xbbc   : > { %v4355_v23 = vpop.xlane.xlu1 %4354 }
 0xbbd   : > { %7673 = vrcp.f32 %v4355_v23 }
 0xbbf   : > { %6940 = vmatmul.msk.bf16.gmra.mxu2 %vm1945_vm13, %v3948_v54 }
 0xbc3   : > { %4375 = vadd.xlane.f32.xlu1 %v4374_v21 }
 0xbc4   : > { %v10388_v20 = vpop.xlane.xlu2 %4369 }
 0xbc6   : > { %4545 = vrot.lane.b32.xlu0 %v11718_v37, %s8338_s3  ;;  %v3950_v37 = vpack.c.bf16 %v10207_v0, %v10202_v32  ;;  %v10418_v32 = vpop.eup %7671  ;;  %v10420_v0 = vpop.f32.mrf.mxu2 }
 0xbc7   : > { %v4371_v62 = vsel %vm2176_vm2, %v10418_v32, 0.0  ;;  %v7674_v10 = vpop.eup %7673 }
 0xbc8   : > { %v4411_v34 = vmul.f32 %v7674_v10, %v10302_v42  ;;  %v4309_v42 = vsub.f32 %v10233_v44, %v10293_v25 }
 0xbca   : > { %v4427_v8 = vpack.c.bf16 %v4411_v34, %v4411_v34  ;;  %v4338_v49 = vmul.f32 1.442695, %v4309_v42 }
 0xbcb   : > { %4387 = vadd.xlane.f32.xlu1 %v4386_v51 }
 0xbcc   : > { %v4521_v43 = vpop.permute.xlu2 %4520  ;;  %v4468_v26 = vunpack.c.l.b16 %v4427_v8 }
 0xbcd   : > { %4533 = vmatpush.bf16.msrb.mxu1 %v4521_v43 }
 0xbce   : > { %v10427_v16 = vpop.f32.mrf.mxu2 }
 0xbcf   : > { %6941 = vmatmul.msk.bf16.gmra.mxu2 %vm1945_vm13, %v3949_v47 }
 0xbd4   : > { %v4496_v60 = vpop.permute.xlu1 %4495 }
 0xbd5   : > { %4508 = vmatpush.bf16.msrb.mxu0 %v4496_v60 }
 0xbd6   : > { %v10429_v5 = vpop.f32.mrf.mxu2 }
 0xbde   : > { %v10436_v31 = vpop.f32.mrf.mxu2 }
 0xbdf   : > { %6942 = vmatmul.msk.bf16.gmra.mxu2 %vm1945_vm13, %v3950_v37 }
 0xbe6   : > { %v10442_v24 = vpop.f32.mrf.mxu2 }
 0xbef   : > { %6943 = vmatmul.msk.bf16.gmra.mxu2 %vm1945_vm13, %v3951_v45 }
 0xbf0   : > { %4360 = vadd.xlane.f32.xlu0 %v4359_v40 }
 0xbf8   : > { %4372 = vadd.xlane.f32.xlu0 %v4371_v62 }
 0xbff   : > { %6944 = vmatmul.msk.bf16.gmra.mxu2 %vm1945_vm13, %v3952_v57 }
 0xc05   : > { %v4379_v23 = vpop.xlane.xlu2 %4378 }
 0xc0c   : > { %4570 = vrot.lane.b32.xlu0 %v9512_v14, %s8338_s3 }
 0xc0d   : > { %v4621_v4 = vpop.permute.xlu2 %4620 }
 0xc0f   : > { %6945 = vmatmul.msk.bf16.gmra.mxu2 %vm1945_vm13, %v3953_v27 }
 0xc15   : > { %v4352_v17 = vpop.xlane.xlu0 %4351 }
 0xc16   : > { %7675 = vrcp.f32 %v4352_v17 }
 0xc1c   : > { %v7676_v9 = vpop.eup %7675 }
 0xc1d   : > { %v4410_v14 = vmul.f32 %v7676_v9, %v10346_v38  ;;  %v4367_v46 = vpop.xlane.xlu0 %4366 }
 0xc1e   : > { %v4358_v1 = vpop.xlane.xlu1 %4357  ;;  %7677 = vrcp.f32 %v4367_v46 }
 0xc1f   : > { %v4426_v48 = vpack.c.bf16 %v4410_v14, %v4410_v14  ;;  %6946 = vmatmul.msk.bf16.gmra.mxu2 %vm1945_vm13, %v3954_v36 }
 0xc21   : > { %v4467_v41 = vunpack.c.l.b16 %v4426_v48 }
 0xc23   : > { %v4469_v58 = vpack.c.b16 %v4468_v26, %v4467_v41 }
 0xc24   : > { %v7678_v2 = vpop.eup %7677 }
 0xc25   : > { %6956 = vmatmul.msk.bf16.vlgmr.msra.gmra.mxu3 %vm2176_vm2, %v4469_v58  ;;  %v4295_v18 = vpop.xlane.xlu0 %4294  ;;  %v4415_v54 = vmul.f32 %v7678_v2, %v10352_v33 }
 0xc26   : > { %v4364_v63 = vpop.xlane.xlu1 %4363  ;;  %v4311_v38 = vsub.f32 %v10365_v55, %v4295_v18 }
 0xc27   : > { %7679 = vrcp.f32 %v4364_v63  ;;  %v4431_v21 = vpack.c.bf16 %v4415_v54, %v4415_v54  ;;  %v7156_v63 = vld [vmem:[%s8735_s13 + $0x38] sm:$0xff] }
 0xc28   : > { %v4342_v22 = vmul.f32 1.442695, %v4311_v38 }
 0xc29   : > { %v4518_v47 = vunpack.c.l.b16 %v4431_v21 }
 0xc2a   : > { %7681 = vpow2.f32 %v4342_v22 }
 0xc2b   : > { %7683 = vpow2.f32 %v4338_v49  ;;  %v7155_v49 = vld [vmem:[%s8735_s13 + $0x30] sm:$0xff]  ;;  %s11744_s13 = scalar_lea.vmem [#allocation15], %s8717_s5 }
 0xc2c   : > { %7685 = vrcp.f32 %v4358_v1 }
 0xc2d   : > { %v7680_v52 = vpop.eup %7679 }
 0xc2e   : > { %v4414_v51 = vmul.f32 %v7680_v52, %v10367_v6  ;;  %v4382_v39 = vpop.xlane.xlu1 %4381 }
 0xc30   : > { %v10451_v44 = vpop.eup %7681  ;;  %v4430_v25 = vpack.c.bf16 %v4414_v51, %v4414_v51 }
 0xc31   : > { %v4389_v43 = vsel %vm2176_vm2, %v10451_v44, 0.0  ;;  %v10455_v55 = vpop.eup %7683 }
 0xc32   : > { %v4517_v60 = vunpack.c.l.b16 %v4430_v25  ;;  %4390 = vadd.xlane.f32.xlu1 %v4389_v43  ;;  %v4383_v33 = vsel %vm2176_vm2, %v10455_v55, 0.0  ;;  %v7686_v12 = vpop.eup %7685 }
 0xc33   : > { %v4412_v45 = vmul.f32 %v7686_v12, %v10354_v61 }
 0xc34   : > { %v4519_v37 = vpack.c.b16 %v4518_v47, %v4517_v60 }
 0xc35   : > { %v4428_v57 = vpack.c.bf16 %v4412_v45, %v4412_v45 }
 0xc36   : > { %6958 = vmatmul.msk.bf16.vlgmr.msrb.gmra.mxu1 %vm2176_vm2, %v4519_v37  ;;  %4384 = vadd.xlane.f32.xlu0 %v4383_v33  ;;  %v4376_v40 = vpop.xlane.xlu1 %4375 }
 0xc37   : > { %v4492_v9 = vunpack.c.l.b16 %v4428_v57 }
 0xc38   : > { %v4546_v6 = vpop.permute.xlu0 %4545 }
 0xc39   : > { %4558 = vmatpush.bf16.msrb.mxu3 %v4546_v6 }
 0xc3d   : > { %4633 = vmatpush.bf16.msra.mxu3 %v4621_v4 }
 0xc3e   : > { %v4388_v52 = vpop.xlane.xlu1 %4387 }
 0xc4b   : > { %4595 = vrot.lane.b32.xlu1 %v9291_v13, %s8338_s3 }
 0xc63   : > { %v4361_v56 = vpop.xlane.xlu0 %4360 }
 0xc64   : > { %7687 = vrcp.f32 %v4361_v56 }
 0xc65   : > { %7689 = vrcp.f32 %v10388_v20 }
 0xc66   : > { %7691 = vrcp.f32 %v4376_v40 }
 0xc6a   : > { %v7688_v62 = vpop.eup %7687 }
 0xc6b   : > { %v4413_v27 = vmul.f32 %v7688_v62, %v10409_v3  ;;  %v4373_v17 = vpop.xlane.xlu0 %4372  ;;  %v7690_v10 = vpop.eup %7689 }
 0xc6c   : > { %7693 = vrcp.f32 %v4373_v17  ;;  %v4416_v13 = vmul.f32 %v7690_v10, %v10307_v19  ;;  %v7692_v8 = vpop.eup %7691  ;;  %v10481_v17 = vpop.f32.mrf.mxu2 }
 0xc6d   : > { %v4429_v34 = vpack.c.bf16 %v4413_v27, %v4413_v27  ;;  %7695 = vrcp.f32 %v4379_v23  ;;  %v4418_v3 = vmul.f32 %v7692_v8, %v10383_v11  ;;  %v4460_v11 = vpop.f32.mrf.mxu1 }
 0xc6e   : > { %v4432_v61 = vpack.c.bf16 %v4416_v13, %v4416_v13  ;;  %7697 = vrcp.f32 %v4388_v52 }
 0xc6f   : > { %v4493_v36 = vunpack.c.l.b16 %v4429_v34  ;;  %v4434_v58 = vpack.c.bf16 %v4418_v3, %v4418_v3 }
 0xc70   : > { %v4542_v26 = vunpack.c.l.b16 %v4432_v61 }
 0xc71   : > { %v4494_v20 = vpack.c.b16 %v4493_v36, %v4492_v9  ;;  %v4567_v38 = vunpack.c.l.b16 %v4434_v58 }
 0xc72   : > { %v7694_v14 = vpop.eup %7693 }
 0xc73   : > { %v4417_v46 = vmul.f32 %v7694_v14, %v10418_v32  ;;  %6957 = vmatmul.msk.bf16.vlgmr.msrb.gmra.mxu0 %vm2176_vm2, %v4494_v20  ;;  %v7696_v1 = vpop.eup %7695 }
 0xc74   : > { %v4419_v41 = vmul.f32 %v7696_v1, %v10331_v28  ;;  %v7698_v51 = vpop.eup %7697  ;;  %v10484_v9 = vpop.f32.mrf.mxu2 }
 0xc75   : > { %v4433_v48 = vpack.c.bf16 %v4417_v46, %v4417_v46  ;;  %v4462_v54 = vpop.f32.mrf.mxu1  ;;  %v4422_v25 = vmul.f32 %v7698_v51, %v10392_v59 }
 0xc76   : > { %v4435_v18 = vpack.c.bf16 %v4419_v41, %v4419_v41  ;;  %v4640_v28 = vpack.c.bf16 %v4462_v54, %v4460_v11  ;;  %v3326_v54 = vadd.f32 %v10040_v29, %v10406_v7 }
 0xc77   : > { %v4543_v19 = vunpack.c.l.b16 %v4433_v48  ;;  %v4438_v60 = vpack.c.bf16 %v4422_v25, %v4422_v25 }
 0xc78   : > { %v4568_v32 = vunpack.c.l.b16 %v4435_v18  ;;  %v3324_v18 = vadd.f32 %v10037_v35, %v10399_v15 }
 0xc79   : > { %v4544_v42 = vpack.c.b16 %v4543_v19, %v4542_v26  ;;  %v4617_v56 = vunpack.c.l.b16 %v4438_v60 }
 0xc7a   : > { %v4569_v22 = vpack.c.b16 %v4568_v32, %v4567_v38  ;;  %v10504_v32 = vld [vmem:[%s11744_s13] ss:$0 sm:$0xff] }
 0xc7b   : > { %6959 = vmatmul.msk.bf16.vlgmr.msrb.gmra.mxu3 %vm2176_vm2, %v4544_v42 }
 0xc7e   : > { %v4571_v2 = vpop.permute.xlu0 %4570 }
 0xc7f   : > { %4583 = vmatpush.bf16.msra.mxu0 %v4571_v2 }
 0xc83   : > { %4690 = vmatpush.bf16.msrb.mxu0 %v7156_v63 }
 0xc84   : > { %6960 = vmatmul.msk.bf16.vlgmr.msra.gmra.mxu0 %vm2176_vm2, %v4569_v22 }
 0xc87   : > { %4691 = vmatpush.bf16.msrb.mxu0 %v7155_v49  ;;  %v7801_v49 = vld [vmem:[#allocation2 + $0x30] sm:$0xff] }
 0xc94   : > { %6971 = vmatmul.msk.bf16.vlgmr.msrb.gmra.mxu0 %vm1945_vm13, %v4640_v28 }
 0xca5   : > { %v4391_v21 = vpop.xlane.xlu1 %4390 }
 0xca6   : > { %7699 = vrcp.f32 %v4391_v21 }
 0xca8   : > { %v4485_v23 = vpop.f32.mrf.mxu3 }
 0xca9   : > { %v4385_v43 = vpop.xlane.xlu0 %4384 }
 0xcaa   : > { %7701 = vrcp.f32 %v4385_v43 }
 0xcab   : > { %7703 = vrcp.f32 %v4382_v39 }
 0xcac   : > { %v7700_v47 = vpop.eup %7699 }
 0xcad   : > { %v4423_v37 = vmul.f32 %v7700_v47, %v10451_v44  ;;  %v3329_v47 = vadd.f32 %v10049_v50, %v10413_v30 }
 0xcaf   : > { %v4439_v33 = vpack.c.bf16 %v4423_v37, %v4423_v37 }
 0xcb0   : > { %v7702_v6 = vpop.eup %7701  ;;  %v4487_v4 = vpop.f32.mrf.mxu3 }
 0xcb1   : > { %v4618_v12 = vunpack.c.l.b16 %v4439_v33  ;;  %v4641_v45 = vpack.c.bf16 %v4487_v4, %v4485_v23  ;;  %v7704_v40 = vpop.eup %7703  ;;  %v4421_v57 = vmul.f32 %v7702_v6, %v10455_v55  ;;  %v10486_v55 = vpop.f32.mrf.mxu2  ;;  %v7802_v23 = vld [vmem:[#allocation2] sm:$0xff]  ;;  %v7803_v6 = vld [vmem:[#allocation2 + $0x58] sm:$0xff] }
 0xcb2   : > { %v4420_v59 = vmul.f32 %v7704_v40, %v10376_v53 }
 0xcb3   : > { %v4619_v62 = vpack.c.b16 %v4618_v12, %v4617_v56  ;;  %6972 = vmatmul.msk.bf16.gmra.mxu0 %vm1945_vm13, %v4641_v45  ;;  %v4437_v39 = vpack.c.bf16 %v4421_v57, %v4421_v57  ;;  %v4535_v1 = vpop.f32.mrf.mxu1  ;;  %v11745_v12 = vld [vmem:[#allocation50_spill] sm:$0xff] }
 0xcb4   : > { %v4436_v27 = vpack.c.bf16 %v4420_v59, %v4420_v59  ;;  %v3331_v45 = vadd.f32 %v11745_v12, %v10420_v0 }
 0xcb5   : > { %6962 = vmatmul.msk.bf16.vlgmr.msra.gmra.mxu3 %vm2176_vm2, %v4619_v62  ;;  %v4593_v44 = vunpack.c.l.b16 %v4437_v39  ;;  %v7804_v39 = vld [vmem:[#allocation2 + $0x18] sm:$0xff] }
 0xcb6   : > { %v4592_v10 = vunpack.c.l.b16 %v4436_v27 }
 0xcb8   : > { %v4594_v13 = vpack.c.b16 %v4593_v44, %v4592_v10 }
 0xcb9   : > { %v10488_v36 = vpop.f32.mrf.mxu2 }
 0xcbb   : > { %v4537_v26 = vpop.f32.mrf.mxu1 }
 0xcbc   : > { %v4643_v19 = vpack.c.bf16 %v4537_v26, %v4535_v1 }
 0xcbd   : > { %v4596_v34 = vpop.permute.xlu1 %4595 }
 0xcbe   : > { %4608 = vmatpush.bf16.msra.mxu1 %v4596_v34 }
 0xcc1   : > { %6961 = vmatmul.msk.bf16.vlgmr.msra.gmra.mxu1 %vm2176_vm2, %v4594_v13  ;;  %v10490_v53 = vpop.f32.mrf.mxu2 }
 0xcc9   : > { %v10492_v8 = vpop.f32.mrf.mxu2 }
 0xcd1   : > { %v10494_v14 = vpop.f32.mrf.mxu2 }
 0xcd9   : > { %v10497_v3 = vpop.f32.mrf.mxu2 }
 0xce1   : > { %v4000_v58 = vpop.f32.mrf.mxu2 }
 0xce2   : > { %v4040_v63 = vadd.f32 %v4000_v58, %v3324_v18 }
 0xce9   : > { %v4002_v11 = vpop.f32.mrf.mxu2 }
 0xcea   : > { %v4041_v21 = vadd.f32 %v4002_v11, %v3326_v54  ;;  %v11748_v54 = vld [vmem:[#allocation47_spill] sm:$0xff] }
 0xcf0   : > { %v4510_v20 = vpop.f32.mrf.mxu0 }
 0xcf1   : > { %v4005_v7 = vpop.f32.mrf.mxu2 }
 0xcf2   : > { %v4042_v60 = vadd.f32 %v4005_v7, %v3329_v47 }
 0xcf8   : > { %v4512_v61 = vpop.f32.mrf.mxu0 }
 0xcf9   : > { %v4642_v46 = vpack.c.bf16 %v4512_v61, %v4510_v20  ;;  %v4007_v56 = vpop.f32.mrf.mxu2  ;;  %v11746_v61 = vld [vmem:[#allocation58_spill] sm:$0xff] }
 0xcfa   : > { %v4043_v62 = vadd.f32 %v4007_v56, %v3331_v45 }
 0xcfb   : > { %6973 = vmatmul.msk.bf16.gmra.mxu0 %vm1945_vm13, %v4642_v46  ;;  %v3334_v46 = vadd.f32 %v11746_v61, %v10427_v16 }
 0xcfe   : > { %v4560_v42 = vpop.f32.mrf.mxu3 }
 0xd01   : > { %v4585_v48 = vpop.f32.mrf.mxu0  ;;  %v4010_v20 = vpop.f32.mrf.mxu2 }
 0xd02   : > { %v4044_v1 = vadd.f32 %v4010_v20, %v3334_v46  ;;  %v7809_v20 = vld [vmem:[#allocation2 + $0x40] sm:$0xff] }
 0xd06   : > { %v4562_v52 = vpop.f32.mrf.mxu3 }
 0xd07   : > { %v4644_v15 = vpack.c.bf16 %v4562_v52, %v4560_v42  ;;  %v11747_v42 = vld [vmem:[#allocation46_spill] sm:$0xff]  ;;  %v3339_v52 = vadd.f32 %v11748_v54, %v10436_v31 }
 0xd08   : > { %v3336_v18 = vadd.f32 %v11747_v42, %v10429_v5 }
 0xd09   : > { %v4587_v41 = vpop.f32.mrf.mxu0 }
 0xd0a   : > { %v4645_v29 = vpack.c.bf16 %v4587_v41, %v4585_v48  ;;  %v4012_v41 = vpop.f32.mrf.mxu2 }
 0xd0b   : > { %6974 = vmatmul.msk.bf16.gmra.mxu0 %vm1945_vm13, %v4643_v19  ;;  %v7805_v19 = vld [vmem:[#allocation2 + $0x50] sm:$0xff] }
 0xd11   : > { %v4693_v38 = vpop.f32.mrf.mxu0 }
 0xd12   : > { %v4733_v2 = vadd.f32 %v4693_v38, %v4040_v63  ;;  %v4045_v38 = vadd.f32 %v4012_v41, %v3336_v18  ;;  %v4015_v16 = vpop.f32.mrf.mxu2 }
 0xd14   : > { %v4749_v22 = vadd.f32 %v7801_v49, %v4733_v2 }
 0xd16   : > { %v10509_v28 = vadd.f32 %v10504_v32, %v4749_v22  ;;  %v7806_v22 = vld [vmem:[#allocation2 + $0x68] sm:$0xff] }
 0xd18   : > { %4787 = vadd.xlane.f32.xlu0 %v10509_v28 }
 0xd19   : > { %v4695_v35 = vpop.f32.mrf.mxu0 }
 0xd1a   : > { %v4734_v51 = vadd.f32 %v4695_v35, %v4041_v21  ;;  %v4046_v35 = vadd.f32 %v4015_v16, %v3339_v52  ;;  %v7810_v16 = vld [vmem:[#allocation2 + $0x20] sm:$0xff] }
 0xd1b   : > { %6975 = vmatmul.msk.bf16.gmra.mxu0 %vm1945_vm13, %v4644_v15 }
 0xd1c   : > { %v4750_v25 = vadd.f32 %v7802_v23, %v4734_v51  ;;  %v7807_v23 = vld [vmem:[#allocation2 + $0x8] sm:$0xff] }
 0xd1e   : > { %v10514_v43 = vadd.f32 %v10504_v32, %v4750_v25 }
 0xd20   : > { %4789 = vadd.xlane.f32.xlu1 %v10514_v43 }
 0xd2b   : > { %6976 = vmatmul.msk.bf16.gmra.mxu0 %vm1945_vm13, %v4645_v29  ;;  %v11749_v29 = vld [vmem:[#allocation45_spill] sm:$0xff] }
 0xd30   : > { %v4698_v37 = vpop.f32.mrf.mxu0 }
 0xd31   : > { %v4735_v33 = vadd.f32 %v4698_v37, %v4042_v60  ;;  %v4017_v37 = vpop.f32.mrf.mxu2 }
 0xd33   : > { %v4751_v4 = vadd.f32 %v7803_v6, %v4735_v33 }
 0xd35   : > { %v10523_v40 = vadd.f32 %v10504_v32, %v4751_v4  ;;  %v11750_v4 = vld [vmem:[#allocation49_spill] sm:$0xff] }
 0xd36   : > { %v3341_v56 = vadd.f32 %v11750_v4, %v10442_v24 }
 0xd37   : > { %4791 = vadd.xlane.f32.xlu0 %v10523_v40 }
 0xd38   : > { %v4700_v57 = vpop.f32.mrf.mxu0  ;;  %v4635_v0 = vpop.f32.mrf.mxu3  ;;  %v4047_v45 = vadd.f32 %v4017_v37, %v3341_v56  ;;  %v7037_v37 = vld [vmem:[%s8744_s14 + $0x70] sm:$0xf]  ;;  %v7039_v56 = vld [vmem:[%s8744_s14 + $0x78] sm:$0xf0] }
 0xd39   : > { %v4736_v59 = vadd.f32 %v4700_v57, %v4043_v62 }
 0xd3b   : > { %v4752_v27 = vadd.f32 %v7804_v39, %v4736_v59  ;;  %v4020_v39 = vpop.f32.mrf.mxu2 }
 0xd3d   : > { %v10527_v50 = vadd.f32 %v10504_v32, %v4752_v27  ;;  %v11751_v27 = vld [vmem:[#allocation56_spill] sm:$0xff] }
 0xd3e   : > { %v4610_v30 = vpop.f32.mrf.mxu1 }
 0xd3f   : > { %4793 = vadd.xlane.f32.xlu2 %v10527_v50 }
 0xd40   : > { %v4637_v34 = vpop.f32.mrf.mxu3 }
 0xd41   : > { %v4647_v13 = vpack.c.bf16 %v4637_v34, %v4635_v0 }
 0xd46   : > { %v4612_v44 = vpop.f32.mrf.mxu1 }
 0xd47   : > { %v4646_v10 = vpack.c.bf16 %v4612_v44, %v4610_v30  ;;  %v3344_v30 = vadd.f32 %v11751_v27, %v10481_v17  ;;  %v7808_v44 = vld [vmem:[#allocation2 + $0x48] sm:$0xff] }
 0xd49   : > { %6977 = vmatmul.msk.bf16.gmra.mxu0 %vm1945_vm13, %v4646_v10  ;;  %v4048_v34 = vadd.f32 %v4020_v39, %v3344_v30  ;;  %v7169_v39 = vld [vmem:[%s8744_s14 + $0x64] sm:$0xf]  ;;  %v7031_v30 = vld [vmem:[%s8744_s14 + $0x68] sm:$0xf0] }
 0xd59   : > { %6978 = vmatmul.msk.bf16.gmra.mxu0 %vm1945_vm13, %v4647_v13 }
 0xd78   : > { %v4703_v48 = vpop.f32.mrf.mxu0 }
 0xd79   : > { %v4737_v26 = vadd.f32 %v4703_v48, %v4044_v1  ;;  %v4022_v1 = vpop.f32.mrf.mxu2 }
 0xd7b   : > { %v4753_v58 = vadd.f32 %v7805_v19, %v4737_v26  ;;  %v11752_v26 = vld [vmem:[#allocation51_spill] sm:$0xff] }
 0xd7c   : > { %v3346_v41 = vadd.f32 %v11752_v26, %v10484_v9 }
 0xd7d   : > { %v10537_v63 = vadd.f32 %v10504_v32, %v4753_v58 }
 0xd7e   : > { %v4049_v58 = vadd.f32 %v4022_v1, %v3346_v41  ;;  %v7167_v1 = vld [vmem:[%s8744_s14 + $0x54] sm:$0xf]  ;;  %v7023_v41 = vld [vmem:[%s8744_s14 + $0x58] sm:$0xf0] }
 0xd7f   : > { %4795 = vadd.xlane.f32.xlu0 %v10537_v63 }
 0xd80   : > { %v4705_v2 = vpop.f32.mrf.mxu0 }
 0xd81   : > { %v4738_v49 = vadd.f32 %v4705_v2, %v4045_v38  ;;  %v4025_v2 = vpop.f32.mrf.mxu2 }
 0xd83   : > { %v4754_v11 = vadd.f32 %v7806_v22, %v4738_v49  ;;  %v11753_v22 = vld [vmem:[#allocation54_spill] sm:$0xff] }
 0xd85   : > { %v10543_v21 = vadd.f32 %v10504_v32, %v4754_v11  ;;  %v3349_v11 = vadd.f32 %v11753_v22, %v10486_v55  ;;  %v7165_v22 = vld [vmem:[%s8744_s14 + $0x44] sm:$0xf] }
 0xd87   : > { %4797 = vadd.xlane.f32.xlu0 %v10543_v21 }
 0xd88   : > { %v4708_v5 = vpop.f32.mrf.mxu0 }
 0xd89   : > { %v4739_v15 = vadd.f32 %v4708_v5, %v4046_v35  ;;  %v4050_v35 = vadd.f32 %v4025_v2, %v3349_v11  ;;  %v7013_v2 = vld [vmem:[%s8744_s14 + $0x40] sm:$0xf] }
 0xd8b   : > { %v4788_v51 = vpop.xlane.xlu0 %4787  ;;  %v4755_v25 = vadd.f32 %v7807_v23, %v4739_v15  ;;  %v7811_v23 = vld [vmem:[#allocation2 + $0x10] sm:$0xff] }
 0xd8c   : > { %v4819_v7 = vmul.f32 %v4788_v51, %v11749_v29 }
 0xd8d   : > { %v10551_v60 = vadd.f32 %v10504_v32, %v4755_v25 }
 0xd8e   : > { %v10548_v47 = vsub.f32 %v10509_v28, %v4819_v7 }
 0xd8f   : > { %4799 = vadd.xlane.f32.xlu1 %v10551_v60 }
 0xd90   : > { %v4851_v31 = vmul.f32 %v10548_v47, %v10548_v47  ;;  %v4710_v33 = vpop.f32.mrf.mxu0 }
 0xd91   : > { %v4740_v57 = vadd.f32 %v4710_v33, %v4047_v45  ;;  %v7172_v33 = vld [vmem:[%s8744_s14 + $0x74] sm:$0xf0] }
 0xd92   : > { %4867 = vadd.xlane.f32.xlu0 %v4851_v31  ;;  %v4027_v31 = vpop.f32.mrf.mxu2  ;;  %v7038_v4 = vor.u32 %v7172_v33, %v7037_v37  ;;  %v7163_v37 = vld [vmem:[%s8744_s14 + $0x34] sm:$0xf] }
 0xd93   : > { %v4790_v6 = vpop.xlane.xlu1 %4789  ;;  %v4756_v10 = vadd.f32 %v7808_v44, %v4740_v57  ;;  %v7029_v57 = vld [vmem:[%s8744_s14 + $0x60] sm:$0xf] }
 0xd94   : > { %v4820_v12 = vmul.f32 %v4790_v6, %v11749_v29  ;;  %v7171_v6 = vld [vmem:[%s8744_s14 + $0x74] sm:$0xf]  ;;  %5255 = vmatpush.bf16.msrb.mxu1 %v7038_v4 }
 0xd95   : > { %v10567_v13 = vadd.f32 %v10504_v32, %v4756_v10  ;;  %v7034_v10 = vor.u32 %v7169_v39, %v7031_v30  ;;  %v6997_v39 = vld [vmem:[%s8744_s14 + $0x20] sm:$0xf]  ;;  %v7161_v30 = vld [vmem:[%s8744_s14 + $0x24] sm:$0xf] }
 0xd96   : > { %v10560_v62 = vsub.f32 %v10514_v43, %v4820_v12  ;;  %v7042_v12 = vor.u32 %v7171_v6, %v7039_v56  ;;  %v7007_v56 = vld [vmem:[%s8744_s14 + $0x38] sm:$0xf0] }
 0xd98   : > { %v4852_v59 = vmul.f32 %v10560_v62, %v10560_v62  ;;  %v4713_v0 = vpop.f32.mrf.mxu0  ;;  %5304 = vmatpush.bf16.msrb.mxu3 %v7042_v12 }
 0xd99   : > { %v4741_v24 = vadd.f32 %v4713_v0, %v4048_v34  ;;  %v11754_v0 = vld [vmem:[#allocation52_spill] sm:$0xff] }
 0xd9a   : > { %4869 = vadd.xlane.f32.xlu0 %v4852_v59  ;;  %v7170_v59 = vld [vmem:[%s8744_s14 + $0x64] sm:$0xf0]  ;;  %v3351_v34 = vadd.f32 %v11754_v0, %v10488_v36 }
 0xd9b   : > { %v4757_v61 = vadd.f32 %v7809_v20, %v4741_v24  ;;  %v7030_v27 = vor.u32 %v7170_v59, %v7029_v57  ;;  %v7021_v20 = vld [vmem:[%s8744_s14 + $0x50] sm:$0xf] }
 0xd9c   : > { %5305 = vmatpush.bf16.msrb.mxu3 %v7034_v10  ;;  %v6999_v10 = vld [vmem:[%s8744_s14 + $0x28] sm:$0xf0] }
 0xd9d   : > { %v10571_v46 = vadd.f32 %v10504_v32, %v4757_v61  ;;  %5256 = vmatpush.bf16.msrb.mxu1 %v7030_v27  ;;  %v7168_v61 = vld [vmem:[%s8744_s14 + $0x54] sm:$0xf0]  ;;  %v7162_v27 = vld [vmem:[%s8744_s14 + $0x24] sm:$0xf0] }
 0xd9e   : > { %v7022_v26 = vor.u32 %v7168_v61, %v7021_v20  ;;  %v11756_v20 = vld [vmem:[#allocation53_spill] sm:$0xff] }
 0xd9f   : > { %v3356_v61 = vadd.f32 %v11756_v20, %v10492_v8 }
 0xda0   : > { %v4715_v48 = vpop.f32.mrf.mxu0 }
 0xda1   : > { %v4742_v18 = vadd.f32 %v4715_v48, %v4049_v58  ;;  %v4051_v48 = vadd.f32 %v4027_v31, %v3351_v34  ;;  %v7026_v58 = vor.u32 %v7167_v1, %v7023_v41  ;;  %5257 = vmatpush.bf16.msrb.mxu1 %v7022_v26  ;;  %v7164_v31 = vld [vmem:[%s8744_s14 + $0x34] sm:$0xf0] }
 0xda2   : > { %4801 = vadd.xlane.f32.xlu0 %v10567_v13  ;;  %v7813_v1 = vld [vmem:[#allocation2 + $0x60] sm:$0xff] }
 0xda3   : > { %v4758_v54 = vadd.f32 %v7810_v16, %v4742_v18  ;;  %5306 = vmatpush.bf16.msrb.mxu3 %v7026_v58  ;;  %v7015_v16 = vld [vmem:[%s8744_s14 + $0x48] sm:$0xf0]  ;;  %v7160_v58 = vld [vmem:[%s8744_s14 + $0x14] sm:$0xf0] }
 0xda5   : > { %v10589_v51 = vadd.f32 %v10504_v32, %v4758_v54 }
 0xda8   : > { %v4718_v52 = vpop.f32.mrf.mxu0 }
 0xda9   : > { %v4743_v15 = vadd.f32 %v4718_v52, %v4050_v35  ;;  %v11755_v52 = vld [vmem:[#allocation48_spill] sm:$0xff] }
 0xdaa   : > { %4803 = vadd.xlane.f32.xlu0 %v10571_v46  ;;  %v4792_v17 = vpop.xlane.xlu0 %4791  ;;  %v3354_v35 = vadd.f32 %v11755_v52, %v10490_v53  ;;  %v7010_v53 = vor.u32 %v7163_v37, %v7007_v56  ;;  %v6981_v52 = vld [vmem:[%s8744_s14] sm:$0xf] }
 0xdab   : > { %v4821_v19 = vmul.f32 %v4792_v17, %v11749_v29  ;;  %v4759_v25 = vadd.f32 %v7811_v23, %v4743_v15  ;;  %v7812_v15 = vld [vmem:[#allocation2 + $0x38] sm:$0xff]  ;;  %v11757_v37 = vld [vmem:[#allocation55_spill] sm:$0xff] }
 0xdad   : > { %v10578_v42 = vsub.f32 %v10523_v40, %v4821_v19  ;;  %v10595_v7 = vadd.f32 %v10504_v32, %v4759_v25  ;;  %v4030_v19 = vpop.f32.mrf.mxu2  ;;  %v7005_v25 = vld [vmem:[%s8744_s14 + $0x30] sm:$0xf] }
 0xdae   : > { %v4052_v33 = vadd.f32 %v4030_v19, %v3354_v35  ;;  %v7006_v4 = vor.u32 %v7164_v31, %v7005_v25  ;;  %v6989_v19 = vld [vmem:[%s8744_s14 + $0x10] sm:$0xf]  ;;  %v7158_v35 = vld [vmem:[%s8744_s14 + $0x4] sm:$0xf0] }
 0xdaf   : > { %v4853_v38 = vmul.f32 %v10578_v42, %v10578_v42  ;;  %v6990_v8 = vor.u32 %v7160_v58, %v6989_v19 }
 0xdb0   : > { %v4720_v45 = vpop.f32.mrf.mxu0 }
 0xdb1   : > { %4871 = vadd.xlane.f32.xlu1 %v4853_v38  ;;  %v4744_v36 = vadd.f32 %v4720_v45, %v4051_v48 }
 0xdb2   : > { %v4794_v49 = vpop.xlane.xlu2 %4793 }
 0xdb3   : > { %v4822_v9 = vmul.f32 %v4794_v49, %v11749_v29  ;;  %v7166_v49 = vld [vmem:[%s8744_s14 + $0x44] sm:$0xf0] }
 0xdb4   : > { %v7014_v11 = vor.u32 %v7166_v49, %v7013_v2  ;;  %v6991_v49 = vld [vmem:[%s8744_s14 + $0x18] sm:$0xf0] }
 0xdb5   : > { %v10586_v5 = vsub.f32 %v10527_v50, %v4822_v9  ;;  %v7018_v9 = vor.u32 %v7165_v22, %v7015_v16  ;;  %v4032_v59 = vpop.f32.mrf.mxu2 }
 0xdb6   : > { %5258 = vmatpush.bf16.msrb.mxu1 %v7014_v11 }
 0xdb7   : > { %v4854_v55 = vmul.f32 %v10586_v5, %v10586_v5  ;;  %5307 = vmatpush.bf16.msrb.mxu3 %v7018_v9 }
 0xdb9   : > { %4805 = vadd.xlane.f32.xlu1 %v10589_v51  ;;  %4873 = vadd.xlane.f32.xlu2 %v4854_v55  ;;  %v4760_v55 = vadd.f32 %v7812_v15, %v4744_v36  ;;  %v7159_v36 = vld [vmem:[%s8744_s14 + $0x14] sm:$0xf]  ;;  %v7157_v15 = vld [vmem:[%s8744_s14 + $0x4] sm:$0xf] }
 0xdba   : > { %5259 = vmatpush.bf16.msrb.mxu1 %v7006_v4  ;;  %v6994_v22 = vor.u32 %v7159_v36, %v6991_v49  ;;  %v7814_v4 = vld [vmem:[#allocation2 + $0x70] sm:$0xff] }
 0xdbb   : > { %v10635_v57 = vadd.f32 %v10504_v32, %v4760_v55  ;;  %5308 = vmatpush.bf16.msrb.mxu3 %v7010_v53  ;;  %v6982_v55 = vor.u32 %v7158_v35, %v6981_v52 }
 0xdbd   : > { %v4035_v25 = vpop.f32.mrf.mxu2 }
 0xdc1   : > { %4807 = vadd.xlane.f32.xlu1 %v10595_v7 }
 0xdc6   : > { %v4723_v38 = vpop.f32.mrf.mxu0 }
 0xdc7   : > { %v4745_v12 = vadd.f32 %v4723_v38, %v4052_v33  ;;  %v3359_v33 = vadd.f32 %v11757_v37, %v10494_v14 }
 0xdc9   : > { %v4761_v48 = vadd.f32 %v7813_v1, %v4745_v12 }
 0xdcb   : > { %v10656_v9 = vadd.f32 %v10504_v32, %v4761_v48 }
 0xdce   : > { %v4725_v0 = vpop.f32.mrf.mxu0 }
 0xdd6   : > { %v4728_v53 = vpop.f32.mrf.mxu0 }
 0xdf2   : > { %v4796_v44 = vpop.xlane.xlu0 %4795 }
 0xdf3   : > { %v4823_v24 = vmul.f32 %v4796_v44, %v11749_v29  ;;  %v6998_v44 = vor.u32 %v7162_v27, %v6997_v39 }
 0xdf5   : > { %v10613_v17 = vsub.f32 %v10537_v63, %v4823_v24  ;;  %v7002_v24 = vor.u32 %v7161_v30, %v6999_v10  ;;  %5260 = vmatpush.bf16.msrb.mxu1 %v6998_v44 }
 0xdf7   : > { %v4855_v18 = vmul.f32 %v10613_v17, %v10613_v17  ;;  %5309 = vmatpush.bf16.msrb.mxu3 %v7002_v24 }
 0xdf9   : > { %4875 = vadd.xlane.f32.xlu2 %v4855_v18  ;;  %v4053_v18 = vadd.f32 %v4032_v59, %v3356_v61  ;;  %5261 = vmatpush.bf16.msrb.mxu1 %v6990_v8 }
 0xdfa   : > { %v4798_v54 = vpop.xlane.xlu0 %4797 }
 0xdfb   : > { %v4824_v23 = vmul.f32 %v4798_v54, %v11749_v29  ;;  %v4746_v11 = vadd.f32 %v4725_v0, %v4053_v18  ;;  %5310 = vmatpush.bf16.msrb.mxu3 %v6994_v22  ;;  %v7815_v0 = vld [vmem:[#allocation2 + $0x78] sm:$0xff]  ;;  %v4037_v22 = vpop.f32.mrf.mxu2 }
 0xdfd   : > { %v10629_v6 = vsub.f32 %v10543_v21, %v4824_v23  ;;  %v6983_v23 = vld [vmem:[%s8744_s14 + $0x8] sm:$0xf0]  ;;  %v4762_v56 = vadd.f32 %v7814_v4, %v4746_v11  ;;  %5262 = vmatpush.bf16.msrb.mxu1 %v6982_v55  ;;  %v10698_v4 = vld [vmem:[%s11760_s21] ss:$0 sm:$0xff] }
 0xdfe   : > { %v6986_v31 = vor.u32 %v7157_v15, %v6983_v23  ;;  %v4730_v15 = vpop.f32.mrf.mxu0 }
 0xdff   : > { %v4856_v45 = vmul.f32 %v10629_v6, %v10629_v6  ;;  %v10667_v44 = vadd.f32 %v10504_v32, %v4762_v56 }
 0xe00   : > { %5311 = vmatpush.bf16.msrb.mxu3 %v6986_v31 }
 0xe01   : > { %4877 = vadd.xlane.f32.xlu0 %v4856_v45  ;;  %4809 = vadd.xlane.f32.xlu2 %v10635_v57  ;;  %v4054_v45 = vadd.f32 %v4035_v25, %v3359_v33 }
 0xe02   : > { %v4800_v34 = vpop.xlane.xlu1 %4799 }
 0xe03   : > { %v4825_v26 = vmul.f32 %v4800_v34, %v11749_v29  ;;  %v4747_v27 = vadd.f32 %v4728_v53, %v4054_v45 }
 0xe05   : > { %v4868_v41 = vpop.xlane.xlu0 %4867  ;;  %v10649_v38 = vsub.f32 %v10551_v60, %v4825_v26  ;;  %v4763_v34 = vadd.f32 %v7815_v0, %v4747_v27 }
 0xe06   : > { %v4899_v2 = vmul.f32 %v4868_v41, %v11749_v29 }
 0xe07   : > { %v4857_v54 = vmul.f32 %v10649_v38, %v10649_v38  ;;  %v10675_v41 = vadd.f32 %v10504_v32, %v4763_v34 }
 0xe08   : > { %v4915_v16 = vadd.f32 1e-06, %v4899_v2 }
 0xe09   : > { %4879 = vadd.xlane.f32.xlu0 %v4857_v54  ;;  %4811 = vadd.xlane.f32.xlu2 %v10656_v9  ;;  %v11758_v54 = vld [vmem:[#allocation59_spill] sm:$0xff] }
 0xe0a   : > { %7705 = vrsqrt.f32 %v4915_v16  ;;  %vm4937_vm4 = vweird.f32 %v4915_v16  ;;  %v3361_v52 = vadd.f32 %v11758_v54, %v10497_v3 }
 0xe0c   : > { %v4055_v25 = vadd.f32 %v4037_v22, %v3361_v52 }
 0xe0d   : > { %v4870_v12 = vpop.xlane.xlu0 %4869 }
 0xe0e   : > { %v4900_v59 = vmul.f32 %v4870_v12, %v11749_v29  ;;  %v4748_v37 = vadd.f32 %v4730_v15, %v4055_v25 }
 0xe10   : > { %v7706_v39 = vpop.eup %7705  ;;  %v4916_v30 = vadd.f32 1e-06, %v4900_v59  ;;  %v7816_v59 = vld [vmem:[#allocation2 + $0x28] sm:$0xff] }
 0xe11   : > { %v4932_v10 = vmul.f32 %v7706_v39, %v4915_v16  ;;  %4813 = vadd.xlane.f32.xlu0 %v10667_v44  ;;  %vm4938_vm3 = vweird.f32 %v7706_v39  ;;  %v10688_v16 = vld [vmem:[%s967_s16] ss:$0 sm:$0xff] }
 0xe12   : > { %7707 = vrsqrt.f32 %v4916_v30  ;;  %vm4939_vm5 = vmor %vm4937_vm4, %vm4938_vm3  ;;  %vm4947_vm7 = vweird.f32 %v4916_v30 }
 0xe13   : > { %v4933_v14 = vmul.f32 %v7706_v39, %v4932_v10 }
 0xe15   : > { %v4934_v24 = vmul.f32 0.5, %v4933_v14  ;;  %v4802_v20 = vpop.xlane.xlu0 %4801 }
 0xe16   : > { %v4826_v61 = vmul.f32 %v4802_v20, %v11749_v29 }
 0xe17   : > { %v4935_v1 = vsub.f32 1.5, %v4934_v24 }
 0xe18   : > { %v7708_v48 = vpop.eup %7707  ;;  %v10672_v26 = vsub.f32 %v10567_v13, %v4826_v61 }
 0xe19   : > { %v4936_v19 = vmul.f32 %v7706_v39, %v4935_v1  ;;  %v4942_v58 = vmul.f32 %v7708_v48, %v4916_v30  ;;  %4815 = vadd.xlane.f32.xlu0 %v10675_v41  ;;  %vm4948_vm6 = vweird.f32 %v7708_v48 }
 0xe1a   : > { %v4858_v36 = vmul.f32 %v10672_v26, %v10672_v26  ;;  %vm4949_vm8 = vmor %vm4947_vm7, %vm4948_vm6 }
 0xe1b   : > { %v4943_v18 = vmul.f32 %v7708_v48, %v4942_v58  ;;  %v4940_v2 = vsel %vm4939_vm5, %v7706_v39, %v4936_v19  ;;  %v4764_v39 = vadd.f32 %v7816_v59, %v4748_v37 }
 0xe1c   : > { %4881 = vadd.xlane.f32.xlu1 %v4858_v36  ;;  %v5091_v55 = vmul.f32 %v4940_v2, %v10548_v47 }
 0xe1d   : > { %v4944_v8 = vmul.f32 0.5, %v4943_v18  ;;  %v4804_v49 = vpop.xlane.xlu0 %4803  ;;  %v10707_v0 = vadd.f32 %v10504_v32, %v4764_v39 }
 0xe1e   : > { %v4827_v11 = vmul.f32 %v4804_v49, %v11749_v29  ;;  %v5110_v56 = vmul.f32 %v10688_v16, %v5091_v55 }
 0xe1f   : > { %v4945_v35 = vsub.f32 1.5, %v4944_v8 }
 0xe20   : > { %v10692_v23 = vsub.f32 %v10571_v46, %v4827_v11  ;;  %v5129_v27 = vadd.f32 %v10698_v4, %v5110_v56 }
 0xe21   : > { %v4946_v31 = vmul.f32 %v7708_v48, %v4945_v35 }
 0xe22   : > { %v4859_v3 = vmul.f32 %v10692_v23, %v10692_v23 }
 0xe23   : > { %v4950_v33 = vsel %vm4949_vm8, %v7708_v48, %v4946_v31 }
 0xe24   : > { %v5092_v53 = vmul.f32 %v4950_v33, %v10560_v62  ;;  %4883 = vadd.xlane.f32.xlu1 %v4859_v3  ;;  %v4872_v47 = vpop.xlane.xlu1 %4871 }
 0xe25   : > { %v4901_v45 = vmul.f32 %v4872_v47, %v11749_v29 }
 0xe26   : > { %v5111_v12 = vmul.f32 %v10688_v16, %v5092_v53 }
 0xe27   : > { %v4917_v10 = vadd.f32 1e-06, %v4901_v45 }
 0xe28   : > { %v5130_v30 = vadd.f32 %v10698_v4, %v5111_v12 }
 0xe29   : > { %7709 = vrsqrt.f32 %v4917_v10  ;;  %vm4957_vm10 = vweird.f32 %v4917_v10 }
 0xe2a   : > { %v5145_v14 = vpack.c.bf16 %v5130_v30, %v5129_v27 }
 0xe2c   : > { %5263 = vmatmul.bf16.vlgmr.msrb.gmra.mxu1 %v5145_v14  ;;  %5312 = vmatmul.bf16.vlgmr.msrb.gmra.mxu3 %v5145_v14  ;;  %v4806_v62 = vpop.xlane.xlu1 %4805  ;;  %v4874_v34 = vpop.xlane.xlu2 %4873 }
 0xe2d   : > { %4817 = vadd.xlane.f32.xlu1 %v10707_v0  ;;  %v4828_v24 = vmul.f32 %v4806_v62, %v11749_v29  ;;  %v4902_v20 = vmul.f32 %v4874_v34, %v11749_v29 }
 0xe2f   : > { %v7710_v61 = vpop.eup %7709  ;;  %v10713_v1 = vsub.f32 %v10589_v51, %v4828_v24  ;;  %v4918_v48 = vadd.f32 1e-06, %v4902_v20 }
 0xe30   : > { %v4952_v19 = vmul.f32 %v7710_v61, %v4917_v10  ;;  %vm4958_vm9 = vweird.f32 %v7710_v61 }
 0xe31   : > { %7711 = vrsqrt.f32 %v4918_v48  ;;  %v4860_v32 = vmul.f32 %v10713_v1, %v10713_v1  ;;  %vm4959_vm11 = vmor %vm4957_vm10, %vm4958_vm9  ;;  %vm4967_vm13 = vweird.f32 %v4918_v48 }
 0xe32   : > { %v4953_v58 = vmul.f32 %v7710_v61, %v4952_v19 }
 0xe33   : > { %4885 = vadd.xlane.f32.xlu2 %v4860_v32 }
 0xe34   : > { %v4954_v36 = vmul.f32 0.5, %v4953_v58  ;;  %v4808_v18 = vpop.xlane.xlu1 %4807 }
 0xe35   : > { %v4829_v2 = vmul.f32 %v4808_v18, %v11749_v29 }
 0xe36   : > { %v4955_v8 = vsub.f32 1.5, %v4954_v36 }
 0xe37   : > { %v7712_v49 = vpop.eup %7711  ;;  %v10719_v22 = vsub.f32 %v10595_v7, %v4829_v2 }
 0xe38   : > { %v4956_v11 = vmul.f32 %v7710_v61, %v4955_v8  ;;  %v4962_v54 = vmul.f32 %v7712_v49, %v4918_v48  ;;  %vm4968_vm12 = vweird.f32 %v7712_v49 }
 0xe39   : > { %v4861_v52 = vmul.f32 %v10719_v22, %v10719_v22  ;;  %vm4969_vm14 = vmor %vm4967_vm13, %vm4968_vm12 }
 0xe3a   : > { %v4963_v35 = vmul.f32 %v7712_v49, %v4962_v54  ;;  %v4960_v15 = vsel %vm4959_vm11, %v7710_v61, %v4956_v11 }
 0xe3b   : > { %4887 = vadd.xlane.f32.xlu2 %v4861_v52  ;;  %v5093_v31 = vmul.f32 %v4960_v15, %v10578_v42 }
 0xe3c   : > { %v4964_v55 = vmul.f32 0.5, %v4963_v35 }
 0xe3d   : > { %v5112_v56 = vmul.f32 %v10688_v16, %v5093_v31 }
 0xe3e   : > { %v4965_v25 = vsub.f32 1.5, %v4964_v55 }
 0xe3f   : > { %v5131_v47 = vadd.f32 %v10698_v4, %v5112_v56 }
 0xe40   : > { %v4966_v3 = vmul.f32 %v7712_v49, %v4965_v25 }
 0xe42   : > { %v4970_v37 = vsel %vm4969_vm14, %v7712_v49, %v4966_v3 }
 0xe43   : > { %v5094_v33 = vmul.f32 %v4970_v37, %v10586_v5 }
 0xe45   : > { %v5113_v53 = vmul.f32 %v10688_v16, %v5094_v33 }
 0xe47   : > { %v5132_v12 = vadd.f32 %v10698_v4, %v5113_v53 }
 0xe49   : > { %v5146_v45 = vpack.c.bf16 %v5132_v12, %v5131_v47 }
 0xe4b   : > { %5268 = vmatmul.bf16.gmra.mxu1 %v5146_v45  ;;  %5317 = vmatmul.bf16.gmra.mxu3 %v5146_v45 }
 0xe6c   : > { %v4876_v59 = vpop.xlane.xlu2 %4875 }
 0xe6d   : > { %v4903_v42 = vmul.f32 %v4876_v59, %v11749_v29 }
 0xe6f   : > { %v4919_v39 = vadd.f32 1e-06, %v4903_v42 }
 0xe71   : > { %7713 = vrsqrt.f32 %v4919_v39  ;;  %vm4977_vm0 = vweird.f32 %v4919_v39 }
 0xe74   : > { %v4878_v27 = vpop.xlane.xlu0 %4877  ;;  %v4810_v30 = vpop.xlane.xlu2 %4809 }
 0xe75   : > { %v4904_v5 = vmul.f32 %v4878_v27, %v11749_v29  ;;  %v4830_v10 = vmul.f32 %v4810_v30, %v11749_v29 }
 0xe77   : > { %v7714_v14 = vpop.eup %7713  ;;  %v4920_v62 = vadd.f32 1e-06, %v4904_v5  ;;  %v10733_v34 = vsub.f32 %v10635_v57, %v4830_v10 }
 0xe78   : > { %v4972_v24 = vmul.f32 %v7714_v14, %v4919_v39  ;;  %vm4978_vm15 = vweird.f32 %v7714_v14  ;;  %v7180_v39 = vld [vmem:[%s8773_s27 + $0x38] sm:$0xff] }
 0xe79   : > { %7715 = vrsqrt.f32 %v4920_v62  ;;  %v4862_v20 = vmul.f32 %v10733_v34, %v10733_v34  ;;  %vm4979_vm1 = vmor %vm4977_vm0, %vm4978_vm15  ;;  %vm4987_vm3 = vweird.f32 %v4920_v62  ;;  %5789 = vmatpush.bf16.msrb.mxu2 %v7180_v39 }
 0xe7a   : > { %v4973_v61 = vmul.f32 %v7714_v14, %v4972_v24 }
 0xe7b   : > { %4889 = vadd.xlane.f32.xlu0 %v4862_v20  ;;  %v7179_v20 = vld [vmem:[%s8773_s27 + $0x30] sm:$0xff] }
 0xe7c   : > { %v4974_v48 = vmul.f32 0.5, %v4973_v61  ;;  %v4880_v19 = vpop.xlane.xlu0 %4879  ;;  %v4812_v32 = vpop.xlane.xlu2 %4811 }
 0xe7d   : > { %v4905_v58 = vmul.f32 %v4880_v19, %v11749_v29  ;;  %v4831_v36 = vmul.f32 %v4812_v32, %v11749_v29  ;;  %5790 = vmatpush.bf16.msrb.mxu2 %v7179_v20 }
 0xe7e   : > { %v4975_v18 = vsub.f32 1.5, %v4974_v48 }
 0xe7f   : > { %v7716_v2 = vpop.eup %7715  ;;  %v10739_v8 = vadd.f32 1e-06, %v4905_v58  ;;  %v10742_v49 = vsub.f32 %v10656_v9, %v4831_v36  ;;  %v7188_v58 = vld [vmem:[%s8773_s27 + $0x78] sm:$0xff]  ;;  %v7178_v36 = vld [vmem:[%s8773_s27 + $0x28] sm:$0xff] }
 0xe80   : > { %v4976_v11 = vmul.f32 %v7714_v14, %v4975_v18  ;;  %v4982_v54 = vmul.f32 %v7716_v2, %v4920_v62  ;;  %vm4988_vm2 = vweird.f32 %v7716_v2  ;;  %5838 = vmatpush.bf16.msra.mxu0 %v7188_v58 }
 0xe81   : > { %7717 = vrsqrt.f32 %v10739_v8  ;;  %v4863_v52 = vmul.f32 %v10742_v49, %v10742_v49  ;;  %vm4989_vm4 = vmor %vm4987_vm3, %vm4988_vm2  ;;  %5791 = vmatpush.bf16.msrb.mxu2 %v7178_v36  ;;  %vm4997_vm6 = vweird.f32 %v10739_v8 }
 0xe82   : > { %v4983_v35 = vmul.f32 %v7716_v2, %v4982_v54  ;;  %v4980_v15 = vsel %vm4979_vm1, %v7714_v14, %v4976_v11  ;;  %v7187_v11 = vld [vmem:[%s8773_s27 + $0x70] sm:$0xff] }
 0xe83   : > { %4891 = vadd.xlane.f32.xlu1 %v4863_v52  ;;  %v5095_v33 = vmul.f32 %v4980_v15, %v10613_v17  ;;  %v7177_v52 = vld [vmem:[%s8773_s27 + $0x20] sm:$0xff] }
 0xe84   : > { %v4984_v55 = vmul.f32 0.5, %v4983_v35  ;;  %v4814_v25 = vpop.xlane.xlu0 %4813  ;;  %5839 = vmatpush.bf16.msra.mxu0 %v7187_v11 }
 0xe85   : > { %v4832_v31 = vmul.f32 %v4814_v25, %v11749_v29  ;;  %v5114_v42 = vmul.f32 %v10688_v16, %v5095_v33  ;;  %5792 = vmatpush.bf16.msrb.mxu2 %v7177_v52  ;;  %v7176_v33 = vld [vmem:[%s8773_s27 + $0x18] sm:$0xff] }
 0xe86   : > { %v4985_v3 = vsub.f32 1.5, %v4984_v55 }
 0xe87   : > { %v10748_v37 = vpop.eup %7717  ;;  %v10752_v56 = vsub.f32 %v10667_v44, %v4832_v31  ;;  %v5133_v62 = vadd.f32 %v10698_v4, %v5114_v42  ;;  %v7186_v31 = vld [vmem:[%s8773_s27 + $0x68] sm:$0xff] }
 0xe88   : > { %v4986_v53 = vmul.f32 %v7716_v2, %v4985_v3  ;;  %v4992_v45 = vmul.f32 %v10748_v37, %v10739_v8  ;;  %vm4998_vm5 = vweird.f32 %v10748_v37  ;;  %5840 = vmatpush.bf16.msra.mxu0 %v7186_v31 }
 0xe89   : > { %v4864_v47 = vmul.f32 %v10752_v56, %v10752_v56  ;;  %vm4999_vm7 = vmor %vm4997_vm6, %vm4998_vm5  ;;  %5793 = vmatpush.bf16.msrb.mxu2 %v7176_v33 }
 0xe8a   : > { %v4990_v12 = vsel %vm4989_vm4, %v7716_v2, %v4986_v53  ;;  %v4993_v5 = vmul.f32 %v10748_v37, %v4992_v45 }
 0xe8b   : > { %v5096_v59 = vmul.f32 %v4990_v12, %v10629_v6  ;;  %4893 = vadd.xlane.f32.xlu2 %v4864_v47  ;;  %v7185_v12 = vld [vmem:[%s8773_s27 + $0x60] sm:$0xff] }
 0xe8c   : > { %v4816_v17 = vpop.xlane.xlu0 %4815  ;;  %v4994_v32 = vmul.f32 0.5, %v4993_v5  ;;  %5841 = vmatpush.bf16.msra.mxu0 %v7185_v12  ;;  %v5169_v5 = vld [vmem:[%s8771_s28] sm:$0x3] }
 0xe8d   : > { %v4833_v27 = vmul.f32 %v4816_v17, %v11749_v29  ;;  %v5115_v30 = vmul.f32 %v10688_v16, %v5096_v59  ;;  %v7175_v17 = vld [vmem:[%s8773_s27 + $0x10] sm:$0xff]  ;;  %v10804_v20 = vperm.slane %v5169_v5, 0  ;;  %v10819_v31 = vperm.slane %v5169_v5, 1 }
 0xe8e   : > { %v4995_v18 = vsub.f32 1.5, %v4994_v32  ;;  %5794 = vmatpush.bf16.msrb.mxu2 %v7175_v17  ;;  %v7183_v32 = vld [vmem:[%s8773_s27 + $0x50] sm:$0xff] }
 0xe8f   : > { %v4882_v10 = vpop.xlane.xlu1 %4881  ;;  %v10765_v14 = vsub.f32 %v10675_v41, %v4833_v27  ;;  %v5134_v24 = vadd.f32 %v10698_v4, %v5115_v30 }
 0xe90   : > { %v4906_v6 = vmul.f32 %v4882_v10, %v11749_v29  ;;  %v4996_v55 = vmul.f32 %v10748_v37, %v4995_v18  ;;  %v7184_v10 = vld [vmem:[%s8773_s27 + $0x58] sm:$0xff] }
 0xe91   : > { %v5147_v48 = vpack.c.bf16 %v5134_v24, %v5133_v62  ;;  %v4865_v19 = vmul.f32 %v10765_v14, %v10765_v14  ;;  %5842 = vmatpush.bf16.msra.mxu0 %v7184_v10 }
 0xe92   : > { %v4922_v61 = vadd.f32 1e-06, %v4906_v6  ;;  %v5000_v53 = vsel %vm4999_vm7, %v10748_v37, %v4996_v55  ;;  %v7182_v55 = vld [vmem:[%s8773_s27 + $0x48] sm:$0xff] }
 0xe93   : > { %5273 = vmatmul.bf16.gmra.mxu1 %v5147_v48  ;;  %5322 = vmatmul.bf16.gmra.mxu3 %v5147_v48  ;;  %v5097_v39 = vmul.f32 %v5000_v53, %v10649_v38  ;;  %v7174_v38 = vld [vmem:[%s8773_s27 + $0x8] sm:$0xff]  ;;  %v7181_v53 = vld [vmem:[%s8773_s27 + $0x40] sm:$0xff] }
 0xe94   : > { %7719 = vrsqrt.f32 %v4922_v61  ;;  %4895 = vadd.xlane.f32.xlu0 %v4865_v19  ;;  %vm5007_vm9 = vweird.f32 %v4922_v61  ;;  %5795 = vmatpush.bf16.msrb.mxu2 %v7174_v38 }
 0xe95   : > { %v5116_v19 = vmul.f32 %v10688_v16, %v5097_v39  ;;  %5843 = vmatpush.bf16.msra.mxu0 %v7183_v32 }
 0xe97   : > { %v4884_v2 = vpop.xlane.xlu1 %4883 }
 0xe98   : > { %v4907_v54 = vmul.f32 %v4884_v2, %v11749_v29  ;;  %v7173_v2 = vld [vmem:[%s8773_s27] sm:$0xff] }
 0xe99   : > { %5796 = vmatpush.bf16.msrb.mxu2 %v7173_v2  ;;  %5844 = vmatpush.bf16.msra.mxu0 %v7182_v55 }
 0xe9a   : > { %v7720_v35 = vpop.eup %7719  ;;  %v10778_v15 = vadd.f32 1e-06, %v4907_v54 }
 0xe9b   : > { %v5002_v25 = vmul.f32 %v7720_v35, %v4922_v61  ;;  %vm5008_vm8 = vweird.f32 %v7720_v35 }
 0xe9c   : > { %7721 = vrsqrt.f32 %v10778_v15  ;;  %vm5009_vm10 = vmor %vm5007_vm9, %vm5008_vm8  ;;  %vm5017_vm12 = vweird.f32 %v10778_v15 }
 0xe9d   : > { %v5003_v3 = vmul.f32 %v7720_v35, %v5002_v25  ;;  %5845 = vmatpush.bf16.msra.mxu0 %v7181_v53 }
 0xe9f   : > { %v5004_v47 = vmul.f32 0.5, %v5003_v3 }
 0xea0   : > { %v4818_v45 = vpop.xlane.xlu1 %4817 }
 0xea1   : > { %v5005_v59 = vsub.f32 1.5, %v5004_v47  ;;  %v4834_v42 = vmul.f32 %v4818_v45, %v11749_v29 }
 0xea2   : > { %v10790_v8 = vpop.eup %7721 }
 0xea3   : > { %v5006_v27 = vmul.f32 %v7720_v35, %v5005_v59  ;;  %v5012_v37 = vmul.f32 %v10790_v8, %v10778_v15  ;;  %v10796_v30 = vsub.f32 %v10707_v0, %v4834_v42  ;;  %vm5018_vm11 = vweird.f32 %v10790_v8 }
 0xea4   : > { %vm5019_vm13 = vmor %vm5017_vm12, %vm5018_vm11 }
 0xea5   : > { %v5010_v6 = vsel %vm5009_vm10, %v7720_v35, %v5006_v27  ;;  %v4866_v62 = vmul.f32 %v10796_v30, %v10796_v30  ;;  %v5013_v61 = vmul.f32 %v10790_v8, %v5012_v37  ;;  %v5135_v35 = vadd.f32 %v10698_v4, %v5116_v19 }
 0xea6   : > { %v5098_v24 = vmul.f32 %v5010_v6, %v10672_v26  ;;  %v4886_v48 = vpop.xlane.xlu2 %4885 }
 0xea7   : > { %4897 = vadd.xlane.f32.xlu1 %v4866_v62  ;;  %v4908_v58 = vmul.f32 %v4886_v48, %v11749_v29  ;;  %v5014_v52 = vmul.f32 0.5, %v5013_v61 }
 0xea8   : > { %v5117_v36 = vmul.f32 %v10688_v16, %v5098_v24 }
 0xea9   : > { %v5264_v18 = vpop.f32.mrf.mxu1  ;;  %v4924_v26 = vadd.f32 1e-06, %v4908_v58  ;;  %v5015_v47 = vsub.f32 1.5, %v5014_v52 }
 0xeaa   : > { %v10813_v11 = vadd.f32 %v5264_v18, %v10804_v20  ;;  %v5136_v54 = vadd.f32 %v10698_v4, %v5117_v36 }
 0xeab   : > { %7723 = vrsqrt.f32 %v4924_v26  ;;  %v5016_v27 = vmul.f32 %v10790_v8, %v5015_v47  ;;  %vm5027_vm15 = vweird.f32 %v4924_v26 }
 0xeac   : > { %v5385_v25 = vmul.f32 0.044715, %v10813_v11  ;;  %v5148_v3 = vpack.c.bf16 %v5136_v54, %v5135_v35 }
 0xead   : > { %v5020_v61 = vsel %vm5019_vm13, %v10790_v8, %v5016_v27 }
 0xeae   : > { %v5417_v33 = vmul.f32 %v5385_v25, %v10813_v11  ;;  %5278 = vmatmul.bf16.gmra.mxu1 %v5148_v3  ;;  %5327 = vmatmul.bf16.gmra.mxu3 %v5148_v3  ;;  %v5099_v15 = vmul.f32 %v5020_v61, %v10692_v23 }
 0xeaf   : > { %v5313_v12 = vpop.f32.mrf.mxu3 }
 0xeb0   : > { %v5449_v45 = vmul.f32 %v5417_v33, %v10813_v11  ;;  %v10825_v59 = vadd.f32 %v5313_v12, %v10819_v31  ;;  %v5118_v12 = vmul.f32 %v10688_v16, %v5099_v15 }
 0xeb1   : > { %v5266_v42 = vpop.f32.mrf.mxu1  ;;  %v7724_v17 = vpop.eup %7723 }
 0xeb2   : > { %v5386_v39 = vmul.f32 0.044715, %v10825_v59  ;;  %v5022_v37 = vmul.f32 %v7724_v17, %v4924_v26  ;;  %v5481_v5 = vadd.f32 %v5449_v45, %v10813_v11  ;;  %v5267_v10 = vadd.f32 %v5266_v42, %v10804_v20 }
 0xeb3   : > { %vm5028_vm14 = vweird.f32 %v7724_v17  ;;  %v5137_v26 = vadd.f32 %v10698_v4, %v5118_v12 }
 0xeb4   : > { %v5418_v6 = vmul.f32 %v5386_v39, %v10825_v59  ;;  %v5023_v62 = vmul.f32 %v7724_v17, %v5022_v37  ;;  %v5387_v38 = vmul.f32 0.044715, %v5267_v10  ;;  %v5513_v19 = vmul.f32 0.7978846, %v5481_v5  ;;  %vm5029_vm0 = vmor %vm5027_vm15, %vm5028_vm14 }
 0xeb6   : > { %v5450_v24 = vmul.f32 %v5418_v6, %v10825_v59  ;;  %v5024_v48 = vmul.f32 0.5, %v5023_v62  ;;  %v5419_v32 = vmul.f32 %v5387_v38, %v5267_v10  ;;  %7725 = vtanh.f32 %v5513_v19 }
 0xeb7   : > { %v5315_v58 = vpop.f32.mrf.mxu3  ;;  %v5355_v62 = vmul.f32 0.5, %v5267_v10 }
 0xeb8   : > { %v5482_v36 = vadd.f32 %v5450_v24, %v10825_v59  ;;  %v5316_v18 = vadd.f32 %v5315_v58, %v10819_v31  ;;  %v5025_v2 = vsub.f32 1.5, %v5024_v48  ;;  %v5451_v54 = vmul.f32 %v5419_v32, %v5267_v10 }
 0xeba   : > { %v5388_v52 = vmul.f32 0.044715, %v5316_v18  ;;  %v5026_v35 = vmul.f32 %v7724_v17, %v5025_v2  ;;  %v5483_v55 = vadd.f32 %v5451_v54, %v5267_v10  ;;  %v5514_v8 = vmul.f32 0.7978846, %v5482_v36 }
 0xebb   : > { %v5354_v2 = vmul.f32 0.5, %v10825_v59  ;;  %v5356_v54 = vmul.f32 0.5, %v5316_v18 }
 0xebc   : > { %v5420_v25 = vmul.f32 %v5388_v52, %v5316_v18  ;;  %v5030_v3 = vsel %vm5029_vm0, %v7724_v17, %v5026_v35  ;;  %v5515_v33 = vmul.f32 0.7978846, %v5483_v55  ;;  %v7726_v42 = vpop.eup %7725 }
 0xebd   : > { %v5100_v53 = vmul.f32 %v5030_v3, %v10713_v1  ;;  %v5577_v37 = vadd.f32 1.0, %v7726_v42  ;;  %v5353_v1 = vmul.f32 0.5, %v10813_v11 }
 0xebe   : > { %v5452_v47 = vmul.f32 %v5420_v25, %v5316_v18  ;;  %7727 = vtanh.f32 %v5515_v33 }
 0xebf   : > { %7729 = vtanh.f32 %v5514_v8  ;;  %v5119_v23 = vmul.f32 %v10688_v16, %v5100_v53  ;;  %v5609_v24 = vmul.f32 %v5577_v37, %v5353_v1 }
 0xec0   : > { %v5484_v45 = vadd.f32 %v5452_v47, %v5316_v18 }
 0xec1   : > { %v5138_v27 = vadd.f32 %v10698_v4, %v5119_v23 }
 0xec2   : > { %v5516_v39 = vmul.f32 0.7978846, %v5484_v45 }
 0xec3   : > { %v5149_v17 = vpack.c.bf16 %v5138_v27, %v5137_v26 }
 0xec4   : > { %7731 = vtanh.f32 %v5516_v39  ;;  %v7728_v5 = vpop.eup %7727  ;;  %v4888_v39 = vpop.xlane.xlu2 %4887 }
 0xec5   : > { %v7730_v6 = vpop.eup %7729  ;;  %v5579_v38 = vadd.f32 1.0, %v7728_v5  ;;  %5283 = vmatmul.bf16.gmra.mxu1 %v5149_v17  ;;  %5332 = vmatmul.bf16.gmra.mxu3 %v5149_v17  ;;  %v4909_v5 = vmul.f32 %v4888_v39, %v11749_v29 }
 0xec6   : > { %v5578_v48 = vadd.f32 1.0, %v7730_v6 }
 0xec7   : > { %v5611_v61 = vmul.f32 %v5579_v38, %v5355_v62 }
 0xec8   : > { %v5269_v19 = vpop.f32.mrf.mxu1  ;;  %v5610_v35 = vmul.f32 %v5578_v48, %v5354_v2 }
 0xec9   : > { %v5270_v58 = vadd.f32 %v5269_v19, %v10804_v20  ;;  %v5641_v36 = vpack.c.bf16 %v5611_v61, %v5609_v24  ;;  %v4925_v61 = vadd.f32 1e-06, %v4909_v5 }
 0xeca   : > { %v7732_v32 = vpop.eup %7731 }
 0xecb   : > { %v5580_v15 = vadd.f32 1.0, %v7732_v32  ;;  %v5389_v52 = vmul.f32 0.044715, %v5270_v58  ;;  %5797 = vmatmul.bf16.vlgmr.msrb.gmra.mxu2 %v5641_v36  ;;  %vm5037_vm2 = vweird.f32 %v4925_v61 }
 0xecd   : > { %v5612_v11 = vmul.f32 %v5580_v15, %v5356_v54  ;;  %v5421_v10 = vmul.f32 %v5389_v52, %v5270_v58  ;;  %v5357_v15 = vmul.f32 0.5, %v5270_v58 }
 0xece   : > { %v5318_v55 = vpop.f32.mrf.mxu3 }
 0xecf   : > { %v5642_v8 = vpack.c.bf16 %v5612_v11, %v5610_v35  ;;  %v5319_v25 = vadd.f32 %v5318_v55, %v10819_v31  ;;  %v5453_v3 = vmul.f32 %v5421_v10, %v5270_v58 }
 0xed0   : > { %v5271_v33 = vpop.f32.mrf.mxu1 }
 0xed1   : > { %5846 = vmatmul.bf16.vlgmr.msra.gmra.mxu0 %v5642_v8  ;;  %v5390_v53 = vmul.f32 0.044715, %v5319_v25  ;;  %v5272_v47 = vadd.f32 %v5271_v33, %v10804_v20  ;;  %v5485_v12 = vadd.f32 %v5453_v3, %v5270_v58 }
 0xed3   : > { %v5422_v45 = vmul.f32 %v5390_v53, %v5319_v25  ;;  %v5391_v59 = vmul.f32 0.044715, %v5272_v47  ;;  %v5517_v23 = vmul.f32 0.7978846, %v5485_v12  ;;  %v5359_v52 = vmul.f32 0.5, %v5272_v47 }
 0xed5   : > { %v5423_v18 = vmul.f32 %v5391_v59, %v5272_v47  ;;  %v5454_v42 = vmul.f32 %v5422_v45, %v5319_v25  ;;  %7733 = vtanh.f32 %v5517_v23  ;;  %v5358_v45 = vmul.f32 0.5, %v5319_v25 }
 0xed6   : > { %v5320_v26 = vpop.f32.mrf.mxu3 }
 0xed7   : > { %v5321_v27 = vadd.f32 %v5320_v26, %v10819_v31  ;;  %v5455_v37 = vmul.f32 %v5423_v18, %v5272_v47  ;;  %v5486_v17 = vadd.f32 %v5454_v42, %v5319_v25 }
 0xed9   : > { %v5392_v6 = vmul.f32 0.044715, %v5321_v27  ;;  %v5487_v1 = vadd.f32 %v5455_v37, %v5272_v47  ;;  %v5518_v24 = vmul.f32 0.7978846, %v5486_v17  ;;  %v5360_v59 = vmul.f32 0.5, %v5321_v27 }
 0xedb   : > { %v5424_v62 = vmul.f32 %v5392_v6, %v5321_v27  ;;  %v5519_v38 = vmul.f32 0.7978846, %v5487_v1  ;;  %v7734_v19 = vpop.eup %7733 }
 0xedc   : > { %v5581_v2 = vadd.f32 1.0, %v7734_v19 }
 0xedd   : > { %7735 = vtanh.f32 %v5519_v38  ;;  %v5456_v48 = vmul.f32 %v5424_v62, %v5321_v27 }
 0xede   : > { %7737 = vtanh.f32 %v5518_v24  ;;  %v5613_v10 = vmul.f32 %v5581_v2, %v5357_v15 }
 0xedf   : > { %v5488_v32 = vadd.f32 %v5456_v48, %v5321_v27  ;;  %7739 = vrsqrt.f32 %v4925_v61 }
 0xee1   : > { %v5520_v36 = vmul.f32 0.7978846, %v5488_v32 }
 0xee3   : > { %v7736_v54 = vpop.eup %7735  ;;  %7741 = vtanh.f32 %v5520_v36 }
 0xee4   : > { %v5583_v35 = vadd.f32 1.0, %v7736_v54  ;;  %v7738_v11 = vpop.eup %7737 }
 0xee5   : > { %v7740_v8 = vpop.eup %7739  ;;  %v5582_v33 = vadd.f32 1.0, %v7738_v11 }
 0xee6   : > { %v5615_v55 = vmul.f32 %v5583_v35, %v5359_v52  ;;  %v5032_v12 = vmul.f32 %v7740_v8, %v4925_v61  ;;  %vm5038_vm1 = vweird.f32 %v7740_v8 }
 0xee7   : > { %v5614_v23 = vmul.f32 %v5582_v33, %v5358_v45  ;;  %vm5039_vm3 = vmor %vm5037_vm2, %vm5038_vm1 }
 0xee8   : > { %v5643_v3 = vpack.c.bf16 %v5615_v55, %v5613_v10  ;;  %v5033_v39 = vmul.f32 %v7740_v8, %v5032_v12 }
 0xee9   : > { %v7742_v53 = vpop.eup %7741 }
 0xeea   : > { %5802 = vmatmul.bf16.gmra.mxu2 %v5643_v3  ;;  %v5584_v18 = vadd.f32 1.0, %v7742_v53  ;;  %v5034_v17 = vmul.f32 0.5, %v5033_v39 }
 0xeec   : > { %v5616_v42 = vmul.f32 %v5584_v18, %v5360_v59  ;;  %v5035_v5 = vsub.f32 1.5, %v5034_v17 }
 0xeee   : > { %v4890_v26 = vpop.xlane.xlu0 %4889  ;;  %v5644_v37 = vpack.c.bf16 %v5616_v42, %v5614_v23  ;;  %v5036_v25 = vmul.f32 %v7740_v8, %v5035_v5 }
 0xeef   : > { %v4910_v58 = vmul.f32 %v4890_v26, %v11749_v29 }
 0xef0   : > { %5851 = vmatmul.bf16.gmra.mxu0 %v5644_v37  ;;  %v5040_v48 = vsel %vm5039_vm3, %v7740_v8, %v5036_v25 }
 0xef1   : > { %v4926_v47 = vadd.f32 1e-06, %v4910_v58  ;;  %v5101_v15 = vmul.f32 %v5040_v48, %v10719_v22 }
 0xef3   : > { %7743 = vrsqrt.f32 %v4926_v47  ;;  %vm5047_vm5 = vweird.f32 %v4926_v47  ;;  %v5120_v8 = vmul.f32 %v10688_v16, %v5101_v15 }
 0xef5   : > { %v5139_v59 = vadd.f32 %v10698_v4, %v5120_v8 }
 0xef6   : > { %v4892_v6 = vpop.xlane.xlu1 %4891 }
 0xef7   : > { %v4911_v1 = vmul.f32 %v4892_v6, %v11749_v29 }
 0xef9   : > { %v7744_v62 = vpop.eup %7743  ;;  %v4927_v38 = vadd.f32 1e-06, %v4911_v1 }
 0xefa   : > { %v5042_v27 = vmul.f32 %v7744_v62, %v4926_v47  ;;  %vm5048_vm4 = vweird.f32 %v7744_v62 }
 0xefb   : > { %7745 = vrsqrt.f32 %v4927_v38  ;;  %vm5049_vm6 = vmor %vm5047_vm5, %vm5048_vm4  ;;  %vm5057_vm8 = vweird.f32 %v4927_v38 }
 0xefc   : > { %v5043_v24 = vmul.f32 %v7744_v62, %v5042_v27 }
 0xefe   : > { %v5044_v19 = vmul.f32 0.5, %v5043_v24  ;;  %v4894_v32 = vpop.xlane.xlu2 %4893 }
 0xeff   : > { %v4912_v36 = vmul.f32 %v4894_v32, %v11749_v29 }
 0xf00   : > { %v5045_v2 = vsub.f32 1.5, %v5044_v19 }
 0xf01   : > { %v7746_v54 = vpop.eup %7745  ;;  %v4928_v52 = vadd.f32 1e-06, %v4912_v36 }
 0xf02   : > { %v5046_v35 = vmul.f32 %v7744_v62, %v5045_v2  ;;  %v5052_v11 = vmul.f32 %v7746_v54, %v4927_v38  ;;  %vm5058_vm7 = vweird.f32 %v7746_v54 }
 0xf03   : > { %7747 = vrsqrt.f32 %v4928_v52  ;;  %vm5059_vm9 = vmor %vm5057_vm8, %vm5058_vm7  ;;  %vm5067_vm11 = vweird.f32 %v4928_v52 }
 0xf04   : > { %v5050_v10 = vsel %vm5049_vm6, %v7744_v62, %v5046_v35  ;;  %v5053_v61 = vmul.f32 %v7746_v54, %v5052_v11 }
 0xf05   : > { %v5102_v55 = vmul.f32 %v5050_v10, %v10733_v34 }
 0xf06   : > { %v5054_v3 = vmul.f32 0.5, %v5053_v61 }
 0xf07   : > { %v4896_v33 = vpop.xlane.xlu0 %4895  ;;  %v5121_v53 = vmul.f32 %v10688_v16, %v5102_v55 }
 0xf08   : > { %v5055_v12 = vsub.f32 1.5, %v5054_v3  ;;  %v4913_v45 = vmul.f32 %v4896_v33, %v11749_v29 }
 0xf09   : > { %v7748_v22 = vpop.eup %7747  ;;  %v5140_v18 = vadd.f32 %v10698_v4, %v5121_v53 }
 0xf0a   : > { %v5056_v23 = vmul.f32 %v7746_v54, %v5055_v12  ;;  %v5062_v42 = vmul.f32 %v7748_v22, %v4928_v52  ;;  %v10861_v39 = vadd.f32 1e-06, %v4913_v45  ;;  %vm5068_vm10 = vweird.f32 %v7748_v22 }
 0xf0b   : > { %v5150_v34 = vpack.c.bf16 %v5140_v18, %v5139_v59  ;;  %vm5069_vm12 = vmor %vm5067_vm11, %vm5068_vm10 }
 0xf0c   : > { %v5063_v26 = vmul.f32 %v7748_v22, %v5062_v42  ;;  %7749 = vrsqrt.f32 %v10861_v39  ;;  %v5060_v37 = vsel %vm5059_vm9, %v7746_v54, %v5056_v23  ;;  %vm5077_vm14 = vweird.f32 %v10861_v39 }
 0xf0d   : > { %5288 = vmatmul.bf16.gmra.mxu1 %v5150_v34  ;;  %5337 = vmatmul.bf16.gmra.mxu3 %v5150_v34  ;;  %v5103_v5 = vmul.f32 %v5060_v37, %v10742_v49 }
 0xf0e   : > { %v5064_v58 = vmul.f32 0.5, %v5063_v26 }
 0xf0f   : > { %v5122_v49 = vmul.f32 %v10688_v16, %v5103_v5 }
 0xf10   : > { %v5065_v47 = vsub.f32 1.5, %v5064_v58  ;;  %v5274_v17 = vpop.f32.mrf.mxu1 }
 0xf11   : > { %v10866_v6 = vadd.f32 %v5274_v17, %v10804_v20  ;;  %v5141_v11 = vadd.f32 %v10698_v4, %v5122_v49 }
 0xf12   : > { %v10868_v1 = vpop.eup %7749  ;;  %v5066_v62 = vmul.f32 %v7748_v22, %v5065_v47 }
 0xf13   : > { %v5393_v38 = vmul.f32 0.044715, %v10866_v6  ;;  %v5072_v27 = vmul.f32 %v10868_v1, %v10861_v39  ;;  %vm5078_vm13 = vweird.f32 %v10868_v1 }
 0xf14   : > { %v5070_v25 = vsel %vm5069_vm12, %v7748_v22, %v5066_v62  ;;  %vm5079_vm15 = vmor %vm5077_vm14, %vm5078_vm13 }
 0xf15   : > { %v5104_v24 = vmul.f32 %v5070_v25, %v10752_v56  ;;  %v5425_v48 = vmul.f32 %v5393_v38, %v10866_v6  ;;  %v5073_v54 = vmul.f32 %v10868_v1, %v5072_v27 }
 0xf16   : > { %v5323_v19 = vpop.f32.mrf.mxu3 }
 0xf17   : > { %v10877_v32 = vadd.f32 %v5323_v19, %v10819_v31  ;;  %v5123_v36 = vmul.f32 %v10688_v16, %v5104_v24  ;;  %v5457_v2 = vmul.f32 %v5425_v48, %v10866_v6  ;;  %v5074_v53 = vmul.f32 0.5, %v5073_v54 }
 0xf18   : > { %v5276_v15 = vpop.f32.mrf.mxu1 }
 0xf19   : > { %v5394_v52 = vmul.f32 0.044715, %v10877_v32  ;;  %v5277_v35 = vadd.f32 %v5276_v15, %v10804_v20  ;;  %v5142_v10 = vadd.f32 %v10698_v4, %v5123_v36  ;;  %v5489_v55 = vadd.f32 %v5457_v2, %v10866_v6 }
 0xf1a   : > { %v4898_v56 = vpop.xlane.xlu1 %4897  ;;  %v5075_v34 = vsub.f32 1.5, %v5074_v53 }
 0xf1b   : > { %v4914_v61 = vmul.f32 %v4898_v56, %v11749_v29  ;;  %v5426_v8 = vmul.f32 %v5394_v52, %v10877_v32  ;;  %v5395_v3 = vmul.f32 0.044715, %v5277_v35  ;;  %v5151_v33 = vpack.c.bf16 %v5142_v10, %v5141_v11 }
 0xf1c   : > { %v5521_v22 = vmul.f32 0.7978846, %v5489_v55  ;;  %v5076_v62 = vmul.f32 %v10868_v1, %v5075_v34  ;;  %v5361_v10 = vmul.f32 0.5, %v10866_v6 }
 0xf1d   : > { %v4930_v12 = vadd.f32 1e-06, %v4914_v61  ;;  %v5427_v45 = vmul.f32 %v5395_v3, %v5277_v35  ;;  %5293 = vmatmul.bf16.gmra.mxu1 %v5151_v33  ;;  %5342 = vmatmul.bf16.gmra.mxu3 %v5151_v33  ;;  %v5458_v59 = vmul.f32 %v5426_v8, %v10877_v32  ;;  %v5363_v61 = vmul.f32 0.5, %v5277_v35 }
 0xf1e   : > { %v5325_v18 = vpop.f32.mrf.mxu3  ;;  %v5080_v49 = vsel %vm5079_vm15, %v10868_v1, %v5076_v62 }
 0xf1f   : > { %7751 = vrsqrt.f32 %v4930_v12  ;;  %v5326_v23 = vadd.f32 %v5325_v18, %v10819_v31  ;;  %v5459_v42 = vmul.f32 %v5427_v45, %v5277_v35  ;;  %v5490_v29 = vadd.f32 %v5458_v59, %v10877_v32 }
 0xf20   : > { %7753 = vtanh.f32 %v5521_v22  ;;  %v5105_v15 = vmul.f32 %v5080_v49, %v10765_v14  ;;  %vm5087_vm1 = vweird.f32 %v4930_v12 }
 0xf21   : > { %v5396_v26 = vmul.f32 0.044715, %v5326_v23  ;;  %v5491_v37 = vadd.f32 %v5459_v42, %v5277_v35  ;;  %v5522_v58 = vmul.f32 0.7978846, %v5490_v29  ;;  %v5362_v35 = vmul.f32 0.5, %v10877_v32 }
 0xf22   : > { %v5124_v53 = vmul.f32 %v10688_v16, %v5105_v15  ;;  %v5364_v29 = vmul.f32 0.5, %v5326_v23 }
 0xf23   : > { %v5428_v47 = vmul.f32 %v5396_v26, %v5326_v23  ;;  %v5523_v17 = vmul.f32 0.7978846, %v5491_v37 }
 0xf25   : > { %v7752_v5 = vpop.eup %7751  ;;  %7755 = vtanh.f32 %v5523_v17  ;;  %v5460_v25 = vmul.f32 %v5428_v47, %v5326_v23  ;;  %v5143_v47 = vadd.f32 %v10698_v4, %v5124_v53 }
 0xf26   : > { %v5082_v38 = vmul.f32 %v7752_v5, %v4930_v12  ;;  %7757 = vtanh.f32 %v5522_v58  ;;  %v7754_v27 = vpop.eup %7753  ;;  %vm5088_vm0 = vweird.f32 %v7752_v5 }
 0xf27   : > { %v5492_v48 = vadd.f32 %v5460_v25, %v5326_v23  ;;  %v5585_v2 = vadd.f32 1.0, %v7754_v27  ;;  %vm5089_vm2 = vmor %vm5087_vm1, %vm5088_vm0 }
 0xf28   : > { %v5083_v24 = vmul.f32 %v7752_v5, %v5082_v38 }
 0xf29   : > { %v5524_v36 = vmul.f32 0.7978846, %v5492_v48  ;;  %v5617_v3 = vmul.f32 %v5585_v2, %v5361_v10 }
 0xf2a   : > { %v5084_v19 = vmul.f32 0.5, %v5083_v24 }
 0xf2b   : > { %v7756_v54 = vpop.eup %7755  ;;  %v5279_v56 = vpop.f32.mrf.mxu1  ;;  %7759 = vtanh.f32 %v5524_v36 }
 0xf2c   : > { %v5085_v52 = vsub.f32 1.5, %v5084_v19  ;;  %v7758_v11 = vpop.eup %7757  ;;  %v10898_v39 = vadd.f32 %v5279_v56, %v10804_v20  ;;  %v5587_v55 = vadd.f32 1.0, %v7756_v54 }
 0xf2d   : > { %v5586_v45 = vadd.f32 1.0, %v7758_v11 }
 0xf2e   : > { %v5086_v8 = vmul.f32 %v7752_v5, %v5085_v52  ;;  %v5397_v1 = vmul.f32 0.044715, %v10898_v39  ;;  %v5619_v33 = vmul.f32 %v5587_v55, %v5363_v61 }
 0xf30   : > { %v5090_v14 = vsel %vm5089_vm2, %v7752_v5, %v5086_v8  ;;  %v5429_v59 = vmul.f32 %v5397_v1, %v10898_v39  ;;  %v5645_v18 = vpack.c.bf16 %v5619_v33, %v5617_v3 }
 0xf31   : > { %v5106_v22 = vmul.f32 %v5090_v14, %v10796_v30  ;;  %v7760_v42 = vpop.eup %7759  ;;  %v5328_v6 = vpop.f32.mrf.mxu3  ;;  %v5618_v30 = vmul.f32 %v5586_v45, %v5362_v35 }
 0xf32   : > { %v5329_v12 = vadd.f32 %v5328_v6, %v10819_v31  ;;  %5807 = vmatmul.bf16.gmra.mxu2 %v5645_v18  ;;  %v5588_v26 = vadd.f32 1.0, %v7760_v42  ;;  %v5461_v37 = vmul.f32 %v5429_v59, %v10898_v39  ;;  %v5365_v59 = vmul.f32 0.5, %v10898_v39 }
 0xf33   : > { %v5125_v34 = vmul.f32 %v10688_v16, %v5106_v22  ;;  %v5281_v58 = vpop.f32.mrf.mxu1 }
 0xf34   : > { %v5398_v17 = vmul.f32 0.044715, %v5329_v12  ;;  %v5282_v5 = vadd.f32 %v5281_v58, %v10804_v20  ;;  %v5620_v38 = vmul.f32 %v5588_v26, %v5364_v29  ;;  %v5493_v32 = vadd.f32 %v5461_v37, %v10898_v39  ;;  %v10931_v39 = vld [vmem:[%s974_s6] ss:$0 sm:$0xff]  ;;  %s11762_s6 = sld [smem:[#allocation34_spill]] }
 0xf35   : > { %v5144_v62 = vadd.f32 %v10698_v4, %v5125_v34 }
 0xf36   : > { %v5430_v23 = vmul.f32 %v5398_v17, %v5329_v12  ;;  %v5399_v25 = vmul.f32 0.044715, %v5282_v5  ;;  %v5646_v24 = vpack.c.bf16 %v5620_v38, %v5618_v30  ;;  %v5525_v48 = vmul.f32 0.7978846, %v5493_v32 }
 0xf37   : > { %v5152_v27 = vpack.c.bf16 %v5144_v62, %v5143_v47  ;;  %v5367_v18 = vmul.f32 0.5, %v5282_v5  ;;  %v5366_v38 = vmul.f32 0.5, %v5329_v12 }
 0xf38   : > { %v5431_v16 = vmul.f32 %v5399_v25, %v5282_v5  ;;  %v5462_v49 = vmul.f32 %v5430_v23, %v5329_v12  ;;  %5856 = vmatmul.bf16.gmra.mxu0 %v5646_v24  ;;  %7761 = vtanh.f32 %v5525_v48 }
 0xf39   : > { %5298 = vmatmul.bf16.gmra.mxu1 %v5152_v27  ;;  %5347 = vmatmul.bf16.gmra.mxu3 %v5152_v27  ;;  %v5330_v19 = vpop.f32.mrf.mxu3 }
 0xf3a   : > { %v5331_v36 = vadd.f32 %v5330_v19, %v10819_v31  ;;  %v5463_v2 = vmul.f32 %v5431_v16, %v5282_v5  ;;  %v5494_v54 = vadd.f32 %v5462_v49, %v5329_v12  ;;  %p7107_p13 = scmp.ne.s32.totalorder %s11762_s6, 1 }
 0xf3b   : > { %s11770_s22 = sld [smem:[#allocation75_spill]] (!%p7107_p13) }
 0xf3c   : > { %v5400_v15 = vmul.f32 0.044715, %v5331_v36  ;;  %v5495_v4 = vadd.f32 %v5463_v2, %v5282_v5  ;;  %v5526_v52 = vmul.f32 0.7978846, %v5494_v54  ;;  %v5368_v25 = vmul.f32 0.5, %v5331_v36  ;;  %s11773_s15 = sld [smem:[#allocation76_spill]] (!%p7107_p13) }
 0xf3e   : > { %v5432_v56 = vmul.f32 %v5400_v15, %v5331_v36  ;;  %v5527_v11 = vmul.f32 0.7978846, %v5495_v4  ;;  %v7762_v61 = vpop.eup %7761 }
 0xf3f   : > { %v5589_v14 = vadd.f32 1.0, %v7762_v61 }
 0xf40   : > { %7763 = vtanh.f32 %v5527_v11  ;;  %v5464_v10 = vmul.f32 %v5432_v56, %v5331_v36 }
 0xf41   : > { %7765 = vtanh.f32 %v5526_v52  ;;  %v5621_v29 = vmul.f32 %v5589_v14, %v5365_v59 }
 0xf42   : > { %v5284_v55 = vpop.f32.mrf.mxu1  ;;  %v5496_v8 = vadd.f32 %v5464_v10, %v5331_v36 }
 0xf43   : > { %v10915_v1 = vadd.f32 %v5284_v55, %v10804_v20 }
 0xf44   : > { %v5528_v3 = vmul.f32 0.7978846, %v5496_v8 }
 0xf45   : > { %v5401_v33 = vmul.f32 0.044715, %v10915_v1 }
 0xf46   : > { %v7764_v53 = vpop.eup %7763  ;;  %7767 = vtanh.f32 %v5528_v3 }
 0xf47   : > { %v7766_v45 = vpop.eup %7765  ;;  %v5433_v22 = vmul.f32 %v5401_v33, %v10915_v1  ;;  %v5591_v42 = vadd.f32 1.0, %v7764_v53 }
 0xf48   : > { %v5333_v6 = vpop.f32.mrf.mxu3  ;;  %v5590_v58 = vadd.f32 1.0, %v7766_v45 }
 0xf49   : > { %v10921_v35 = vadd.f32 %v5333_v6, %v10819_v31  ;;  %v5623_v34 = vmul.f32 %v5591_v42, %v5367_v18  ;;  %v5465_v26 = vmul.f32 %v5433_v22, %v10915_v1 }
 0xf4a   : > { %v5286_v37 = vpop.f32.mrf.mxu1  ;;  %v5622_v48 = vmul.f32 %v5590_v58, %v5366_v38 }
 0xf4b   : > { %v5402_v47 = vmul.f32 0.044715, %v10921_v35  ;;  %v5287_v30 = vadd.f32 %v5286_v37, %v10804_v20  ;;  %v5647_v17 = vpack.c.bf16 %v5623_v34, %v5621_v29  ;;  %v5497_v5 = vadd.f32 %v5465_v26, %v10915_v1 }
 0xf4c   : > { %v7768_v62 = vpop.eup %7767  ;;  %v5369_v26 = vmul.f32 0.5, %v10915_v1 }
 0xf4d   : > { %v5434_v32 = vmul.f32 %v5402_v47, %v10921_v35  ;;  %v5403_v23 = vmul.f32 0.044715, %v5287_v30  ;;  %5812 = vmatmul.bf16.gmra.mxu2 %v5647_v17  ;;  %v5592_v27 = vadd.f32 1.0, %v7768_v62  ;;  %v5529_v49 = vmul.f32 0.7978846, %v5497_v5 }
 0xf4e   : > { %v5798_v24 = vpop.f32.mrf.mxu2  ;;  %v5847_v16 = vpop.f32.mrf.mxu0  ;;  %v5371_v37 = vmul.f32 0.5, %v5287_v30 }
 0xf4f   : > { %v5435_v19 = vmul.f32 %v5403_v23, %v5287_v30  ;;  %v5799_v2 = vadd.f32 %v10931_v39, %v5798_v24  ;;  %v5624_v54 = vmul.f32 %v5592_v27, %v5368_v25  ;;  %v5466_v15 = vmul.f32 %v5434_v32, %v10921_v35 }
 0xf50   : > { %v5335_v4 = vpop.f32.mrf.mxu3  ;;  %7769 = vtanh.f32 %v5529_v49 }
 0xf51   : > { %v5848_v52 = vadd.f32 %v5847_v16, %v5799_v2  ;;  %v5336_v12 = vadd.f32 %v5335_v4, %v10819_v31  ;;  %v5648_v56 = vpack.c.bf16 %v5624_v54, %v5622_v48  ;;  %v5467_v11 = vmul.f32 %v5435_v19, %v5287_v30 }
 0xf52   : > { %v5498_v10 = vadd.f32 %v5466_v15, %v10921_v35 }
 0xf53   : > { %v10940_v36 = vadd.f32 %v5848_v52, %v10509_v28  ;;  %v5404_v61 = vmul.f32 0.044715, %v5336_v12  ;;  %5861 = vmatmul.bf16.gmra.mxu0 %v5648_v56  ;;  %v5499_v55 = vadd.f32 %v5467_v11, %v5287_v30  ;;  %v5372_v23 = vmul.f32 0.5, %v5336_v12 }
 0xf54   : > { %v5530_v33 = vmul.f32 0.7978846, %v5498_v10 }
 0xf55   : > { %5903 = vst [vmem:[#allocation2 + $0x30] sm:$0xff] %v10940_v36  ;;  %v5436_v8 = vmul.f32 %v5404_v61, %v5336_v12  ;;  %v5531_v3 = vmul.f32 0.7978846, %v5499_v55 }
 0xf56   : > { %v5800_v14 = vpop.f32.mrf.mxu2  ;;  %v5849_v22 = vpop.f32.mrf.mxu0 }
 0xf57   : > { %v5801_v53 = vadd.f32 %v10931_v39, %v5800_v14  ;;  %7771 = vtanh.f32 %v5531_v3  ;;  %v5468_v45 = vmul.f32 %v5436_v8, %v5336_v12  ;;  %v7770_v59 = vpop.eup %7769 }
 0xf58   : > { %7773 = vtanh.f32 %v5530_v33  ;;  %v5593_v29 = vadd.f32 1.0, %v7770_v59 }
 0xf59   : > { %v5850_v18 = vadd.f32 %v5849_v22, %v5801_v53  ;;  %v5500_v42 = vadd.f32 %v5468_v45, %v5336_v12 }
 0xf5a   : > { %v5625_v17 = vmul.f32 %v5593_v29, %v5369_v26 }
 0xf5b   : > { %v10945_v28 = vadd.f32 %v5850_v18, %v10514_v43  ;;  %v5532_v6 = vmul.f32 0.7978846, %v5500_v42  ;;  %v5370_v43 = vmul.f32 0.5, %v10921_v35 }
 0xf5d   : > { %v7772_v34 = vpop.eup %7771  ;;  %5904 = vst [vmem:[#allocation2] sm:$0xff] %v10945_v28  ;;  %7775 = vtanh.f32 %v5532_v6 }
 0xf5e   : > { %v5595_v58 = vadd.f32 1.0, %v7772_v34  ;;  %v7774_v47 = vpop.eup %7773 }
 0xf5f   : > { %v5594_v38 = vadd.f32 1.0, %v7774_v47 }
 0xf60   : > { %v5627_v5 = vmul.f32 %v5595_v58, %v5371_v37 }
 0xf61   : > { %v5626_v27 = vmul.f32 %v5594_v38, %v5370_v43 }
 0xf62   : > { %v5649_v62 = vpack.c.bf16 %v5627_v5, %v5625_v17 }
 0xf63   : > { %v7776_v32 = vpop.eup %7775 }
 0xf64   : > { %5817 = vmatmul.bf16.gmra.mxu2 %v5649_v62  ;;  %v5596_v25 = vadd.f32 1.0, %v7776_v32 }
 0xf66   : > { %v5628_v24 = vmul.f32 %v5596_v25, %v5372_v23 }
 0xf68   : > { %v5650_v16 = vpack.c.bf16 %v5628_v24, %v5626_v27 }
 0xf6a   : > { %5866 = vmatmul.bf16.gmra.mxu0 %v5650_v16 }
 0xf6d   : > { %v5803_v48 = vpop.f32.mrf.mxu2  ;;  %v5852_v49 = vpop.f32.mrf.mxu0 }
 0xf6e   : > { %v5804_v1 = vadd.f32 %v10931_v39, %v5803_v48 }
 0xf70   : > { %v5853_v30 = vadd.f32 %v5852_v49, %v5804_v1 }
 0xf72   : > { %v10952_v19 = vadd.f32 %v5853_v30, %v10523_v40 }
 0xf74   : > { %5905 = vst [vmem:[#allocation2 + $0x58] sm:$0xff] %v10952_v19 }
 0xf75   : > { %v5805_v2 = vpop.f32.mrf.mxu2  ;;  %v5854_v35 = vpop.f32.mrf.mxu0 }
 0xf76   : > { %v5806_v54 = vadd.f32 %v10931_v39, %v5805_v2 }
 0xf78   : > { %v5855_v15 = vadd.f32 %v5854_v35, %v5806_v54 }
 0xf7a   : > { %v10957_v4 = vadd.f32 %v5855_v15, %v10527_v50 }
 0xf7c   : > { %5906 = vst [vmem:[#allocation2 + $0x18] sm:$0xff] %v10957_v4 }
 0xf8a   : > { %v5289_v52 = vpop.f32.mrf.mxu1 }
 0xf8b   : > { %v5290_v12 = vadd.f32 %v5289_v52, %v10804_v20 }
 0xf8d   : > { %v5405_v56 = vmul.f32 0.044715, %v5290_v12  ;;  %v5373_v15 = vmul.f32 0.5, %v5290_v12 }
 0xf8f   : > { %v5437_v11 = vmul.f32 %v5405_v56, %v5290_v12 }
 0xf90   : > { %v5338_v10 = vpop.f32.mrf.mxu3 }
 0xf91   : > { %v5339_v40 = vadd.f32 %v5338_v10, %v10819_v31  ;;  %v5469_v61 = vmul.f32 %v5437_v11, %v5290_v12 }
 0xf92   : > { %v5291_v55 = vpop.f32.mrf.mxu1 }
 0xf93   : > { %v5406_v8 = vmul.f32 0.044715, %v5339_v40  ;;  %v5292_v3 = vadd.f32 %v5291_v55, %v10804_v20  ;;  %v5501_v33 = vadd.f32 %v5469_v61, %v5290_v12 }
 0xf95   : > { %v5438_v14 = vmul.f32 %v5406_v8, %v5339_v40  ;;  %v5407_v53 = vmul.f32 0.044715, %v5292_v3  ;;  %v5533_v45 = vmul.f32 0.7978846, %v5501_v33  ;;  %v5375_v52 = vmul.f32 0.5, %v5292_v3 }
 0xf97   : > { %v5439_v50 = vmul.f32 %v5407_v53, %v5292_v3  ;;  %v5470_v22 = vmul.f32 %v5438_v14, %v5339_v40  ;;  %7777 = vtanh.f32 %v5533_v45 }
 0xf98   : > { %v5340_v59 = vpop.f32.mrf.mxu3 }
 0xf99   : > { %v5341_v18 = vadd.f32 %v5340_v59, %v10819_v31  ;;  %v5471_v42 = vmul.f32 %v5439_v50, %v5292_v3  ;;  %v5502_v6 = vadd.f32 %v5470_v22, %v5339_v40 }
 0xf9a   : > { %v5294_v29 = vpop.f32.mrf.mxu1 }
 0xf9b   : > { %v5408_v34 = vmul.f32 0.044715, %v5341_v18  ;;  %v10965_v26 = vadd.f32 %v5294_v29, %v10804_v20  ;;  %v5503_v37 = vadd.f32 %v5471_v42, %v5292_v3  ;;  %v5534_v5 = vmul.f32 0.7978846, %v5502_v6 }
 0xf9c   : > { %v5374_v3 = vmul.f32 0.5, %v5339_v40  ;;  %v5376_v29 = vmul.f32 0.5, %v5341_v18 }
 0xf9d   : > { %v5440_v58 = vmul.f32 %v5408_v34, %v5341_v18  ;;  %v5409_v47 = vmul.f32 0.044715, %v10965_v26  ;;  %v5535_v17 = vmul.f32 0.7978846, %v5503_v37  ;;  %v7778_v43 = vpop.eup %7777  ;;  %v5377_v40 = vmul.f32 0.5, %v10965_v26 }
 0xf9e   : > { %v5597_v30 = vadd.f32 1.0, %v7778_v43 }
 0xf9f   : > { %v5441_v62 = vmul.f32 %v5409_v47, %v10965_v26  ;;  %7779 = vtanh.f32 %v5535_v17  ;;  %v5472_v38 = vmul.f32 %v5440_v58, %v5341_v18 }
 0xfa0   : > { %v5343_v32 = vpop.f32.mrf.mxu3  ;;  %7781 = vtanh.f32 %v5534_v5  ;;  %v5629_v33 = vmul.f32 %v5597_v30, %v5373_v15 }
 0xfa1   : > { %v10970_v23 = vadd.f32 %v5343_v32, %v10819_v31  ;;  %v5504_v25 = vadd.f32 %v5472_v38, %v5341_v18  ;;  %v5473_v27 = vmul.f32 %v5441_v62, %v10965_v26 }
 0xfa2   : > { %v5296_v24 = vpop.f32.mrf.mxu1 }
 0xfa3   : > { %v5410_v16 = vmul.f32 0.044715, %v10970_v23  ;;  %v5297_v48 = vadd.f32 %v5296_v24, %v10804_v20  ;;  %v5536_v49 = vmul.f32 0.7978846, %v5504_v25  ;;  %v5505_v1 = vadd.f32 %v5473_v27, %v10965_v26 }
 0xfa5   : > { %v7780_v2 = vpop.eup %7779  ;;  %v5442_v54 = vmul.f32 %v5410_v16, %v10970_v23  ;;  %v5411_v35 = vmul.f32 0.044715, %v5297_v48  ;;  %7783 = vtanh.f32 %v5536_v49  ;;  %v5537_v61 = vmul.f32 0.7978846, %v5505_v1 }
 0xfa6   : > { %v5599_v56 = vadd.f32 1.0, %v7780_v2  ;;  %v7782_v11 = vpop.eup %7781 }
 0xfa7   : > { %v5443_v10 = vmul.f32 %v5411_v35, %v5297_v48  ;;  %v5474_v55 = vmul.f32 %v5442_v54, %v10970_v23  ;;  %v5598_v59 = vadd.f32 1.0, %v7782_v11  ;;  %7785 = vtanh.f32 %v5537_v61 }
 0xfa8   : > { %v5345_v8 = vpop.f32.mrf.mxu3  ;;  %v5631_v14 = vmul.f32 %v5599_v56, %v5375_v52  ;;  %v5379_v54 = vmul.f32 0.5, %v5297_v48 }
 0xfa9   : > { %v5346_v53 = vadd.f32 %v5345_v8, %v10819_v31  ;;  %v5475_v50 = vmul.f32 %v5443_v10, %v5297_v48  ;;  %v5506_v45 = vadd.f32 %v5474_v55, %v10970_v23  ;;  %v5630_v17 = vmul.f32 %v5598_v59, %v5374_v3 }
 0xfaa   : > { %v5651_v22 = vpack.c.bf16 %v5631_v14, %v5629_v33  ;;  %v5378_v14 = vmul.f32 0.5, %v10970_v23 }
 0xfab   : > { %v7784_v42 = vpop.eup %7783  ;;  %v5412_v6 = vmul.f32 0.044715, %v5346_v53  ;;  %v5507_v12 = vadd.f32 %v5475_v50, %v5297_v48  ;;  %v5538_v37 = vmul.f32 0.7978846, %v5506_v45  ;;  %v5380_v50 = vmul.f32 0.5, %v5346_v53 }
 0xfac   : > { %5822 = vmatmul.bf16.gmra.mxu2 %v5651_v22  ;;  %v5600_v34 = vadd.f32 1.0, %v7784_v42 }
 0xfad   : > { %v5444_v58 = vmul.f32 %v5412_v6, %v5346_v53  ;;  %v5539_v47 = vmul.f32 0.7978846, %v5507_v12  ;;  %v7786_v32 = vpop.eup %7785 }
 0xfae   : > { %v5632_v5 = vmul.f32 %v5600_v34, %v5376_v29  ;;  %v5601_v27 = vadd.f32 1.0, %v7786_v32 }
 0xfaf   : > { %7787 = vtanh.f32 %v5539_v47  ;;  %v5476_v62 = vmul.f32 %v5444_v58, %v5346_v53 }
 0xfb0   : > { %v5652_v38 = vpack.c.bf16 %v5632_v5, %v5630_v17  ;;  %7789 = vtanh.f32 %v5538_v37  ;;  %v5633_v56 = vmul.f32 %v5601_v27, %v5377_v40 }
 0xfb1   : > { %v5508_v43 = vadd.f32 %v5476_v62, %v5346_v53 }
 0xfb2   : > { %5871 = vmatmul.bf16.gmra.mxu0 %v5652_v38 }
 0xfb3   : > { %v5540_v25 = vmul.f32 0.7978846, %v5508_v43 }
 0xfb5   : > { %v7788_v24 = vpop.eup %7787  ;;  %v5808_v49 = vpop.f32.mrf.mxu2  ;;  %7791 = vtanh.f32 %v5540_v25 }
 0xfb6   : > { %v5299_v16 = vpop.f32.mrf.mxu1  ;;  %v7790_v18 = vpop.eup %7789  ;;  %v5809_v30 = vadd.f32 %v10931_v39, %v5808_v49  ;;  %v5603_v35 = vadd.f32 1.0, %v7788_v24 }
 0xfb7   : > { %v10982_v1 = vadd.f32 %v5299_v16, %v10804_v20  ;;  %v5857_v2 = vpop.f32.mrf.mxu0  ;;  %v5602_v10 = vadd.f32 1.0, %v7790_v18 }
 0xfb8   : > { %v5858_v52 = vadd.f32 %v5857_v2, %v5809_v30  ;;  %v5635_v11 = vmul.f32 %v5603_v35, %v5379_v54 }
 0xfb9   : > { %v5413_v15 = vmul.f32 0.044715, %v10982_v1  ;;  %v5634_v6 = vmul.f32 %v5602_v10, %v5378_v14 }
 0xfba   : > { %v10988_v26 = vadd.f32 %v5858_v52, %v10537_v63  ;;  %v5653_v55 = vpack.c.bf16 %v5635_v11, %v5633_v56  ;;  %v5381_v56 = vmul.f32 0.5, %v10982_v1 }
 0xfbb   : > { %v5445_v61 = vmul.f32 %v5413_v15, %v10982_v1  ;;  %v7792_v8 = vpop.eup %7791 }
 0xfbc   : > { %v5348_v33 = vpop.f32.mrf.mxu3  ;;  %5907 = vst [vmem:[#allocation2 + $0x50] sm:$0xff] %v10988_v26  ;;  %5827 = vmatmul.bf16.gmra.mxu2 %v5653_v55  ;;  %v5604_v45 = vadd.f32 1.0, %v7792_v8 }
 0xfbd   : > { %v5349_v48 = vadd.f32 %v5348_v33, %v10819_v31  ;;  %v5477_v22 = vmul.f32 %v5445_v61, %v10982_v1  ;;  %v5810_v42 = vpop.f32.mrf.mxu2 }
 0xfbe   : > { %v5301_v59 = vpop.f32.mrf.mxu1  ;;  %v5811_v3 = vadd.f32 %v10931_v39, %v5810_v42  ;;  %v5636_v29 = vmul.f32 %v5604_v45, %v5380_v50 }
 0xfbf   : > { %v5414_v12 = vmul.f32 0.044715, %v5349_v48  ;;  %v5302_v63 = vadd.f32 %v5301_v59, %v10804_v20  ;;  %v5859_v34 = vpop.f32.mrf.mxu0  ;;  %v5509_v23 = vadd.f32 %v5477_v22, %v10982_v1  ;;  %v5382_v59 = vmul.f32 0.5, %v5349_v48 }
 0xfc0   : > { %v5860_v47 = vadd.f32 %v5859_v34, %v5811_v3  ;;  %v5654_v17 = vpack.c.bf16 %v5636_v29, %v5634_v6 }
 0xfc1   : > { %v5446_v37 = vmul.f32 %v5414_v12, %v5349_v48  ;;  %v5415_v58 = vmul.f32 0.044715, %v5302_v63  ;;  %v5541_v62 = vmul.f32 0.7978846, %v5509_v23  ;;  %v5383_v11 = vmul.f32 0.5, %v5302_v63 }
 0xfc2   : > { %v10998_v5 = vadd.f32 %v5860_v47, %v10543_v21  ;;  %5876 = vmatmul.bf16.gmra.mxu0 %v5654_v17 }
 0xfc3   : > { %v5447_v53 = vmul.f32 %v5415_v58, %v5302_v63  ;;  %v5478_v38 = vmul.f32 %v5446_v37, %v5349_v48  ;;  %7793 = vtanh.f32 %v5541_v62 }
 0xfc4   : > { %v5350_v32 = vpop.f32.mrf.mxu3  ;;  %5908 = vst [vmem:[#allocation2 + $0x68] sm:$0xff] %v10998_v5 }
 0xfc5   : > { %v5351_v20 = vadd.f32 %v5350_v32, %v10819_v31  ;;  %v5479_v43 = vmul.f32 %v5447_v53, %v5302_v63  ;;  %v5510_v25 = vadd.f32 %v5478_v38, %v5349_v48 }
 0xfc7   : > { %v5416_v27 = vmul.f32 0.044715, %v5351_v20  ;;  %v5511_v24 = vadd.f32 %v5479_v43, %v5302_v63  ;;  %v5542_v40 = vmul.f32 0.7978846, %v5510_v25  ;;  %v5384_v42 = vmul.f32 0.5, %v5351_v20 }
 0xfc9   : > { %v5448_v16 = vmul.f32 %v5416_v27, %v5351_v20  ;;  %v5543_v49 = vmul.f32 0.7978846, %v5511_v24  ;;  %v7794_v21 = vpop.eup %7793 }
 0xfca   : > { %v5605_v54 = vadd.f32 1.0, %v7794_v21 }
 0xfcb   : > { %7795 = vtanh.f32 %v5543_v49  ;;  %v5480_v18 = vmul.f32 %v5448_v16, %v5351_v20 }
 0xfcc   : > { %7797 = vtanh.f32 %v5542_v40  ;;  %v5637_v8 = vmul.f32 %v5605_v54, %v5381_v56 }
 0xfcd   : > { %v5512_v30 = vadd.f32 %v5480_v18, %v5351_v20 }
 0xfcf   : > { %v5544_v2 = vmul.f32 0.7978846, %v5512_v30 }
 0xfd0   : > { %v5813_v15 = vpop.f32.mrf.mxu2  ;;  %v5862_v52 = vpop.f32.mrf.mxu0 }
 0xfd1   : > { %v7796_v35 = vpop.eup %7795  ;;  %7799 = vtanh.f32 %v5544_v2  ;;  %v5814_v31 = vadd.f32 %v10931_v39, %v5813_v15 }
 0xfd2   : > { %v5607_v10 = vadd.f32 1.0, %v7796_v35  ;;  %v7798_v61 = vpop.eup %7797 }
 0xfd3   : > { %v5863_v55 = vadd.f32 %v5862_v52, %v5814_v31  ;;  %v5606_v45 = vadd.f32 1.0, %v7798_v61 }
 0xfd4   : > { %v5639_v33 = vmul.f32 %v5607_v10, %v5383_v11 }
 0xfd5   : > { %v11005_v14 = vadd.f32 %v5863_v55, %v10551_v60  ;;  %v5638_v63 = vmul.f32 %v5606_v45, %v5382_v59 }
 0xfd6   : > { %v5655_v50 = vpack.c.bf16 %v5639_v33, %v5637_v8 }
 0xfd7   : > { %v7800_v22 = vpop.eup %7799  ;;  %5909 = vst [vmem:[#allocation2 + $0x8] sm:$0xff] %v11005_v14 }
 0xfd8   : > { %5832 = vmatmul.bf16.gmra.mxu2 %v5655_v50  ;;  %v5608_v6 = vadd.f32 1.0, %v7800_v22  ;;  %v5815_v12 = vpop.f32.mrf.mxu2  ;;  %v5864_v29 = vpop.f32.mrf.mxu0 }
 0xfd9   : > { %v5816_v1 = vadd.f32 %v10931_v39, %v5815_v12 }
 0xfda   : > { %v5640_v3 = vmul.f32 %v5608_v6, %v5384_v42 }
 0xfdb   : > { %v5865_v34 = vadd.f32 %v5864_v29, %v5816_v1 }
 0xfdc   : > { %v5656_v23 = vpack.c.bf16 %v5640_v3, %v5638_v63 }
 0xfdd   : > { %v11010_v60 = vadd.f32 %v5865_v34, %v10567_v13 }
 0xfde   : > { %5881 = vmatmul.bf16.gmra.mxu0 %v5656_v23 }
 0xfdf   : > { %5910 = vst [vmem:[#allocation2 + $0x48] sm:$0xff] %v11010_v60 }
 0xfe7   : > { %v5818_v37 = vpop.f32.mrf.mxu2  ;;  %v5867_v58 = vpop.f32.mrf.mxu0 }
 0xfe8   : > { %v5819_v48 = vadd.f32 %v10931_v39, %v5818_v37 }
 0xfea   : > { %v5868_v47 = vadd.f32 %v5867_v58, %v5819_v48 }
 0xfec   : > { %v11015_v17 = vadd.f32 %v5868_v47, %v10571_v46 }
 0xfee   : > { %5911 = vst [vmem:[#allocation2 + $0x40] sm:$0xff] %v11015_v17 }
 0xfef   : > { %v5820_v53 = vpop.f32.mrf.mxu2  ;;  %v5869_v38 = vpop.f32.mrf.mxu0 }
 0xff0   : > { %v5821_v62 = vadd.f32 %v10931_v39, %v5820_v53 }
 0xff2   : > { %v5870_v32 = vadd.f32 %v5869_v38, %v5821_v62 }
 0xff4   : > { %v11020_v13 = vadd.f32 %v5870_v32, %v10589_v51 }
 0xff6   : > { %5912 = vst [vmem:[#allocation2 + $0x20] sm:$0xff] %v11020_v13 }
0x102f   : > { %v5823_v20 = vpop.f32.mrf.mxu2  ;;  %v5872_v43 = vpop.f32.mrf.mxu0 }
0x1030   : > { %v5824_v25 = vadd.f32 %v10931_v39, %v5823_v20 }
0x1032   : > { %v5873_v27 = vadd.f32 %v5872_v43, %v5824_v25 }
0x1034   : > { %v11025_v46 = vadd.f32 %v5873_v27, %v10595_v7 }
0x1036   : > { %5913 = vst [vmem:[#allocation2 + $0x10] sm:$0xff] %v11025_v46 }
0x1037   : > { %v5825_v24 = vpop.f32.mrf.mxu2  ;;  %v5874_v16 = vpop.f32.mrf.mxu0 }
0x1038   : > { %v5826_v49 = vadd.f32 %v10931_v39, %v5825_v24 }
0x103a   : > { %v5875_v40 = vadd.f32 %v5874_v16, %v5826_v49 }
0x103c   : > { %v11030_v51 = vadd.f32 %v5875_v40, %v10635_v57 }
0x103e   : > { %5914 = vst [vmem:[#allocation2 + $0x38] sm:$0xff] %v11030_v51 }
0x103f   : > { %v5828_v18 = vpop.f32.mrf.mxu2  ;;  %v5877_v21 = vpop.f32.mrf.mxu0 }
0x1040   : > { %v5829_v30 = vadd.f32 %v10931_v39, %v5828_v18 }
0x1042   : > { %v5878_v2 = vadd.f32 %v5877_v21, %v5829_v30 }
0x1044   : > { %v11035_v7 = vadd.f32 %v5878_v2, %v10656_v9 }
0x1046   : > { %5915 = vst [vmem:[#allocation2 + $0x60] sm:$0xff] %v11035_v7 }
0x1047   : > { %v5830_v54 = vpop.f32.mrf.mxu2  ;;  %v5879_v15 = vpop.f32.mrf.mxu0 }
0x1048   : > { %v5831_v35 = vadd.f32 %v10931_v39, %v5830_v54 }
0x104a   : > { %v5880_v52 = vadd.f32 %v5879_v15, %v5831_v35 }
0x104c   : > { %v11040_v57 = vadd.f32 %v5880_v52, %v10667_v44 }
0x104e   : > { %5916 = vst [vmem:[#allocation2 + $0x70] sm:$0xff] %v11040_v57 }
0x105b   : > { %v5833_v31 = vpop.f32.mrf.mxu2  ;;  %v5882_v56 = vpop.f32.mrf.mxu0 }
0x105c   : > { %v5834_v11 = vadd.f32 %v10931_v39, %v5833_v31 }
0x105e   : > { %v5883_v10 = vadd.f32 %v5882_v56, %v5834_v11 }
0x1060   : > { %v11045_v9 = vadd.f32 %v5883_v10, %v10675_v41 }
0x1062   : > { %5917 = vst [vmem:[#allocation2 + $0x78] sm:$0xff] %v11045_v9 }
0x1063   : > { %v5835_v61 = vpop.f32.mrf.mxu2  ;;  %v5884_v8 = vpop.f32.mrf.mxu0 }
0x1064   : > { %v5836_v55 = vadd.f32 %v10931_v39, %v5835_v61 }
0x1066   : > { %v5885_v33 = vadd.f32 %v5884_v8, %v5836_v55  ;;  %5922 = sbr.rel (%p7107_p13) target bundleno = 4540 (0x11bc), region = 140 }
0x1068   : > { %v11050_v44 = vadd.f32 %v5885_v33, %v10707_v0 }
0x106a   : > { %5918 = vst [vmem:[#allocation2 + $0x28] sm:$0xff] %v11050_v44 }
0x106b   : > { %5933 = vadd.xlane.f32.xlu2 %v10988_v26  ;;  %5929 = vadd.xlane.f32.xlu1 %v10952_v19  ;;  %v11763_v39 = vld [vmem:[#allocation45_spill] sm:$0xff] }
0x106c   : > { %5925 = vadd.xlane.f32.xlu0 %v10940_v36 }
0x1073   : > { %5935 = vadd.xlane.f32.xlu2 %v10998_v5  ;;  %5931 = vadd.xlane.f32.xlu1 %v10957_v4 }
0x1074   : > { %5927 = vadd.xlane.f32.xlu0 %v10945_v28 }
0x107b   : > { %5941 = vadd.xlane.f32.xlu2 %v11015_v17  ;;  %5939 = vadd.xlane.f32.xlu1 %v11010_v60 }
0x107c   : > { %5937 = vadd.xlane.f32.xlu0 %v11005_v14 }
0x1083   : > { %5947 = vadd.xlane.f32.xlu2 %v11030_v51  ;;  %5945 = vadd.xlane.f32.xlu1 %v11025_v46 }
0x1084   : > { %5943 = vadd.xlane.f32.xlu0 %v11020_v13 }
0x108b   : > { %5953 = vadd.xlane.f32.xlu2 %v11045_v9  ;;  %5951 = vadd.xlane.f32.xlu1 %v11040_v57 }
0x108c   : > { %5949 = vadd.xlane.f32.xlu0 %v11035_v7 }
0x1094   : > { %5955 = vadd.xlane.f32.xlu0 %v11050_v44 }
0x10de   : > { %v5934_v41 = vpop.xlane.xlu2 %5933  ;;  %v5930_v0 = vpop.xlane.xlu1 %5929 }
0x10df   : > { %v5959_v50 = vmul.f32 %v5930_v0, %v11763_v39  ;;  %v5926_v45 = vpop.xlane.xlu0 %5925  ;;  %v5961_v47 = vmul.f32 %v5934_v41, %v11763_v39 }
0x10e0   : > { %v5957_v22 = vmul.f32 %v5926_v45, %v11763_v39 }
0x10e1   : > { %v11073_v59 = vsub.f32 %v10952_v19, %v5959_v50  ;;  %v11103_v38 = vsub.f32 %v10988_v26, %v5961_v47 }
0x10e2   : > { %v11076_v42 = vsub.f32 %v10940_v36, %v5957_v22 }
0x10e3   : > { %v5991_v6 = vmul.f32 %v11073_v59, %v11073_v59  ;;  %v5993_v24 = vmul.f32 %v11103_v38, %v11103_v38 }
0x10e4   : > { %v5989_v12 = vmul.f32 %v11076_v42, %v11076_v42 }
0x10e5   : > { %6009 = vadd.xlane.f32.xlu0 %v5991_v6 }
0x10e6   : > { %6005 = vadd.xlane.f32.xlu1 %v5989_v12  ;;  %v5936_v1 = vpop.xlane.xlu2 %5935  ;;  %v5932_v63 = vpop.xlane.xlu1 %5931 }
0x10e7   : > { %v5962_v3 = vmul.f32 %v5936_v1, %v11763_v39  ;;  %v5960_v29 = vmul.f32 %v5932_v63, %v11763_v39  ;;  %v5928_v34 = vpop.xlane.xlu0 %5927 }
0x10e8   : > { %v5958_v19 = vmul.f32 %v5928_v34, %v11763_v39 }
0x10e9   : > { %v11086_v36 = vsub.f32 %v10998_v5, %v5962_v3  ;;  %v11089_v23 = vsub.f32 %v10957_v4, %v5960_v29 }
0x10ea   : > { %v11092_v37 = vsub.f32 %v10945_v28, %v5958_v19 }
0x10eb   : > { %v5994_v58 = vmul.f32 %v11086_v36, %v11086_v36  ;;  %v5992_v48 = vmul.f32 %v11089_v23, %v11089_v23 }
0x10ec   : > { %v5990_v53 = vmul.f32 %v11092_v37, %v11092_v37 }
0x10ed   : > { %6015 = vadd.xlane.f32.xlu0 %v5994_v58 }
0x10ee   : > { %6011 = vadd.xlane.f32.xlu1 %v5992_v48  ;;  %6007 = vadd.xlane.f32.xlu2 %v5990_v53  ;;  %v5942_v5 = vpop.xlane.xlu2 %5941  ;;  %v5940_v4 = vpop.xlane.xlu1 %5939 }
0x10ef   : > { %v5965_v62 = vmul.f32 %v5942_v5, %v11763_v39  ;;  %v5938_v28 = vpop.xlane.xlu0 %5937  ;;  %v5964_v25 = vmul.f32 %v5940_v4, %v11763_v39 }
0x10f0   : > { %v5963_v32 = vmul.f32 %v5938_v28, %v11763_v39 }
0x10f1   : > { %v11107_v20 = vsub.f32 %v11015_v17, %v5965_v62  ;;  %v11120_v17 = vsub.f32 %v11010_v60, %v5964_v25 }
0x10f2   : > { %v11110_v43 = vsub.f32 %v11005_v14, %v5963_v32 }
0x10f3   : > { %v5997_v27 = vmul.f32 %v11107_v20, %v11107_v20  ;;  %v5996_v2 = vmul.f32 %v11120_v17, %v11120_v17 }
0x10f4   : > { %v5995_v26 = vmul.f32 %v11110_v43, %v11110_v43 }
0x10f5   : > { %6021 = vadd.xlane.f32.xlu0 %v5997_v27 }
0x10f6   : > { %6013 = vadd.xlane.f32.xlu2 %v5993_v24  ;;  %6017 = vadd.xlane.f32.xlu1 %v5995_v26  ;;  %v5948_v16 = vpop.xlane.xlu2 %5947  ;;  %v5946_v14 = vpop.xlane.xlu1 %5945 }
0x10f7   : > { %v5968_v49 = vmul.f32 %v5948_v16, %v11763_v39  ;;  %v5944_v40 = vpop.xlane.xlu0 %5943  ;;  %v5967_v54 = vmul.f32 %v5946_v14, %v11763_v39 }
0x10f8   : > { %v5966_v18 = vmul.f32 %v5944_v40, %v11763_v39 }
0x10f9   : > { %v11125_v21 = vsub.f32 %v11030_v51, %v5968_v49  ;;  %v11138_v51 = vsub.f32 %v11025_v46, %v5967_v54 }
0x10fa   : > { %v11128_v30 = vsub.f32 %v11020_v13, %v5966_v18 }
0x10fb   : > { %v6000_v60 = vmul.f32 %v11125_v21, %v11125_v21  ;;  %v5999_v61 = vmul.f32 %v11138_v51, %v11138_v51 }
0x10fc   : > { %v5998_v35 = vmul.f32 %v11128_v30, %v11128_v30 }
0x10fd   : > { %6027 = vadd.xlane.f32.xlu0 %v6000_v60 }
0x10fe   : > { %6019 = vadd.xlane.f32.xlu2 %v5996_v2  ;;  %6023 = vadd.xlane.f32.xlu1 %v5998_v35  ;;  %v5954_v15 = vpop.xlane.xlu2 %5953  ;;  %v5952_v31 = vpop.xlane.xlu1 %5951 }
0x10ff   : > { %v5971_v13 = vmul.f32 %v5954_v15, %v11763_v39  ;;  %v5950_v52 = vpop.xlane.xlu0 %5949  ;;  %v5970_v55 = vmul.f32 %v5952_v31, %v11763_v39 }
0x1100   : > { %v5969_v56 = vmul.f32 %v5950_v52, %v11763_v39 }
0x1101   : > { %v11143_v11 = vsub.f32 %v11045_v9, %v5971_v13  ;;  %v11156_v9 = vsub.f32 %v11040_v57, %v5970_v55 }
0x1102   : > { %v11146_v10 = vsub.f32 %v11035_v7, %v5969_v56 }
0x1103   : > { %v6003_v46 = vmul.f32 %v11143_v11, %v11143_v11  ;;  %v6002_v0 = vmul.f32 %v11156_v9, %v11156_v9 }
0x1104   : > { %v6001_v8 = vmul.f32 %v11146_v10, %v11146_v10 }
0x1105   : > { %6033 = vadd.xlane.f32.xlu0 %v6003_v46 }
0x1106   : > { %6025 = vadd.xlane.f32.xlu2 %v5999_v61  ;;  %6029 = vadd.xlane.f32.xlu1 %v6001_v8 }
0x1107   : > { %v5956_v33 = vpop.xlane.xlu0 %5955 }
0x1108   : > { %v5972_v7 = vmul.f32 %v5956_v33, %v11763_v39 }
0x110a   : > { %v11160_v41 = vsub.f32 %v11050_v44, %v5972_v7 }
0x110c   : > { %v6004_v50 = vmul.f32 %v11160_v41, %v11160_v41 }
0x110e   : > { %6031 = vadd.xlane.f32.xlu2 %v6002_v0  ;;  %6035 = vadd.xlane.f32.xlu1 %v6004_v50 }
0x1158   : > { %v6010_v45 = vpop.xlane.xlu0 %6009 }
0x1159   : > { %v6006_v22 = vpop.xlane.xlu1 %6005  ;;  %v6039_v6 = vmul.f32 %v6010_v45, %v11763_v39 }
0x115a   : > { %v6037_v57 = vmul.f32 %v6006_v22, %v11763_v39 }
0x115b   : > { %v11168_v12 = vadd.f32 1e-06, %v6039_v6 }
0x115c   : > { %v11170_v1 = vadd.f32 1e-06, %v6037_v57 }
0x115d   : > { %7819 = vrsqrt.f32 %v11168_v12  ;;  %vm6095_vm3 = vweird.f32 %v11168_v12 }
0x115e   : > { %7821 = vrsqrt.f32 %v11170_v1  ;;  %vm6075_vm5 = vweird.f32 %v11170_v1 }
0x1160   : > { %v6016_v44 = vpop.xlane.xlu0 %6015 }
0x1161   : > { %v6012_v63 = vpop.xlane.xlu1 %6011  ;;  %v6008_v3 = vpop.xlane.xlu2 %6007  ;;  %v6042_v29 = vmul.f32 %v6016_v44, %v11763_v39 }
0x1162   : > { %v6040_v34 = vmul.f32 %v6012_v63, %v11763_v39  ;;  %v6038_v19 = vmul.f32 %v6008_v3, %v11763_v39 }
0x1163   : > { %v11177_v58 = vpop.eup %7819  ;;  %v11179_v48 = vadd.f32 1e-06, %v6042_v29 }
0x1164   : > { %v11181_v47 = vpop.eup %7821  ;;  %v11183_v53 = vadd.f32 1e-06, %v6040_v34  ;;  %v11185_v5 = vadd.f32 1e-06, %v6038_v19  ;;  %v6090_v4 = vmul.f32 %v11177_v58, %v11168_v12  ;;  %vm6096_vm4 = vweird.f32 %v11177_v58 }
0x1165   : > { %7823 = vrsqrt.f32 %v11179_v48  ;;  %v6070_v62 = vmul.f32 %v11181_v47, %v11170_v1  ;;  %vm6076_vm6 = vweird.f32 %v11181_v47  ;;  %vm11240_vm8 = vmor %vm6095_vm3, %vm6096_vm4  ;;  %vm6125_vm14 = vweird.f32 %v11179_v48 }
0x1166   : > { %7825 = vrsqrt.f32 %v11183_v53  ;;  %v6091_v32 = vmul.f32 %v11177_v58, %v6090_v4  ;;  %vm6105_vm7 = vweird.f32 %v11183_v53  ;;  %vm11261_vm11 = vmor %vm6075_vm5, %vm6076_vm6  ;;  %vm6085_vm13 = vweird.f32 %v11185_v5 }
0x1167   : > { %7827 = vrsqrt.f32 %v11185_v5  ;;  %v6071_v14 = vmul.f32 %v11181_v47, %v6070_v62 }
0x1168   : > { %v6022_v28 = vpop.xlane.xlu0 %6021  ;;  %v6092_v2 = vmul.f32 0.5, %v6091_v32 }
0x1169   : > { %v6014_v25 = vpop.xlane.xlu2 %6013  ;;  %v6018_v27 = vpop.xlane.xlu1 %6017  ;;  %v6045_v24 = vmul.f32 %v6022_v28, %v11763_v39  ;;  %v6072_v13 = vmul.f32 0.5, %v6071_v14 }
0x116a   : > { %v6041_v26 = vmul.f32 %v6014_v25, %v11763_v39  ;;  %v6043_v60 = vmul.f32 %v6018_v27, %v11763_v39  ;;  %v6093_v61 = vsub.f32 1.5, %v6092_v2 }
0x116b   : > { %v11197_v16 = vpop.eup %7823  ;;  %v11209_v35 = vadd.f32 1e-06, %v6045_v24  ;;  %v6073_v0 = vsub.f32 1.5, %v6072_v13 }
0x116c   : > { %v11200_v49 = vpop.eup %7825  ;;  %v11202_v40 = vadd.f32 1e-06, %v6041_v26  ;;  %v6120_v31 = vmul.f32 %v11197_v16, %v11179_v48  ;;  %v11218_v46 = vadd.f32 1e-06, %v6043_v60  ;;  %v6094_v57 = vmul.f32 %v11177_v58, %v6093_v61 }
0x116d   : > { %v11204_v18 = vpop.eup %7827  ;;  %v6100_v54 = vmul.f32 %v11200_v49, %v11183_v53  ;;  %v6074_v19 = vmul.f32 %v11181_v47, %v6073_v0  ;;  %vm6106_vm9 = vweird.f32 %v11200_v49  ;;  %vm6126_vm0 = vweird.f32 %v11197_v16 }
0x116e   : > { %v6080_v15 = vmul.f32 %v11204_v18, %v11185_v5  ;;  %7829 = vrsqrt.f32 %v11202_v40  ;;  %v6121_v50 = vmul.f32 %v11197_v16, %v6120_v31  ;;  %v6098_v24 = vsel %vm11240_vm8, %v11177_v58, %v6094_v57  ;;  %vm11275_vm12 = vmor %vm6105_vm7, %vm6106_vm9 }
0x116f   : > { %v6101_v52 = vmul.f32 %v11200_v49, %v6100_v54  ;;  %7831 = vrsqrt.f32 %v11209_v35  ;;  %vm6086_vm10 = vweird.f32 %v11204_v18  ;;  %v6231_v31 = vmul.f32 %v6098_v24, %v11073_v59  ;;  %vm11330_vm4 = vmor %vm6125_vm14, %vm6126_vm0 }
0x1170   : > { %v6081_v56 = vmul.f32 %v11204_v18, %v6080_v15  ;;  %7833 = vrsqrt.f32 %v11218_v46  ;;  %v6028_v29 = vpop.xlane.xlu0 %6027  ;;  %v6122_v12 = vmul.f32 0.5, %v6121_v50  ;;  %v6078_v15 = vsel %vm11261_vm11, %v11181_v47, %v6074_v19  ;;  %vm11293_vm15 = vmor %vm6085_vm13, %vm6086_vm10 }
0x1171   : > { %v6102_v55 = vmul.f32 0.5, %v6101_v52  ;;  %v6020_v8 = vpop.xlane.xlu2 %6019  ;;  %v6024_v7 = vpop.xlane.xlu1 %6023  ;;  %v6048_v26 = vmul.f32 %v6028_v29, %v11763_v39  ;;  %v11284_v52 = vld [vmem:[%s11770_s22] ss:$0 sm:$0xff]  ;;  %v6229_v61 = vmul.f32 %v6078_v15, %v11076_v42  ;;  %vm6115_vm2 = vweird.f32 %v11202_v40 }
0x1172   : > { %v6082_v33 = vmul.f32 0.5, %v6081_v56  ;;  %v6044_v22 = vmul.f32 %v6020_v8, %v11763_v39  ;;  %v6046_v44 = vmul.f32 %v6024_v7, %v11763_v39  ;;  %v6123_v13 = vsub.f32 1.5, %v6122_v12  ;;  %v11317_v42 = vld [vmem:[%s11773_s15] ss:$0 sm:$0xff] }
0x1173   : > { %v6103_v45 = vsub.f32 1.5, %v6102_v55  ;;  %v11300_v59 = vadd.f32 1e-06, %v6048_v26  ;;  %vm6155_vm5 = vweird.f32 %v11209_v35  ;;  %vm6135_vm6 = vweird.f32 %v11218_v46 }
0x1174   : > { %v11224_v6 = vpop.eup %7829  ;;  %v6083_v63 = vsub.f32 1.5, %v6082_v33  ;;  %v11238_v4 = vadd.f32 1e-06, %v6044_v22  ;;  %v11247_v25 = vadd.f32 1e-06, %v6046_v44  ;;  %v6124_v0 = vmul.f32 %v11197_v16, %v6123_v13 }
0x1175   : > { %v6110_v3 = vmul.f32 %v11224_v6, %v11202_v40  ;;  %v11234_v34 = vpop.eup %7831  ;;  %v6104_v28 = vmul.f32 %v11200_v49, %v6103_v45  ;;  %vm6116_vm1 = vweird.f32 %v11224_v6 }
0x1176   : > { %v11249_v27 = vpop.eup %7833  ;;  %7835 = vrsqrt.f32 %v11238_v4  ;;  %v6084_v2 = vmul.f32 %v11204_v18, %v6083_v63  ;;  %v6150_v60 = vmul.f32 %v11234_v34, %v11209_v35  ;;  %vm6117_vm3 = vmor %vm6115_vm2, %vm6116_vm1  ;;  %vm6145_vm8 = vweird.f32 %v11238_v4 }
0x1177   : > { %v6111_v32 = vmul.f32 %v11224_v6, %v6110_v3  ;;  %v6130_v58 = vmul.f32 %v11249_v27, %v11218_v46  ;;  %v6108_v47 = vsel %vm11275_vm12, %v11200_v49, %v6104_v28  ;;  %7837 = vrsqrt.f32 %v11247_v25 }
0x1178   : > { %v6088_v49 = vsel %vm11293_vm15, %v11204_v18, %v6084_v2  ;;  %v6151_v8 = vmul.f32 %v11234_v34, %v6150_v60  ;;  %v6232_v7 = vmul.f32 %v6108_v47, %v11089_v23  ;;  %7839 = vrsqrt.f32 %v11300_v59 }
0x1179   : > { %v6112_v54 = vmul.f32 0.5, %v6111_v32  ;;  %v6131_v56 = vmul.f32 %v11249_v27, %v6130_v58  ;;  %v6250_v18 = vmul.f32 %v11284_v52, %v6231_v31  ;;  %v6230_v45 = vmul.f32 %v6088_v49, %v11092_v37  ;;  %v6026_v19 = vpop.xlane.xlu2 %6025  ;;  %v6030_v58 = vpop.xlane.xlu1 %6029 }
0x117a   : > { %v6152_v44 = vmul.f32 0.5, %v6151_v8  ;;  %v6248_v3 = vmul.f32 %v11284_v52, %v6229_v61  ;;  %v6251_v37 = vmul.f32 %v11284_v52, %v6232_v7  ;;  %vm6136_vm7 = vweird.f32 %v11249_v27 }
0x117b   : > { %v6113_v53 = vsub.f32 1.5, %v6112_v54  ;;  %v6132_v22 = vmul.f32 0.5, %v6131_v56  ;;  %v6269_v48 = vadd.f32 %v11317_v42, %v6250_v18  ;;  %v6249_v32 = vmul.f32 %v11284_v52, %v6230_v45  ;;  %vm11378_vm13 = vmor %vm6135_vm6, %vm6136_vm7 }
0x117c   : > { %v11308_v33 = vpop.eup %7835  ;;  %v6153_v14 = vsub.f32 1.5, %v6152_v44  ;;  %vm6156_vm11 = vweird.f32 %v11234_v34  ;;  %v6267_v49 = vadd.f32 %v11317_v42, %v6248_v3  ;;  %vm6165_vm14 = vweird.f32 %v11247_v25 }
0x117d   : > { %v6114_v55 = vmul.f32 %v11224_v6, %v6113_v53  ;;  %v6140_v50 = vmul.f32 %v11308_v33, %v11238_v4  ;;  %v11324_v57 = vpop.eup %7837  ;;  %v6133_v24 = vsub.f32 1.5, %v6132_v22  ;;  %vm6146_vm9 = vweird.f32 %v11308_v33  ;;  %vm11397_vm0 = vmor %vm6155_vm5, %vm6156_vm11  ;;  %v6034_v22 = vpop.xlane.xlu0 %6033 }
0x117e   : > { %v6160_v29 = vmul.f32 %v11324_v57, %v11247_v25  ;;  %v11345_v28 = vpop.eup %7839  ;;  %v6268_v13 = vadd.f32 %v11317_v42, %v6249_v32  ;;  %vm6166_vm10 = vweird.f32 %v11324_v57  ;;  %v6154_v5 = vmul.f32 %v11234_v34, %v6153_v14  ;;  %vm11368_vm12 = vmor %vm6145_vm8, %vm6146_vm9 }
0x117f   : > { %v6118_v23 = vsel %vm6117_vm3, %v11224_v6, %v6114_v55  ;;  %v6141_v63 = vmul.f32 %v11308_v33, %v6140_v50  ;;  %v6128_v6 = vsel %vm11330_vm4, %v11197_v16, %v6124_v0  ;;  %v6180_v1 = vmul.f32 %v11345_v28, %v11300_v59  ;;  %vm6167_vm15 = vmor %vm6165_vm14, %vm6166_vm10 }
0x1180   : > { %v6233_v12 = vmul.f32 %v6118_v23, %v11103_v38  ;;  %v6161_v16 = vmul.f32 %v11324_v57, %v6160_v29  ;;  %v6234_v26 = vmul.f32 %v6128_v6, %v11086_v36  ;;  %v6270_v38 = vadd.f32 %v11317_v42, %v6251_v37 }
0x1181   : > { %v6142_v62 = vmul.f32 0.5, %v6141_v63  ;;  %v6047_v36 = vmul.f32 %v6026_v19, %v11763_v39  ;;  %v6134_v31 = vmul.f32 %v11249_v27, %v6133_v24  ;;  %v6181_v61 = vmul.f32 %v11345_v28, %v6180_v1  ;;  %v6032_v40 = vpop.xlane.xlu2 %6031 }
0x1182   : > { %v6162_v54 = vmul.f32 0.5, %v6161_v16  ;;  %v6252_v60 = vmul.f32 %v11284_v52, %v6233_v12  ;;  %v6253_v53 = vmul.f32 %v11284_v52, %v6234_v26  ;;  %v8339_v7 = vmov 16.0  }
0x1183   : > { %v6143_v2 = vsub.f32 1.5, %v6142_v62  ;;  %7841 = vrcp.f32 %v8339_v7  ;;  %v6182_v18 = vmul.f32 0.5, %v6181_v61  ;;  %v11388_v50 = vadd.f32 1e-06, %v6047_v36 }
0x1184   : > { %v6163_v47 = vsub.f32 1.5, %v6162_v54  ;;  %v6271_v0 = vadd.f32 %v11317_v42, %v6252_v60  ;;  %v6290_v46 = vadd.f32 %v6270_v38, %v6269_v48  ;;  %v6283_v45 = vadd.f32 %v6268_v13, %v6267_v49 }
0x1185   : > { %v6144_v15 = vmul.f32 %v11308_v33, %v6143_v2  ;;  %v6138_v23 = vsel %vm11378_vm13, %v11249_v27, %v6134_v31  ;;  %v6272_v44 = vadd.f32 %v11317_v42, %v6253_v53  ;;  %v6158_v63 = vsel %vm11397_vm0, %v11234_v34, %v6154_v5 }
0x1186   : > { %v6164_v8 = vmul.f32 %v11324_v57, %v6163_v47  ;;  %7843 = vrsqrt.f32 %v11388_v50  ;;  %v6183_v3 = vsub.f32 1.5, %v6182_v18  ;;  %v6049_v37 = vmul.f32 %v6030_v58, %v11763_v39 }
0x1187   : > { %v6148_v4 = vsel %vm11368_vm12, %v11308_v33, %v6144_v15  ;;  %v6297_v6 = vadd.f32 %v6272_v44, %v6271_v0  ;;  %v6051_v29 = vmul.f32 %v6034_v22, %v11763_v39  ;;  %v6050_v19 = vmul.f32 %v6032_v40, %v11763_v39 }
0x1188   : > { %v6168_v33 = vsel %vm6167_vm15, %v11324_v57, %v6164_v8  ;;  %v6236_v27 = vmul.f32 %v6148_v4, %v11120_v17  ;;  %v6235_v57 = vmul.f32 %v6138_v23, %v11110_v43  ;;  %v6291_v48 = vrot.slane %v6290_v46, 4  ;;  %v6036_v17 = vpop.xlane.xlu1 %6035 }
0x1189   : > { %v6238_v35 = vmul.f32 %v6168_v33, %v11128_v30  ;;  %v6284_v12 = vrot.slane %v6283_v45, 4  ;;  %v6237_v34 = vmul.f32 %v6158_v63, %v11107_v20  ;;  %v11414_v62 = vadd.f32 1e-06, %v6049_v37  ;;  %v11416_v32 = vpop.eup %7841 }
0x118a   : > { %v6255_v30 = vmul.f32 %v11284_v52, %v6236_v27  ;;  %vm6185_vm1 = vweird.f32 %v11300_v59  ;;  %v11420_v24 = vadd.f32 1e-06, %v6051_v29  ;;  %v11422_v43 = vadd.f32 1e-06, %v6050_v19 }
0x118b   : > { %v6257_v16 = vmul.f32 %v11284_v52, %v6238_v35  ;;  %v6184_v26 = vmul.f32 %v11345_v28, %v6183_v3  ;;  %vm6186_vm2 = vweird.f32 %v11345_v28  ;;  %7845 = vrsqrt.f32 %v11414_v62 }
0x118c   : > { %v7844_v20 = vpop.eup %7843  ;;  %v6298_v14 = vrot.slane %v6297_v6, 4  ;;  %v6254_v2 = vmul.f32 %v11284_v52, %v6235_v57  ;;  %7847 = vrsqrt.f32 %v11420_v24  ;;  %v6052_v38 = vmul.f32 %v6036_v17, %v11763_v39  ;;  %vm11439_vm3 = vmor %vm6185_vm1, %vm6186_vm2 }
0x118d   : > { %v11432_v54 = vmul.f32 16.0, %v11416_v32  ;;  %v6256_v58 = vmul.f32 %v11284_v52, %v6237_v34  ;;  %v6170_v60 = vmul.f32 %v7844_v20, %v11388_v50  ;;  %v6274_v15 = vadd.f32 %v11317_v42, %v6255_v30 }
0x118e   : > { %7849 = vrsqrt.f32 %v11422_v43  ;;  %v11444_v36 = vadd.f32 %v6291_v48, %v6290_v46  ;;  %v6276_v39 = vadd.f32 %v11317_v42, %v6257_v16  ;;  %v6188_v13 = vsel %vm11439_vm3, %v11345_v28, %v6184_v26 }
0x118f   : > { %v6171_v31 = vmul.f32 %v7844_v20, %v6170_v60  ;;  %v11450_v47 = vadd.f32 %v6284_v12, %v6283_v45  ;;  %v11452_v53 = vadd.f32 %v6298_v14, %v6297_v6  ;;  %v6273_v59 = vadd.f32 %v11317_v42, %v6254_v2 }
0x1190   : > { %v11455_v5 = vadd.f32 1e-06, %v6052_v38  ;;  %v6341_v61 = vsub.f32 1.0, %v11432_v54  ;;  %v6275_v49 = vadd.f32 %v11317_v42, %v6256_v58  ;;  %v6240_v7 = vmul.f32 %v6188_v13, %v11125_v21 }
0x1191   : > { %v7846_v56 = vpop.eup %7845  ;;  %v6172_v55 = vmul.f32 0.5, %v6171_v31  ;;  %v6304_v8 = vadd.f32 %v6274_v15, %v6273_v59  ;;  %vm6176_vm4 = vweird.f32 %v7844_v20  ;;  %v6293_v23 = vrot.slane %v11444_v36, 2 }
0x1192   : > { %v7848_v4 = vpop.eup %7847  ;;  %v6190_v28 = vmul.f32 %v7846_v56, %v11414_v62  ;;  %7851 = vrsqrt.f32 %v11455_v5  ;;  %v6311_v0 = vadd.f32 %v6276_v39, %v6275_v49  ;;  %v6286_v25 = vrot.slane %v11450_v47, 2 }
0x1193   : > { %v6173_v18 = vsub.f32 1.5, %v6172_v55  ;;  %v6210_v46 = vmul.f32 %v7848_v4, %v11420_v24  ;;  %v6300_v33 = vrot.slane %v11452_v53, 2  ;;  %vm6175_vm5 = vweird.f32 %v11388_v50 }
0x1194   : > { %v7850_v45 = vpop.eup %7849  ;;  %v6191_v22 = vmul.f32 %v7846_v56, %v6190_v28  ;;  %v6305_v63 = vrot.slane %v6304_v8, 4  ;;  %v6259_v27 = vmul.f32 %v11284_v52, %v6240_v7  ;;  %vm6177_vm6 = vmor %vm6175_vm5, %vm6176_vm4  ;;  %vm6195_vm7 = vweird.f32 %v11414_v62 }
0x1195   : > { %v6174_v40 = vmul.f32 %v7844_v20, %v6173_v18  ;;  %v6211_v21 = vmul.f32 %v7848_v4, %v6210_v46  ;;  %v6200_v44 = vmul.f32 %v7850_v45, %v11422_v43  ;;  %v6312_v3 = vrot.slane %v6311_v0, 4 }
0x1196   : > { %v6192_v35 = vmul.f32 0.5, %v6191_v22  ;;  %vm6196_vm8 = vweird.f32 %v7846_v56  ;;  %vm6215_vm9 = vweird.f32 %v11420_v24  ;;  %vm6216_vm10 = vweird.f32 %v7848_v4 }
0x1197   : > { %v6178_v37 = vsel %vm6177_vm6, %v7844_v20, %v6174_v40  ;;  %v6212_v6 = vmul.f32 0.5, %v6211_v21  ;;  %v6201_v57 = vmul.f32 %v7850_v45, %v6200_v44  ;;  %v6306_v17 = vadd.f32 %v6305_v63, %v6304_v8  ;;  %vm6197_vm11 = vmor %vm6195_vm7, %vm6196_vm8 }
0x1198   : > { %v7852_v29 = vpop.eup %7851  ;;  %v6239_v19 = vmul.f32 %v6178_v37, %v11138_v51  ;;  %v6193_v48 = vsub.f32 1.5, %v6192_v35  ;;  %v6278_v30 = vadd.f32 %v11317_v42, %v6259_v27  ;;  %vm6206_vm12 = vweird.f32 %v7850_v45  ;;  %vm6217_vm13 = vmor %vm6215_vm9, %vm6216_vm10 }
0x1199   : > { %v6213_v50 = vsub.f32 1.5, %v6212_v6  ;;  %v6202_v12 = vmul.f32 0.5, %v6201_v57  ;;  %v6220_v34 = vmul.f32 %v7852_v29, %v11455_v5  ;;  %v6313_v2 = vadd.f32 %v6312_v3, %v6311_v0 }
0x119a   : > { %v6258_v16 = vmul.f32 %v11284_v52, %v6239_v19  ;;  %v6194_v26 = vmul.f32 %v7846_v56, %v6193_v48  ;;  %vm6205_vm14 = vweird.f32 %v11422_v43  ;;  %v6294_v39 = vadd.f32 %v6293_v23, %v11444_v36 }
0x119b   : > { %v6214_v20 = vmul.f32 %v7848_v4, %v6213_v50  ;;  %v6203_v51 = vsub.f32 1.5, %v6202_v12  ;;  %v6221_v14 = vmul.f32 %v7852_v29, %v6220_v34  ;;  %v6287_v13 = vadd.f32 %v6286_v25, %v11450_v47  ;;  %vm6207_vm15 = vmor %vm6205_vm14, %vm6206_vm12 }
0x119c   : > { %v6277_v38 = vadd.f32 %v11317_v42, %v6258_v16  ;;  %v6198_v58 = vsel %vm6197_vm11, %v7846_v56, %v6194_v26  ;;  %v6307_v31 = vrot.slane %v6306_v17, 2  ;;  %vm6226_vm0 = vweird.f32 %v7852_v29 }
0x119d   : > { %v6241_v60 = vmul.f32 %v6198_v58, %v11146_v10  ;;  %v6218_v15 = vsel %vm6217_vm13, %v7848_v4, %v6214_v20  ;;  %v6204_v1 = vmul.f32 %v7850_v45, %v6203_v51  ;;  %v6222_v62 = vmul.f32 0.5, %v6221_v14 }
0x119e   : > { %v6318_v59 = vadd.f32 %v6278_v30, %v6277_v38  ;;  %v6243_v56 = vmul.f32 %v6218_v15, %v11143_v11  ;;  %v6342_v10 = vmul.f32 %v11416_v32, %v6341_v61  ;;  %v6301_v47 = vadd.f32 %v6300_v33, %v11452_v53 }
0x119f   : > { %v6208_v49 = vsel %vm6207_vm15, %v7850_v45, %v6204_v1  ;;  %v6223_v24 = vsub.f32 1.5, %v6222_v62  ;;  %v6260_v55 = vmul.f32 %v11284_v52, %v6241_v60  ;;  %v6314_v4 = vrot.slane %v6313_v2, 2 }
0x11a0   : > { %v6319_v43 = vrot.slane %v6318_v59, 4  ;;  %v6242_v36 = vmul.f32 %v6208_v49, %v11156_v9  ;;  %vm6225_vm1 = vweird.f32 %v11455_v5  ;;  %v6308_v7 = vadd.f32 %v6307_v31, %v6306_v17 }
0x11a1   : > { %v6224_v8 = vmul.f32 %v7852_v29, %v6223_v24  ;;  %vm6227_vm2 = vmor %vm6225_vm1, %vm6226_vm0  ;;  %v6295_v0 = vrot.slane %v6294_v39, 1  ;;  %v6288_v54 = vrot.slane %v6287_v13, 1  ;;  %v6262_v61 = vmul.f32 %v11284_v52, %v6243_v56 }
0x11a2   : > { %v6320_v11 = vadd.f32 %v6319_v43, %v6318_v59  ;;  %v6261_v28 = vmul.f32 %v11284_v52, %v6242_v36  ;;  %v6279_v45 = vadd.f32 %v11317_v42, %v6260_v55  ;;  %v6343_v23 = vadd.f32 %v11416_v32, %v6342_v10 }
0x11a3   : > { %v6228_v18 = vsel %vm6227_vm2, %v7852_v29, %v6224_v8  ;;  %vm6344_vm3 = vweird.f32 %v11416_v32  ;;  %v6302_v5 = vrot.slane %v6301_v47, 1  ;;  %v6315_v25 = vadd.f32 %v6314_v4, %v6313_v2 }
0x11a4   : > { %v6321_v46 = vrot.slane %v6320_v11, 2  ;;  %v6280_v9 = vadd.f32 %v11317_v42, %v6261_v28  ;;  %v6244_v53 = vmul.f32 %v6228_v18, %v11160_v41  ;;  %v6309_v33 = vrot.slane %v6308_v7, 1 }
0x11a5   : > { %v6296_v44 = vadd.f32 %v6295_v0, %v6294_v39  ;;  %v6289_v63 = vadd.f32 %v6288_v54, %v6287_v13  ;;  %v6281_v27 = vadd.f32 %v11317_v42, %v6262_v61  ;;  %v6345_v41 = vsel %vm6344_vm3, %v11416_v32, %v6343_v23 }
0x11a6   : > { %v6322_v22 = vadd.f32 %v6321_v46, %v6320_v11  ;;  %v6325_v40 = vadd.f32 %v6280_v9, %v6279_v45  ;;  %v6263_v21 = vmul.f32 %v11284_v52, %v6244_v53  ;;  %v6303_v37 = vadd.f32 %v6302_v5, %v6301_v47 }
0x11a7   : > { %v6316_v6 = vrot.slane %v6315_v25, 1  ;;  %v6310_v57 = vadd.f32 %v6309_v33, %v6308_v7  ;;  %v6347_v50 = vmul.f32 %v6345_v41, %v6296_v44  ;;  %v6346_v12 = vmul.f32 %v6345_v41, %v6289_v63 }
0x11a8   : > { %v6326_v35 = vrot.slane %v6325_v40, 4  ;;  %v6282_v3 = vadd.f32 %v11317_v42, %v6263_v21  ;;  %v6323_v29 = vrot.slane %v6322_v22, 1  ;;  %vm6362_vm4 = vcmask 1041409  }
0x11a9   : > { %v6348_v52 = vmul.f32 %v6345_v41, %v6303_v37  ;;  %vm6364_vm5 = vcmask 1042434   ;;  %v6317_v30 = vadd.f32 %v6316_v6, %v6315_v25  ;;  %v6349_v16 = vmul.f32 %v6345_v41, %v6310_v57 }
0x11aa   : > { %v6327_v19 = vadd.f32 %v6326_v35, %v6325_v40  ;;  %v6332_v48 = vadd.f32 %v6282_v3, %v6281_v27  ;;  %v6324_v26 = vadd.f32 %v6323_v29, %v6322_v22  ;;  %vm6366_vm6 = vcmask 1043459  }
0x11ab   : > { %v6363_v32 = vsel %vm6362_vm4, %v6347_v50, %v6346_v12  ;;  %v6350_v38 = vmul.f32 %v6345_v41, %v6317_v30  ;;  %vm6368_vm7 = vcmask 1044484   ;;  %vm6370_vm8 = vcmask 1045509  }
0x11ac   : > { %v6328_v34 = vrot.slane %v6327_v19, 2  ;;  %v6333_v17 = vrot.slane %v6332_v48, 4  ;;  %v6365_v2 = vsel %vm6364_vm5, %v6348_v52, %v6363_v32  ;;  %v6351_v60 = vmul.f32 %v6345_v41, %v6324_v26 }
0x11ad   : > { %v6367_v58 = vsel %vm6366_vm6, %v6349_v16, %v6365_v2  ;;  %vm6372_vm9 = vcmask 1046534   ;;  %vm6374_vm10 = vcmask 1047559  }
0x11ae   : > { %v6329_v20 = vadd.f32 %v6328_v34, %v6327_v19  ;;  %v6334_v42 = vadd.f32 %v6333_v17, %v6332_v48  ;;  %v6369_v13 = vsel %vm6368_vm7, %v6350_v38, %v6367_v58 }
0x11af   : > { %v6371_v31 = vsel %vm6370_vm8, %v6351_v60, %v6369_v13 }
0x11b0   : > { %v6330_v51 = vrot.slane %v6329_v20, 1  ;;  %v6335_v14 = vrot.slane %v6334_v42, 2 }
0x11b2   : > { %v6331_v15 = vadd.f32 %v6330_v51, %v6329_v20  ;;  %v6336_v1 = vadd.f32 %v6335_v14, %v6334_v42 }
0x11b4   : > { %v6352_v62 = vmul.f32 %v6345_v41, %v6331_v15  ;;  %v6337_v39 = vrot.slane %v6336_v1, 1 }
0x11b6   : > { %v6338_v59 = vadd.f32 %v6337_v39, %v6336_v1  ;;  %v6373_v56 = vsel %vm6372_vm9, %v6352_v62, %v6371_v31 }
0x11b8   : > { %v6353_v49 = vmul.f32 %v6345_v41, %v6338_v59 }
0x11ba   : > { %v6375_v24 = vsel %vm6374_vm10, %v6353_v49, %v6373_v56 }
0x11bb   : > { %6377 = vst [vmem:[%s8775_s24] sm:$0xff] %v6375_v24 }
0x11bc PF: > { %s11784_s16 = sld [smem:[#allocation35_spill]]  ;;  %s6391_s17 = sshll.u32 %s8775_s24, 4  ;;  %s6392_s17 = int_to_ptr.vmem [resolvable:$true] %s6391_s17 }
0x11bd   : > { %s11785_s12 = sld [smem:[#allocation77_spill]]  ;;  %s6379_s10 = scalar_lea.sflag [#allocation5], %s8701_s9 }
0x11c2   : > { %s7109_s8 = sshll.u32 %s11784_s16, 3 }
0x11c3   : > { %s6389_s18 = scalar_lea.hbm %s11785_s12, %s7109_s8  ;;  %s8203_s14 = scalar_lea.hbm %s11785_s12, 16 }
0x11c4   : > { %s6393_s7 = sshll.u32 %s6389_s18, 4  ;;  %s6394_s7 = int_to_ptr.hbm [resolvable:$true] %s6393_s7 }
0x11c5   : > { %s8197_s2 = sshra.s32 %s6394_s7, 4  ;;  %s8198_s2 = int_to_ptr.hbm [resolvable:$true] %s8197_s2 }
0x11c6   : > { %s8199_s11 = scalar_lea.hbm %s8198_s2, 8  ;;  %p8204_p10 = scmp.lt.s32.totalorder %s8198_s2, %s11785_s12 }
0x11c7   : > { %p8200_p3 = scmp.ne.s32.totalorder %s8198_s2, %s8199_s11  ;;  %p8205_p12 = scmp.lt.s32.totalorder %s8203_s14, %s8199_s11 }
0x11c9   : > { %p8201_p4 = pnand %p8200_p3, %p8633_p9  ;;  %p8206_p0 = por %p8205_p12, %p8204_p10 }
0x11cb   : > { %p8202_p7 = pneg %p8201_p4 }
0x11cd   : > { %p8207_p1 = pnand %p8206_p0, %p8202_p7 }
0x11cf   : > { %8210 = shalt.err (!%p8207_p1)
}
0x11d0   : > { %7261 = dma.vmem_to_hbm [thread:$0]  (%p8633_p9), %s6392_s17, 128, %s6394_s7, %s6379_s10  }
0x11d1 PF: > { %s11786_s9 = sld [smem:[#allocation31_spill]]  ;;  %p7307_p2 = scmp.ge.s32.totalorder %s8325_s1, 2 }
0x11d3   : > { %p7299_p6 = pnand %p7307_p2, %p8645_p8 }
0x11d5   : > { %p7300_p11 = pneg %p7299_p6 }
0x11d7   : > { %s6405_s21 = sand.u32 1, %s11786_s9  }
0x11d8   : > { %s6406_s27 = scalar_lea.sflag [#allocation5], %s6405_s21 }
0x11d9   : > { %8280 = dma.done.wait (%p7300_p11), %s6406_s27, 128  }
0x11da   : > { %8282 = vsyncadd (%p7300_p11), %s6406_s27, 4294967168  ;;  %s46_s1 = sadd.s32 1, %s8325_s1   ;;  %s11788_s24 = sld [smem:[#allocation29_spill]] }
0x11db   : > { %p43_p5 = scmp.ge.s32.totalorder %s46_s1, 6   ;;  %s11789_s25 = sld [smem:[#allocation30_spill]] }
0x11dc   : > { %s11790_s26 = sld [smem:[#allocation42_spill]] }
0x11dd   : > { %s11791_s27 = sld [smem:[#allocation32_spill]] }
0x11de   : > { %s11792_s28 = sld [smem:[#allocation33_spill]] }
0x11df   : > { %s11793_s29 = sld [smem:[#allocation43_spill]]  ;;  %45 = sbr.rel (!%p43_p5) target bundleno = 37 (0x25), region = 257 }
0x11e0   : > { %s11794_s0 = sld [smem:[#allocation36_spill]] }
0x11e1   : > { %s11795_s30 = sld [smem:[#allocation37_spill]] }
0x11e2   : > { %s11796_s18 = sld [smem:[#allocation40_spill]] }
0x11e3   : > { %s11797_s19 = sld [smem:[#allocation41_spill]] }
0x11e4   :  { %6412 = vsyncpa [#allocation4], 1 }
0x11e5   :  { %6414 = vsyncpa [#allocation4 + $0x1], 1 }
0x11e6   :  { %6415 = vsyncpa [#allocation7], 1 }
0x11e7   :  { %6416 = vsyncpa [#allocation10], 1 }
0x11e8   :  { %6418 = vsyncpa [#allocation10 + $0x1], 1 }
0x11e9   :  { %6419 = vsyncpa [#allocation13], 1 }
0x11ea   :  { %6421 = vsyncpa [#allocation13 + $0x1], 1 }
0x11eb   :  { %6422 = vsyncpa [#allocation16], 1 }
0x11ec   :  { %6424 = vsyncpa [#allocation16 + $0x1], 1 }
0x11ed   :  { %6425 = vsyncpa [#allocation19], 1 }
0x11ee   :  { %6427 = vsyncpa [#allocation19 + $0x1], 1 }
0x11ef   :  { %6428 = vsyncpa [#allocation5], 1 }
0x11f0   :  { %6430 = vsyncpa [#allocation5 + $0x1], 1 }

</bundles_post_ra>
